<compile_context>
chip_gen: v5e
topology: v5e:2x2
jax: 0.10.0
libtpu: 0.0.40
codegen_flags: <defaults>
</compile_context>

<pallas_src>
import functools

import jax
import jax.numpy as jnp
from jax.experimental import pallas as pl
from jax.experimental.pallas import tpu as pltpu

LANE = 128


def _round_up(n, m):
    return ((n + m - 1) // m) * m


def _choose_tm(M, max_tm=512):
    # Single tile for small M; 512-row tiles (pipelined / double-buffered)
    # otherwise. 512 rows x K<=800 in bf16 stays well under scoped VMEM on
    # v5e/v6e/v7x while amortizing the per-grid-step overhead.
    if M <= max_tm:
        return _round_up(M, 8)
    return max_tm


# ----------------------------------------------------------------------------
# Pallas kernel 1: fused  out = [relu](x @ w + b)   (M tiled, lane-dense N)
# ----------------------------------------------------------------------------
def matmul_bias_kernel(x_ref, w_ref, b_ref, o_ref, *, relu: bool):
    acc = jnp.dot(x_ref[...], w_ref[...], preferred_element_type=jnp.float32)
    acc = acc + b_ref[...]                       # (1, N) broadcasts over rows
    if relu:
        acc = jnp.maximum(acc, 0.0)
    o_ref[...] = acc.astype(o_ref.dtype)


def pallas_matmul_bias(x, w, b, *, relu: bool, out_dtype=jnp.bfloat16):
    """x:(M,K) @ w:(K,N) + b:(1,N), optional ReLU. N must be a multiple of 128."""
    M, K = x.shape
    K2, N = w.shape
    assert K == K2 and b.shape == (1, N) and N % LANE == 0
    TM = _choose_tm(M)
    Mp = _round_up(M, TM)
    if Mp != M:
        x = jnp.pad(x, ((0, Mp - M), (0, 0)))
    out = pl.pallas_call(
        functools.partial(matmul_bias_kernel, relu=relu),
        out_shape=jax.ShapeDtypeStruct((Mp, N), out_dtype),
        grid=(Mp // TM,),
        in_specs=[
            pl.BlockSpec((TM, K), lambda i: (i, 0)),
            pl.BlockSpec((K, N), lambda i: (0, 0)),
            pl.BlockSpec((1, N), lambda i: (0, 0)),
        ],
        out_specs=pl.BlockSpec((TM, N), lambda i: (i, 0)),
        compiler_params=pltpu.CompilerParams(dimension_semantics=("parallel",)),
    )(x, w, b)
    return out[:M] if Mp != M else out


# ----------------------------------------------------------------------------
# Pallas kernel 2: direct conv (valid, stride 1) + bias + ReLU, NHWC in VMEM.
# Accumulates K*K shifted taps  (TB*OH*OW, Cin) @ (Cin, Cout_pad)  in f32.
# ----------------------------------------------------------------------------
def conv_direct_kernel(x_ref, w_ref, b_ref, o_ref, *, K: int, OH: int, OW: int):
    TB, H, W, Cin = x_ref.shape
    N = o_ref.shape[-1]
    xt = x_ref[...]                                        # (TB,H,W,Cin) bf16
    acc = jnp.zeros((TB * OH * OW, N), jnp.float32)
    for kh in range(K):                                    # static unroll (25 taps)
        for kw in range(K):
            patch = xt[:, kh:kh + OH, kw:kw + OW, :]
            patch = patch.reshape(TB * OH * OW, Cin)
            acc = acc + jnp.dot(patch, w_ref[kh * K + kw],
                                preferred_element_type=jnp.float32)
    acc = jnp.maximum(acc + b_ref[...], 0.0)
    o_ref[...] = acc.astype(o_ref.dtype)


def conv2d_direct_relu(x, w_taps, b, *, K=5):
    """x:(B,H,W,Cin) NHWC bf16, w_taps:(K*K,Cin,Cout_pad), b:(1,Cout_pad) f32."""
    B, H, W, Cin = x.shape
    KK, Cin2, N = w_taps.shape
    assert KK == K * K and Cin2 == Cin and N % LANE == 0
    OH, OW = H - K + 1, W - K + 1
    TB = min(B, 8)
    Bp = _round_up(B, TB)
    if Bp != B:
        x = jnp.pad(x, ((0, Bp - B), (0, 0), (0, 0), (0, 0)))
    out = pl.pallas_call(
        functools.partial(conv_direct_kernel, K=K, OH=OH, OW=OW),
        out_shape=jax.ShapeDtypeStruct((Bp * OH * OW, N), jnp.bfloat16),
        grid=(Bp // TB,),
        in_specs=[
            pl.BlockSpec((TB, H, W, Cin), lambda i: (i, 0, 0, 0)),
            pl.BlockSpec((KK, Cin, N), lambda i: (0, 0, 0)),
            pl.BlockSpec((1, N), lambda i: (0, 0)),
        ],
        out_specs=pl.BlockSpec((TB * OH * OW, N), lambda i: (i, 0)),
        compiler_params=pltpu.CompilerParams(dimension_semantics=("parallel",)),
    )(x, w_taps, b)
    return out[:B * OH * OW].reshape(B, OH, OW, N)


# ----------------------------------------------------------------------------
# Pallas kernel 3: fused FC(+ReLU) + head in one call.
# ----------------------------------------------------------------------------
def fc_head_kernel(x_ref, w1_ref, b1_ref, w2_ref, b2_ref, o_ref):
    h = jnp.dot(x_ref[...], w1_ref[...], preferred_element_type=jnp.float32)
    h = jnp.maximum(h + b1_ref[...], 0.0)
    out = jnp.dot(h.astype(jnp.bfloat16), w2_ref[...],
                  preferred_element_type=jnp.float32)
    o_ref[...] = (out + b2_ref[...]).astype(o_ref.dtype)


def pallas_fc_head(x, w1, b1, w2, b2):
    M, K = x.shape
    K1, Hh = w1.shape
    Hh2, N = w2.shape
    assert K == K1 and Hh == Hh2 and b1.shape == (1, Hh) and b2.shape == (1, N)
    TM = _choose_tm(M)
    Mp = _round_up(M, TM)
    if Mp != M:
        x = jnp.pad(x, ((0, Mp - M), (0, 0)))
    out = pl.pallas_call(
        fc_head_kernel,
        out_shape=jax.ShapeDtypeStruct((Mp, N), jnp.float32),
        grid=(Mp // TM,),
        in_specs=[
            pl.BlockSpec((TM, K), lambda i: (i, 0)),
            pl.BlockSpec((K, Hh), lambda i: (0, 0)),
            pl.BlockSpec((1, Hh), lambda i: (0, 0)),
            pl.BlockSpec((Hh, N), lambda i: (0, 0)),
            pl.BlockSpec((1, N), lambda i: (0, 0)),
        ],
        out_specs=pl.BlockSpec((TM, N), lambda i: (i, 0)),
        compiler_params=pltpu.CompilerParams(dimension_semantics=("parallel",)),
    )(x, w1, b1, w2, b2)
    return out[:M] if Mp != M else out


# ----------------------------------------------------------------------------
# Glue: im2col (conv1 only), maxpool, parameter construction / preparation
# ----------------------------------------------------------------------------
def im2col_nhwc(x, k):
    """x:(B,H,W,C) NHWC -> patches (B*OH*OW, k*k*C), column order (kh,kw,c)."""
    B, H, W, C = x.shape
    OH, OW = H - k + 1, W - k + 1
    cols = [x[:, kh:kh + OH, kw:kw + OW, :] for kh in range(k) for kw in range(k)]
    p = jnp.concatenate(cols, axis=-1)             # (B, OH, OW, k*k*C)
    return p.reshape(B * OH * OW, k * k * C), (OH, OW)


def maxpool2x2_nhwc(x):
    # TODO(synk): 2x2 max-pool kept as tiny XLA reshape+max glue; the odd
    # 4-D NHWC shapes make a dedicated Pallas kernel not worth the relayout.
    B, H, W, C = x.shape
    return x.reshape(B, H // 2, 2, W // 2, 2, C).max(axis=(2, 4))


def init_params(key, input_channels=1, classes=10, fc_neurons=500):
    """Deterministic PyTorch-default-style uniform(-1/sqrt(fan_in), +) init (torch layouts)."""
    def uniform(k, shape, fan_in):
        bound = 1.0 / jnp.sqrt(jnp.float32(fan_in))
        return jax.random.uniform(k, shape, jnp.float32, -bound, bound)

    ks = jax.random.split(key, 8)
    return {
        "conv1_w": uniform(ks[0], (20, input_channels, 5, 5), input_channels * 25),
        "conv1_b": uniform(ks[1], (20,), input_channels * 25),
        "conv2_w": uniform(ks[2], (50, 20, 5, 5), 20 * 25),
        "conv2_b": uniform(ks[3], (50,), 20 * 25),
        "fc_w":    uniform(ks[4], (fc_neurons, 800), 800),   # torch Linear (out, in)
        "fc_b":    uniform(ks[5], (fc_neurons,), 800),
        "head_w":  uniform(ks[6], (classes, fc_neurons), fc_neurons),
        "head_b":  uniform(ks[7], (classes,), fc_neurons),
    }


def prepare_params(p):
    """One-time conversion: torch layouts -> padded, bf16, matmul-ready layouts."""
    def pad_last(a, n):
        return jnp.pad(a, [(0, 0)] * (a.ndim - 1) + [(0, n - a.shape[-1])])

    cout1 = p["conv1_b"].shape[0]          # 20
    cout2 = p["conv2_b"].shape[0]          # 50
    fcn = p["fc_b"].shape[0]               # 500
    ncls = p["head_b"].shape[0]            # 10
    fcn_p = _round_up(fcn, LANE)           # 512

    # conv1: (Cout,Cin,K,K) -> rows ordered (kh,kw,cin) x cols Cout -> pad N to 128
    w1 = p["conv1_w"].transpose(2, 3, 1, 0).reshape(-1, cout1)
    # conv2: (Cout,Cin,K,K) -> per-tap (K*K, Cin, Cout) -> pad Cout to 128
    w2 = p["conv2_w"].transpose(2, 3, 1, 0).reshape(25, p["conv2_w"].shape[1], cout2)
    # FC: (500,800), input ordered NCHW (c=50,h=4,w=4) -> permute rows to NHWC
    # flatten order (h,w,c) so the NHWC flatten matches torch's .view(-1,800).
    wf = p["fc_w"].reshape(fcn, cout2, 4, 4).transpose(2, 3, 1, 0).reshape(800, fcn)
    # head: (10,500) -> (500,10) -> pad rows to 512, cols to 128 (zeros)
    wh = jnp.pad(p["head_w"].T, ((0, fcn_p - fcn), (0, _round_up(ncls, LANE) - ncls)))

    return {
        "conv1_w": pad_last(w1, LANE).astype(jnp.bfloat16),
        "conv1_b": pad_last(p["conv1_b"].reshape(1, -1), LANE).astype(jnp.float32),
        "conv2_w": pad_last(w2, LANE).astype(jnp.bfloat16),
        "conv2_b": pad_last(p["conv2_b"].reshape(1, -1), LANE).astype(jnp.float32),
        "fc_w":    pad_last(wf, fcn_p).astype(jnp.bfloat16),
        "fc_b":    pad_last(p["fc_b"].reshape(1, -1), fcn_p).astype(jnp.float32),
        "head_w":  wh.astype(jnp.bfloat16),
        "head_b":  pad_last(p["head_b"].reshape(1, -1), LANE).astype(jnp.float32),
    }


# ----------------------------------------------------------------------------
# Forward pass (dropout_on=False)
# ----------------------------------------------------------------------------
def my_cnn_model_forward(prep, x, *, conv1_cout=20, conv2_cout=50, classes=10):
    """x: (B, Cin, 28, 28) NCHW float32 -> logits (B, classes) float32."""
    B = x.shape[0]
    x = jnp.transpose(x, (0, 2, 3, 1)).astype(jnp.bfloat16)        # NHWC, bf16

    # conv1 + relu : (B,28,28,1) -> (B,24,24,20)
    patches, (OH, OW) = im2col_nhwc(x, 5)                          # (B*576, 25)
    y = pallas_matmul_bias(patches, prep["conv1_w"], prep["conv1_b"],
                           relu=True, out_dtype=jnp.bfloat16)      # (B*576, 128)
    y = y.reshape(B, OH, OW, -1)[..., :conv1_cout]
    y = maxpool2x2_nhwc(y)                                         # (B,12,12,20)

    # conv2 + relu : direct conv inside the kernel -> (B,8,8,50)
    y = conv2d_direct_relu(y, prep["conv2_w"], prep["conv2_b"], K=5)
    y = y[..., :conv2_cout]
    y = maxpool2x2_nhwc(y)                                         # (B,4,4,50)

    # flatten (NHWC order; fc_w rows pre-permuted to preserve torch numerics)
    y = y.reshape(B, -1)                                           # (B, 800)

    # fused FC + ReLU + head (dropout_on=False -> no dropout)
    logits = pallas_fc_head(y, prep["fc_w"], prep["fc_b"],
                            prep["head_w"], prep["head_b"])        # (B, 128) f32
    return logits[:, :classes]


if __name__ == "__main__":
    key = jax.random.PRNGKey(0)
    k_param, k_input = jax.random.split(key)

    params = init_params(k_param)
    prep = prepare_params(params)

    # MNIST-shaped input: the .view(-1, 800) in the reference forces 1x28x28.
    x = jax.random.normal(k_input, (2, 1, 28, 28), dtype=jnp.float32)

    fwd = jax.jit(my_cnn_model_forward)
    pred = jax.block_until_ready(fwd(prep, x))
    assert pred.shape == (2, 10)
    assert bool(jnp.all(jnp.isfinite(pred)))
    print("KERNEL_OK")
</pallas_src>

<mosaic_0001>
module attributes {stable_mosaic.version = 11 : i64} {
  func.func @matmul_bias_kernel(%arg0: i32, %arg1: memref<512x25xbf16, #tpu.memory_space<vmem>>, %arg2: memref<25x128xbf16, #tpu.memory_space<vmem>>, %arg3: memref<1x128xf32, #tpu.memory_space<vmem>>, %arg4: memref<512x128xbf16, #tpu.memory_space<vmem>>) attributes {dimension_semantics = [#tpu.dimension_semantics<parallel>], iteration_bounds = array<i64: 3>, scalar_prefetch = 0 : i64, scratch_operands = 0 : i64, tpu.core_type = #tpu.core_type<tc>, window_params = [{transform_indices = @transform_0, window_bounds = array<i64: 512, 25>}, {pipeline_mode = #tpu.pipeline_mode<synchronous>, transform_indices = @transform_1, window_bounds = array<i64: 25, 128>}, {pipeline_mode = #tpu.pipeline_mode<synchronous>, transform_indices = @transform_2, window_bounds = array<i64: 1, 128>}, {transform_indices = @transform_3, window_bounds = array<i64: 512, 128>}]} {
    %c0 = arith.constant 0 : index
    %c0_0 = arith.constant 0 : index
    %0 = vector.load %arg1[%c0, %c0_0] : memref<512x25xbf16, #tpu.memory_space<vmem>>, vector<512x25xbf16>
    %c0_1 = arith.constant 0 : index
    %c0_2 = arith.constant 0 : index
    %1 = vector.load %arg2[%c0_1, %c0_2] : memref<25x128xbf16, #tpu.memory_space<vmem>>, vector<25x128xbf16>
    %cst = arith.constant dense<0.000000e+00> : vector<512x128xf32>
    %2 = tpu.matmul %0, %1, %cst {dimension_numbers = #tpu.dot_dimension_numbers<[1], [0], [0], [1], [0, 0, 1, 1], [], []>} : vector<512x25xbf16>, vector<25x128xbf16>, vector<512x128xf32> -> vector<512x128xf32>
    %c0_3 = arith.constant 0 : index
    %c0_4 = arith.constant 0 : index
    %3 = vector.load %arg3[%c0_3, %c0_4] : memref<1x128xf32, #tpu.memory_space<vmem>>, vector<1x128xf32>
    %4 = vector.broadcast %3 : vector<1x128xf32> to vector<512x128xf32>
    %5 = arith.addf %2, %4 : vector<512x128xf32>
    %cst_5 = arith.constant 0.000000e+00 : f32
    %6 = vector.broadcast %cst_5 : f32 to vector<512x128xf32>
    %7 = arith.maximumf %5, %6 : vector<512x128xf32>
    %8 = arith.truncf %7 : vector<512x128xf32> to vector<512x128xbf16>
    %c0_6 = arith.constant 0 : index
    %c0_7 = arith.constant 0 : index
    %9 = vector.load %arg4[%c0_6, %c0_7] : memref<512x128xbf16, #tpu.memory_space<vmem>>, vector<512x128xbf16>
    tpu.vector_store %arg4[%c0_6, %c0_7], %8 {strides = array<i32>} : memref<512x128xbf16, #tpu.memory_space<vmem>>, vector<512x128xbf16>,
    return
  }
  func.func @transform_0(%arg0: i32) -> (i32, i32) {
    %c0_i32 = arith.constant 0 : i32
    %c0_i32_0 = arith.constant 0 : i32
    return %arg0, %c0_i32 : i32, i32
  }
  func.func @transform_1(%arg0: i32) -> (i32, i32) {
    %c0_i32 = arith.constant 0 : i32
    %c0_i32_0 = arith.constant 0 : i32
    %c0_i32_1 = arith.constant 0 : i32
    return %c0_i32, %c0_i32_0 : i32, i32
  }
  func.func @transform_2(%arg0: i32) -> (i32, i32) {
    %c0_i32 = arith.constant 0 : i32
    %c0_i32_0 = arith.constant 0 : i32
    %c0_i32_1 = arith.constant 0 : i32
    return %c0_i32, %c0_i32_0 : i32, i32
  }
  func.func @transform_3(%arg0: i32) -> (i32, i32) {
    %c0_i32 = arith.constant 0 : i32
    %c0_i32_0 = arith.constant 0 : i32
    return %arg0, %c0_i32 : i32, i32
  }
}

module attributes {stable_mosaic.version = 11 : i64} {
  func.func @conv_direct_kernel(%arg0: i32, %arg1: memref<2x12x12x20xbf16, #tpu.memory_space<vmem>>, %arg2: memref<25x20x128xbf16, #tpu.memory_space<vmem>>, %arg3: memref<1x128xf32, #tpu.memory_space<vmem>>, %arg4: memref<128x128xbf16, #tpu.memory_space<vmem>>) attributes {dimension_semantics = [#tpu.dimension_semantics<parallel>], iteration_bounds = array<i64: 1>, scalar_prefetch = 0 : i64, scratch_operands = 0 : i64, tpu.core_type = #tpu.core_type<tc>, window_params = [{transform_indices = @transform_0, window_bounds = array<i64: 2, 12, 12, 20>}, {pipeline_mode = #tpu.pipeline_mode<synchronous>, transform_indices = @transform_1, window_bounds = array<i64: 25, 20, 128>}, {pipeline_mode = #tpu.pipeline_mode<synchronous>, transform_indices = @transform_2, window_bounds = array<i64: 1, 128>}, {transform_indices = @transform_3, window_bounds = array<i64: 128, 128>}]} {
    %c0 = arith.constant 0 : index
    %c0_0 = arith.constant 0 : index
    %c0_1 = arith.constant 0 : index
    %c0_2 = arith.constant 0 : index
    %0 = vector.load %arg1[%c0, %c0_0, %c0_1, %c0_2] : memref<2x12x12x20xbf16, #tpu.memory_space<vmem>>, vector<2x12x12x20xbf16>
    %cst = arith.constant 0.000000e+00 : f32
    %1 = vector.broadcast %cst : f32 to vector<128x128xf32>
    %2 = vector.extract_strided_slice %0 {offsets = [0, 0, 0, 0], sizes = [2, 8, 8, 20], strides = [1, 1, 1, 1]} : vector<2x12x12x20xbf16> to vector<2x8x8x20xbf16>
    %3 = vector.shape_cast %2 : vector<2x8x8x20xbf16> to vector<128x20xbf16>
    %c0_3 = arith.constant 0 : index
    %c0_4 = arith.constant 0 : index
    %c0_5 = arith.constant 0 : index
    %4 = vector.load %arg2[%c0_3, %c0_4, %c0_5] : memref<25x20x128xbf16, #tpu.memory_space<vmem>>, vector<1x20x128xbf16>
    %5 = vector.shape_cast %4 : vector<1x20x128xbf16> to vector<20x128xbf16>
    %cst_6 = arith.constant dense<0.000000e+00> : vector<128x128xf32>
    %6 = tpu.matmul %3, %5, %cst_6 {dimension_numbers = #tpu.dot_dimension_numbers<[1], [0], [0], [1], [0, 0, 1, 1], [], []>} : vector<128x20xbf16>, vector<20x128xbf16>, vector<128x128xf32> -> vector<128x128xf32>
    %7 = arith.addf %1, %6 : vector<128x128xf32>
    %8 = vector.extract_strided_slice %0 {offsets = [0, 0, 1, 0], sizes = [2, 8, 8, 20], strides = [1, 1, 1, 1]} : vector<2x12x12x20xbf16> to vector<2x8x8x20xbf16>
    %9 = vector.shape_cast %8 : vector<2x8x8x20xbf16> to vector<128x20xbf16>
    %c1 = arith.constant 1 : index
    %c0_7 = arith.constant 0 : index
    %c0_8 = arith.constant 0 : index
    %10 = vector.load %arg2[%c1, %c0_7, %c0_8] : memref<25x20x128xbf16, #tpu.memory_space<vmem>>, vector<1x20x128xbf16>
    %11 = vector.shape_cast %10 : vector<1x20x128xbf16> to vector<20x128xbf16>
    %cst_9 = arith.constant dense<0.000000e+00> : vector<128x128xf32>
    %12 = tpu.matmul %9, %11, %cst_9 {dimension_numbers = #tpu.dot_dimension_numbers<[1], [0], [0], [1], [0, 0, 1, 1], [], []>} : vector<128x20xbf16>, vector<20x128xbf16>, vector<128x128xf32> -> vector<128x128xf32>
    %13 = arith.addf %7, %12 : vector<128x128xf32>
    %14 = vector.extract_strided_slice %0 {offsets = [0, 0, 2, 0], sizes = [2, 8, 8, 20], strides = [1, 1, 1, 1]} : vector<2x12x12x20xbf16> to vector<2x8x8x20xbf16>
    %15 = vector.shape_cast %14 : vector<2x8x8x20xbf16> to vector<128x20xbf16>
    %c2 = arith.constant 2 : index
    %c0_10 = arith.constant 0 : index
    %c0_11 = arith.constant 0 : index
    %16 = vector.load %arg2[%c2, %c0_10, %c0_11] : memref<25x20x128xbf16, #tpu.memory_space<vmem>>, vector<1x20x128xbf16>
    %17 = vector.shape_cast %16 : vector<1x20x128xbf16> to vector<20x128xbf16>
    %cst_12 = arith.constant dense<0.000000e+00> : vector<128x128xf32>
    %18 = tpu.matmul %15, %17, %cst_12 {dimension_numbers = #tpu.dot_dimension_numbers<[1], [0], [0], [1], [0, 0, 1, 1], [], []>} : vector<128x20xbf16>, vector<20x128xbf16>, vector<128x128xf32> -> vector<128x128xf32>
    %19 = arith.addf %13, %18 : vector<128x128xf32>
    %20 = vector.extract_strided_slice %0 {offsets = [0, 0, 3, 0], sizes = [2, 8, 8, 20], strides = [1, 1, 1, 1]} : vector<2x12x12x20xbf16> to vector<2x8x8x20xbf16>
    %21 = vector.shape_cast %20 : vector<2x8x8x20xbf16> to vector<128x20xbf16>
    %c3 = arith.constant 3 : index
    %c0_13 = arith.constant 0 : index
    %c0_14 = arith.constant 0 : index
    %22 = vector.load %arg2[%c3, %c0_13, %c0_14] : memref<25x20x128xbf16, #tpu.memory_space<vmem>>, vector<1x20x128xbf16>
    %23 = vector.shape_cast %22 : vector<1x20x128xbf16> to vector<20x128xbf16>
    %cst_15 = arith.constant dense<0.000000e+00> : vector<128x128xf32>
    %24 = tpu.matmul %21, %23, %cst_15 {dimension_numbers = #tpu.dot_dimension_numbers<[1], [0], [0], [1], [0, 0, 1, 1], [], []>} : vector<128x20xbf16>, vector<20x128xbf16>, vector<128x128xf32> -> vector<128x128xf32>
    %25 = arith.addf %19, %24 : vector<128x128xf32>
    %26 = vector.extract_strided_slice %0 {offsets = [0, 0, 4, 0], sizes = [2, 8, 8, 20], strides = [1, 1, 1, 1]} : vector<2x12x12x20xbf16> to vector<2x8x8x20xbf16>
    %27 = vector.shape_cast %26 : vector<2x8x8x20xbf16> to vector<128x20xbf16>
    %c4 = arith.constant 4 : index
    %c0_16 = arith.constant 0 : index
    %c0_17 = arith.constant 0 : index
    %28 = vector.load %arg2[%c4, %c0_16, %c0_17] : memref<25x20x128xbf16, #tpu.memory_space<vmem>>, vector<1x20x128xbf16>
    %29 = vector.shape_cast %28 : vector<1x20x128xbf16> to vector<20x128xbf16>
    %cst_18 = arith.constant dense<0.000000e+00> : vector<128x128xf32>
    %30 = tpu.matmul %27, %29, %cst_18 {dimension_numbers = #tpu.dot_dimension_numbers<[1], [0], [0], [1], [0, 0, 1, 1], [], []>} : vector<128x20xbf16>, vector<20x128xbf16>, vector<128x128xf32> -> vector<128x128xf32>
    %31 = arith.addf %25, %30 : vector<128x128xf32>
    %32 = vector.extract_strided_slice %0 {offsets = [0, 1, 0, 0], sizes = [2, 8, 8, 20], strides = [1, 1, 1, 1]} : vector<2x12x12x20xbf16> to vector<2x8x8x20xbf16>
    %33 = vector.shape_cast %32 : vector<2x8x8x20xbf16> to vector<128x20xbf16>
    %c5 = arith.constant 5 : index
    %c0_19 = arith.constant 0 : index
    %c0_20 = arith.constant 0 : index
    %34 = vector.load %arg2[%c5, %c0_19, %c0_20] : memref<25x20x128xbf16, #tpu.memory_space<vmem>>, vector<1x20x128xbf16>
    %35 = vector.shape_cast %34 : vector<1x20x128xbf16> to vector<20x128xbf16>
    %cst_21 = arith.constant dense<0.000000e+00> : vector<128x128xf32>
    %36 = tpu.matmul %33, %35, %cst_21 {dimension_numbers = #tpu.dot_dimension_numbers<[1], [0], [0], [1], [0, 0, 1, 1], [], []>} : vector<128x20xbf16>, vector<20x128xbf16>, vector<128x128xf32> -> vector<128x128xf32>
    %37 = arith.addf %31, %36 : vector<128x128xf32>
    %38 = vector.extract_strided_slice %0 {offsets = [0, 1, 1, 0], sizes = [2, 8, 8, 20], strides = [1, 1, 1, 1]} : vector<2x12x12x20xbf16> to vector<2x8x8x20xbf16>
    %39 = vector.shape_cast %38 : vector<2x8x8x20xbf16> to vector<128x20xbf16>
    %c6 = arith.constant 6 : index
    %c0_22 = arith.constant 0 : index
    %c0_23 = arith.constant 0 : index
    %40 = vector.load %arg2[%c6, %c0_22, %c0_23] : memref<25x20x128xbf16, #tpu.memory_space<vmem>>, vector<1x20x128xbf16>
    %41 = vector.shape_cast %40 : vector<1x20x128xbf16> to vector<20x128xbf16>
    %cst_24 = arith.constant dense<0.000000e+00> : vector<128x128xf32>
    %42 = tpu.matmul %39, %41, %cst_24 {dimension_numbers = #tpu.dot_dimension_numbers<[1], [0], [0], [1], [0, 0, 1, 1], [], []>} : vector<128x20xbf16>, vector<20x128xbf16>, vector<128x128xf32> -> vector<128x128xf32>
    %43 = arith.addf %37, %42 : vector<128x128xf32>
    %44 = vector.extract_strided_slice %0 {offsets = [0, 1, 2, 0], sizes = [2, 8, 8, 20], strides = [1, 1, 1, 1]} : vector<2x12x12x20xbf16> to vector<2x8x8x20xbf16>
    %45 = vector.shape_cast %44 : vector<2x8x8x20xbf16> to vector<128x20xbf16>
    %c7 = arith.constant 7 : index
    %c0_25 = arith.constant 0 : index
    %c0_26 = arith.constant 0 : index
    %46 = vector.load %arg2[%c7, %c0_25, %c0_26] : memref<25x20x128xbf16, #tpu.memory_space<vmem>>, vector<1x20x128xbf16>
    %47 = vector.shape_cast %46 : vector<1x20x128xbf16> to vector<20x128xbf16>
    %cst_27 = arith.constant dense<0.000000e+00> : vector<128x128xf32>
    %48 = tpu.matmul %45, %47, %cst_27 {dimension_numbers = #tpu.dot_dimension_numbers<[1], [0], [0], [1], [0, 0, 1, 1], [], []>} : vector<128x20xbf16>, vector<20x128xbf16>, vector<128x128xf32> -> vector<128x128xf32>
    %49 = arith.addf %43, %48 : vector<128x128xf32>
    %50 = vector.extract_strided_slice %0 {offsets = [0, 1, 3, 0], sizes = [2, 8, 8, 20], strides = [1, 1, 1, 1]} : vector<2x12x12x20xbf16> to vector<2x8x8x20xbf16>
    %51 = vector.shape_cast %50 : vector<2x8x8x20xbf16> to vector<128x20xbf16>
    %c8 = arith.constant 8 : index
    %c0_28 = arith.constant 0 : index
    %c0_29 = arith.constant 0 : index
    %52 = vector.load %arg2[%c8, %c0_28, %c0_29] : memref<25x20x128xbf16, #tpu.memory_space<vmem>>, vector<1x20x128xbf16>
    %53 = vector.shape_cast %52 : vector<1x20x128xbf16> to vector<20x128xbf16>
    %cst_30 = arith.constant dense<0.000000e+00> : vector<128x128xf32>
    %54 = tpu.matmul %51, %53, %cst_30 {dimension_numbers = #tpu.dot_dimension_numbers<[1], [0], [0], [1], [0, 0, 1, 1], [], []>} : vector<128x20xbf16>, vector<20x128xbf16>, vector<128x128xf32> -> vector<128x128xf32>
    %55 = arith.addf %49, %54 : vector<128x128xf32>
    %56 = vector.extract_strided_slice %0 {offsets = [0, 1, 4, 0], sizes = [2, 8, 8, 20], strides = [1, 1, 1, 1]} : vector<2x12x12x20xbf16> to vector<2x8x8x20xbf16>
    %57 = vector.shape_cast %56 : vector<2x8x8x20xbf16> to vector<128x20xbf16>
    %c9 = arith.constant 9 : index
    %c0_31 = arith.constant 0 : index
    %c0_32 = arith.constant 0 : index
    %58 = vector.load %arg2[%c9, %c0_31, %c0_32] : memref<25x20x128xbf16, #tpu.memory_space<vmem>>, vector<1x20x128xbf16>
    %59 = vector.shape_cast %58 : vector<1x20x128xbf16> to vector<20x128xbf16>
    %cst_33 = arith.constant dense<0.000000e+00> : vector<128x128xf32>
    %60 = tpu.matmul %57, %59, %cst_33 {dimension_numbers = #tpu.dot_dimension_numbers<[1], [0], [0], [1], [0, 0, 1, 1], [], []>} : vector<128x20xbf16>, vector<20x128xbf16>, vector<128x128xf32> -> vector<128x128xf32>
    %61 = arith.addf %55, %60 : vector<128x128xf32>
    %62 = vector.extract_strided_slice %0 {offsets = [0, 2, 0, 0], sizes = [2, 8, 8, 20], strides = [1, 1, 1, 1]} : vector<2x12x12x20xbf16> to vector<2x8x8x20xbf16>
    %63 = vector.shape_cast %62 : vector<2x8x8x20xbf16> to vector<128x20xbf16>
    %c10 = arith.constant 10 : index
    %c0_34 = arith.constant 0 : index
    %c0_35 = arith.constant 0 : index
    %64 = vector.load %arg2[%c10, %c0_34, %c0_35] : memref<25x20x128xbf16, #tpu.memory_space<vmem>>, vector<1x20x128xbf16>
    %65 = vector.shape_cast %64 : vector<1x20x128xbf16> to vector<20x128xbf16>
    %cst_36 = arith.constant dense<0.000000e+00> : vector<128x128xf32>
    %66 = tpu.matmul %63, %65, %cst_36 {dimension_numbers = #tpu.dot_dimension_numbers<[1], [0], [0], [1], [0, 0, 1, 1], [], []>} : vector<128x20xbf16>, vector<20x128xbf16>, vector<128x128xf32> -> vector<128x128xf32>
    %67 = arith.addf %61, %66 : vector<128x128xf32>
    %68 = vector.extract_strided_slice %0 {offsets = [0, 2, 1, 0], sizes = [2, 8, 8, 20], strides = [1, 1, 1, 1]} : vector<2x12x12x20xbf16> to vector<2x8x8x20xbf16>
    %69 = vector.shape_cast %68 : vector<2x8x8x20xbf16> to vector<128x20xbf16>
    %c11 = arith.constant 11 : index
    %c0_37 = arith.constant 0 : index
    %c0_38 = arith.constant 0 : index
    %70 = vector.load %arg2[%c11, %c0_37, %c0_38] : memref<25x20x128xbf16, #tpu.memory_space<vmem>>, vector<1x20x128xbf16>
    %71 = vector.shape_cast %70 : vector<1x20x128xbf16> to vector<20x128xbf16>
    %cst_39 = arith.constant dense<0.000000e+00> : vector<128x128xf32>
    %72 = tpu.matmul %69, %71, %cst_39 {dimension_numbers = #tpu.dot_dimension_numbers<[1], [0], [0], [1], [0, 0, 1, 1], [], []>} : vector<128x20xbf16>, vector<20x128xbf16>, vector<128x128xf32> -> vector<128x128xf32>
    %73 = arith.addf %67, %72 : vector<128x128xf32>
    %74 = vector.extract_strided_slice %0 {offsets = [0, 2, 2, 0], sizes = [2, 8, 8, 20], strides = [1, 1, 1, 1]} : vector<2x12x12x20xbf16> to vector<2x8x8x20xbf16>
    %75 = vector.shape_cast %74 : vector<2x8x8x20xbf16> to vector<128x20xbf16>
    %c12 = arith.constant 12 : index
    %c0_40 = arith.constant 0 : index
    %c0_41 = arith.constant 0 : index
    %76 = vector.load %arg2[%c12, %c0_40, %c0_41] : memref<25x20x128xbf16, #tpu.memory_space<vmem>>, vector<1x20x128xbf16>
    %77 = vector.shape_cast %76 : vector<1x20x128xbf16> to vector<20x128xbf16>
    %cst_42 = arith.constant dense<0.000000e+00> : vector<128x128xf32>
    %78 = tpu.matmul %75, %77, %cst_42 {dimension_numbers = #tpu.dot_dimension_numbers<[1], [0], [0], [1], [0, 0, 1, 1], [], []>} : vector<128x20xbf16>, vector<20x128xbf16>, vector<128x128xf32> -> vector<128x128xf32>
    %79 = arith.addf %73, %78 : vector<128x128xf32>
    %80 = vector.extract_strided_slice %0 {offsets = [0, 2, 3, 0], sizes = [2, 8, 8, 20], strides = [1, 1, 1, 1]} : vector<2x12x12x20xbf16> to vector<2x8x8x20xbf16>
    %81 = vector.shape_cast %80 : vector<2x8x8x20xbf16> to vector<128x20xbf16>
    %c13 = arith.constant 13 : index
    %c0_43 = arith.constant 0 : index
    %c0_44 = arith.constant 0 : index
    %82 = vector.load %arg2[%c13, %c0_43, %c0_44] : memref<25x20x128xbf16, #tpu.memory_space<vmem>>, vector<1x20x128xbf16>
    %83 = vector.shape_cast %82 : vector<1x20x128xbf16> to vector<20x128xbf16>
    %cst_45 = arith.constant dense<0.000000e+00> : vector<128x128xf32>
    %84 = tpu.matmul %81, %83, %cst_45 {dimension_numbers = #tpu.dot_dimension_numbers<[1], [0], [0], [1], [0, 0, 1, 1], [], []>} : vector<128x20xbf16>, vector<20x128xbf16>, vector<128x128xf32> -> vector<128x128xf32>
    %85 = arith.addf %79, %84 : vector<128x128xf32>
    %86 = vector.extract_strided_slice %0 {offsets = [0, 2, 4, 0], sizes = [2, 8, 8, 20], strides = [1, 1, 1, 1]} : vector<2x12x12x20xbf16> to vector<2x8x8x20xbf16>
    %87 = vector.shape_cast %86 : vector<2x8x8x20xbf16> to vector<128x20xbf16>
    %c14 = arith.constant 14 : index
    %c0_46 = arith.constant 0 : index
    %c0_47 = arith.constant 0 : index
    %88 = vector.load %arg2[%c14, %c0_46, %c0_47] : memref<25x20x128xbf16, #tpu.memory_space<vmem>>, vector<1x20x128xbf16>
    %89 = vector.shape_cast %88 : vector<1x20x128xbf16> to vector<20x128xbf16>
    %cst_48 = arith.constant dense<0.000000e+00> : vector<128x128xf32>
    %90 = tpu.matmul %87, %89, %cst_48 {dimension_numbers = #tpu.dot_dimension_numbers<[1], [0], [0], [1], [0, 0, 1, 1], [], []>} : vector<128x20xbf16>, vector<20x128xbf16>, vector<128x128xf32> -> vector<128x128xf32>
    %91 = arith.addf %85, %90 : vector<128x128xf32>
    %92 = vector.extract_strided_slice %0 {offsets = [0, 3, 0, 0], sizes = [2, 8, 8, 20], strides = [1, 1, 1, 1]} : vector<2x12x12x20xbf16> to vector<2x8x8x20xbf16>
    %93 = vector.shape_cast %92 : vector<2x8x8x20xbf16> to vector<128x20xbf16>
    %c15 = arith.constant 15 : index
    %c0_49 = arith.constant 0 : index
    %c0_50 = arith.constant 0 : index
    %94 = vector.load %arg2[%c15, %c0_49, %c0_50] : memref<25x20x128xbf16, #tpu.memory_space<vmem>>, vector<1x20x128xbf16>
    %95 = vector.shape_cast %94 : vector<1x20x128xbf16> to vector<20x128xbf16>
    %cst_51 = arith.constant dense<0.000000e+00> : vector<128x128xf32>
    %96 = tpu.matmul %93, %95, %cst_51 {dimension_numbers = #tpu.dot_dimension_numbers<[1], [0], [0], [1], [0, 0, 1, 1], [], []>} : vector<128x20xbf16>, vector<20x128xbf16>, vector<128x128xf32> -> vector<128x128xf32>
    %97 = arith.addf %91, %96 : vector<128x128xf32>
    %98 = vector.extract_strided_slice %0 {offsets = [0, 3, 1, 0], sizes = [2, 8, 8, 20], strides = [1, 1, 1, 1]} : vector<2x12x12x20xbf16> to vector<2x8x8x20xbf16>
    %99 = vector.shape_cast %98 : vector<2x8x8x20xbf16> to vector<128x20xbf16>
    %c16 = arith.constant 16 : index
    %c0_52 = arith.constant 0 : index
    %c0_53 = arith.constant 0 : index
    %100 = vector.load %arg2[%c16, %c0_52, %c0_53] : memref<25x20x128xbf16, #tpu.memory_space<vmem>>, vector<1x20x128xbf16>
    %101 = vector.shape_cast %100 : vector<1x20x128xbf16> to vector<20x128xbf16>
    %cst_54 = arith.constant dense<0.000000e+00> : vector<128x128xf32>
    %102 = tpu.matmul %99, %101, %cst_54 {dimension_numbers = #tpu.dot_dimension_numbers<[1], [0], [0], [1], [0, 0, 1, 1], [], []>} : vector<128x20xbf16>, vector<20x128xbf16>, vector<128x128xf32> -> vector<128x128xf32>
    %103 = arith.addf %97, %102 : vector<128x128xf32>
    %104 = vector.extract_strided_slice %0 {offsets = [0, 3, 2, 0], sizes = [2, 8, 8, 20], strides = [1, 1, 1, 1]} : vector<2x12x12x20xbf16> to vector<2x8x8x20xbf16>
    %105 = vector.shape_cast %104 : vector<2x8x8x20xbf16> to vector<128x20xbf16>
    %c17 = arith.constant 17 : index
    %c0_55 = arith.constant 0 : index
    %c0_56 = arith.constant 0 : index
    %106 = vector.load %arg2[%c17, %c0_55, %c0_56] : memref<25x20x128xbf16, #tpu.memory_space<vmem>>, vector<1x20x128xbf16>
    %107 = vector.shape_cast %106 : vector<1x20x128xbf16> to vector<20x128xbf16>
    %cst_57 = arith.constant dense<0.000000e+00> : vector<128x128xf32>
    %108 = tpu.matmul %105, %107, %cst_57 {dimension_numbers = #tpu.dot_dimension_numbers<[1], [0], [0], [1], [0, 0, 1, 1], [], []>} : vector<128x20xbf16>, vector<20x128xbf16>, vector<128x128xf32> -> vector<128x128xf32>
    %109 = arith.addf %103, %108 : vector<128x128xf32>
    %110 = vector.extract_strided_slice %0 {offsets = [0, 3, 3, 0], sizes = [2, 8, 8, 20], strides = [1, 1, 1, 1]} : vector<2x12x12x20xbf16> to vector<2x8x8x20xbf16>
    %111 = vector.shape_cast %110 : vector<2x8x8x20xbf16> to vector<128x20xbf16>
    %c18 = arith.constant 18 : index
    %c0_58 = arith.constant 0 : index
    %c0_59 = arith.constant 0 : index
    %112 = vector.load %arg2[%c18, %c0_58, %c0_59] : memref<25x20x128xbf16, #tpu.memory_space<vmem>>, vector<1x20x128xbf16>
    %113 = vector.shape_cast %112 : vector<1x20x128xbf16> to vector<20x128xbf16>
    %cst_60 = arith.constant dense<0.000000e+00> : vector<128x128xf32>
    %114 = tpu.matmul %111, %113, %cst_60 {dimension_numbers = #tpu.dot_dimension_numbers<[1], [0], [0], [1], [0, 0, 1, 1], [], []>} : vector<128x20xbf16>, vector<20x128xbf16>, vector<128x128xf32> -> vector<128x128xf32>
    %115 = arith.addf %109, %114 : vector<128x128xf32>
    %116 = vector.extract_strided_slice %0 {offsets = [0, 3, 4, 0], sizes = [2, 8, 8, 20], strides = [1, 1, 1, 1]} : vector<2x12x12x20xbf16> to vector<2x8x8x20xbf16>
    %117 = vector.shape_cast %116 : vector<2x8x8x20xbf16> to vector<128x20xbf16>
    %c19 = arith.constant 19 : index
    %c0_61 = arith.constant 0 : index
    %c0_62 = arith.constant 0 : index
    %118 = vector.load %arg2[%c19, %c0_61, %c0_62] : memref<25x20x128xbf16, #tpu.memory_space<vmem>>, vector<1x20x128xbf16>
    %119 = vector.shape_cast %118 : vector<1x20x128xbf16> to vector<20x128xbf16>
    %cst_63 = arith.constant dense<0.000000e+00> : vector<128x128xf32>
    %120 = tpu.matmul %117, %119, %cst_63 {dimension_numbers = #tpu.dot_dimension_numbers<[1], [0], [0], [1], [0, 0, 1, 1], [], []>} : vector<128x20xbf16>, vector<20x128xbf16>, vector<128x128xf32> -> vector<128x128xf32>
    %121 = arith.addf %115, %120 : vector<128x128xf32>
    %122 = vector.extract_strided_slice %0 {offsets = [0, 4, 0, 0], sizes = [2, 8, 8, 20], strides = [1, 1, 1, 1]} : vector<2x12x12x20xbf16> to vector<2x8x8x20xbf16>
    %123 = vector.shape_cast %122 : vector<2x8x8x20xbf16> to vector<128x20xbf16>
    %c20 = arith.constant 20 : index
    %c0_64 = arith.constant 0 : index
    %c0_65 = arith.constant 0 : index
    %124 = vector.load %arg2[%c20, %c0_64, %c0_65] : memref<25x20x128xbf16, #tpu.memory_space<vmem>>, vector<1x20x128xbf16>
    %125 = vector.shape_cast %124 : vector<1x20x128xbf16> to vector<20x128xbf16>
    %cst_66 = arith.constant dense<0.000000e+00> : vector<128x128xf32>
    %126 = tpu.matmul %123, %125, %cst_66 {dimension_numbers = #tpu.dot_dimension_numbers<[1], [0], [0], [1], [0, 0, 1, 1], [], []>} : vector<128x20xbf16>, vector<20x128xbf16>, vector<128x128xf32> -> vector<128x128xf32>
    %127 = arith.addf %121, %126 : vector<128x128xf32>
    %128 = vector.extract_strided_slice %0 {offsets = [0, 4, 1, 0], sizes = [2, 8, 8, 20], strides = [1, 1, 1, 1]} : vector<2x12x12x20xbf16> to vector<2x8x8x20xbf16>
    %129 = vector.shape_cast %128 : vector<2x8x8x20xbf16> to vector<128x20xbf16>
    %c21 = arith.constant 21 : index
    %c0_67 = arith.constant 0 : index
    %c0_68 = arith.constant 0 : index
    %130 = vector.load %arg2[%c21, %c0_67, %c0_68] : memref<25x20x128xbf16, #tpu.memory_space<vmem>>, vector<1x20x128xbf16>
    %131 = vector.shape_cast %130 : vector<1x20x128xbf16> to vector<20x128xbf16>
    %cst_69 = arith.constant dense<0.000000e+00> : vector<128x128xf32>
    %132 = tpu.matmul %129, %131, %cst_69 {dimension_numbers = #tpu.dot_dimension_numbers<[1], [0], [0], [1], [0, 0, 1, 1], [], []>} : vector<128x20xbf16>, vector<20x128xbf16>, vector<128x128xf32> -> vector<128x128xf32>
    %133 = arith.addf %127, %132 : vector<128x128xf32>
    %134 = vector.extract_strided_slice %0 {offsets = [0, 4, 2, 0], sizes = [2, 8, 8, 20], strides = [1, 1, 1, 1]} : vector<2x12x12x20xbf16> to vector<2x8x8x20xbf16>
    %135 = vector.shape_cast %134 : vector<2x8x8x20xbf16> to vector<128x20xbf16>
    %c22 = arith.constant 22 : index
    %c0_70 = arith.constant 0 : index
    %c0_71 = arith.constant 0 : index
    %136 = vector.load %arg2[%c22, %c0_70, %c0_71] : memref<25x20x128xbf16, #tpu.memory_space<vmem>>, vector<1x20x128xbf16>
    %137 = vector.shape_cast %136 : vector<1x20x128xbf16> to vector<20x128xbf16>
    %cst_72 = arith.constant dense<0.000000e+00> : vector<128x128xf32>
    %138 = tpu.matmul %135, %137, %cst_72 {dimension_numbers = #tpu.dot_dimension_numbers<[1], [0], [0], [1], [0, 0, 1, 1], [], []>} : vector<128x20xbf16>, vector<20x128xbf16>, vector<128x128xf32> -> vector<128x128xf32>
    %139 = arith.addf %133, %138 : vector<128x128xf32>
    %140 = vector.extract_strided_slice %0 {offsets = [0, 4, 3, 0], sizes = [2, 8, 8, 20], strides = [1, 1, 1, 1]} : vector<2x12x12x20xbf16> to vector<2x8x8x20xbf16>
    %141 = vector.shape_cast %140 : vector<2x8x8x20xbf16> to vector<128x20xbf16>
    %c23 = arith.constant 23 : index
    %c0_73 = arith.constant 0 : index
    %c0_74 = arith.constant 0 : index
    %142 = vector.load %arg2[%c23, %c0_73, %c0_74] : memref<25x20x128xbf16, #tpu.memory_space<vmem>>, vector<1x20x128xbf16>
    %143 = vector.shape_cast %142 : vector<1x20x128xbf16> to vector<20x128xbf16>
    %cst_75 = arith.constant dense<0.000000e+00> : vector<128x128xf32>
    %144 = tpu.matmul %141, %143, %cst_75 {dimension_numbers = #tpu.dot_dimension_numbers<[1], [0], [0], [1], [0, 0, 1, 1], [], []>} : vector<128x20xbf16>, vector<20x128xbf16>, vector<128x128xf32> -> vector<128x128xf32>
    %145 = arith.addf %139, %144 : vector<128x128xf32>
    %146 = vector.extract_strided_slice %0 {offsets = [0, 4, 4, 0], sizes = [2, 8, 8, 20], strides = [1, 1, 1, 1]} : vector<2x12x12x20xbf16> to vector<2x8x8x20xbf16>
    %147 = vector.shape_cast %146 : vector<2x8x8x20xbf16> to vector<128x20xbf16>
    %c24 = arith.constant 24 : index
    %c0_76 = arith.constant 0 : index
    %c0_77 = arith.constant 0 : index
    %148 = vector.load %arg2[%c24, %c0_76, %c0_77] : memref<25x20x128xbf16, #tpu.memory_space<vmem>>, vector<1x20x128xbf16>
    %149 = vector.shape_cast %148 : vector<1x20x128xbf16> to vector<20x128xbf16>
    %cst_78 = arith.constant dense<0.000000e+00> : vector<128x128xf32>
    %150 = tpu.matmul %147, %149, %cst_78 {dimension_numbers = #tpu.dot_dimension_numbers<[1], [0], [0], [1], [0, 0, 1, 1], [], []>} : vector<128x20xbf16>, vector<20x128xbf16>, vector<128x128xf32> -> vector<128x128xf32>
    %151 = arith.addf %145, %150 : vector<128x128xf32>
    %c0_79 = arith.constant 0 : index
    %c0_80 = arith.constant 0 : index
    %152 = vector.load %arg3[%c0_79, %c0_80] : memref<1x128xf32, #tpu.memory_space<vmem>>, vector<1x128xf32>
    %153 = vector.broadcast %152 : vector<1x128xf32> to vector<128x128xf32>
    %154 = arith.addf %151, %153 : vector<128x128xf32>
    %cst_81 = arith.constant 0.000000e+00 : f32
    %155 = vector.broadcast %cst_81 : f32 to vector<128x128xf32>
    %156 = arith.maximumf %154, %155 : vector<128x128xf32>
    %157 = arith.truncf %156 : vector<128x128xf32> to vector<128x128xbf16>
    %c0_82 = arith.constant 0 : index
    %c0_83 = arith.constant 0 : index
    %158 = vector.load %arg4[%c0_82, %c0_83] : memref<128x128xbf16, #tpu.memory_space<vmem>>, vector<128x128xbf16>
    tpu.vector_store %arg4[%c0_82, %c0_83], %157 {strides = array<i32>} : memref<128x128xbf16, #tpu.memory_space<vmem>>, vector<128x128xbf16>,
    return
  }
  func.func @transform_0(%arg0: i32) -> (i32, i32, i32, i32) {
    %c0_i32 = arith.constant 0 : i32
    %c0_i32_0 = arith.constant 0 : i32
    %c0_i32_1 = arith.constant 0 : i32
    %c0_i32_2 = arith.constant 0 : i32
    return %arg0, %c0_i32, %c0_i32_0, %c0_i32_1 : i32, i32, i32, i32
  }
  func.func @transform_1(%arg0: i32) -> (i32, i32, i32) {
    %c0_i32 = arith.constant 0 : i32
    %c0_i32_0 = arith.constant 0 : i32
    %c0_i32_1 = arith.constant 0 : i32
    %c0_i32_2 = arith.constant 0 : i32
    return %c0_i32, %c0_i32_0, %c0_i32_1 : i32, i32, i32
  }
  func.func @transform_2(%arg0: i32) -> (i32, i32) {
    %c0_i32 = arith.constant 0 : i32
    %c0_i32_0 = arith.constant 0 : i32
    %c0_i32_1 = arith.constant 0 : i32
    return %c0_i32, %c0_i32_0 : i32, i32
  }
  func.func @transform_3(%arg0: i32) -> (i32, i32) {
    %c0_i32 = arith.constant 0 : i32
    %c0_i32_0 = arith.constant 0 : i32
    return %arg0, %c0_i32 : i32, i32
  }
}

module attributes {stable_mosaic.version = 11 : i64} {
  func.func @fc_head_kernel(%arg0: i32, %arg1: memref<8x800xbf16, #tpu.memory_space<vmem>>, %arg2: memref<800x512xbf16, #tpu.memory_space<vmem>>, %arg3: memref<1x512xf32, #tpu.memory_space<vmem>>, %arg4: memref<512x128xbf16, #tpu.memory_space<vmem>>, %arg5: memref<1x128xf32, #tpu.memory_space<vmem>>, %arg6: memref<8x128xf32, #tpu.memory_space<vmem>>) attributes {dimension_semantics = [#tpu.dimension_semantics<parallel>], iteration_bounds = array<i64: 1>, scalar_prefetch = 0 : i64, scratch_operands = 0 : i64, tpu.core_type = #tpu.core_type<tc>, window_params = [{transform_indices = @transform_0, window_bounds = array<i64: 8, 800>}, {pipeline_mode = #tpu.pipeline_mode<synchronous>, transform_indices = @transform_1, window_bounds = array<i64: 800, 512>}, {pipeline_mode = #tpu.pipeline_mode<synchronous>, transform_indices = @transform_2, window_bounds = array<i64: 1, 512>}, {pipeline_mode = #tpu.pipeline_mode<synchronous>, transform_indices = @transform_3, window_bounds = array<i64: 512, 128>}, {pipeline_mode = #tpu.pipeline_mode<synchronous>, transform_indices = @transform_4, window_bounds = array<i64: 1, 128>}, {transform_indices = @transform_5, window_bounds = array<i64: 8, 128>}]} {
    %c0 = arith.constant 0 : index
    %c0_0 = arith.constant 0 : index
    %0 = vector.load %arg1[%c0, %c0_0] : memref<8x800xbf16, #tpu.memory_space<vmem>>, vector<8x800xbf16>
    %c0_1 = arith.constant 0 : index
    %c0_2 = arith.constant 0 : index
    %1 = vector.load %arg2[%c0_1, %c0_2] : memref<800x512xbf16, #tpu.memory_space<vmem>>, vector<800x512xbf16>
    %cst = arith.constant dense<0.000000e+00> : vector<8x512xf32>
    %2 = tpu.matmul %0, %1, %cst {dimension_numbers = #tpu.dot_dimension_numbers<[1], [0], [0], [1], [0, 0, 1, 1], [], []>} : vector<8x800xbf16>, vector<800x512xbf16>, vector<8x512xf32> -> vector<8x512xf32>
    %c0_3 = arith.constant 0 : index
    %c0_4 = arith.constant 0 : index
    %3 = vector.load %arg3[%c0_3, %c0_4] : memref<1x512xf32, #tpu.memory_space<vmem>>, vector<1x512xf32>
    %4 = vector.broadcast %3 : vector<1x512xf32> to vector<8x512xf32>
    %5 = arith.addf %2, %4 : vector<8x512xf32>
    %cst_5 = arith.constant 0.000000e+00 : f32
    %6 = vector.broadcast %cst_5 : f32 to vector<8x512xf32>
    %7 = arith.maximumf %5, %6 : vector<8x512xf32>
    %8 = arith.truncf %7 : vector<8x512xf32> to vector<8x512xbf16>
    %c0_6 = arith.constant 0 : index
    %c0_7 = arith.constant 0 : index
    %9 = vector.load %arg4[%c0_6, %c0_7] : memref<512x128xbf16, #tpu.memory_space<vmem>>, vector<512x128xbf16>
    %cst_8 = arith.constant dense<0.000000e+00> : vector<8x128xf32>
    %10 = tpu.matmul %8, %9, %cst_8 {dimension_numbers = #tpu.dot_dimension_numbers<[1], [0], [0], [1], [0, 0, 1, 1], [], []>} : vector<8x512xbf16>, vector<512x128xbf16>, vector<8x128xf32> -> vector<8x128xf32>
    %c0_9 = arith.constant 0 : index
    %c0_10 = arith.constant 0 : index
    %11 = vector.load %arg5[%c0_9, %c0_10] : memref<1x128xf32, #tpu.memory_space<vmem>>, vector<1x128xf32>
    %12 = vector.broadcast %11 : vector<1x128xf32> to vector<8x128xf32>
    %13 = arith.addf %10, %12 : vector<8x128xf32>
    %c0_11 = arith.constant 0 : index
    %c0_12 = arith.constant 0 : index
    %14 = vector.load %arg6[%c0_11, %c0_12] : memref<8x128xf32, #tpu.memory_space<vmem>>, vector<8x128xf32>
    tpu.vector_store %arg6[%c0_11, %c0_12], %13 {strides = array<i32>} : memref<8x128xf32, #tpu.memory_space<vmem>>, vector<8x128xf32>,
    return
  }
  func.func @transform_0(%arg0: i32) -> (i32, i32) {
    %c0_i32 = arith.constant 0 : i32
    %c0_i32_0 = arith.constant 0 : i32
    return %arg0, %c0_i32 : i32, i32
  }
  func.func @transform_1(%arg0: i32) -> (i32, i32) {
    %c0_i32 = arith.constant 0 : i32
    %c0_i32_0 = arith.constant 0 : i32
    %c0_i32_1 = arith.constant 0 : i32
    return %c0_i32, %c0_i32_0 : i32, i32
  }
  func.func @transform_2(%arg0: i32) -> (i32, i32) {
    %c0_i32 = arith.constant 0 : i32
    %c0_i32_0 = arith.constant 0 : i32
    %c0_i32_1 = arith.constant 0 : i32
    return %c0_i32, %c0_i32_0 : i32, i32
  }
  func.func @transform_3(%arg0: i32) -> (i32, i32) {
    %c0_i32 = arith.constant 0 : i32
    %c0_i32_0 = arith.constant 0 : i32
    %c0_i32_1 = arith.constant 0 : i32
    return %c0_i32, %c0_i32_0 : i32, i32
  }
  func.func @transform_4(%arg0: i32) -> (i32, i32) {
    %c0_i32 = arith.constant 0 : i32
    %c0_i32_0 = arith.constant 0 : i32
    %c0_i32_1 = arith.constant 0 : i32
    return %c0_i32, %c0_i32_0 : i32, i32
  }
  func.func @transform_5(%arg0: i32) -> (i32, i32) {
    %c0_i32 = arith.constant 0 : i32
    %c0_i32_0 = arith.constant 0 : i32
    return %arg0, %c0_i32 : i32, i32
  }
}

</mosaic_0001>

<bundles_post_ra>
// kernel: my_cnn_model_forward.3
= control target key start
LH: loop header
LB: loop body
LE: loop exit
PB: predicated region body
PF: predicated region fallthrough
CT: control target
= control target key end

     0   :  { %s1388_s12 = smov 0   ;;  %s1590_s0 = inlined_call_operand.vmem [shape: bf16[1536,25], index: 0, kind: input, shape index: {}]   ;;  %s1591_s1 = inlined_call_operand.vmem [shape: bf16[25,128], index: 1, kind: input, shape index: {}]   ;;  %s1592_s2 = inlined_call_operand.vmem [shape: f32[1,128], index: 2, kind: input, shape index: {}]   ;;  %s1593_s3 = inlined_call_operand.vmem [shape: bf16[1536,128], index: 3, kind: output, shape index: {}]  }
   0x1 LB: > { %s939_s13 = sadd.s32 4294967295, %s1365_s12   ;;  %p943_p0 = scmp.ge.s32.totalorder %s1365_s12, 1  ;;  %s1365_s12 = sphi %s1388_s12, %s13_s12  }
   0x2   : > { %p138_p1 = scmp.lt.s32.totalorder %s1365_s12, 4 }
   0x4   : > { %p139_p2 = pnand %p943_p0, %p138_p1 }
   0x5   : > { %s944_s18 = sshll.u32 (!%p139_p2), %s939_s13, 6 }
   0x6   : > { %142 = sbr.rel (%p139_p2) target bundleno = 285 (0x11d), region = 32  ;;  %p163_p3 = scmp.lt.s32.totalorder (!%p139_p2), %s944_s18, 191 }
   0xb   : > { %v1082_v0 = vld [vmem:[%s1591_s1 + $0x8] sm:$0xf]  ;;  %v1151_v1 = vld [vmem:[%s1591_s1 + $0x8] sm:$0x10]  ;;  %vm515_vm0 = vcmask 1043456   ;;  %vm516_vm1 = vcmask 1044480  }
   0xc   : > { %v1083_v2 = vor.u32 %v1151_v1, %v1082_v0  ;;  %v1367_v3 = vmov 65535   ;;  %s1595_s18 = smov (!%p163_p3, %s944_s18), 191  ;;  %v1150_v7 = vld [vmem:[%s1591_s1] sm:$0xff]  ;;  %vm418_vm2 = vcmask 203776  }
   0xd   : > { %v517_v4 = vsel %vm515_vm0, 4294967295, %v1367_v3  ;;  %s945_s21 = sshll.u32 %s1595_s18, 2  ;;  %v1482_v42 = vld [vmem:[%s1592_s2] ss:$0 sm:$0xff] }
   0xe   : > { %v518_v5 = vsel %vm516_vm1, %v517_v4, 0  ;;  %s1413_s24 = scalar_lea.vmem %s1590_s0, %s945_s21  ;;  %s1493_s29 = scalar_lea.vmem %s1593_s3, %s945_s21 }
   0xf   : > { %v520_v6 = vand.u32 %v1083_v2, %v518_v5  ;;  %v1118_v8 = vld [vmem:[%s1413_s24] sm:$0xff]  ;;  %v1119_v12 = vld [vmem:[%s1413_s24 + $0x8] sm:$0xff]  ;;  %v1120_v16 = vld [vmem:[%s1413_s24 + $0x10] sm:$0xff] }
  0x10   : > { %v1126_v9 = vld [vmem:[%s1413_s24 + $0x40] sm:$0xff]  ;;  %v1127_v13 = vld [vmem:[%s1413_s24 + $0x48] sm:$0xff]  ;;  %v1128_v17 = vld [vmem:[%s1413_s24 + $0x50] sm:$0xff] }
  0x11   : > { %528 = vmatpush.bf16.msra.mxu0 %v520_v6  ;;  %1343 = vmatpush.bf16.msra.mxu1 %v520_v6  ;;  %v1134_v10 = vld [vmem:[%s1413_s24 + $0x80] sm:$0xff]  ;;  %v1135_v14 = vld [vmem:[%s1413_s24 + $0x88] sm:$0xff]  ;;  %v1136_v18 = vld [vmem:[%s1413_s24 + $0x90] sm:$0xff] }
  0x12   : > { %1344 = vmatpush.bf16.msra.mxu2 %v520_v6  ;;  %1345 = vmatpush.bf16.msra.mxu3 %v520_v6  ;;  %v1142_v11 = vld [vmem:[%s1413_s24 + $0xc0] sm:$0xff]  ;;  %v1143_v15 = vld [vmem:[%s1413_s24 + $0xc8] sm:$0xff]  ;;  %v1144_v19 = vld [vmem:[%s1413_s24 + $0xd0] sm:$0xff] }
  0x13   : > { %v1121_v20 = vld [vmem:[%s1413_s24 + $0x18] sm:$0xff]  ;;  %v1122_v24 = vld [vmem:[%s1413_s24 + $0x20] sm:$0xff]  ;;  %v1123_v28 = vld [vmem:[%s1413_s24 + $0x28] sm:$0xff] }
  0x14   : > { %v1129_v21 = vld [vmem:[%s1413_s24 + $0x58] sm:$0xff]  ;;  %v1130_v25 = vld [vmem:[%s1413_s24 + $0x60] sm:$0xff]  ;;  %v1131_v29 = vld [vmem:[%s1413_s24 + $0x68] sm:$0xff] }
  0x15   : > { %529 = vmatpush.bf16.msra.mxu0 %v1150_v7  ;;  %1346 = vmatpush.bf16.msra.mxu1 %v1150_v7  ;;  %v1137_v22 = vld [vmem:[%s1413_s24 + $0x98] sm:$0xff]  ;;  %v1138_v26 = vld [vmem:[%s1413_s24 + $0xa0] sm:$0xff]  ;;  %v1139_v30 = vld [vmem:[%s1413_s24 + $0xa8] sm:$0xff] }
  0x16   : > { %1347 = vmatpush.bf16.msra.mxu2 %v1150_v7  ;;  %1348 = vmatpush.bf16.msra.mxu3 %v1150_v7  ;;  %v1145_v23 = vld [vmem:[%s1413_s24 + $0xd8] sm:$0xff]  ;;  %v1146_v27 = vld [vmem:[%s1413_s24 + $0xe0] sm:$0xff]  ;;  %v1147_v31 = vld [vmem:[%s1413_s24 + $0xe8] sm:$0xff] }
  0x17   : > { %v1124_v32 = vld [vmem:[%s1413_s24 + $0x30] sm:$0xff]  ;;  %v1125_v36 = vld [vmem:[%s1413_s24 + $0x38] sm:$0xff] }
  0x18   : > { %1084 = vmatmul.msk.bf16.vlgmr.msra.gmra.mxu0 %vm418_vm2, %v1118_v8  ;;  %1092 = vmatmul.msk.bf16.vlgmr.msra.gmra.mxu1 %vm418_vm2, %v1126_v9  ;;  %v1132_v33 = vld [vmem:[%s1413_s24 + $0x70] sm:$0xff]  ;;  %v1133_v37 = vld [vmem:[%s1413_s24 + $0x78] sm:$0xff] }
  0x19   : > { %1100 = vmatmul.msk.bf16.vlgmr.msra.gmra.mxu2 %vm418_vm2, %v1134_v10  ;;  %1108 = vmatmul.msk.bf16.vlgmr.msra.gmra.mxu3 %vm418_vm2, %v1142_v11  ;;  %v1140_v34 = vld [vmem:[%s1413_s24 + $0xb0] sm:$0xff]  ;;  %v1141_v38 = vld [vmem:[%s1413_s24 + $0xb8] sm:$0xff] }
  0x1a   : > { %v1148_v35 = vld [vmem:[%s1413_s24 + $0xf0] sm:$0xff]  ;;  %v1149_v39 = vld [vmem:[%s1413_s24 + $0xf8] sm:$0xff] }
  0x28   : > { %1085 = vmatmul.msk.bf16.gmra.mxu0 %vm418_vm2, %v1119_v12  ;;  %1093 = vmatmul.msk.bf16.gmra.mxu1 %vm418_vm2, %v1127_v13 }
  0x29   : > { %1101 = vmatmul.msk.bf16.gmra.mxu2 %vm418_vm2, %v1135_v14  ;;  %1109 = vmatmul.msk.bf16.gmra.mxu3 %vm418_vm2, %v1143_v15 }
  0x38   : > { %1086 = vmatmul.msk.bf16.gmra.mxu0 %vm418_vm2, %v1120_v16  ;;  %1094 = vmatmul.msk.bf16.gmra.mxu1 %vm418_vm2, %v1128_v17 }
  0x39   : > { %1102 = vmatmul.msk.bf16.gmra.mxu2 %vm418_vm2, %v1136_v18  ;;  %1110 = vmatmul.msk.bf16.gmra.mxu3 %vm418_vm2, %v1144_v19 }
  0x48   : > { %1087 = vmatmul.msk.bf16.gmra.mxu0 %vm418_vm2, %v1121_v20  ;;  %1095 = vmatmul.msk.bf16.gmra.mxu1 %vm418_vm2, %v1129_v21 }
  0x49   : > { %1103 = vmatmul.msk.bf16.gmra.mxu2 %vm418_vm2, %v1137_v22  ;;  %1111 = vmatmul.msk.bf16.gmra.mxu3 %vm418_vm2, %v1145_v23 }
  0x58   : > { %1088 = vmatmul.msk.bf16.gmra.mxu0 %vm418_vm2, %v1122_v24  ;;  %1096 = vmatmul.msk.bf16.gmra.mxu1 %vm418_vm2, %v1130_v25 }
  0x59   : > { %1104 = vmatmul.msk.bf16.gmra.mxu2 %vm418_vm2, %v1138_v26  ;;  %1112 = vmatmul.msk.bf16.gmra.mxu3 %vm418_vm2, %v1146_v27 }
  0x68   : > { %1089 = vmatmul.msk.bf16.gmra.mxu0 %vm418_vm2, %v1123_v28  ;;  %1097 = vmatmul.msk.bf16.gmra.mxu1 %vm418_vm2, %v1131_v29 }
  0x69   : > { %1105 = vmatmul.msk.bf16.gmra.mxu2 %vm418_vm2, %v1139_v30  ;;  %1113 = vmatmul.msk.bf16.gmra.mxu3 %vm418_vm2, %v1147_v31 }
  0x78   : > { %1090 = vmatmul.msk.bf16.gmra.mxu0 %vm418_vm2, %v1124_v32  ;;  %1098 = vmatmul.msk.bf16.gmra.mxu1 %vm418_vm2, %v1132_v33 }
  0x79   : > { %1106 = vmatmul.msk.bf16.gmra.mxu2 %vm418_vm2, %v1140_v34  ;;  %1114 = vmatmul.msk.bf16.gmra.mxu3 %vm418_vm2, %v1148_v35 }
  0x88   : > { %1091 = vmatmul.msk.bf16.gmra.mxu0 %vm418_vm2, %v1125_v36  ;;  %1099 = vmatmul.msk.bf16.gmra.mxu1 %vm418_vm2, %v1133_v37 }
  0x89   : > { %1107 = vmatmul.msk.bf16.gmra.mxu2 %vm418_vm2, %v1141_v38  ;;  %1115 = vmatmul.msk.bf16.gmra.mxu3 %vm418_vm2, %v1149_v39 }
  0x95   : > { %v531_v40 = vpop.f32.mrf.mxu0  ;;  %v571_v41 = vpop.f32.mrf.mxu1 }
  0x96   : > { %v532_v43 = vadd.f32 %v1482_v42, %v531_v40  ;;  %v572_v44 = vadd.f32 %v1482_v42, %v571_v41 }
  0x98   : > { %v691_v51 = vmax.f32 %v532_v43, 0.0  ;;  %v707_v52 = vmax.f32 %v572_v44, 0.0 }
  0x9c   : > { %v611_v45 = vpop.f32.mrf.mxu2  ;;  %v651_v46 = vpop.f32.mrf.mxu3 }
  0x9d   : > { %v533_v47 = vpop.f32.mrf.mxu0  ;;  %v573_v48 = vpop.f32.mrf.mxu1  ;;  %v612_v57 = vadd.f32 %v1482_v42, %v611_v45  ;;  %v652_v58 = vadd.f32 %v1482_v42, %v651_v46 }
  0x9e   : > { %v534_v49 = vadd.f32 %v1482_v42, %v533_v47  ;;  %v574_v50 = vadd.f32 %v1482_v42, %v573_v48 }
  0x9f   : > { %v723_v1 = vmax.f32 %v612_v57, 0.0  ;;  %v739_v2 = vmax.f32 %v652_v58, 0.0 }
  0xa0   : > { %v692_v53 = vmax.f32 %v534_v49, 0.0  ;;  %v708_v54 = vmax.f32 %v574_v50, 0.0 }
  0xa2   : > { %v1155_v55 = vpack.c.bf16 %v692_v53, %v691_v51  ;;  %v1195_v56 = vpack.c.bf16 %v708_v54, %v707_v52 }
  0xa4   : > { %1156 = vst [vmem:[%s1493_s29] sm:$0xff] %v1155_v55   ;;  %v613_v59 = vpop.f32.mrf.mxu2  ;;  %v653_v60 = vpop.f32.mrf.mxu3 }
  0xa5   : > { %1319 = vst [vmem:[%s1493_s29 + $0x40] sm:$0xff] %v1195_v56   ;;  %v614_v61 = vadd.f32 %v1482_v42, %v613_v59  ;;  %v654_v62 = vadd.f32 %v1482_v42, %v653_v60  ;;  %v536_v63 = vpop.f32.mrf.mxu0  ;;  %v576_v0 = vpop.f32.mrf.mxu1 }
  0xa6   : > { %v537_v7 = vadd.f32 %v1482_v42, %v536_v63  ;;  %v577_v8 = vadd.f32 %v1482_v42, %v576_v0 }
  0xa7   : > { %v724_v3 = vmax.f32 %v614_v61, 0.0  ;;  %v740_v4 = vmax.f32 %v654_v62, 0.0 }
  0xa8   : > { %v693_v15 = vmax.f32 %v537_v7, 0.0  ;;  %v709_v16 = vmax.f32 %v577_v8, 0.0 }
  0xa9   : > { %v1235_v5 = vpack.c.bf16 %v724_v3, %v723_v1  ;;  %v1275_v6 = vpack.c.bf16 %v740_v4, %v739_v2 }
  0xab   : > { %1327 = vst [vmem:[%s1493_s29 + $0x80] sm:$0xff] %v1235_v5  }
  0xac   : > { %1335 = vst [vmem:[%s1493_s29 + $0xc0] sm:$0xff] %v1275_v6   ;;  %v616_v9 = vpop.f32.mrf.mxu2  ;;  %v656_v10 = vpop.f32.mrf.mxu3 }
  0xad   : > { %v538_v11 = vpop.f32.mrf.mxu0  ;;  %v578_v12 = vpop.f32.mrf.mxu1  ;;  %v617_v21 = vadd.f32 %v1482_v42, %v616_v9  ;;  %v657_v22 = vadd.f32 %v1482_v42, %v656_v10 }
  0xae   : > { %v539_v13 = vadd.f32 %v1482_v42, %v538_v11  ;;  %v579_v14 = vadd.f32 %v1482_v42, %v578_v12 }
  0xaf   : > { %v725_v29 = vmax.f32 %v617_v21, 0.0  ;;  %v741_v30 = vmax.f32 %v657_v22, 0.0 }
  0xb0   : > { %v694_v17 = vmax.f32 %v539_v13, 0.0  ;;  %v710_v18 = vmax.f32 %v579_v14, 0.0 }
  0xb2   : > { %v1160_v19 = vpack.c.bf16 %v694_v17, %v693_v15  ;;  %v1200_v20 = vpack.c.bf16 %v710_v18, %v709_v16 }
  0xb4   : > { %1312 = vst [vmem:[%s1493_s29 + $0x8] sm:$0xff] %v1160_v19   ;;  %v618_v23 = vpop.f32.mrf.mxu2  ;;  %v658_v24 = vpop.f32.mrf.mxu3 }
  0xb5   : > { %1320 = vst [vmem:[%s1493_s29 + $0x48] sm:$0xff] %v1200_v20   ;;  %v619_v25 = vadd.f32 %v1482_v42, %v618_v23  ;;  %v659_v26 = vadd.f32 %v1482_v42, %v658_v24  ;;  %v541_v27 = vpop.f32.mrf.mxu0  ;;  %v581_v28 = vpop.f32.mrf.mxu1 }
  0xb6   : > { %v542_v35 = vadd.f32 %v1482_v42, %v541_v27  ;;  %v582_v36 = vadd.f32 %v1482_v42, %v581_v28 }
  0xb7   : > { %v726_v31 = vmax.f32 %v619_v25, 0.0  ;;  %v742_v32 = vmax.f32 %v659_v26, 0.0 }
  0xb8   : > { %v695_v44 = vmax.f32 %v542_v35, 0.0  ;;  %v711_v45 = vmax.f32 %v582_v36, 0.0 }
  0xb9   : > { %v1240_v33 = vpack.c.bf16 %v726_v31, %v725_v29  ;;  %v1280_v34 = vpack.c.bf16 %v742_v32, %v741_v30 }
  0xbb   : > { %1328 = vst [vmem:[%s1493_s29 + $0x88] sm:$0xff] %v1240_v33  }
  0xbc   : > { %1336 = vst [vmem:[%s1493_s29 + $0xc8] sm:$0xff] %v1280_v34   ;;  %v621_v37 = vpop.f32.mrf.mxu2  ;;  %v661_v38 = vpop.f32.mrf.mxu3 }
  0xbd   : > { %v543_v39 = vpop.f32.mrf.mxu0  ;;  %v583_v40 = vpop.f32.mrf.mxu1  ;;  %v622_v50 = vadd.f32 %v1482_v42, %v621_v37  ;;  %v662_v51 = vadd.f32 %v1482_v42, %v661_v38 }
  0xbe   : > { %v544_v41 = vadd.f32 %v1482_v42, %v543_v39  ;;  %v584_v43 = vadd.f32 %v1482_v42, %v583_v40 }
  0xbf   : > { %v727_v58 = vmax.f32 %v622_v50, 0.0  ;;  %v743_v59 = vmax.f32 %v662_v51, 0.0 }
  0xc0   : > { %v696_v46 = vmax.f32 %v544_v41, 0.0  ;;  %v712_v47 = vmax.f32 %v584_v43, 0.0 }
  0xc2   : > { %v1165_v48 = vpack.c.bf16 %v696_v46, %v695_v44  ;;  %v1205_v49 = vpack.c.bf16 %v712_v47, %v711_v45 }
  0xc4   : > { %1313 = vst [vmem:[%s1493_s29 + $0x10] sm:$0xff] %v1165_v48   ;;  %v623_v52 = vpop.f32.mrf.mxu2  ;;  %v663_v53 = vpop.f32.mrf.mxu3 }
  0xc5   : > { %1321 = vst [vmem:[%s1493_s29 + $0x50] sm:$0xff] %v1205_v49   ;;  %v624_v54 = vadd.f32 %v1482_v42, %v623_v52  ;;  %v664_v55 = vadd.f32 %v1482_v42, %v663_v53  ;;  %v546_v56 = vpop.f32.mrf.mxu0  ;;  %v586_v57 = vpop.f32.mrf.mxu1 }
  0xc6   : > { %v547_v0 = vadd.f32 %v1482_v42, %v546_v56  ;;  %v587_v1 = vadd.f32 %v1482_v42, %v586_v57 }
  0xc7   : > { %v728_v60 = vmax.f32 %v624_v54, 0.0  ;;  %v744_v61 = vmax.f32 %v664_v55, 0.0 }
  0xc8   : > { %v697_v8 = vmax.f32 %v547_v0, 0.0  ;;  %v713_v9 = vmax.f32 %v587_v1, 0.0 }
  0xc9   : > { %v1245_v62 = vpack.c.bf16 %v728_v60, %v727_v58  ;;  %v1285_v63 = vpack.c.bf16 %v744_v61, %v743_v59 }
  0xcb   : > { %1329 = vst [vmem:[%s1493_s29 + $0x90] sm:$0xff] %v1245_v62  }
  0xcc   : > { %1337 = vst [vmem:[%s1493_s29 + $0xd0] sm:$0xff] %v1285_v63   ;;  %v626_v2 = vpop.f32.mrf.mxu2  ;;  %v666_v3 = vpop.f32.mrf.mxu3 }
  0xcd   : > { %v548_v4 = vpop.f32.mrf.mxu0  ;;  %v588_v5 = vpop.f32.mrf.mxu1  ;;  %v627_v14 = vadd.f32 %v1482_v42, %v626_v2  ;;  %v667_v15 = vadd.f32 %v1482_v42, %v666_v3 }
  0xce   : > { %v549_v6 = vadd.f32 %v1482_v42, %v548_v4  ;;  %v589_v7 = vadd.f32 %v1482_v42, %v588_v5 }
  0xcf   : > { %v729_v22 = vmax.f32 %v627_v14, 0.0  ;;  %v745_v23 = vmax.f32 %v667_v15, 0.0 }
  0xd0   : > { %v698_v10 = vmax.f32 %v549_v6, 0.0  ;;  %v714_v11 = vmax.f32 %v589_v7, 0.0 }
  0xd2   : > { %v1170_v12 = vpack.c.bf16 %v698_v10, %v697_v8  ;;  %v1210_v13 = vpack.c.bf16 %v714_v11, %v713_v9 }
  0xd4   : > { %1314 = vst [vmem:[%s1493_s29 + $0x18] sm:$0xff] %v1170_v12   ;;  %v628_v16 = vpop.f32.mrf.mxu2  ;;  %v668_v17 = vpop.f32.mrf.mxu3 }
  0xd5   : > { %1322 = vst [vmem:[%s1493_s29 + $0x58] sm:$0xff] %v1210_v13   ;;  %v629_v18 = vadd.f32 %v1482_v42, %v628_v16  ;;  %v669_v19 = vadd.f32 %v1482_v42, %v668_v17  ;;  %v551_v20 = vpop.f32.mrf.mxu0  ;;  %v591_v21 = vpop.f32.mrf.mxu1 }
  0xd6   : > { %v552_v28 = vadd.f32 %v1482_v42, %v551_v20  ;;  %v592_v29 = vadd.f32 %v1482_v42, %v591_v21 }
  0xd7   : > { %v730_v24 = vmax.f32 %v629_v18, 0.0  ;;  %v746_v25 = vmax.f32 %v669_v19, 0.0 }
  0xd8   : > { %v699_v36 = vmax.f32 %v552_v28, 0.0  ;;  %v715_v37 = vmax.f32 %v592_v29, 0.0 }
  0xd9   : > { %v1250_v26 = vpack.c.bf16 %v730_v24, %v729_v22  ;;  %v1290_v27 = vpack.c.bf16 %v746_v25, %v745_v23 }
  0xdb   : > { %1330 = vst [vmem:[%s1493_s29 + $0x98] sm:$0xff] %v1250_v26  }
  0xdc   : > { %1338 = vst [vmem:[%s1493_s29 + $0xd8] sm:$0xff] %v1290_v27   ;;  %v631_v30 = vpop.f32.mrf.mxu2  ;;  %v671_v31 = vpop.f32.mrf.mxu3 }
  0xdd   : > { %v553_v32 = vpop.f32.mrf.mxu0  ;;  %v593_v33 = vpop.f32.mrf.mxu1  ;;  %v632_v43 = vadd.f32 %v1482_v42, %v631_v30  ;;  %v672_v44 = vadd.f32 %v1482_v42, %v671_v31 }
  0xde   : > { %v554_v34 = vadd.f32 %v1482_v42, %v553_v32  ;;  %v594_v35 = vadd.f32 %v1482_v42, %v593_v33 }
  0xdf   : > { %v731_v51 = vmax.f32 %v632_v43, 0.0  ;;  %v747_v52 = vmax.f32 %v672_v44, 0.0 }
  0xe0   : > { %v700_v38 = vmax.f32 %v554_v34, 0.0  ;;  %v716_v39 = vmax.f32 %v594_v35, 0.0 }
  0xe2   : > { %v1175_v40 = vpack.c.bf16 %v700_v38, %v699_v36  ;;  %v1215_v41 = vpack.c.bf16 %v716_v39, %v715_v37 }
  0xe4   : > { %1315 = vst [vmem:[%s1493_s29 + $0x20] sm:$0xff] %v1175_v40   ;;  %v633_v45 = vpop.f32.mrf.mxu2  ;;  %v673_v46 = vpop.f32.mrf.mxu3 }
  0xe5   : > { %1323 = vst [vmem:[%s1493_s29 + $0x60] sm:$0xff] %v1215_v41   ;;  %v634_v47 = vadd.f32 %v1482_v42, %v633_v45  ;;  %v674_v48 = vadd.f32 %v1482_v42, %v673_v46  ;;  %v556_v49 = vpop.f32.mrf.mxu0  ;;  %v596_v50 = vpop.f32.mrf.mxu1 }
  0xe6   : > { %v557_v57 = vadd.f32 %v1482_v42, %v556_v49  ;;  %v597_v58 = vadd.f32 %v1482_v42, %v596_v50 }
  0xe7   : > { %v732_v53 = vmax.f32 %v634_v47, 0.0  ;;  %v748_v54 = vmax.f32 %v674_v48, 0.0 }
  0xe8   : > { %v701_v1 = vmax.f32 %v557_v57, 0.0  ;;  %v717_v2 = vmax.f32 %v597_v58, 0.0 }
  0xe9   : > { %v1255_v55 = vpack.c.bf16 %v732_v53, %v731_v51  ;;  %v1295_v56 = vpack.c.bf16 %v748_v54, %v747_v52 }
  0xeb   : > { %1331 = vst [vmem:[%s1493_s29 + $0xa0] sm:$0xff] %v1255_v55  }
  0xec   : > { %1339 = vst [vmem:[%s1493_s29 + $0xe0] sm:$0xff] %v1295_v56   ;;  %v636_v59 = vpop.f32.mrf.mxu2  ;;  %v676_v60 = vpop.f32.mrf.mxu3 }
  0xed   : > { %v558_v61 = vpop.f32.mrf.mxu0  ;;  %v598_v62 = vpop.f32.mrf.mxu1  ;;  %v637_v7 = vadd.f32 %v1482_v42, %v636_v59  ;;  %v677_v8 = vadd.f32 %v1482_v42, %v676_v60 }
  0xee   : > { %v559_v63 = vadd.f32 %v1482_v42, %v558_v61  ;;  %v599_v0 = vadd.f32 %v1482_v42, %v598_v62 }
  0xef   : > { %v733_v15 = vmax.f32 %v637_v7, 0.0  ;;  %v749_v16 = vmax.f32 %v677_v8, 0.0 }
  0xf0   : > { %v702_v3 = vmax.f32 %v559_v63, 0.0  ;;  %v718_v4 = vmax.f32 %v599_v0, 0.0 }
  0xf2   : > { %v1180_v5 = vpack.c.bf16 %v702_v3, %v701_v1  ;;  %v1220_v6 = vpack.c.bf16 %v718_v4, %v717_v2 }
  0xf4   : > { %1316 = vst [vmem:[%s1493_s29 + $0x28] sm:$0xff] %v1180_v5   ;;  %v638_v9 = vpop.f32.mrf.mxu2  ;;  %v678_v10 = vpop.f32.mrf.mxu3 }
  0xf5   : > { %1324 = vst [vmem:[%s1493_s29 + $0x68] sm:$0xff] %v1220_v6   ;;  %v639_v11 = vadd.f32 %v1482_v42, %v638_v9  ;;  %v679_v12 = vadd.f32 %v1482_v42, %v678_v10  ;;  %v561_v13 = vpop.f32.mrf.mxu0  ;;  %v601_v14 = vpop.f32.mrf.mxu1 }
  0xf6   : > { %v562_v21 = vadd.f32 %v1482_v42, %v561_v13  ;;  %v602_v22 = vadd.f32 %v1482_v42, %v601_v14 }
  0xf7   : > { %v734_v17 = vmax.f32 %v639_v11, 0.0  ;;  %v750_v18 = vmax.f32 %v679_v12, 0.0 }
  0xf8   : > { %v703_v29 = vmax.f32 %v562_v21, 0.0  ;;  %v719_v30 = vmax.f32 %v602_v22, 0.0 }
  0xf9   : > { %v1260_v19 = vpack.c.bf16 %v734_v17, %v733_v15  ;;  %v1300_v20 = vpack.c.bf16 %v750_v18, %v749_v16 }
  0xfb   : > { %1332 = vst [vmem:[%s1493_s29 + $0xa8] sm:$0xff] %v1260_v19  }
  0xfc   : > { %1340 = vst [vmem:[%s1493_s29 + $0xe8] sm:$0xff] %v1300_v20   ;;  %v641_v23 = vpop.f32.mrf.mxu2  ;;  %v681_v24 = vpop.f32.mrf.mxu3 }
  0xfd   : > { %v563_v25 = vpop.f32.mrf.mxu0  ;;  %v603_v26 = vpop.f32.mrf.mxu1  ;;  %v642_v35 = vadd.f32 %v1482_v42, %v641_v23  ;;  %v682_v36 = vadd.f32 %v1482_v42, %v681_v24 }
  0xfe   : > { %v564_v27 = vadd.f32 %v1482_v42, %v563_v25  ;;  %v604_v28 = vadd.f32 %v1482_v42, %v603_v26 }
  0xff   : > { %v735_v44 = vmax.f32 %v642_v35, 0.0  ;;  %v751_v45 = vmax.f32 %v682_v36, 0.0 }
 0x100   : > { %v704_v31 = vmax.f32 %v564_v27, 0.0  ;;  %v720_v32 = vmax.f32 %v604_v28, 0.0 }
 0x102   : > { %v1185_v33 = vpack.c.bf16 %v704_v31, %v703_v29  ;;  %v1225_v34 = vpack.c.bf16 %v720_v32, %v719_v30 }
 0x104   : > { %1317 = vst [vmem:[%s1493_s29 + $0x30] sm:$0xff] %v1185_v33   ;;  %v643_v37 = vpop.f32.mrf.mxu2  ;;  %v683_v38 = vpop.f32.mrf.mxu3 }
 0x105   : > { %1325 = vst [vmem:[%s1493_s29 + $0x70] sm:$0xff] %v1225_v34   ;;  %v644_v39 = vadd.f32 %v1482_v42, %v643_v37  ;;  %v684_v40 = vadd.f32 %v1482_v42, %v683_v38  ;;  %v566_v41 = vpop.f32.mrf.mxu0  ;;  %v606_v43 = vpop.f32.mrf.mxu1 }
 0x106   : > { %v567_v50 = vadd.f32 %v1482_v42, %v566_v41  ;;  %v607_v51 = vadd.f32 %v1482_v42, %v606_v43 }
 0x107   : > { %v736_v46 = vmax.f32 %v644_v39, 0.0  ;;  %v752_v47 = vmax.f32 %v684_v40, 0.0 }
 0x108   : > { %v705_v58 = vmax.f32 %v567_v50, 0.0  ;;  %v721_v59 = vmax.f32 %v607_v51, 0.0 }
 0x109   : > { %v1265_v48 = vpack.c.bf16 %v736_v46, %v735_v44  ;;  %v1305_v49 = vpack.c.bf16 %v752_v47, %v751_v45 }
 0x10b   : > { %1333 = vst [vmem:[%s1493_s29 + $0xb0] sm:$0xff] %v1265_v48  }
 0x10c   : > { %1341 = vst [vmem:[%s1493_s29 + $0xf0] sm:$0xff] %v1305_v49   ;;  %v646_v52 = vpop.f32.mrf.mxu2  ;;  %v686_v53 = vpop.f32.mrf.mxu3 }
 0x10d   : > { %v568_v54 = vpop.f32.mrf.mxu0  ;;  %v608_v55 = vpop.f32.mrf.mxu1  ;;  %v647_v0 = vadd.f32 %v1482_v42, %v646_v52  ;;  %v687_v1 = vadd.f32 %v1482_v42, %v686_v53 }
 0x10e   : > { %v569_v56 = vadd.f32 %v1482_v42, %v568_v54  ;;  %v609_v57 = vadd.f32 %v1482_v42, %v608_v55 }
 0x10f   : > { %v737_v6 = vmax.f32 %v647_v0, 0.0  ;;  %v753_v7 = vmax.f32 %v687_v1, 0.0 }
 0x110   : > { %v706_v60 = vmax.f32 %v569_v56, 0.0  ;;  %v722_v61 = vmax.f32 %v609_v57, 0.0 }
 0x112   : > { %v1190_v62 = vpack.c.bf16 %v706_v60, %v705_v58  ;;  %v1230_v63 = vpack.c.bf16 %v722_v61, %v721_v59 }
 0x114   : > { %1318 = vst [vmem:[%s1493_s29 + $0x38] sm:$0xff] %v1190_v62   ;;  %v648_v2 = vpop.f32.mrf.mxu2  ;;  %v688_v3 = vpop.f32.mrf.mxu3 }
 0x115   : > { %1326 = vst [vmem:[%s1493_s29 + $0x78] sm:$0xff] %v1230_v63   ;;  %v649_v4 = vadd.f32 %v1482_v42, %v648_v2  ;;  %v689_v5 = vadd.f32 %v1482_v42, %v688_v3 }
 0x117   : > { %v738_v8 = vmax.f32 %v649_v4, 0.0  ;;  %v754_v9 = vmax.f32 %v689_v5, 0.0 }
 0x119   : > { %v1270_v10 = vpack.c.bf16 %v738_v8, %v737_v6  ;;  %v1310_v11 = vpack.c.bf16 %v754_v9, %v753_v7 }
 0x11b   : > { %1334 = vst [vmem:[%s1493_s29 + $0xb8] sm:$0xff] %v1270_v10  }
 0x11c   : > { %1342 = vst [vmem:[%s1493_s29 + $0xf8] sm:$0xff] %v1310_v11  }
 0x11d PF: > { %s13_s12 = sadd.s32 1, %s1365_s12  }
 0x11e   : > { %p10_p4 = scmp.ge.s32.totalorder %s13_s12, 5  }
 0x120   :  { %12 = sbr.rel (!%p10_p4) target bundleno = 1 (0x1), region = 62 }

// kernel: my_cnn_model_forward.4
= control target key start
LH: loop header
LB: loop body
LE: loop exit
PB: predicated region body
PF: predicated region fallthrough
CT: control target
= control target key end

     0   :  { %vm355_vm0 = vcmask 1041408   ;;  %vm66_vm1 = vsmask.f32 3328  ;;  %vm67_vm2 = vsmask.f32 7440  ;;  %vm330_vm3 = vcmask 162816   ;;  %s6507_s1 = inlined_call_operand.vmem [shape: bf16[25,20,128], index: 1, kind: input, shape index: {}]   ;;  %s6508_s0 = inlined_call_operand.vmem [shape: bf16[2,12,12,20], index: 0, kind: input, shape index: {}]   ;;  %s6509_s2 = inlined_call_operand.vmem [shape: f32[1,128], index: 2, kind: input, shape index: {}]   ;;  %s6510_s3 = inlined_call_operand.vmem [shape: bf16[128,128], index: 3, kind: output, shape index: {}]  }
   0x1   :  { %v3519_v0 = vld [vmem:[%s6507_s1 + $0x14] sm:$0x3]  ;;  %v4046_v1 = vld [vmem:[%s6508_s0 + $0x20] sm:$0xf]  ;;  %v4051_v3 = vld [vmem:[%s6508_s0 + $0x24] sm:$0x3] }
   0x2   :  { %v326_v2 = vunpack.c.l.b16 %v3519_v0  ;;  %v4056_v4 = vld [vmem:[%s6508_s0 + $0x28] sm:$0xf]  ;;  %v4061_v5 = vld [vmem:[%s6508_s0 + $0x2c] sm:$0x3]  ;;  %v6544_v6 = vshrl.u32 %v4046_v1, 16  ;;  %v6539_v7 = vshll.u32 %v4046_v1, 16  ;;  %vm4116_vm4 = vmor %vm66_vm1, %vm67_vm2 }
   0x3   :  { %v6537_v8 = vshll.u32 %v4051_v3, 16  ;;  %v6538_v9 = vshrl.u32 %v4056_v4, 16  ;;  %v4070_v10 = vld [vmem:[%s6508_s0 + $0x60] sm:$0xf]  ;;  %v6532_v12 = vshll.u32 %v4056_v4, 16  ;;  %v6530_v13 = vshll.u32 %v4061_v5, 16 }
   0x4   :  { %v328_v11 = vpack.c.b16 %v326_v2, %v326_v2  ;;  %v4077_v14 = vld [vmem:[%s6508_s0 + $0x64] sm:$0x3]  ;;  %v4082_v15 = vld [vmem:[%s6508_s0 + $0x68] sm:$0xf]  ;;  %v128_v16 = vrot.slane %v6544_v6, 4  ;;  %v131_v17 = vrot.slane %v6539_v7, 5 }
   0x5   :  { %v137_v18 = vrot.slane %v6537_v8, 5  ;;  %v142_v19 = vrot.slane %v6538_v9, 4  ;;  %v4095_v20 = vld [vmem:[%s6508_s0 + $0x6c] sm:$0x3]  ;;  %v145_v22 = vrot.slane %v6532_v12, 5  ;;  %v151_v23 = vrot.slane %v6530_v13, 5 }
   0x6   :  { %v357_v21 = vsel %vm355_vm0, %v328_v11, 0  ;;  %v6522_v24 = vshrl.u32 %v4070_v10, 16  ;;  %v3938_v25 = vld [vmem:[%s6507_s1 + $0xc] sm:$0xff]  ;;  %v132_v26 = vor.u32 %v131_v17, %v128_v16  ;;  %v6521_v27 = vshll.u32 %v4070_v10, 16  ;;  %v4112_v30 = vld [vmem:[%s6508_s0 + $0x80] sm:$0xf] }
   0x7   :  { %4009 = vmatpush.bf16.msra.mxu1 %v357_v21  ;;  %4010 = vmatpush.bf16.msra.mxu2 %v357_v21  ;;  %v6518_v28 = vshll.u32 %v4077_v14, 16  ;;  %v6520_v29 = vshrl.u32 %v4082_v15, 16  ;;  %v6738_v31 = vmov 0  ;;  %v146_v32 = vor.u32 %v145_v22, %v142_v19  ;;  %v4127_v36 = vld [vmem:[%s6508_s0 + $0x84] sm:$0x3] }
   0x8   :  { %4011 = vmatpush.bf16.msra.mxu3 %v357_v21  ;;  %365 = vmatpush.bf16.msra.mxu0 %v357_v21  ;;  %v6739_v31 = vsel %vm4116_vm4, 4294967295, %v6738_v31  ;;  %v184_v33 = vrot.slane %v6522_v24, 4  ;;  %v6519_v34 = vshll.u32 %v4082_v15, 16  ;;  %v6517_v35 = vshll.u32 %v4095_v20, 16  ;;  %v4145_v47 = vld [vmem:[%s6508_s0 + $0x88] sm:$0xf] }
   0x9   :  { %6740 = vst [vmem:[#allocation2_spill] sm:$0xff] %v6739_v31  ;;  %v133_v37 = vrot.slane %v132_v26, 4  ;;  %v187_v38 = vrot.slane %v6521_v27, 5  ;;  %v193_v39 = vrot.slane %v6518_v28, 5  ;;  %v198_v40 = vrot.slane %v6520_v29, 4  ;;  %v3937_v28 = vld [vmem:[%s6507_s1] sm:$0xff] }
   0xa   :  { %v147_v41 = vrot.slane %v146_v32, 4  ;;  %v201_v42 = vrot.slane %v6519_v34, 5  ;;  %v207_v43 = vrot.slane %v6517_v35, 5  ;;  %v6516_v44 = vshrl.u32 %v4112_v30, 16  ;;  %v4150_v48 = vld [vmem:[%s6508_s0 + $0x8c] sm:$0x3] }
   0xb   :  { %4012 = vmatpush.bf16.msra.mxu1 %v3938_v25  ;;  %4013 = vmatpush.bf16.msra.mxu2 %v3938_v25  ;;  %v138_v45 = vsel %vm4116_vm4, %v133_v37, %v137_v18  ;;  %v188_v46 = vor.u32 %v187_v38, %v184_v33  ;;  %v6515_v49 = vshll.u32 %v4112_v30, 16  ;;  %v6512_v50 = vshll.u32 %v4127_v36, 16  ;;  %v3562_v55 = vld [vmem:[%s6507_s1 + $0x20] sm:$0x3]  ;;  %v4186_v18 = vld [vmem:[%s6508_s0 + $0x4] sm:$0x3] }
   0xc   :  { %4014 = vmatpush.bf16.msra.mxu3 %v3938_v25  ;;  %366 = vmatpush.bf16.msra.mxu0 %v3938_v25  ;;  %v152_v51 = vsel %vm4116_vm4, %v147_v41, %v151_v23  ;;  %v4156_v52 = vunpack.c.l.b16 %v138_v45  ;;  %v202_v53 = vor.u32 %v201_v42, %v198_v40  ;;  %v240_v54 = vrot.slane %v6516_v44, 4  ;;  %v4181_v17 = vld [vmem:[%s6508_s0] sm:$0xf]  ;;  %v4197_v25 = vld [vmem:[%s6508_s0 + $0x8] sm:$0xf] }
   0xd   :  { %v4163_v56 = vunpack.c.l.b16 %v152_v51  ;;  %v189_v57 = vrot.slane %v188_v46, 4  ;;  %v243_v58 = vrot.slane %v6515_v49, 5  ;;  %v249_v59 = vrot.slane %v6512_v50, 5  ;;  %v4358_v13 = vld [vmem:[%s6508_s0 + $0x98] sm:$0xf] }
   0xe   :  { %v203_v60 = vrot.slane %v202_v53, 4  ;;  %v6514_v61 = vshrl.u32 %v4145_v47, 16  ;;  %v6513_v62 = vshll.u32 %v4145_v47, 16  ;;  %v6511_v63 = vshll.u32 %v4150_v48, 16  ;;  %v3577_v53 = vld [vmem:[%s6507_s1 + $0x2c] sm:$0x3] }
   0xf   :  { %v4174_v0 = vpack.c.b16 %v4163_v56, %v4156_v52  ;;  %v194_v2 = vsel %vm4116_vm4, %v189_v57, %v193_v39  ;;  %v244_v11 = vor.u32 %v243_v58, %v240_v54  ;;  %v649_v16 = vunpack.c.l.b16 %v3562_v55  ;;  %v4208_v39 = vld [vmem:[%s6508_s0 + $0xc] sm:$0x3] }
  0x10   :  { %v208_v19 = vsel %vm4116_vm4, %v203_v60, %v207_v43  ;;  %v305_v21 = vunpack.c.l.b16 %v194_v2  ;;  %v254_v22 = vrot.slane %v6514_v61, 4  ;;  %v257_v23 = vrot.slane %v6513_v62, 5  ;;  %v3939_v60 = vld [vmem:[%s6507_s1 + $0x18] sm:$0xff] }
  0x11   :  { %6741 = vst [vmem:[#allocation3_spill] sm:$0xff] %v4174_v0  ;;  %3526 = vmatmul.msk.bf16.vlgmr.msra.gmra.mxu1 %vm330_vm3, %v4174_v0  ;;  %v4201_v26 = vunpack.c.l.b16 %v208_v19  ;;  %v245_v32 = vrot.slane %v244_v11, 4  ;;  %v263_v33 = vrot.slane %v6511_v63, 5  ;;  %v651_v37 = vpack.c.b16 %v649_v16, %v649_v16  ;;  %v3638_v0 = vld [vmem:[%s6507_s1 + $0x50] sm:$0x3] }
  0x12   :  { %v258_v38 = vor.u32 %v257_v23, %v254_v22  ;;  %v6550_v40 = vshrl.u32 %v4181_v17, 16  ;;  %v6549_v41 = vshll.u32 %v4181_v17, 16  ;;  %v79_v42 = vshll.u32 %v4186_v18, 16 }
  0x13   :  { %6742 = vst [vmem:[#allocation4_spill] sm:$0xff] %v4201_v26  ;;  %v317_v43 = vpack.c.b16 %v4201_v26, %v305_v21  ;;  %v250_v45 = vsel %vm4116_vm4, %v245_v32, %v249_v59  ;;  %v678_v46 = vsel %vm355_vm0, %v651_v37, 0  ;;  %v6548_v51 = vshrl.u32 %v4197_v25, 16  ;;  %v65_v59 = vld [vmem:[%s6507_s1 + $0x8] sm:$0x3] }
  0x14   :  { %v259_v54 = vrot.slane %v258_v38, 4  ;;  %v4221_v55 = vunpack.c.l.b16 %v250_v45  ;;  %686 = vmatpush.bf16.msrb.mxu2 %v678_v46  ;;  %v72_v57 = vrot.slane %v6550_v40, 4  ;;  %v75_v58 = vrot.slane %v6549_v41, 5  ;;  %v3608_v21 = vld [vmem:[%s6507_s1 + $0x38] sm:$0x3] }
  0x15   :  { %3528 = vmatmul.msk.bf16.vlgmr.msra.gmra.mxu2 %vm330_vm3, %v317_v43  ;;  %v81_v2 = vrot.slane %v79_v42, 5  ;;  %v86_v11 = vrot.slane %v6548_v51, 4  ;;  %v6545_v16 = vshll.u32 %v4197_v25, 16  ;;  %v93_v19 = vshll.u32 %v4208_v39, 16  ;;  %v4248_v38 = vld [vmem:[%s6508_s0 + $0x30] sm:$0xf] }
  0x16   :  { %6743 = vst [vmem:[#allocation5_spill] sm:$0xff] %v4221_v55  ;;  %v264_v22 = vsel %vm4116_vm4, %v259_v54, %v263_v33  ;;  %v76_v23 = vor.u32 %v75_v58, %v72_v57  ;;  %v4243_v32 = vrot.slane %v79_v42, 6  ;;  %v941_v37 = vunpack.c.l.b16 %v3577_v53  ;;  %v4263_v57 = vld [vmem:[%s6508_s0 + $0x34] sm:$0x3]  ;;  %v4268_v58 = vld [vmem:[%s6508_s0 + $0x38] sm:$0xf] }
  0x17   :  { %v4250_v43 = vunpack.c.l.b16 %v264_v22  ;;  %v89_v45 = vrot.slane %v6545_v16, 5  ;;  %v95_v46 = vrot.slane %v93_v19, 5  ;;  %v4254_v63 = vrot.slane %v93_v19, 6  ;;  %6746 = vst [vmem:[#allocation8_spill] sm:$0xff] %v4268_v58 }
  0x18   :  { %v77_v50 = vrot.slane %v76_v23, 4  ;;  %v943_v62 = vpack.c.b16 %v941_v37, %v941_v37  ;;  %v453_v33 = vunpack.c.l.b16 %v65_v59  ;;  %v1137_v54 = vunpack.c.l.b16 %v3608_v21  ;;  %687 = vmatpush.bf16.msrb.mxu2 %v3939_v60  ;;  %v4278_v23 = vld [vmem:[%s6508_s0 + $0x3c] sm:$0x3]  ;;  %v4283_v37 = vld [vmem:[%s6508_s0 + $0x70] sm:$0xf] }
  0x19   :  { %6744 = vst [vmem:[#allocation6_spill] sm:$0xff] %v4250_v43  ;;  %v4258_v42 = vpack.c.b16 %v4250_v43, %v4221_v55  ;;  %v90_v53 = vor.u32 %v89_v45, %v86_v11  ;;  %v6528_v19 = vshrl.u32 %v4248_v38, 16  ;;  %v6527_v59 = vshll.u32 %v4248_v38, 16 }
  0x1a   :  { %v82_v60 = vsel %vm4116_vm4, %v77_v50, %v81_v2  ;;  %v970_v21 = vsel %vm355_vm0, %v943_v62, 0  ;;  %v455_v11 = vpack.c.b16 %v453_v33, %v453_v33  ;;  %v1139_v22 = vpack.c.b16 %v1137_v54, %v1137_v54  ;;  %v4294_v2 = vld [vmem:[%s6508_s0 + $0x74] sm:$0x3] }
  0x1b   :  { %6745 = vst [vmem:[#allocation7_spill] sm:$0xff] %v4258_v42  ;;  %3530 = vmatmul.msk.bf16.vlgmr.msra.gmra.mxu3 %vm330_vm3, %v4258_v42  ;;  %v91_v45 = vrot.slane %v90_v53, 4  ;;  %v297_v61 = vunpack.c.l.b16 %v82_v60  ;;  %v156_v50 = vrot.slane %v6528_v19, 4  ;;  %v159_v62 = vrot.slane %v6527_v59, 5  ;;  %v3940_v60 = vld [vmem:[%s6507_s1 + $0x24] sm:$0xff] }
  0x1c   :  { %978 = vmatpush.bf16.msrb.mxu3 %v970_v21  ;;  %v482_v33 = vsel %vm355_vm0, %v455_v11, 0  ;;  %v1166_v54 = vsel %vm355_vm0, %v1139_v22, 0  ;;  %v6524_v49 = vshll.u32 %v4263_v57, 16  ;;  %v6523_v53 = vshrl.u32 %v4268_v58, 16  ;;  %v4310_v22 = vld [vmem:[%s6508_s0 + $0x78] sm:$0xf] }
  0x1d   :  { %v96_v44 = vsel %vm4116_vm4, %v91_v45, %v95_v46  ;;  %490 = vmatpush.bf16.msrb.mxu1 %v482_v33  ;;  %1174 = vmatpush.bf16.msrb.mxu0 %v1166_v54  ;;  %v160_v35 = vor.u32 %v159_v62, %v156_v50  ;;  %v6526_v21 = vshll.u32 %v4268_v58, 16  ;;  %v6525_v11 = vshll.u32 %v4278_v23, 16  ;;  %6747 = vst [vmem:[#allocation9_spill] sm:$0xff] %v4310_v22  ;;  %v3941_v46 = vld [vmem:[%s6507_s1 + $0x30] sm:$0xff] }
  0x1e   :  { %v4318_v45 = vunpack.c.l.b16 %v96_v44  ;;  %v165_v50 = vrot.slane %v6524_v49, 5  ;;  %v170_v62 = vrot.slane %v6523_v53, 4  ;;  %v6529_v33 = vshrl.u32 %v4283_v37, 16  ;;  %v4332_v44 = vld [vmem:[%s6508_s0 + $0x7c] sm:$0x3] }
  0x1f   :  { %v161_v54 = vrot.slane %v160_v35, 4  ;;  %v173_v34 = vrot.slane %v6526_v21, 5  ;;  %v179_v29 = vrot.slane %v6525_v11, 5  ;;  %v6531_v27 = vshll.u32 %v4283_v37, 16  ;;  %v4343_v11 = vld [vmem:[%s6508_s0 + $0x90] sm:$0xf] }
  0x20   :  { %v313_v24 = vpack.c.b16 %v4318_v45, %v297_v61  ;;  %v212_v53 = vrot.slane %v6529_v33, 4  ;;  %v6533_v35 = vshll.u32 %v4294_v2, 16  ;;  %v6535_v49 = vshrl.u32 %v4310_v22, 16  ;;  %979 = vmatpush.bf16.msrb.mxu3 %v3940_v60  ;;  %v4353_v33 = vld [vmem:[%s6508_s0 + $0x94] sm:$0x3] }
  0x21   :  { %v166_v21 = vsel %vm4116_vm4, %v161_v54, %v165_v50  ;;  %v174_v59 = vor.u32 %v173_v34, %v170_v62  ;;  %v215_v61 = vrot.slane %v6531_v27, 5  ;;  %v6534_v19 = vshll.u32 %v4310_v22, 16  ;;  %491 = vmatpush.bf16.msrb.mxu1 %v3937_v28  ;;  %1175 = vmatpush.bf16.msrb.mxu0 %v3941_v46 }
  0x22   :  { %3524 = vmatmul.msk.bf16.vlgmr.msra.gmra.mxu0 %vm330_vm3, %v313_v24  ;;  %v4361_v34 = vunpack.c.l.b16 %v166_v21  ;;  %v221_v60 = vrot.slane %v6533_v35, 5  ;;  %v226_v50 = vrot.slane %v6535_v49, 4  ;;  %v6536_v62 = vshll.u32 %v4332_v44, 16  ;;  %v4376_v21 = vld [vmem:[%s6508_s0 + $0x9c] sm:$0x3] }
  0x23   :  { %v175_v54 = vrot.slane %v174_v59, 4  ;;  %v216_v27 = vor.u32 %v215_v61, %v212_v53  ;;  %v229_v12 = vrot.slane %v6534_v19, 5  ;;  %v6543_v28 = vshrl.u32 %v4343_v11, 16 }
  0x24   :  { %v235_v24 = vrot.slane %v6536_v62, 5  ;;  %v6540_v46 = vshll.u32 %v4343_v11, 16  ;;  %v6541_v35 = vshll.u32 %v4353_v33, 16  ;;  %v6542_v59 = vshrl.u32 %v4358_v13, 16  ;;  %v4388_v62 = vld [vmem:[%s6508_s0 + $0x10] sm:$0xf] }
  0x25   :  { %v180_v53 = vsel %vm4116_vm4, %v175_v54, %v179_v29  ;;  %v217_v61 = vrot.slane %v216_v27, 4  ;;  %v230_v19 = vor.u32 %v229_v12, %v226_v50  ;;  %v268_v49 = vrot.slane %v6543_v28, 4 }
  0x26   :  { %v4390_v8 = vunpack.c.l.b16 %v180_v53  ;;  %v271_v9 = vrot.slane %v6540_v46, 5  ;;  %v277_v7 = vrot.slane %v6541_v35, 5  ;;  %v282_v27 = vrot.slane %v6542_v59, 4  ;;  %v4405_v53 = vld [vmem:[%s6508_s0 + $0x14] sm:$0x3] }
  0x27   :  { %v222_v12 = vsel %vm4116_vm4, %v217_v61, %v221_v60  ;;  %v231_v29 = vrot.slane %v230_v19, 4  ;;  %v6546_v50 = vshll.u32 %v4358_v13, 16  ;;  %v6547_v54 = vshll.u32 %v4376_v21, 16  ;;  %v4416_v19 = vld [vmem:[%s6508_s0 + $0x18] sm:$0xf] }
  0x28   :  { %6748 = vst [vmem:[#allocation10_spill] sm:$0xff] %v4390_v8  ;;  %v4409_v46 = vpack.c.b16 %v4390_v8, %v4361_v34  ;;  %v4411_v35 = vunpack.c.l.b16 %v222_v12  ;;  %v272_v59 = vor.u32 %v271_v9, %v268_v49  ;;  %v6551_v60 = vshrl.u32 %v4388_v62, 16  ;;  %v4428_v9 = vld [vmem:[%s6508_s0 + $0x1c] sm:$0x3] }
  0x29   :  { %v236_v61 = vsel %vm4116_vm4, %v231_v29, %v235_v24  ;;  %v285_v28 = vrot.slane %v6546_v50, 5  ;;  %v291_v6 = vrot.slane %v6547_v54, 5  ;;  %v6552_v49 = vshll.u32 %v4388_v62, 16 }
  0x2a   :  { %6749 = vst [vmem:[#allocation11_spill] sm:$0xff] %v4409_v46  ;;  %3527 = vmatmul.msk.bf16.gmra.mxu1 %vm330_vm3, %v4409_v46  ;;  %v4433_v12 = vunpack.c.l.b16 %v236_v61  ;;  %v273_v16 = vrot.slane %v272_v59, 4  ;;  %v100_v24 = vrot.slane %v6551_v60, 4  ;;  %v6557_v29 = vshll.u32 %v4405_v53, 16 }
  0x2b   :  { %6750 = vst [vmem:[#allocation12_spill] sm:$0xff] %v4411_v35  ;;  %v286_v50 = vor.u32 %v285_v28, %v282_v27  ;;  %v103_v54 = vrot.slane %v6552_v49, 5  ;;  %v6558_v51 = vshrl.u32 %v4416_v19, 16  ;;  %v6559_v41 = vshll.u32 %v4416_v19, 16 }
  0x2c   :  { %6751 = vst [vmem:[#allocation13_spill] sm:$0xff] %v4433_v12  ;;  %v4444_v40 = vpack.c.b16 %v4433_v12, %v4411_v35  ;;  %v278_v59 = vsel %vm4116_vm4, %v273_v16, %v277_v7  ;;  %v109_v61 = vrot.slane %v6557_v29, 5  ;;  %v6560_v60 = vshll.u32 %v4428_v9, 16  ;;  %v3655_v35 = vld [vmem:[%s6507_s1 + $0x5c] sm:$0x3] }
  0x2d   :  { %v287_v28 = vrot.slane %v286_v50, 4  ;;  %v4451_v27 = vunpack.c.l.b16 %v278_v59  ;;  %v104_v49 = vor.u32 %v103_v54, %v100_v24  ;;  %v114_v42 = vrot.slane %v6558_v51, 4 }
  0x2e   :  { %6752 = vst [vmem:[#allocation14_spill] sm:$0xff] %v4444_v40  ;;  %3529 = vmatmul.msk.bf16.gmra.mxu2 %vm330_vm3, %v4444_v40  ;;  %v117_v46 = vrot.slane %v6559_v41, 5  ;;  %v123_v7 = vrot.slane %v6560_v60, 5  ;;  %v424_v16 = vunpack.c.l.b16 %v4181_v17  ;;  %v6562_v29 = vunpack.c.l.b16 %v4197_v25 }
  0x2f   :  { %6753 = vst [vmem:[#allocation15_spill] sm:$0xff] %v4451_v27  ;;  %v292_v50 = vsel %vm4116_vm4, %v287_v28, %v291_v6  ;;  %v105_v54 = vrot.slane %v104_v49, 4  ;;  %vm549_vm5 = vcmask 1042432   ;;  %vm550_vm6 = vcmask 1046532  }
  0x30   :  { %v4465_v24 = vunpack.c.l.b16 %v292_v50  ;;  %v118_v59 = vor.u32 %v117_v46, %v114_v42  ;;  %v440_v51 = vpack.c.b16 %v6562_v29, %v424_v16  ;;  %vm4469_vm7 = vmor %vm549_vm5, %vm550_vm6  ;;  %v3544_v60 = vrot.slane %v4181_v17, 9 }
  0x31   :  { %v110_v40 = vsel %vm4116_vm4, %v105_v54, %v109_v61  ;;  %v554_v6 = vrot.slane %v4186_v18, 5  ;;  %v3545_v49 = vrot.slane %v4197_v25, 9  ;;  %v558_v28 = vrot.slane %v4208_v39, 5 }
  0x32   :  { %6754 = vst [vmem:[#allocation16_spill] sm:$0xff] %v4465_v24  ;;  %v4481_v42 = vpack.c.b16 %v4465_v24, %v4451_v27  ;;  %v119_v46 = vrot.slane %v118_v59, 4  ;;  %v4483_v16 = vunpack.c.l.b16 %v110_v40  ;;  %vm745_vm8 = vsmask.f32 2304 }
  0x33   :  { %v555_v50 = vsel %vm4469_vm7, %v3544_v60, %v554_v6  ;;  %v4489_v61 = vsel %vm4469_vm7, %v3545_v49, %v558_v28  ;;  %vm746_vm9 = vsmask.f32 6416  ;;  %v6758_v54 = vshrl.u32 %v4181_v17, 16 }
  0x34   :  { %6757 = vst [vmem:[#allocation17_spill] sm:$0xff] %v4481_v42  ;;  %3531 = vmatmul.msk.bf16.gmra.mxu3 %vm330_vm3, %v4481_v42  ;;  %v124_v40 = vsel %vm4116_vm4, %v119_v46, %v123_v7  ;;  %v620_v59 = vunpack.c.l.b16 %v555_v50  ;;  %v6571_v6 = vunpack.c.l.b16 %v4489_v61  ;;  %v6759_v28 = vshll.u32 %v4181_v17, 16  ;;  %vm4521_vm10 = vmor %vm745_vm8, %vm746_vm9 }
  0x35   :  { %v748_v29 = vrot.slane %v6758_v54, 5  ;;  %v4503_v49 = vunpack.c.l.b16 %v124_v40  ;;  %v752_v24 = vshrl.u32 %v4186_v18, 16  ;;  %v6760_v27 = vshrl.u32 %v4197_v25, 16 }
  0x36   :  { %v749_v54 = vrot.slane %v6759_v28, 6  ;;  %v636_v42 = vpack.c.b16 %v6571_v6, %v620_v59  ;;  %v6761_v7 = vshll.u32 %v4197_v25, 16  ;;  %v762_v50 = vshrl.u32 %v4208_v39, 16 }
  0x37   :  { %v758_v43 = vrot.slane %v6760_v27, 5  ;;  %v1397_v60 = vunpack.c.l.b16 %v3638_v0  ;;  %v4517_v40 = vpack.c.b16 %v4503_v49, %v4483_v16  ;;  %v754_v55 = vrot.slane %v752_v24, 5 }
  0x38   :  { %v759_v46 = vrot.slane %v6761_v7, 6  ;;  %v750_v27 = vor.u32 %v749_v54, %v748_v29  ;;  %vm1038_vm11 = vcmask 1045508   ;;  %v764_v6 = vrot.slane %v762_v50, 5  ;;  %v3623_v29 = vld [vmem:[%s6507_s1 + $0x44] sm:$0x3] }
  0x39   :  { %6762 = vst [vmem:[#allocation18_spill] sm:$0xff] %v4517_v40  ;;  %v1399_v12 = vpack.c.b16 %v1397_v60, %v1397_v60  ;;  %vm4526_vm12 = vmor %vm355_vm0, %vm1038_vm11  ;;  %v3590_v0 = vrot.slane %v4181_v17, 10  ;;  %3525 = vmatmul.msk.bf16.gmra.mxu0 %vm330_vm3, %v4517_v40  ;;  %v756_v24 = vor.u32 %v4243_v32, %v754_v55  ;;  %v1042_v60 = vrot.slane %v4186_v18, 6 }
  0x3a   :  { %v760_v59 = vor.u32 %v759_v46, %v758_v43  ;;  %v751_v43 = vrot.slane %v750_v27, 4  ;;  %v3591_v54 = vrot.slane %v4197_v25, 10  ;;  %3536 = vmatmul.msk.bf16.vlgmr.msrb.gmra.mxu1 %vm330_vm3, %v440_v51  ;;  %v766_v46 = vor.u32 %v4254_v63, %v764_v6  ;;  %v3670_v51 = vld [vmem:[%s6507_s1 + $0x68] sm:$0x3] }
  0x3b   :  { %v1426_v50 = vsel %vm355_vm0, %v1399_v12, 0  ;;  %v1046_v26 = vrot.slane %v4208_v39, 6  ;;  %v1043_v55 = vsel %vm4526_vm12, %v3590_v0, %v1042_v60  ;;  %v1522_v32 = vunpack.c.l.b16 %v3655_v35 }
  0x3c   :  { %v761_v17 = vrot.slane %v760_v59, 4  ;;  %v757_v8 = vsel %vm4521_vm10, %v751_v43, %v756_v24  ;;  %1434 = vmatpush.bf16.msra.mxu2 %v1426_v50  ;;  %v1254_v18 = vunpack.c.l.b16 %v3623_v29  ;;  %v1108_v6 = vunpack.c.l.b16 %v1043_v55 }
  0x3d   :  { %v912_v12 = vunpack.c.l.b16 %v757_v8  ;;  %v4559_v39 = vsel %vm4526_vm12, %v3591_v54, %v1046_v26  ;;  %v1524_v35 = vpack.c.b16 %v1522_v32, %v1522_v32  ;;  %v1657_v29 = vunpack.c.l.b16 %v3670_v51 }
  0x3e   :  { %v4555_v63 = vsel %vm4521_vm10, %v761_v17, %v766_v46  ;;  %v1109_v59 = vunpack.c.l.b16 %v4559_v39  ;;  %v1256_v0 = vpack.c.b16 %v1254_v18, %v1254_v18  ;;  %3567 = vmatmul.msk.bf16.vlgmr.msrb.gmra.mxu2 %vm330_vm3, %v636_v42  ;;  %v426_v43 = vunpack.c.l.b16 %v4388_v62 }
  0x3f   :  { %v913_v27 = vunpack.c.l.b16 %v4555_v63  ;;  %v3546_v24 = vrot.slane %v4388_v62, 9  ;;  %v1551_v8 = vsel %vm355_vm0, %v1524_v35, 0  ;;  %v1659_v46 = vpack.c.b16 %v1657_v29, %v1657_v29 }
  0x40   :  { %v1283_v26 = vsel %vm355_vm0, %v1256_v0, 0  ;;  %v1124_v17 = vpack.c.b16 %v1109_v59, %v1108_v6  ;;  %1559 = vmatpush.bf16.msra.mxu3 %v1551_v8  ;;  %v6767_v50 = vunpack.c.l.b16 %v4197_v25  ;;  %v562_v42 = vrot.slane %v4405_v53, 5 }
  0x41   :  { %v928_v60 = vpack.c.b16 %v913_v27, %v912_v12  ;;  %1291 = vmatpush.bf16.msra.mxu1 %v1283_v26  ;;  %v3547_v32 = vrot.slane %v4416_v19, 9  ;;  %v566_v18 = vrot.slane %v4428_v9, 5  ;;  %v6768_v51 = vshrl.u32 %v4388_v62, 16 }
  0x42   :  { %v4571_v55 = vpack.c.b16 %v426_v43, %v6767_v50  ;;  %v6769_v12 = vshll.u32 %v4388_v62, 16  ;;  %v1686_v6 = vsel %vm355_vm0, %v1659_v46, 0  ;;  %v563_v35 = vsel %vm4469_vm7, %v3546_v24, %v562_v42 }
  0x43   :  { %v768_v63 = vrot.slane %v6768_v51, 5  ;;  %v772_v25 = vshrl.u32 %v4405_v53, 16  ;;  %v6770_v0 = vshll.u32 %v4405_v53, 16  ;;  %1694 = vmatpush.bf16.msra.mxu0 %v1686_v6  ;;  %v4588_v8 = vsel %vm4469_vm7, %v3547_v32, %v566_v18 }
  0x44   :  { %v769_v39 = vrot.slane %v6769_v12, 6  ;;  %v622_v26 = vunpack.c.l.b16 %v563_v35  ;;  %v6771_v51 = vshrl.u32 %v4416_v19, 16  ;;  %3582 = vmatmul.msk.bf16.vlgmr.msrb.gmra.mxu3 %vm330_vm3, %v928_v60  ;;  %v6772_v42 = vshll.u32 %v4416_v19, 16 }
  0x45   :  { %v775_v29 = vrot.slane %v6770_v0, 6  ;;  %v774_v24 = vrot.slane %v772_v25, 5  ;;  %v782_v0 = vshrl.u32 %v4428_v9, 16  ;;  %v6773_v6 = vunpack.c.l.b16 %v4489_v61 }
  0x46   :  { %v770_v50 = vor.u32 %v769_v39, %v768_v63  ;;  %v778_v12 = vrot.slane %v6771_v51, 5  ;;  %v779_v54 = vrot.slane %v6772_v42, 6  ;;  %v6774_v18 = vshll.u32 %v4428_v9, 16 }
  0x47   :  { %v4599_v40 = vpack.c.b16 %v622_v26, %v6773_v6  ;;  %v3592_v39 = vrot.slane %v4388_v62, 10  ;;  %v6775_v60 = vunpack.c.l.b16 %v4416_v19  ;;  %v776_v25 = vor.u32 %v775_v29, %v774_v24 }
  0x48   :  { %v771_v32 = vrot.slane %v770_v50, 4  ;;  %v785_v63 = vrot.slane %v6774_v18, 6  ;;  %v780_v51 = vor.u32 %v779_v54, %v778_v12  ;;  %v784_v46 = vrot.slane %v782_v0, 5 }
  0x49   :  { %v4606_v35 = vpack.c.b16 %v6775_v60, %v426_v43  ;;  %v1050_v42 = vrot.slane %v4405_v53, 6  ;;  %3613 = vmatmul.msk.bf16.vlgmr.msrb.gmra.mxu0 %vm330_vm3, %v1124_v17  ;;  %v6777_v50 = vunpack.c.l.b16 %v4588_v8  ;;  %v3593_v54 = vrot.slane %v4416_v19, 10 }
  0x4a   :  { %v777_v61 = vsel %vm4521_vm10, %v771_v32, %v776_v25  ;;  %v781_v6 = vrot.slane %v780_v51, 4  ;;  %v786_v31 = vor.u32 %v785_v63, %v784_v46  ;;  %v1054_v29 = vrot.slane %v4428_v9, 6 }
  0x4b   :  { %6776 = vst [vmem:[#allocation19_spill] sm:$0xff] %v4606_v35  ;;  %v4614_v18 = vpack.c.b16 %v6777_v50, %v622_v26  ;;  %v914_v62 = vunpack.c.l.b16 %v777_v61  ;;  %v1051_v43 = vsel %vm4526_vm12, %v3592_v39, %v1050_v42  ;;  %3537 = vmatmul.msk.bf16.gmra.mxu1 %vm330_vm3, %v4606_v35  ;;  %v3548_v46 = vrot.slane %v4046_v1, 9 }
  0x4c   :  { %v4622_v53 = vsel %vm4521_vm10, %v781_v6, %v786_v31  ;;  %v1110_v17 = vunpack.c.l.b16 %v1051_v43  ;;  %v570_v24 = vrot.slane %v4051_v3, 5  ;;  %v3549_v32 = vrot.slane %v4056_v4, 9 }
  0x4d   :  { %6778 = vst [vmem:[#allocation20_spill] sm:$0xff] %v4614_v18  ;;  %v6580_v12 = vunpack.c.l.b16 %v4622_v53  ;;  %v4627_v26 = vpack.c.b16 %v914_v62, %v913_v27  ;;  %v574_v31 = vrot.slane %v4061_v5, 5  ;;  %v6780_v63 = vshrl.u32 %v4046_v1, 16 }
  0x4e   :  { %v4631_v0 = vpack.c.b16 %v1110_v17, %v1109_v59  ;;  %v6781_v9 = vshll.u32 %v4046_v1, 16  ;;  %v792_v25 = vshrl.u32 %v4051_v3, 16  ;;  %3568 = vmatmul.msk.bf16.gmra.mxu2 %vm330_vm3, %v4614_v18  ;;  %v4648_v59 = vsel %vm4526_vm12, %v3593_v54, %v1054_v29 }
  0x4f   :  { %v788_v39 = vrot.slane %v6780_v63, 5  ;;  %v4644_v27 = vpack.c.b16 %v6580_v12, %v914_v62  ;;  %6783 = vst [vmem:[#allocation23_spill] sm:$0xff] %v4648_v59  ;;  %v6784_v51 = vshrl.u32 %v4056_v4, 16  ;;  %v6785_v50 = vshll.u32 %v4051_v3, 16 }
  0x50   :  { %6779 = vst [vmem:[#allocation21_spill] sm:$0xff] %v4631_v0  ;;  %v789_v60 = vrot.slane %v6781_v9, 6  ;;  %v794_v6 = vrot.slane %v792_v25, 5  ;;  %v6786_v63 = vshll.u32 %v4056_v4, 16  ;;  %v4658_v18 = vsel %vm4469_vm7, %v3548_v46, %v570_v24 }
  0x51   :  { %6782 = vst [vmem:[#allocation22_spill] sm:$0xff] %v4644_v27  ;;  %v798_v42 = vrot.slane %v6784_v51, 5  ;;  %v795_v43 = vrot.slane %v6785_v50, 6  ;;  %v4662_v62 = vsel %vm4469_vm7, %v3549_v32, %v574_v31  ;;  %v802_v54 = vshrl.u32 %v4061_v5, 16 }
  0x52   :  { %v790_v61 = vor.u32 %v789_v60, %v788_v39  ;;  %v799_v9 = vrot.slane %v6786_v63, 6  ;;  %6787 = vst [vmem:[#allocation24_spill] sm:$0xff] %v4662_v62  ;;  %v6788_v29 = vshll.u32 %v4061_v5, 16  ;;  %v6582_v60 = vunpack.c.l.b16 %v4648_v59 }
  0x53   :  { %v6586_v51 = vunpack.c.l.b16 %v4046_v1  ;;  %v6583_v50 = vunpack.c.l.b16 %v4056_v4  ;;  %v804_v63 = vrot.slane %v802_v54, 5  ;;  %v6585_v46 = vunpack.c.l.b16 %v4658_v18 }
  0x54   :  { %v805_v39 = vrot.slane %v6788_v29, 6  ;;  %v800_v25 = vor.u32 %v799_v9, %v798_v42  ;;  %v6584_v24 = vunpack.c.l.b16 %v4662_v62  ;;  %v791_v12 = vrot.slane %v790_v61, 4  ;;  %3583 = vmatmul.msk.bf16.gmra.mxu3 %vm330_vm3, %v4644_v27 }
  0x55   :  { %v796_v32 = vor.u32 %v795_v43, %v794_v6  ;;  %v4676_v29 = vpack.c.b16 %v6582_v60, %v1110_v17  ;;  %v3551_v42 = vrot.slane %v4268_v58, 9  ;;  %v4683_v9 = vpack.c.b16 %v6583_v50, %v6586_v51 }
  0x56   :  { %v801_v31 = vrot.slane %v800_v25, 4  ;;  %v806_v35 = vor.u32 %v805_v39, %v804_v63  ;;  %v3594_v61 = vrot.slane %v4046_v1, 10  ;;  %v582_v6 = vrot.slane %v4278_v23, 5 }
  0x57   :  { %6789 = vst [vmem:[#allocation25_spill] sm:$0xff] %v4676_v29  ;;  %v6791_v43 = vshrl.u32 %v4248_v38, 16  ;;  %v4693_v17 = vpack.c.b16 %v6584_v24, %v6585_v46  ;;  %v4697_v39 = vsel %vm4521_vm10, %v791_v12, %v796_v32  ;;  %v1058_v25 = vrot.slane %v4051_v3, 6 }
  0x58   :  { %6790 = vst [vmem:[#allocation26_spill] sm:$0xff] %v4683_v9  ;;  %v6793_v63 = vshll.u32 %v4248_v38, 16  ;;  %v4704_v50 = vsel %vm4521_vm10, %v801_v31, %v806_v35  ;;  %v812_v24 = vshrl.u32 %v4263_v57, 16  ;;  %v6796_v46 = vshll.u32 %v4263_v57, 16 }
  0x59   :  { %v808_v54 = vrot.slane %v6791_v43, 5  ;;  %6792 = vst [vmem:[#allocation27_spill] sm:$0xff] %v4693_v17  ;;  %v4708_v43 = vsel %vm4469_vm7, %v3551_v42, %v582_v6  ;;  %3614 = vmatmul.msk.bf16.gmra.mxu0 %vm330_vm3, %v4676_v29  ;;  %v3595_v3 = vrot.slane %v4056_v4, 10  ;;  %v1062_v12 = vrot.slane %v4061_v5, 6 }
  0x5a   :  { %v809_v60 = vrot.slane %v6793_v63, 6  ;;  %6794 = vst [vmem:[#allocation28_spill] sm:$0xff] %v4704_v50  ;;  %v815_v51 = vrot.slane %v6796_v46, 6  ;;  %v6797_v35 = vshrl.u32 %v4268_v58, 16  ;;  %v814_v42 = vrot.slane %v812_v24, 5 }
  0x5b   :  { %6795 = vst [vmem:[#allocation29_spill] sm:$0xff] %v4708_v43  ;;  %3538 = vmatmul.msk.bf16.gmra.mxu1 %vm330_vm3, %v4683_v9  ;;  %v6798_v6 = vshll.u32 %v4268_v58, 16  ;;  %v822_v46 = vshrl.u32 %v4278_v23, 16  ;;  %v6799_v27 = vshll.u32 %v4278_v23, 16  ;;  %v6596_v59 = vunpack.c.l.b16 %v4697_v39 }
  0x5c   :  { %v810_v32 = vor.u32 %v809_v60, %v808_v54  ;;  %v818_v31 = vrot.slane %v6797_v35, 5  ;;  %v6594_v5 = vunpack.c.l.b16 %v4704_v50  ;;  %v816_v54 = vor.u32 %v815_v51, %v814_v42 }
  0x5d   :  { %v819_v63 = vrot.slane %v6798_v6, 6  ;;  %v825_v29 = vrot.slane %v6799_v27, 6  ;;  %v824_v35 = vrot.slane %v822_v46, 5  ;;  %v3597_v62 = vrot.slane %v4268_v58, 10  ;;  %v3943_v46 = vld [vmem:[%s6507_s1 + $0x48] sm:$0xff] }
  0x5e   :  { %v811_v60 = vrot.slane %v810_v32, 4  ;;  %v4731_v24 = vsel %vm4526_vm12, %v3594_v61, %v1058_v25  ;;  %v1070_v6 = vrot.slane %v4278_v23, 6  ;;  %3569 = vmatmul.msk.bf16.gmra.mxu2 %vm330_vm3, %v4693_v17  ;;  %v4738_v27 = vsel %vm4526_vm12, %v3595_v3, %v1062_v12 }
  0x5f   :  { %v820_v0 = vor.u32 %v819_v63, %v818_v31  ;;  %6800 = vst [vmem:[#allocation30_spill] sm:$0xff] %v4731_v24  ;;  %v826_v31 = vor.u32 %v825_v29, %v824_v35  ;;  %v3550_v42 = vrot.slane %v4248_v38, 9  ;;  %v578_v61 = vrot.slane %v4263_v57, 5  ;;  %1435 = vmatpush.bf16.msra.mxu2 %v3943_v46 }
  0x60   :  { %6801 = vst [vmem:[#allocation31_spill] sm:$0xff] %v4738_v27  ;;  %v4742_v51 = vsel %vm4521_vm10, %v811_v60, %v816_v54  ;;  %v4748_v23 = vsel %vm4526_vm12, %v3597_v62, %v1070_v6  ;;  %v4754_v25 = vpack.c.b16 %v6594_v5, %v6596_v59  ;;  %v6591_v29 = vunpack.c.l.b16 %v4738_v27 }
  0x61   :  { %6802 = vst [vmem:[#allocation32_spill] sm:$0xff] %v4742_v51  ;;  %v821_v32 = vrot.slane %v820_v0, 4  ;;  %v6592_v0 = vunpack.c.l.b16 %v4731_v24  ;;  %v6595_v12 = vunpack.c.l.b16 %v4248_v38  ;;  %v6593_v63 = vunpack.c.l.b16 %v4268_v58 }
  0x62   :  { %6803 = vst [vmem:[#allocation33_spill] sm:$0xff] %v4748_v23  ;;  %v4766_v62 = vsel %vm4469_vm7, %v3550_v42, %v578_v61  ;;  %v6601_v6 = vunpack.c.l.b16 %v4708_v43  ;;  %v3944_v42 = vld [vmem:[%s6507_s1 + $0x54] sm:$0xff]  ;;  %v3942_v61 = vld [vmem:[%s6507_s1 + $0x3c] sm:$0xff]  ;;  %v6809_v5 = vshrl.u32 %v4070_v10, 16  ;;  %v6810_v59 = vshll.u32 %v4070_v10, 16 }
  0x63   :  { %6804 = vst [vmem:[#allocation34_spill] sm:$0xff] %v4754_v25  ;;  %v4758_v3 = vsel %vm4521_vm10, %v821_v32, %v826_v31  ;;  %v4777_v60 = vpack.c.b16 %v6591_v29, %v6592_v0  ;;  %v4783_v54 = vpack.c.b16 %v6593_v63, %v6595_v12  ;;  %v6602_v35 = vunpack.c.l.b16 %v4766_v62  ;;  %v3945_v29 = vld [vmem:[%s6507_s1 + $0x60] sm:$0xff]  ;;  %1560 = vmatpush.bf16.msra.mxu3 %v3944_v42 }
  0x64   :  { %3584 = vmatmul.msk.bf16.gmra.mxu3 %vm330_vm3, %v4754_v25  ;;  %v3596_v32 = vrot.slane %v4248_v38, 10  ;;  %v1066_v31 = vrot.slane %v4263_v57, 6  ;;  %1292 = vmatpush.bf16.msra.mxu1 %v3942_v61  ;;  %v6620_v63 = vunpack.c.l.b16 %v4758_v3  ;;  %v828_v12 = vrot.slane %v6809_v5, 5 }
  0x65   :  { %6805 = vst [vmem:[#allocation35_spill] sm:$0xff] %v4777_v60  ;;  %v4806_v57 = vpack.c.b16 %v6601_v6, %v6602_v35  ;;  %v832_v25 = vshrl.u32 %v4077_v14, 16  ;;  %1695 = vmatpush.bf16.msra.mxu0 %v3945_v29  ;;  %v6811_v6 = vshrl.u32 %v4082_v15, 16  ;;  %v6812_v46 = vshll.u32 %v4082_v15, 16 }
  0x66   :  { %6806 = vst [vmem:[#allocation36_spill] sm:$0xff] %v4783_v54  ;;  %v4811_v0 = vsel %vm4526_vm12, %v3596_v32, %v1066_v31  ;;  %v842_v31 = vshrl.u32 %v4095_v20, 16  ;;  %v3552_v5 = vrot.slane %v4070_v10, 9  ;;  %v3553_v61 = vrot.slane %v4082_v15, 9 }
  0x67   :  { %6807 = vst [vmem:[#allocation37_spill] sm:$0xff] %v4806_v57  ;;  %v838_v35 = vrot.slane %v6811_v6, 5  ;;  %v839_v32 = vrot.slane %v6812_v46, 6  ;;  %v590_v29 = vrot.slane %v4095_v20, 5  ;;  %v6813_v6 = vunpack.c.l.b16 %v4742_v51 }
  0x68   :  { %6808 = vst [vmem:[#allocation38_spill] sm:$0xff] %v4811_v0  ;;  %v834_v17 = vrot.slane %v832_v25, 5  ;;  %v6617_v42 = vunpack.c.l.b16 %v4748_v23  ;;  %v844_v24 = vrot.slane %v842_v31, 5  ;;  %v6816_v43 = vshll.u32 %v4095_v20, 16 }
  0x69   :  { %3615 = vmatmul.msk.bf16.gmra.mxu0 %vm330_vm3, %v4777_v60  ;;  %v829_v60 = vrot.slane %v6810_v59, 6  ;;  %v586_v59 = vrot.slane %v4077_v14, 5  ;;  %v4835_v46 = vpack.c.b16 %v6620_v63, %v6813_v6  ;;  %v840_v9 = vor.u32 %v839_v32, %v838_v35 }
  0x6a   :  { %v845_v58 = vrot.slane %v6816_v43, 6  ;;  %v432_v50 = vunpack.c.l.b16 %v4070_v10  ;;  %v6619_v51 = vunpack.c.l.b16 %v4082_v15  ;;  %v4848_v25 = vsel %vm4469_vm7, %v3553_v61, %v590_v29 }
  0x6b   :  { %3539 = vmatmul.msk.bf16.gmra.mxu1 %vm330_vm3, %v4783_v54  ;;  %6814 = vst [vmem:[#allocation39_spill] sm:$0xff] %v4835_v46  ;;  %v830_v54 = vor.u32 %v829_v60, %v828_v12  ;;  %v587_v6 = vsel %vm4469_vm7, %v3552_v5, %v586_v59  ;;  %v6817_v35 = vunpack.c.l.b16 %v4811_v0  ;;  %v6618_v59 = vunpack.c.l.b16 %v4848_v25 }
  0x6c   :  { %v846_v32 = vor.u32 %v845_v58, %v844_v24  ;;  %v444_v31 = vpack.c.b16 %v6619_v51, %v432_v50  ;;  %v628_v5 = vunpack.c.l.b16 %v587_v6  ;;  %v3598_v61 = vrot.slane %v4070_v10, 10 }
  0x6d   :  { %v831_v12 = vrot.slane %v830_v54, 4  ;;  %v4856_v43 = vpack.c.b16 %v6617_v42, %v6817_v35  ;;  %v1074_v29 = vrot.slane %v4077_v14, 6  ;;  %v3599_v50 = vrot.slane %v4082_v15, 10 }
  0x6e   :  { %3570 = vmatmul.msk.bf16.gmra.mxu2 %vm330_vm3, %v4806_v57  ;;  %v6815_v57 = vshll.u32 %v4077_v14, 16  ;;  %v640_v58 = vpack.c.b16 %v6618_v59, %v628_v5  ;;  %v1078_v10 = vrot.slane %v4095_v20, 6  ;;  %v6820_v54 = vshrl.u32 %v4283_v37, 16 }
  0x6f   :  { %6818 = vst [vmem:[#allocation40_spill] sm:$0xff] %v4856_v43  ;;  %v1075_v24 = vsel %vm4526_vm12, %v3598_v61, %v1074_v29  ;;  %v852_v35 = vshrl.u32 %v4294_v2, 16  ;;  %v862_v5 = vshrl.u32 %v4332_v44, 16  ;;  %v6826_v63 = vshll.u32 %v4332_v44, 16 }
  0x70   :  { %v835_v27 = vrot.slane %v6815_v57, 6  ;;  %v841_v57 = vrot.slane %v840_v9, 4  ;;  %v848_v6 = vrot.slane %v6820_v54, 5  ;;  %v4892_v61 = vsel %vm4526_vm12, %v3599_v50, %v1078_v10 }
  0x71   :  { %6824 = vst [vmem:[#allocation42_spill] sm:$0xff] %v4892_v61  ;;  %v1116_v29 = vunpack.c.l.b16 %v1075_v24  ;;  %v594_v54 = vrot.slane %v4294_v2, 5  ;;  %v854_v59 = vrot.slane %v852_v35, 5  ;;  %v6627_v50 = vunpack.c.l.b16 %v4892_v61 }
  0x72   :  { %v836_v60 = vor.u32 %v835_v27, %v834_v17  ;;  %v4869_v9 = vsel %vm4521_vm10, %v841_v57, %v846_v32  ;;  %v6822_v57 = vshrl.u32 %v4310_v22, 16  ;;  %v864_v24 = vrot.slane %v862_v5, 5 }
  0x73   :  { %6819 = vst [vmem:[#allocation41_spill] sm:$0xff] %v4869_v9  ;;  %v6630_v27 = vunpack.c.l.b16 %v4869_v9  ;;  %v6629_v23 = vunpack.c.l.b16 %v4310_v22  ;;  %v1128_v35 = vpack.c.b16 %v6627_v50, %v1116_v29  ;;  %v1086_v29 = vrot.slane %v4332_v44, 6 }
  0x74   :  { %3585 = vmatmul.msk.bf16.gmra.mxu3 %vm330_vm3, %v4835_v46  ;;  %v837_v17 = vsel %vm4521_vm10, %v831_v12, %v836_v60  ;;  %v6821_v12 = vshll.u32 %v4283_v37, 16  ;;  %v858_v32 = vrot.slane %v6822_v57, 5  ;;  %v598_v57 = vrot.slane %v4332_v44, 5 }
  0x75   :  { %v920_v14 = vunpack.c.l.b16 %v837_v17  ;;  %v3554_v17 = vrot.slane %v4283_v37, 9  ;;  %v6632_v46 = vunpack.c.l.b16 %v4283_v37  ;;  %v6834_v44 = vshrl.u32 %v4145_v47, 16 }
  0x76   :  { %v849_v60 = vrot.slane %v6821_v12, 6  ;;  %v3555_v12 = vrot.slane %v4310_v22, 9  ;;  %v6840_v61 = vshll.u32 %v4150_v48, 16 }
  0x77   :  { %v4909_v0 = vsel %vm4469_vm7, %v3554_v17, %v594_v54  ;;  %v3600_v54 = vrot.slane %v4283_v37, 10 }
  0x78   :  { %v850_v42 = vor.u32 %v849_v60, %v848_v6  ;;  %v6631_v5 = vunpack.c.l.b16 %v4909_v0 }
  0x79   :  { %3616 = vmatmul.msk.bf16.gmra.mxu0 %vm330_vm3, %v4856_v43  ;;  %v865_v43 = vrot.slane %v6826_v63, 6 }
  0x7a   :  { %v851_v6 = vrot.slane %v850_v42, 4  ;;  %v1082_v42 = vrot.slane %v4294_v2, 6 }
  0x7b   :  { %3540 = vmatmul.msk.bf16.gmra.mxu1 %vm330_vm3, %v444_v31  ;;  %v6823_v31 = vshll.u32 %v4310_v22, 16 }
  0x7d   :  { %v859_v20 = vrot.slane %v6823_v31, 6  ;;  %v932_v31 = vpack.c.b16 %v6630_v27, %v920_v14  ;;  %v4913_v14 = vsel %vm4469_vm7, %v3555_v12, %v598_v57  ;;  %v4950_v57 = vsel %vm4526_vm12, %v3600_v54, %v1082_v42 }
  0x7e   :  { %3571 = vmatmul.msk.bf16.gmra.mxu2 %vm330_vm3, %v640_v58  ;;  %v6825_v58 = vshll.u32 %v4294_v2, 16  ;;  %6827 = vst [vmem:[#allocation43_spill] sm:$0xff] %v4913_v14  ;;  %v6628_v17 = vunpack.c.l.b16 %v4913_v14  ;;  %v3601_v2 = vrot.slane %v4310_v22, 10  ;;  %v882_v42 = vshrl.u32 %v4150_v48, 16 }
  0x7f   :  { %v860_v10 = vor.u32 %v859_v20, %v858_v32  ;;  %v866_v32 = vor.u32 %v865_v43, %v864_v24  ;;  %v4922_v20 = vpack.c.b16 %v6629_v23, %v6632_v46  ;;  %6831 = vst [vmem:[#allocation47_spill] sm:$0xff] %v4950_v57  ;;  %v6833_v24 = vshll.u32 %v4112_v30, 16 }
  0x80   :  { %v855_v51 = vrot.slane %v6825_v58, 6  ;;  %v6832_v58 = vshrl.u32 %v4112_v30, 16  ;;  %v4969_v30 = vsel %vm4526_vm12, %v3601_v2, %v1086_v29  ;;  %v4019_v2 = vld [vmem:[%s6508_s0 + $0x8c] sm:$0x3]  ;;  %v885_v14 = vrot.slane %v6840_v61, 6 }
  0x81   :  { %v861_v63 = vrot.slane %v860_v10, 4  ;;  %6828 = vst [vmem:[#allocation44_spill] sm:$0xff] %v4922_v20  ;;  %v606_v29 = vrot.slane %v4019_v2, 5  ;;  %v6842_v61 = vunpack.c.l.b16 %v4950_v57 }
  0x82   :  { %v856_v60 = vor.u32 %v855_v51, %v854_v59  ;;  %v4943_v59 = vpack.c.b16 %v6628_v17, %v6631_v5  ;;  %v868_v10 = vrot.slane %v6832_v58, 5  ;;  %6836 = vst [vmem:[#allocation48_spill] sm:$0xff] %v4969_v30  ;;  %v6839_v5 = vshll.u32 %v4127_v36, 16 }
  0x83   :  { %v4935_v43 = vsel %vm4521_vm10, %v861_v63, %v866_v32  ;;  %v878_v63 = vrot.slane %v6834_v44, 5  ;;  %v6835_v32 = vshll.u32 %v4145_v47, 16  ;;  %v6640_v58 = vunpack.c.l.b16 %v4969_v30 }
  0x84   :  { %3586 = vmatmul.msk.bf16.gmra.mxu3 %vm330_vm3, %v932_v31  ;;  %v4930_v51 = vsel %vm4521_vm10, %v851_v6, %v856_v60  ;;  %6830 = vst [vmem:[#allocation46_spill] sm:$0xff] %v4943_v59  ;;  %v6643_v31 = vunpack.c.l.b16 %v4935_v43  ;;  %v869_v6 = vrot.slane %v6833_v24, 6  ;;  %v4016_v60 = vld [vmem:[%s6508_s0 + $0x84] sm:$0x3]  ;;  %v4975_v24 = vld [vmem:[%s6508_s0 + $0x80] sm:$0xf] }
  0x85   :  { %6829 = vst [vmem:[#allocation45_spill] sm:$0xff] %v4930_v51  ;;  %v6646_v12 = vunpack.c.l.b16 %v4930_v51  ;;  %v879_v54 = vrot.slane %v6835_v32, 6  ;;  %v3556_v44 = vrot.slane %v4975_v24, 9  ;;  %v602_v47 = vrot.slane %v4016_v60, 5  ;;  %v4981_v32 = vld [vmem:[%s6508_s0 + $0x88] sm:$0xf] }
  0x86   :  { %6837 = vst [vmem:[#allocation49_spill] sm:$0xff] %v4981_v32  ;;  %v3557_v50 = vrot.slane %v4981_v32, 9  ;;  %v870_v23 = vor.u32 %v869_v6, %v868_v10  ;;  %v875_v46 = vrot.slane %v6839_v5, 6  ;;  %v6645_v22 = vunpack.c.l.b16 %v4975_v24 }
  0x87   :  { %v4991_v17 = vpack.c.b16 %v6643_v31, %v6646_v12  ;;  %v6642_v51 = vunpack.c.l.b16 %v4981_v32  ;;  %v5004_v10 = vsel %vm4469_vm7, %v3556_v44, %v602_v47  ;;  %v5016_v6 = vpack.c.b16 %v6640_v58, %v6842_v61 }
  0x88   :  { %v5008_v36 = vsel %vm4469_vm7, %v3557_v50, %v606_v29  ;;  %v871_v5 = vrot.slane %v870_v23, 4  ;;  %v6644_v50 = vunpack.c.l.b16 %v5004_v10  ;;  %v3602_v23 = vrot.slane %v4975_v24, 10 }
  0x89   :  { %3617 = vmatmul.msk.bf16.gmra.mxu0 %vm330_vm3, %v1128_v35  ;;  %v872_v35 = vshrl.u32 %v4016_v60, 16  ;;  %6838 = vst [vmem:[#allocation50_spill] sm:$0xff] %v4991_v17  ;;  %v6854_v30 = vshll.u32 %v4376_v21, 16 }
  0x8a   :  { %6841 = vst [vmem:[#allocation51_spill] sm:$0xff] %v5008_v36 }
  0x8b   :  { %3541 = vmatmul.msk.bf16.gmra.mxu1 %vm330_vm3, %v4922_v20  ;;  %v874_v27 = vrot.slane %v872_v35, 5  ;;  %v884_v20 = vrot.slane %v882_v42, 5  ;;  %6843 = vst [vmem:[#allocation52_spill] sm:$0xff] %v5016_v6  ;;  %v6641_v42 = vunpack.c.l.b16 %v5008_v36  ;;  %v905_v57 = vrot.slane %v6854_v30, 6 }
  0x8d   :  { %v876_v48 = vor.u32 %v875_v46, %v874_v27  ;;  %v1090_v46 = vrot.slane %v4016_v60, 6  ;;  %v5044_v60 = vpack.c.b16 %v6641_v42, %v6644_v50  ;;  %v3559_v50 = vrot.slane %v4358_v13, 9 }
  0x8e   :  { %3572 = vmatmul.msk.bf16.gmra.mxu2 %vm330_vm3, %v4943_v59  ;;  %v880_v59 = vor.u32 %v879_v54, %v878_v63  ;;  %v5000_v9 = vpop.f32.mrf.mxu1  ;;  %v886_v63 = vor.u32 %v885_v14, %v884_v20  ;;  %v5022_v54 = vpack.c.b16 %v6642_v51, %v6645_v22  ;;  %v3603_v20 = vrot.slane %v4981_v32, 10 }
  0x8f   :  { %v5029_v27 = vsel %vm4521_vm10, %v871_v5, %v876_v48  ;;  %6846 = vst [vmem:[#allocation55_spill] sm:$0xff] %v5044_v60  ;;  %v5049_v47 = vsel %vm4526_vm12, %v3602_v23, %v1090_v46  ;;  %v6847_v5 = vshrl.u32 %v4343_v11, 16  ;;  %v6848_v48 = vshll.u32 %v4343_v11, 16 }
  0x90   :  { %v881_v35 = vrot.slane %v880_v59, 4  ;;  %6844 = vst [vmem:[#allocation53_spill] sm:$0xff] %v5022_v54  ;;  %v1094_v59 = vrot.slane %v4019_v2, 6  ;;  %v6662_v44 = vunpack.c.l.b16 %v5029_v27  ;;  %v6850_v23 = vshrl.u32 %v4358_v13, 16 }
  0x91   :  { %v888_v2 = vrot.slane %v6847_v5, 5  ;;  %v889_v61 = vrot.slane %v6848_v48, 6  ;;  %v6851_v51 = vshll.u32 %v4358_v13, 16  ;;  %v902_v5 = vshrl.u32 %v4376_v21, 16 }
  0x92   :  { %v5035_v14 = vsel %vm4521_vm10, %v881_v35, %v886_v63  ;;  %v892_v35 = vshrl.u32 %v4353_v33, 16  ;;  %v5059_v63 = vsel %vm4526_vm12, %v3603_v20, %v1094_v59  ;;  %v898_v46 = vrot.slane %v6850_v23, 5 }
  0x93   :  { %6845 = vst [vmem:[#allocation54_spill] sm:$0xff] %v5035_v14  ;;  %v6658_v29 = vunpack.c.l.b16 %v5035_v14  ;;  %v899_v31 = vrot.slane %v6851_v51, 6  ;;  %v3558_v20 = vrot.slane %v4343_v11, 9  ;;  %v610_v59 = vrot.slane %v4353_v33, 5 }
  0x94   :  { %3587 = vmatmul.msk.bf16.gmra.mxu3 %vm330_vm3, %v4991_v17  ;;  %6849 = vst [vmem:[#allocation56_spill] sm:$0xff] %v5059_v63  ;;  %v614_v22 = vrot.slane %v4376_v21, 5  ;;  %v6659_v23 = vunpack.c.l.b16 %v5059_v63  ;;  %v890_v12 = vor.u32 %v889_v61, %v888_v2  ;;  %v6853_v48 = vshll.u32 %v4353_v33, 16 }
  0x95   :  { %v5081_v51 = vpack.c.b16 %v6658_v29, %v6662_v44  ;;  %v6661_v32 = vunpack.c.l.b16 %v4343_v11  ;;  %v6660_v14 = vunpack.c.l.b16 %v4358_v13  ;;  %v5096_v2 = vsel %vm4469_vm7, %v3558_v20, %v610_v59  ;;  %v3702_v59 = vld [vmem:[%s6507_s1 + $0x80] sm:$0x3] }
  0x96   :  { %v5063_v42 = vpop.f32.mrf.mxu1  ;;  %v895_v17 = vrot.slane %v6853_v48, 6  ;;  %v5100_v61 = vsel %vm4469_vm7, %v3559_v50, %v614_v22  ;;  %v6675_v22 = vunpack.c.l.b16 %v5096_v2 }
  0x97   :  { %6852 = vst [vmem:[#allocation57_spill] sm:$0xff] %v5081_v51  ;;  %v5114_v20 = vpack.c.b16 %v6660_v14, %v6661_v32  ;;  %v6671_v50 = vunpack.c.l.b16 %v5100_v61 }
  0x98   :  { %v5061_v58 = vpop.f32.mrf.mxu2 }
  0x99   :  { %3618 = vmatmul.msk.bf16.gmra.mxu0 %vm330_vm3, %v5016_v6  ;;  %v894_v6 = vrot.slane %v892_v35, 5  ;;  %v891_v35 = vrot.slane %v890_v12, 4  ;;  %6857 = vst [vmem:[#allocation59_spill] sm:$0xff] %v5114_v20 }
  0x9b   :  { %3542 = vmatmul.msk.bf16.gmra.mxu1 %vm330_vm3, %v5022_v54  ;;  %v904_v54 = vrot.slane %v902_v5, 5 }
  0x9d   :  { %v906_v48 = vor.u32 %v905_v57, %v904_v54  ;;  %v3604_v57 = vrot.slane %v4343_v11, 10 }
  0x9e   :  { %3573 = vmatmul.msk.bf16.gmra.mxu2 %vm330_vm3, %v5044_v60  ;;  %v900_v60 = vor.u32 %v899_v31, %v898_v46  ;;  %v5092_v29 = vpop.f32.mrf.mxu3  ;;  %v6855_v31 = vunpack.c.l.b16 %v5049_v47  ;;  %v896_v46 = vor.u32 %v895_v17, %v894_v6  ;;  %v1891_v17 = vunpack.c.l.b16 %v3702_v59  ;;  %v3717_v59 = vld [vmem:[%s6507_s1 + $0x8c] sm:$0x3] }
  0x9f   :  { %v5088_v36 = vpop.f32.mrf.mxu0  ;;  %v1098_v6 = vrot.slane %v4353_v33, 6  ;;  %v3687_v33 = vld [vmem:[%s6507_s1 + $0x74] sm:$0x3] }
  0xa0   :  { %v5108_v30 = vpack.c.b16 %v6659_v23, %v6855_v31  ;;  %v901_v5 = vrot.slane %v900_v60, 4  ;;  %v5121_v31 = vpop.f32.mrf.mxu2  ;;  %v5131_v54 = vsel %vm4521_vm10, %v891_v35, %v896_v46  ;;  %v3605_v23 = vrot.slane %v4358_v13, 10 }
  0xa1   :  { %v1893_v14 = vpack.c.b16 %v1891_v17, %v1891_v17  ;;  %v5150_v35 = vpack.c.b16 %v6671_v50, %v6675_v22  ;;  %v1102_v46 = vrot.slane %v4376_v21, 6  ;;  %v6674_v44 = vunpack.c.l.b16 %v5131_v54 }
  0xa2   :  { %6856 = vst [vmem:[#allocation58_spill] sm:$0xff] %v5108_v30  ;;  %v5135_v60 = vsel %vm4521_vm10, %v901_v5, %v906_v48  ;;  %v2010_v5 = vunpack.c.l.b16 %v3717_v59  ;;  %v1780_v48 = vunpack.c.l.b16 %v3687_v33  ;;  %v5162_v21 = vsel %vm4526_vm12, %v3604_v57, %v1098_v6 }
  0xa3   :  { %6858 = vst [vmem:[#allocation60_spill] sm:$0xff] %v5150_v35  ;;  %v1902_v17 = vsel %vm355_vm0, %v1893_v14, 0  ;;  %v5166_v14 = vsel %vm4526_vm12, %v3605_v23, %v1102_v46  ;;  %v6673_v23 = vunpack.c.l.b16 %v5162_v21 }
  0xa4   :  { %3588 = vmatmul.msk.bf16.gmra.mxu3 %vm330_vm3, %v5081_v51  ;;  %1910 = vmatpush.bf16.msrb.mxu2 %v1902_v17  ;;  %v2012_v51 = vpack.c.b16 %v2010_v5, %v2010_v5  ;;  %v3734_v5 = vld [vmem:[%s6507_s1 + $0x98] sm:$0x3] }
  0xa5   :  { %v2111_v17 = vunpack.c.l.b16 %v3734_v5 }
  0xa6   :  { %v5156_v63 = vpop.f32.mrf.mxu3  ;;  %v2021_v59 = vsel %vm355_vm0, %v2012_v51, 0  ;;  %v6672_v51 = vunpack.c.l.b16 %v5166_v14 }
  0xa7   :  { %v5123_v12 = vpop.f32.mrf.mxu1  ;;  %v370_v32 = vpop.f32.mrf.mxu0  ;;  %2029 = vmatpush.bf16.msrb.mxu3 %v2021_v59  ;;  %v2113_v6 = vpack.c.b16 %v2111_v17, %v2111_v17 }
  0xa8   :  { %v5192_v59 = vpack.c.b16 %v6672_v51, %v6673_v23 }
  0xa9   :  { %3619 = vmatmul.msk.bf16.gmra.mxu0 %vm330_vm3, %v5108_v30  ;;  %v6670_v30 = vunpack.c.l.b16 %v5135_v60  ;;  %v2122_v46 = vsel %vm355_vm0, %v2113_v6, 0 }
  0xaa   :  { %2130 = vmatpush.bf16.msrb.mxu0 %v2122_v46  ;;  %6860 = vst [vmem:[#allocation62_spill] sm:$0xff] %v5192_v59  ;;  %v6861_v46 = vpack.c.b16 %v4483_v16, %v4318_v45 }
  0xab   :  { %3543 = vmatmul.msk.bf16.gmra.mxu1 %vm330_vm3, %v5114_v20  ;;  %v1782_v20 = vpack.c.b16 %v1780_v48, %v1780_v48  ;;  %v5179_v57 = vpack.c.b16 %v6670_v30, %v6674_v44 }
  0xad   :  { %v1809_v33 = vsel %vm355_vm0, %v1782_v20, 0  ;;  %6859 = vst [vmem:[#allocation61_spill] sm:$0xff] %v5179_v57 }
  0xae   :  { %3574 = vmatmul.msk.bf16.gmra.mxu2 %vm330_vm3, %v5150_v35  ;;  %1817 = vmatpush.bf16.msrb.mxu1 %v1809_v33 }
  0xaf   :  { %v5173_v48 = vpop.f32.mrf.mxu1 }
  0xb1   :  { %v5183_v20 = vpop.f32.mrf.mxu2 }
  0xb4   :  { %3589 = vmatmul.msk.bf16.gmra.mxu3 %vm330_vm3, %v5179_v57 }
  0xb6   :  { %v373_v33 = vpop.f32.mrf.mxu0 }
  0xb7   :  { %v5194_v5 = vpop.f32.mrf.mxu3  ;;  %v493_v30 = vpop.f32.mrf.mxu1 }
  0xb8   :  { %v494_v50 = vadd.f32 %v493_v30, %v5088_v36 }
  0xb9   :  { %3620 = vmatmul.msk.bf16.gmra.mxu0 %vm330_vm3, %v5192_v59  ;;  %v5199_v17 = vpop.f32.mrf.mxu2  ;;  %v6862_v59 = vunpack.c.l.b16 %v4416_v19 }
  0xbb   :  { %3628 = vmatmul.msk.bf16.vlgmr.msra.gmra.mxu1 %vm330_vm3, %v4571_v55  ;;  %v6863_v55 = vunpack.c.l.b16 %v4046_v1 }
  0xbd   :  { %v5215_v57 = vpack.c.b16 %v6863_v55, %v6862_v59 }
  0xbe   :  { %v375_v6 = vpop.f32.mrf.mxu0  ;;  %3643 = vmatmul.msk.bf16.vlgmr.msra.gmra.mxu2 %vm330_vm3, %v6861_v46 }
  0xbf   :  { %v5207_v51 = vpop.f32.mrf.mxu3  ;;  %v495_v23 = vpop.f32.mrf.mxu1 }
  0xc0   :  { %v496_v44 = vadd.f32 %v495_v23, %v370_v32 }
  0xc1   :  { %v689_v22 = vpop.f32.mrf.mxu2 }
  0xc2   :  { %v729_v36 = vadd.f32 %v689_v22, %v494_v50 }
  0xc4   :  { %3660 = vmatmul.msk.bf16.vlgmr.msra.gmra.mxu3 %vm330_vm3, %v4599_v40  ;;  %v5223_v40 = vpack.c.b16 %v4156_v52, %v4503_v49  ;;  %v5238_v52 = vld [vmem:[%s6508_s0 + $0x40] sm:$0xf] }
  0xc5   :  { %v1351_v55 = vshrl.u32 %v5238_v52, 16 }
  0xc6   :  { %v1177_v30 = vpop.f32.mrf.mxu0  ;;  %6864 = vst [vmem:[#allocation63_spill] sm:$0xff] %v5223_v40 }
  0xc7   :  { %v981_v35 = vpop.f32.mrf.mxu3 }
  0xc8   :  { %v498_v45 = vpop.f32.mrf.mxu1  ;;  %v1021_v16 = vadd.f32 %v981_v35, %v729_v36 }
  0xc9   :  { %v499_v46 = vadd.f32 %v498_v45, %v373_v33  ;;  %3675 = vmatmul.msk.bf16.vlgmr.msra.gmra.mxu0 %vm330_vm3, %v4627_v26  ;;  %v691_v32 = vpop.f32.mrf.mxu2  ;;  %v6865_v26 = vunpack.c.l.b16 %v4588_v8  ;;  %v1354_v45 = vshll.u32 %v5238_v52, 16  ;;  %v6868_v8 = vunpack.c.l.b16 %v4622_v53  ;;  %v5261_v53 = vld [vmem:[%s6508_s0 + $0x44] sm:$0x3] }
  0xca   :  { %v730_v23 = vadd.f32 %v691_v32, %v496_v44  ;;  %v5225_v19 = vadd.f32 %v1177_v30, %v1021_v16  ;;  %v6866_v44 = vunpack.c.l.b16 %v4658_v18  ;;  %v6869_v18 = vunpack.c.l.b16 %v4697_v39 }
  0xcb   :  { %3629 = vmatmul.msk.bf16.gmra.mxu1 %vm330_vm3, %v5215_v57  ;;  %v6871_v32 = vunpack.c.l.b16 %v4056_v4  ;;  %v5269_v4 = vpack.c.b16 %v4361_v34, %v4163_v56  ;;  %v6877_v56 = vunpack.c.l.b16 %v4766_v62  ;;  %v6880_v62 = vld [vmem:[#allocation28_spill] sm:$0xff] }
  0xcc   :  { %v5233_v59 = vpack.c.b16 %v6866_v44, %v6865_v26 }
  0xcd   :  { %6874 = vst [vmem:[#allocation67_spill] sm:$0xff] %v5269_v4 }
  0xce   :  { %v1179_v1 = vpop.f32.mrf.mxu0  ;;  %3644 = vmatmul.msk.bf16.gmra.mxu2 %vm330_vm3, %v5223_v40  ;;  %6867 = vst [vmem:[#allocation64_spill] sm:$0xff] %v5233_v59 }
  0xcf   :  { %v983_v22 = vpop.f32.mrf.mxu3 }
  0xd0   :  { %v500_v50 = vpop.f32.mrf.mxu1  ;;  %v1022_v35 = vadd.f32 %v983_v22, %v730_v23 }
  0xd1   :  { %v501_v33 = vadd.f32 %v500_v50, %v375_v6  ;;  %v694_v49 = vpop.f32.mrf.mxu2  ;;  %v5250_v6 = vpack.c.b16 %v6869_v18, %v6868_v8  ;;  %v1353_v50 = vrot.slane %v1351_v55, 4 }
  0xd2   :  { %v731_v36 = vadd.f32 %v694_v49, %v499_v46  ;;  %v5240_v30 = vadd.f32 %v1179_v1, %v1022_v35  ;;  %v6872_v46 = vunpack.c.l.b16 %v4248_v38  ;;  %v1356_v35 = vrot.slane %v1354_v45, 5 }
  0xd3   :  { %6870 = vst [vmem:[#allocation65_spill] sm:$0xff] %v5250_v6 }
  0xd4   :  { %3661 = vmatmul.msk.bf16.gmra.mxu3 %vm330_vm3, %v5233_v59  ;;  %v5256_v23 = vpack.c.b16 %v6872_v46, %v6871_v32  ;;  %v1357_v49 = vor.u32 %v1356_v35, %v1353_v50  ;;  %v1618_v35 = vrot.slane %v1351_v55, 5  ;;  %v3651_v55 = vrot.slane %v5238_v52, 9 }
  0xd6   :  { %v1182_v16 = vpop.f32.mrf.mxu0  ;;  %6873 = vst [vmem:[#allocation66_spill] sm:$0xff] %v5256_v23  ;;  %v1358_v46 = vrot.slane %v1357_v49, 4  ;;  %v1622_v49 = vshrl.u32 %v5261_v53, 16 }
  0xd7   :  { %v986_v1 = vpop.f32.mrf.mxu3 }
  0xd8   :  { %v503_v22 = vpop.f32.mrf.mxu1  ;;  %v1023_v26 = vadd.f32 %v986_v1, %v731_v36  ;;  %v1360_v36 = vshll.u32 %v5261_v53, 16 }
  0xd9   :  { %3676 = vmatmul.msk.bf16.gmra.mxu0 %vm330_vm3, %v5250_v6  ;;  %v696_v39 = vpop.f32.mrf.mxu2  ;;  %v6875_v6 = vld [vmem:[#allocation24_spill] sm:$0xff] }
  0xda   :  { %v732_v44 = vadd.f32 %v696_v39, %v501_v33  ;;  %v5271_v38 = vadd.f32 %v1182_v16, %v1023_v26  ;;  %v1362_v33 = vrot.slane %v1360_v36, 5  ;;  %v504_v39 = vadd.f32 %v503_v22, %v5000_v9 }
  0xdb   :  { %3630 = vmatmul.msk.bf16.gmra.mxu1 %vm330_vm3, %v5256_v23  ;;  %v6876_v59 = vunpack.c.l.b16 %v6875_v6  ;;  %v1619_v26 = vrot.slane %v1354_v45, 6  ;;  %v6882_v6 = vld [vmem:[#allocation32_spill] sm:$0xff]  ;;  %v1497_v45 = vrot.slane %v5261_v53, 5 }
  0xdc   :  { %v1363_v9 = vsel %vm4116_vm4, %v1358_v46, %v1362_v33 }
  0xdd   :  { %v5281_v34 = vpack.c.b16 %v6877_v56, %v6876_v59  ;;  %v6881_v59 = vunpack.c.l.b16 %v6880_v62  ;;  %v5306_v33 = vunpack.c.l.b16 %v1363_v9  ;;  %v1625_v56 = vrot.slane %v1360_v36, 6  ;;  %v3948_v36 = vld [vmem:[%s6507_s1 + $0x84] sm:$0xff] }
  0xde   :  { %v1184_v8 = vpop.f32.mrf.mxu0  ;;  %3645 = vmatmul.msk.bf16.gmra.mxu2 %vm330_vm3, %v5269_v4  ;;  %v6689_v4 = vunpack.c.l.b16 %v5238_v52  ;;  %v5316_v9 = vsel %vm4469_vm7, %v3651_v55, %v1497_v45  ;;  %2030 = vmatpush.bf16.msrb.mxu3 %v3948_v36 }
  0xdf   :  { %v988_v18 = vpop.f32.mrf.mxu3  ;;  %6878 = vst [vmem:[#allocation24_spill] sm:$0xff] %v5281_v34  ;;  %v6688_v45 = vunpack.c.l.b16 %v5316_v9 }
  0xe0   :  { %v505_v32 = vpop.f32.mrf.mxu1  ;;  %v1024_v1 = vadd.f32 %v988_v18, %v732_v44  ;;  %v1620_v18 = vor.u32 %v1619_v26, %v1618_v35 }
  0xe1   :  { %v506_v16 = vadd.f32 %v505_v32, %v5063_v42  ;;  %v699_v50 = vpop.f32.mrf.mxu2  ;;  %v6883_v42 = vunpack.c.l.b16 %v6882_v6 }
  0xe2   :  { %v733_v23 = vadd.f32 %v699_v50, %v504_v39  ;;  %v5286_v40 = vadd.f32 %v1184_v8, %v1024_v1  ;;  %v6885_v8 = vld [vmem:[#allocation8_spill] sm:$0xff]  ;;  %v1624_v39 = vrot.slane %v1622_v49, 5  ;;  %v3947_v50 = vld [vmem:[%s6507_s1 + $0x78] sm:$0xff]  ;;  %v1621_v49 = vrot.slane %v1620_v18, 4 }
  0xe3   :  { %v5296_v22 = vpack.c.b16 %v6883_v42, %v6881_v59  ;;  %v6886_v1 = vunpack.c.l.b16 %v6885_v8  ;;  %1911 = vmatpush.bf16.msrb.mxu2 %v3947_v50  ;;  %v3949_v50 = vld [vmem:[%s6507_s1 + $0x90] sm:$0xff] }
  0xe4   :  { %3662 = vmatmul.msk.bf16.gmra.mxu3 %vm330_vm3, %v5281_v34  ;;  %2131 = vmatpush.bf16.msrb.mxu0 %v3949_v50 }
  0xe5   :  { %6884 = vst [vmem:[#allocation2_spill] sm:$0xff] %v5296_v22  ;;  %v5304_v46 = vpack.c.b16 %v6689_v4, %v6886_v1  ;;  %v1626_v1 = vor.u32 %v1625_v56, %v1624_v39  ;;  %v6888_v56 = vld [vmem:[#allocation29_spill] sm:$0xff] }
  0xe6   :  { %v1187_v32 = vpop.f32.mrf.mxu0 }
  0xe7   :  { %v991_v62 = vpop.f32.mrf.mxu3 }
  0xe8   :  { %v508_v59 = vpop.f32.mrf.mxu1  ;;  %v1025_v6 = vadd.f32 %v991_v62, %v733_v23  ;;  %v3946_v23 = vld [vmem:[%s6507_s1 + $0x6c] sm:$0xff] }
  0xe9   :  { %v509_v35 = vadd.f32 %v508_v59, %v5123_v12  ;;  %3677 = vmatmul.msk.bf16.gmra.mxu0 %vm330_vm3, %v5296_v22  ;;  %v701_v26 = vpop.f32.mrf.mxu2  ;;  %v6887_v12 = vld [vmem:[#allocation10_spill] sm:$0xff]  ;;  %1818 = vmatpush.bf16.msrb.mxu1 %v3946_v23  ;;  %v6889_v59 = vunpack.c.l.b16 %v6888_v56  ;;  %v6893_v56 = vunpack.c.l.b16 %v4082_v15 }
  0xea   :  { %v734_v42 = vadd.f32 %v701_v26, %v506_v16  ;;  %v5328_v8 = vpack.c.b16 %v5306_v33, %v6887_v12  ;;  %v5330_v55 = vadd.f32 %v1187_v32, %v1025_v6  ;;  %v5337_v16 = vsel %vm4521_vm10, %v1621_v49, %v1626_v1 }
  0xeb   :  { %3631 = vmatmul.msk.bf16.gmra.mxu1 %vm330_vm3, %v5304_v46  ;;  %v5346_v6 = vpack.c.b16 %v6688_v45, %v6889_v59  ;;  %v6687_v36 = vunpack.c.l.b16 %v5337_v16 }
  0xed   :  { %6890 = vst [vmem:[#allocation28_spill] sm:$0xff] %v5346_v6 }
  0xee   :  { %v1189_v18 = vpop.f32.mrf.mxu0  ;;  %3646 = vmatmul.msk.bf16.gmra.mxu2 %vm330_vm3, %v5328_v8 }
  0xef   :  { %v993_v62 = vpop.f32.mrf.mxu3 }
  0xf0   :  { %v510_v39 = vpop.f32.mrf.mxu1  ;;  %v1026_v32 = vadd.f32 %v993_v62, %v734_v42  ;;  %v6891_v42 = vunpack.c.l.b16 %v4758_v3  ;;  %v6895_v3 = vld [vmem:[#allocation4_spill] sm:$0xff] }
  0xf1   :  { %v511_v26 = vadd.f32 %v510_v39, %v5173_v48  ;;  %v704_v49 = vpop.f32.mrf.mxu2  ;;  %v6894_v48 = vunpack.c.l.b16 %v4283_v37 }
  0xf2   :  { %v735_v23 = vadd.f32 %v704_v49, %v509_v35  ;;  %v5350_v12 = vadd.f32 %v1189_v18, %v1026_v32  ;;  %v5358_v1 = vpack.c.b16 %v6687_v36, %v6891_v42  ;;  %v6896_v49 = vld [vmem:[#allocation12_spill] sm:$0xff] }
  0xf3   :  { %v1245_v50 = vpack.c.b16 %v6894_v48, %v6893_v56  ;;  %v1388_v42 = vpack.c.b16 %v6896_v49, %v6895_v3  ;;  %v6897_v48 = vunpack.c.l.b16 %v4848_v25  ;;  %v6901_v3 = vld [vmem:[#allocation45_spill] sm:$0xff] }
  0xf4   :  { %3663 = vmatmul.msk.bf16.gmra.mxu3 %vm330_vm3, %v5346_v6  ;;  %6892 = vst [vmem:[#allocation32_spill] sm:$0xff] %v5358_v1  ;;  %v6902_v49 = vunpack.c.l.b16 %v6901_v3 }
  0xf6   :  { %v1192_v62 = vpop.f32.mrf.mxu0 }
  0xf7   :  { %v996_v39 = vpop.f32.mrf.mxu3 }
  0xf8   :  { %v513_v59 = vpop.f32.mrf.mxu1  ;;  %v1027_v35 = vadd.f32 %v996_v39, %v735_v23  ;;  %v6898_v39 = vunpack.c.l.b16 %v4909_v0 }
  0xf9   :  { %3678 = vmatmul.msk.bf16.gmra.mxu0 %vm330_vm3, %v5358_v1  ;;  %v706_v18 = vpop.f32.mrf.mxu2  ;;  %v514_v23 = vadd.f32 %v513_v59, %v5061_v58  ;;  %v6905_v58 = vunpack.c.l.b16 %v4975_v24 }
  0xfa   :  { %v736_v32 = vadd.f32 %v706_v18, %v511_v26  ;;  %v5369_v36 = vadd.f32 %v1192_v62, %v1027_v35  ;;  %v1513_v26 = vpack.c.b16 %v6898_v39, %v6897_v48  ;;  %v6899_v62 = vld [vmem:[#allocation41_spill] sm:$0xff] }
  0xfb   :  { %3632 = vmatmul.msk.bf16.gmra.mxu1 %vm330_vm3, %v1245_v50  ;;  %v6900_v35 = vunpack.c.l.b16 %v6899_v62  ;;  %v6906_v39 = vld [vmem:[#allocation13_spill] sm:$0xff] }
  0xfe   :  { %v1194_v45 = vpop.f32.mrf.mxu0  ;;  %3647 = vmatmul.msk.bf16.gmra.mxu2 %vm330_vm3, %v1388_v42  ;;  %v1648_v42 = vpack.c.b16 %v6902_v49, %v6900_v35  ;;  %v6908_v49 = vld [vmem:[#allocation43_spill] sm:$0xff] }
  0xff   :  { %v998_v15 = vpop.f32.mrf.mxu3 }
 0x100   :  { %v515_v37 = vpop.f32.mrf.mxu1  ;;  %v1028_v56 = vadd.f32 %v998_v15, %v736_v32  ;;  %v6903_v32 = vld [vmem:[#allocation9_spill] sm:$0xff] }
 0x101   :  { %v709_v18 = vpop.f32.mrf.mxu2  ;;  %v6904_v15 = vunpack.c.l.b16 %v6903_v32  ;;  %v6910_v32 = vunpack.c.l.b16 %v5004_v10 }
 0x102   :  { %v737_v50 = vadd.f32 %v709_v18, %v514_v23  ;;  %v5377_v4 = vadd.f32 %v1194_v45, %v1028_v56  ;;  %v516_v45 = vadd.f32 %v515_v37, %v5121_v31  ;;  %v5405_v31 = vld [vmem:[%s6508_s0 + $0xa0] sm:$0xf] }
 0x103   :  { %v5388_v25 = vpack.c.b16 %v6905_v58, %v6904_v15 }
 0x104   :  { %3664 = vmatmul.msk.bf16.gmra.mxu3 %vm330_vm3, %v1513_v26  ;;  %v6907_v26 = vld [vmem:[#allocation5_spill] sm:$0xff] }
 0x105   :  { %v5396_v18 = vpack.c.b16 %v6907_v26, %v6906_v39  ;;  %v6917_v26 = vunpack.c.l.b16 %v4343_v11  ;;  %v6919_v11 = vld [vmem:[#allocation15_spill] sm:$0xff] }
 0x106   :  { %v1197_v1 = vpop.f32.mrf.mxu0 }
 0x107   :  { %v1001_v0 = vpop.f32.mrf.mxu3 }
 0x108   :  { %v518_v59 = vpop.f32.mrf.mxu1  ;;  %v1029_v48 = vadd.f32 %v1001_v0, %v737_v50  ;;  %v1365_v0 = vshrl.u32 %v5405_v31, 16 }
 0x109   :  { %3679 = vmatmul.msk.bf16.gmra.mxu0 %vm330_vm3, %v1648_v42  ;;  %v711_v56 = vpop.f32.mrf.mxu2  ;;  %v519_v3 = vadd.f32 %v518_v59, %v5183_v20  ;;  %v6909_v42 = vunpack.c.l.b16 %v6908_v49  ;;  %v6913_v20 = vunpack.c.l.b16 %v5029_v27 }
 0x10a   :  { %v738_v23 = vadd.f32 %v711_v56, %v516_v45  ;;  %v5398_v62 = vadd.f32 %v1197_v1, %v1029_v48  ;;  %v1368_v48 = vshll.u32 %v5405_v31, 16  ;;  %v6912_v56 = vunpack.c.l.b16 %v4935_v43 }
 0x10b   :  { %3633 = vmatmul.msk.bf16.gmra.mxu1 %vm330_vm3, %v5388_v25  ;;  %v5412_v1 = vpack.c.b16 %v6910_v32, %v6909_v42  ;;  %v5435_v42 = vld [vmem:[%s6508_s0 + $0xa4] sm:$0x3] }
 0x10c   :  { %v5424_v59 = vpack.c.b16 %v6913_v20, %v6912_v56  ;;  %v1370_v49 = vrot.slane %v1368_v48, 5  ;;  %v1632_v6 = vshrl.u32 %v5435_v42, 16 }
 0x10d   :  { %6911 = vst [vmem:[#allocation8_spill] sm:$0xff] %v5412_v1 }
 0x10e   :  { %v1199_v24 = vpop.f32.mrf.mxu0  ;;  %3648 = vmatmul.msk.bf16.gmra.mxu2 %vm330_vm3, %v5396_v18  ;;  %6914 = vst [vmem:[#allocation10_spill] sm:$0xff] %v5424_v59 }
 0x10f   :  { %v1003_v50 = vpop.f32.mrf.mxu3 }
 0x110   :  { %v520_v35 = vpop.f32.mrf.mxu1  ;;  %v1030_v37 = vadd.f32 %v1003_v50, %v738_v23  ;;  %v6915_v23 = vld [vmem:[#allocation49_spill] sm:$0xff] }
 0x111   :  { %v714_v15 = vpop.f32.mrf.mxu2  ;;  %v6916_v39 = vunpack.c.l.b16 %v6915_v23  ;;  %v521_v27 = vadd.f32 %v520_v35, %v5199_v17 }
 0x112   :  { %v739_v58 = vadd.f32 %v714_v15, %v519_v3  ;;  %v5416_v45 = vadd.f32 %v1199_v24, %v1030_v37  ;;  %v1367_v3 = vrot.slane %v1365_v0, 4  ;;  %v6918_v15 = vld [vmem:[#allocation6_spill] sm:$0xff] }
 0x113   :  { %v5430_v50 = vpack.c.b16 %v6917_v26, %v6916_v39  ;;  %v5442_v56 = vpack.c.b16 %v6919_v11, %v6918_v15  ;;  %v1374_v39 = vshll.u32 %v5435_v42, 16  ;;  %v6922_v11 = vunpack.c.l.b16 %v5096_v2 }
 0x114   :  { %3665 = vmatmul.msk.bf16.gmra.mxu3 %vm330_vm3, %v5412_v1  ;;  %v1371_v23 = vor.u32 %v1370_v49, %v1367_v3 }
 0x115   :  { %v1376_v35 = vrot.slane %v1374_v39, 5 }
 0x116   :  { %v1202_v10 = vpop.f32.mrf.mxu0  ;;  %v1372_v17 = vrot.slane %v1371_v23, 4  ;;  %v6696_v23 = vunpack.c.l.b16 %v5405_v31 }
 0x117   :  { %v1006_v24 = vpop.f32.mrf.mxu3 }
 0x118   :  { %v523_v37 = vpop.f32.mrf.mxu1  ;;  %v1031_v43 = vadd.f32 %v1006_v24, %v739_v58  ;;  %v1377_v34 = vsel %vm4116_vm4, %v1372_v17, %v1376_v35  ;;  %v1635_v17 = vrot.slane %v1374_v39, 6  ;;  %v6929_v39 = vld [vmem:[#allocation16_spill] sm:$0xff] }
 0x119   :  { %3680 = vmatmul.msk.bf16.gmra.mxu0 %vm330_vm3, %v5424_v59  ;;  %v716_v32 = vpop.f32.mrf.mxu2  ;;  %v524_v15 = vadd.f32 %v523_v37, %v5092_v29  ;;  %v6924_v29 = vld [vmem:[#allocation54_spill] sm:$0xff]  ;;  %v6926_v37 = vunpack.c.l.b16 %v5131_v54  ;;  %v3766_v54 = vld [vmem:[%s6507_s1 + $0xb0] sm:$0x3] }
 0x11a   :  { %v740_v20 = vadd.f32 %v716_v32, %v521_v27  ;;  %v5447_v26 = vadd.f32 %v1202_v10, %v1031_v43  ;;  %v6920_v27 = vld [vmem:[#allocation51_spill] sm:$0xff]  ;;  %v1628_v10 = vrot.slane %v1365_v0, 5  ;;  %v1629_v43 = vrot.slane %v1368_v48, 6 }
 0x11b   :  { %3634 = vmatmul.msk.bf16.gmra.mxu1 %vm330_vm3, %v5430_v50  ;;  %v6921_v32 = vunpack.c.l.b16 %v6920_v27  ;;  %v6925_v2 = vunpack.c.l.b16 %v6924_v29  ;;  %v3652_v0 = vrot.slane %v5405_v31, 9  ;;  %v1501_v48 = vrot.slane %v5435_v42, 5 }
 0x11c   :  { %v1630_v27 = vor.u32 %v1629_v43, %v1628_v10  ;;  %v2321_v29 = vunpack.c.l.b16 %v3766_v54 }
 0x11d   :  { %v5456_v3 = vpack.c.b16 %v6922_v11, %v6921_v32  ;;  %v1634_v32 = vrot.slane %v1632_v6, 5  ;;  %v5488_v6 = vsel %vm4469_vm7, %v3652_v0, %v1501_v48 }
 0x11e   :  { %v1204_v58 = vpop.f32.mrf.mxu0  ;;  %3649 = vmatmul.msk.bf16.gmra.mxu2 %vm330_vm3, %v5442_v56  ;;  %v1631_v43 = vrot.slane %v1630_v27, 4 }
 0x11f   :  { %v1008_v24 = vpop.f32.mrf.mxu3  ;;  %6923 = vst [vmem:[#allocation29_spill] sm:$0xff] %v5456_v3 }
 0x120   :  { %v525_v59 = vpop.f32.mrf.mxu1  ;;  %v1032_v1 = vadd.f32 %v1008_v24, %v740_v20  ;;  %v5470_v24 = vpack.c.b16 %v6926_v37, %v6925_v2  ;;  %v1636_v37 = vor.u32 %v1635_v17, %v1634_v32  ;;  %v6698_v32 = vunpack.c.l.b16 %v5488_v6 }
 0x121   :  { %v719_v49 = vpop.f32.mrf.mxu2 }
 0x122   :  { %v741_v22 = vadd.f32 %v719_v49, %v524_v15  ;;  %v5462_v20 = vadd.f32 %v1204_v58, %v1032_v1  ;;  %6927 = vst [vmem:[#allocation4_spill] sm:$0xff] %v5470_v24  ;;  %v5474_v15 = vunpack.c.l.b16 %v1377_v34  ;;  %v6928_v58 = vunpack.c.l.b16 %v4358_v13 }
 0x123   :  { %v526_v34 = vadd.f32 %v525_v59, %v5156_v63  ;;  %v3749_v63 = vld [vmem:[%s6507_s1 + $0xa4] sm:$0x3] }
 0x124   :  { %3666 = vmatmul.msk.bf16.gmra.mxu3 %vm330_vm3, %v5456_v3  ;;  %v5480_v35 = vpack.c.b16 %v6696_v23, %v6928_v58  ;;  %v5494_v10 = vpack.c.b16 %v5474_v15, %v6929_v39  ;;  %v2323_v58 = vpack.c.b16 %v2321_v29, %v2321_v29  ;;  %v2222_v48 = vunpack.c.l.b16 %v3749_v63  ;;  %v6950_v3 = vld [vmem:[#allocation11_spill] sm:$0xff] }
 0x126   :  { %v1207_v1 = vpop.f32.mrf.mxu0  ;;  %v2332_v27 = vsel %vm355_vm0, %v2323_v58, 0 }
 0x127   :  { %v1011_v11 = vpop.f32.mrf.mxu3  ;;  %2340 = vmatpush.bf16.msra.mxu2 %v2332_v27 }
 0x128   :  { %v528_v49 = vpop.f32.mrf.mxu1  ;;  %v1033_v2 = vadd.f32 %v1011_v11, %v741_v22  ;;  %v3781_v22 = vld [vmem:[%s6507_s1 + $0xbc] sm:$0x3]  ;;  %v2224_v11 = vpack.c.b16 %v2222_v48, %v2222_v48  ;;  %v6930_v48 = vunpack.c.l.b16 %v5100_v61 }
 0x129   :  { %3681 = vmatmul.msk.bf16.gmra.mxu0 %vm330_vm3, %v5470_v24  ;;  %v721_v13 = vpop.f32.mrf.mxu2  ;;  %v2414_v0 = vunpack.c.l.b16 %v3781_v22 }
 0x12a   :  { %v742_v59 = vadd.f32 %v721_v13, %v526_v34  ;;  %v5504_v54 = vadd.f32 %v1207_v1, %v1033_v2  ;;  %v5512_v34 = vsel %vm4521_vm10, %v1631_v43, %v1636_v37  ;;  %v2233_v1 = vsel %vm355_vm0, %v2224_v11, 0  ;;  %v3796_v2 = vld [vmem:[%s6507_s1 + $0xc8] sm:$0x3] }
 0x12b   :  { %3635 = vmatmul.msk.bf16.gmra.mxu1 %vm330_vm3, %v5480_v35  ;;  %v2416_v17 = vpack.c.b16 %v2414_v0, %v2414_v0  ;;  %v2533_v22 = vunpack.c.l.b16 %v3796_v2  ;;  %v529_v0 = vadd.f32 %v528_v49, %v5194_v5  ;;  %v5524_v43 = vpack.c.b16 %v6698_v32, %v6930_v48 }
 0x12c   :  { %2241 = vmatpush.bf16.msra.mxu1 %v2233_v1  ;;  %v6697_v37 = vunpack.c.l.b16 %v5512_v34  ;;  %v6932_v5 = vunpack.c.l.b16 %v5135_v60 }
 0x12d   :  { %v2425_v13 = vsel %vm355_vm0, %v2416_v17, 0  ;;  %6931 = vst [vmem:[#allocation12_spill] sm:$0xff] %v5524_v43  ;;  %v2535_v17 = vpack.c.b16 %v2533_v22, %v2533_v22 }
 0x12e   :  { %v1209_v29 = vpop.f32.mrf.mxu0  ;;  %3650 = vmatmul.msk.bf16.gmra.mxu2 %vm330_vm3, %v5494_v10  ;;  %2433 = vmatpush.bf16.msra.mxu3 %v2425_v13  ;;  %v5536_v61 = vpack.c.b16 %v6697_v37, %v6932_v5 }
 0x12f   :  { %v1013_v39 = vpop.f32.mrf.mxu3  ;;  %v2544_v13 = vsel %vm355_vm0, %v2535_v17, 0 }
 0x130   :  { %v530_v58 = vpop.f32.mrf.mxu1  ;;  %v1034_v63 = vadd.f32 %v1013_v39, %v742_v59  ;;  %2552 = vmatpush.bf16.msra.mxu0 %v2544_v13  ;;  %6933 = vst [vmem:[#allocation41_spill] sm:$0xff] %v5536_v61 }
 0x131   :  { %v724_v27 = vpop.f32.mrf.mxu2  ;;  %v531_v39 = vadd.f32 %v530_v58, %v5207_v51 }
 0x132   :  { %v743_v11 = vadd.f32 %v724_v27, %v529_v0  ;;  %v5527_v23 = vadd.f32 %v1209_v29, %v1034_v63  ;;  %v6934_v0 = vld [vmem:[#allocation21_spill] sm:$0xff]  ;;  %v6935_v27 = vld [vmem:[#allocation19_spill] sm:$0xff] }
 0x134   :  { %3667 = vmatmul.msk.bf16.gmra.mxu3 %vm330_vm3, %v5524_v43 }
 0x136   :  { %v1212_v49 = vpop.f32.mrf.mxu0 }
 0x137   :  { %v1016_v59 = vpop.f32.mrf.mxu3 }
 0x138   :  { %v1294_v1 = vpop.f32.mrf.mxu1  ;;  %v1035_v2 = vadd.f32 %v1016_v59, %v743_v11  ;;  %v6936_v59 = vld [vmem:[#allocation18_spill] sm:$0xff] }
 0x139   :  { %v1334_v29 = vadd.f32 %v1294_v1, %v5225_v19  ;;  %3682 = vmatmul.msk.bf16.gmra.mxu0 %vm330_vm3, %v5536_v61  ;;  %v726_v22 = vpop.f32.mrf.mxu2 }
 0x13a   :  { %v744_v63 = vadd.f32 %v726_v22, %v531_v39  ;;  %v5544_v60 = vadd.f32 %v1212_v49, %v1035_v2  ;;  %v6937_v39 = vld [vmem:[#allocation23_spill] sm:$0xff]  ;;  %v6939_v2 = vld [vmem:[#allocation30_spill] sm:$0xff] }
 0x13b   :  { %3692 = vmatmul.msk.bf16.vlgmr.msrb.gmra.mxu1 %vm330_vm3, %v6934_v0  ;;  %v6938_v49 = vunpack.c.l.b16 %v6937_v39  ;;  %v6940_v22 = vunpack.c.l.b16 %v6939_v2  ;;  %v6943_v2 = vld [vmem:[#allocation3_spill] sm:$0xff] }
 0x13d   :  { %v5557_v0 = vpack.c.b16 %v6940_v22, %v6938_v49  ;;  %v6944_v22 = vld [vmem:[#allocation31_spill] sm:$0xff] }
 0x13e   :  { %v1214_v48 = vpop.f32.mrf.mxu0  ;;  %3707 = vmatmul.msk.bf16.vlgmr.msrb.gmra.mxu2 %vm330_vm3, %v6935_v27 }
 0x13f   :  { %v1018_v17 = vpop.f32.mrf.mxu3 }
 0x140   :  { %v1296_v11 = vpop.f32.mrf.mxu1  ;;  %v1036_v13 = vadd.f32 %v1018_v17, %v744_v63 }
 0x141   :  { %v1335_v51 = vadd.f32 %v1296_v11, %v5240_v30  ;;  %v1437_v19 = vpop.f32.mrf.mxu2  ;;  %v6941_v30 = vld [vmem:[#allocation20_spill] sm:$0xff] }
 0x142   :  { %v1477_v58 = vadd.f32 %v1437_v19, %v1334_v29  ;;  %v5549_v5 = vadd.f32 %v1214_v48, %v1036_v13  ;;  %v6942_v13 = vld [vmem:[#allocation26_spill] sm:$0xff] }
 0x144   :  { %3722 = vmatmul.msk.bf16.vlgmr.msrb.gmra.mxu3 %vm330_vm3, %v6936_v59 }
 0x146   :  { %v1697_v1 = vpop.f32.mrf.mxu0 }
 0x147   :  { %v1562_v27 = vpop.f32.mrf.mxu3 }
 0x148   :  { %v1299_v37 = vpop.f32.mrf.mxu1  ;;  %v1602_v32 = vadd.f32 %v1562_v27, %v1477_v58 }
 0x149   :  { %v1336_v63 = vadd.f32 %v1299_v37, %v5271_v38  ;;  %3739 = vmatmul.msk.bf16.vlgmr.msrb.gmra.mxu0 %vm330_vm3, %v6941_v30  ;;  %v1439_v29 = vpop.f32.mrf.mxu2 }
 0x14a   :  { %v1478_v48 = vadd.f32 %v1439_v29, %v1335_v51  ;;  %v5564_v17 = vadd.f32 %v1697_v1, %v1602_v32  ;;  %v6945_v32 = vunpack.c.l.b16 %v6944_v22  ;;  %v6946_v1 = vld [vmem:[#allocation38_spill] sm:$0xff]  ;;  %v5582_v29 = vld [vmem:[%s6508_s0 + $0x48] sm:$0xf] }
 0x14b   :  { %3693 = vmatmul.msk.bf16.gmra.mxu1 %vm330_vm3, %v5557_v0  ;;  %v6947_v27 = vunpack.c.l.b16 %v6946_v1  ;;  %v3683_v1 = vrot.slane %v5238_v52, 10 }
 0x14d   :  { %v5577_v30 = vpack.c.b16 %v6947_v27, %v6945_v32 }
 0x14e   :  { %v1699_v11 = vpop.f32.mrf.mxu0  ;;  %3708 = vmatmul.msk.bf16.gmra.mxu2 %vm330_vm3, %v6942_v13 }
 0x14f   :  { %v1564_v19 = vpop.f32.mrf.mxu3 }
 0x150   :  { %v1301_v59 = vpop.f32.mrf.mxu1  ;;  %v1603_v39 = vadd.f32 %v1564_v19, %v1478_v48  ;;  %v6948_v19 = vld [vmem:[#allocation27_spill] sm:$0xff] }
 0x151   :  { %v1337_v58 = vadd.f32 %v1301_v59, %v5286_v40  ;;  %v1442_v38 = vpop.f32.mrf.mxu2 }
 0x152   :  { %v1479_v37 = vadd.f32 %v1442_v38, %v1336_v63  ;;  %v5569_v49 = vadd.f32 %v1699_v11, %v1603_v39  ;;  %v6699_v39 = vshrl.u32 %v5582_v29, 16  ;;  %v6700_v38 = vshll.u32 %v5582_v29, 16 }
 0x154   :  { %3723 = vmatmul.msk.bf16.gmra.mxu3 %vm330_vm3, %v6943_v2  ;;  %v1975_v27 = vrot.slane %v6700_v38, 5 }
 0x156   :  { %v1702_v51 = vpop.f32.mrf.mxu0 }
 0x157   :  { %v1567_v40 = vpop.f32.mrf.mxu3 }
 0x158   :  { %v1304_v48 = vpop.f32.mrf.mxu1  ;;  %v1604_v63 = vadd.f32 %v1567_v40, %v1479_v37  ;;  %v1755_v37 = vrot.slane %v5261_v53, 6 }
 0x159   :  { %v1338_v11 = vadd.f32 %v1304_v48, %v5330_v55  ;;  %3740 = vmatmul.msk.bf16.gmra.mxu0 %vm330_vm3, %v6948_v19  ;;  %v1444_v59 = vpop.f32.mrf.mxu2  ;;  %v1972_v55 = vrot.slane %v6699_v39, 4  ;;  %v6949_v48 = vld [vmem:[#allocation36_spill] sm:$0xff] }
 0x15a   :  { %v1480_v22 = vadd.f32 %v1444_v59, %v1337_v58  ;;  %v5591_v32 = vadd.f32 %v1702_v51, %v1604_v63  ;;  %v5604_v58 = vld [vmem:[%s6508_s0 + $0x4c] sm:$0x3]  ;;  %v5608_v53 = vsel %vm4526_vm12, %v3683_v1, %v1755_v37 }
 0x15b   :  { %3694 = vmatmul.msk.bf16.gmra.mxu1 %vm330_vm3, %v5577_v30  ;;  %v1976_v38 = vor.u32 %v1975_v27, %v1972_v55  ;;  %v6706_v2 = vshll.u32 %v5604_v58, 16  ;;  %v6705_v43 = vunpack.c.l.b16 %v5608_v53 }
 0x15d   :  { %v1981_v1 = vrot.slane %v6706_v2, 5 }
 0x15e   :  { %v1704_v40 = vpop.f32.mrf.mxu0  ;;  %3709 = vmatmul.msk.bf16.gmra.mxu2 %vm330_vm3, %v6949_v48  ;;  %v1977_v48 = vrot.slane %v1976_v38, 4 }
 0x15f   :  { %v1569_v51 = vpop.f32.mrf.mxu3 }
 0x160   :  { %v1306_v63 = vpop.f32.mrf.mxu1  ;;  %v1605_v59 = vadd.f32 %v1569_v51, %v1480_v22  ;;  %v6951_v22 = vld [vmem:[#allocation33_spill] sm:$0xff] }
 0x161   :  { %v1339_v39 = vadd.f32 %v1306_v63, %v5350_v12  ;;  %v1447_v19 = vpop.f32.mrf.mxu2  ;;  %v6952_v51 = vunpack.c.l.b16 %v6951_v22  ;;  %v6953_v63 = vld [vmem:[#allocation37_spill] sm:$0xff]  ;;  %v1982_v22 = vsel %vm4116_vm4, %v1977_v48, %v1981_v1  ;;  %v2092_v48 = vrot.slane %v5604_v58, 5 }
 0x162   :  { %v1481_v61 = vadd.f32 %v1447_v19, %v1338_v11  ;;  %v5613_v24 = vadd.f32 %v1704_v40, %v1605_v59  ;;  %v6707_v11 = vunpack.c.l.b16 %v5582_v29  ;;  %v3951_v19 = vld [vmem:[%s6507_s1 + $0xa8] sm:$0xff] }
 0x163   :  { %v5623_v12 = vpack.c.b16 %v6705_v43, %v6952_v51  ;;  %2341 = vmatpush.bf16.msra.mxu2 %v3951_v19  ;;  %v3730_v51 = vrot.slane %v5582_v29, 9  ;;  %v3952_v43 = vld [vmem:[%s6507_s1 + $0xb4] sm:$0xff] }
 0x164   :  { %3724 = vmatmul.msk.bf16.gmra.mxu3 %vm330_vm3, %v6950_v3 }
 0x165   :  { %2434 = vmatpush.bf16.msra.mxu3 %v3952_v43 }
 0x166   :  { %v1707_v37 = vpop.f32.mrf.mxu0 }
 0x167   :  { %v1572_v55 = vpop.f32.mrf.mxu3 }
 0x168   :  { %v1309_v27 = vpop.f32.mrf.mxu1  ;;  %v1606_v40 = vadd.f32 %v1572_v55, %v1481_v61  ;;  %v3950_v61 = vld [vmem:[%s6507_s1 + $0x9c] sm:$0xff] }
 0x169   :  { %v1340_v38 = vadd.f32 %v1309_v27, %v5369_v36  ;;  %3741 = vmatmul.msk.bf16.gmra.mxu0 %vm330_vm3, %v6953_v63  ;;  %v1449_v59 = vpop.f32.mrf.mxu2  ;;  %v6954_v36 = vunpack.c.l.b16 %v5238_v52  ;;  %2242 = vmatpush.bf16.msra.mxu1 %v3950_v61  ;;  %v5652_v27 = vunpack.c.l.b16 %v1982_v22  ;;  %v3953_v52 = vld [vmem:[%s6507_s1 + $0xc0] sm:$0xff] }
 0x16a   :  { %v1482_v55 = vadd.f32 %v1449_v59, %v1339_v39  ;;  %v5650_v1 = vadd.f32 %v1707_v37, %v1606_v40  ;;  %v5658_v39 = vsel %vm4469_vm7, %v3730_v51, %v2092_v48  ;;  %2553 = vmatpush.bf16.msra.mxu0 %v3953_v52  ;;  %v6958_v48 = vunpack.c.l.b16 %v5316_v9 }
 0x16b   :  { %3695 = vmatmul.msk.bf16.gmra.mxu1 %vm330_vm3, %v5623_v12  ;;  %v5647_v19 = vpack.c.b16 %v6707_v11, %v6954_v36  ;;  %6956 = vst [vmem:[#allocation9_spill] sm:$0xff] %v5658_v39  ;;  %v5665_v43 = vpack.c.b16 %v5652_v27, %v5306_v33  ;;  %v6709_v22 = vunpack.c.l.b16 %v5658_v39 }
 0x16d   :  { %6955 = vst [vmem:[#allocation45_spill] sm:$0xff] %v5647_v19 }
 0x16e   :  { %v1709_v2 = vpop.f32.mrf.mxu0  ;;  %3710 = vmatmul.msk.bf16.gmra.mxu2 %vm330_vm3, %v5647_v19  ;;  %6957 = vst [vmem:[#allocation13_spill] sm:$0xff] %v5665_v43 }
 0x16f   :  { %v1574_v59 = vpop.f32.mrf.mxu3 }
 0x170   :  { %v1311_v36 = vpop.f32.mrf.mxu1  ;;  %v1607_v37 = vadd.f32 %v1574_v59, %v1482_v55  ;;  %v5677_v55 = vpack.c.b16 %v6709_v22, %v6958_v48  ;;  %v6960_v59 = vld [vmem:[#allocation42_spill] sm:$0xff]  ;;  %v6964_v22 = vld [vmem:[#allocation44_spill] sm:$0xff] }
 0x171   :  { %v1341_v40 = vadd.f32 %v1311_v36, %v5377_v4  ;;  %v1452_v61 = vpop.f32.mrf.mxu2  ;;  %v6961_v63 = vunpack.c.l.b16 %v6960_v59  ;;  %v6962_v4 = vld [vmem:[#allocation47_spill] sm:$0xff] }
 0x172   :  { %v1483_v11 = vadd.f32 %v1452_v61, %v1340_v38  ;;  %v5669_v51 = vadd.f32 %v1709_v2, %v1607_v37  ;;  %6959 = vst [vmem:[#allocation5_spill] sm:$0xff] %v5677_v55  ;;  %v6963_v52 = vunpack.c.l.b16 %v6962_v4 }
 0x174   :  { %3725 = vmatmul.msk.bf16.gmra.mxu3 %vm330_vm3, %v5665_v43  ;;  %v1771_v36 = vpack.c.b16 %v6963_v52, %v6961_v63  ;;  %v6965_v52 = vld [vmem:[#allocation14_spill] sm:$0xff] }
 0x176   :  { %v1712_v33 = vpop.f32.mrf.mxu0 }
 0x177   :  { %v1577_v3 = vpop.f32.mrf.mxu3 }
 0x178   :  { %v1314_v19 = vpop.f32.mrf.mxu1  ;;  %v1608_v38 = vadd.f32 %v1577_v3, %v1483_v11 }
 0x179   :  { %v1342_v2 = vadd.f32 %v1314_v19, %v5398_v62  ;;  %3742 = vmatmul.msk.bf16.gmra.mxu0 %vm330_vm3, %v5677_v55  ;;  %v1454_v37 = vpop.f32.mrf.mxu2 }
 0x17a   :  { %v1484_v9 = vadd.f32 %v1454_v37, %v1341_v40  ;;  %v5687_v61 = vadd.f32 %v1712_v33, %v1608_v38  ;;  %v6968_v38 = vunpack.c.l.b16 %v5049_v47 }
 0x17b   :  { %3696 = vmatmul.msk.bf16.gmra.mxu1 %vm330_vm3, %v1771_v36  ;;  %v6966_v36 = vld [vmem:[#allocation48_spill] sm:$0xff] }
 0x17c   :  { %v6967_v33 = vunpack.c.l.b16 %v6966_v36 }
 0x17e   :  { %v1714_v48 = vpop.f32.mrf.mxu0  ;;  %3711 = vmatmul.msk.bf16.gmra.mxu2 %vm330_vm3, %v6964_v22  ;;  %v5700_v37 = vpack.c.b16 %v6968_v38, %v6967_v33  ;;  %v6972_v33 = vld [vmem:[#allocation7_spill] sm:$0xff]  ;;  %v6973_v38 = vld [vmem:[#allocation56_spill] sm:$0xff] }
 0x17f   :  { %v1579_v59 = vpop.f32.mrf.mxu3 }
 0x180   :  { %v1316_v63 = vpop.f32.mrf.mxu1  ;;  %v1609_v4 = vadd.f32 %v1579_v59, %v1484_v9  ;;  %6969 = vst [vmem:[#allocation43_spill] sm:$0xff] %v5700_v37 }
 0x181   :  { %v1343_v3 = vadd.f32 %v1316_v63, %v5416_v45  ;;  %v1457_v11 = vpop.f32.mrf.mxu2  ;;  %v6970_v45 = vld [vmem:[#allocation46_spill] sm:$0xff] }
 0x182   :  { %v1485_v62 = vadd.f32 %v1457_v11, %v1342_v2  ;;  %v5692_v19 = vadd.f32 %v1714_v48, %v1609_v4  ;;  %v6971_v4 = vld [vmem:[#allocation53_spill] sm:$0xff] }
 0x184   :  { %3726 = vmatmul.msk.bf16.gmra.mxu3 %vm330_vm3, %v6965_v52 }
 0x186   :  { %v1717_v40 = vpop.f32.mrf.mxu0 }
 0x187   :  { %v1582_v22 = vpop.f32.mrf.mxu3 }
 0x188   :  { %v1319_v55 = vpop.f32.mrf.mxu1  ;;  %v1610_v43 = vadd.f32 %v1582_v22, %v1485_v62 }
 0x189   :  { %v1344_v9 = vadd.f32 %v1319_v55, %v5447_v26  ;;  %3743 = vmatmul.msk.bf16.gmra.mxu0 %vm330_vm3, %v6970_v45  ;;  %v1459_v2 = vpop.f32.mrf.mxu2  ;;  %v5725_v45 = vld [vmem:[%s6508_s0 + $0xa8] sm:$0xf] }
 0x18a   :  { %v1486_v48 = vadd.f32 %v1459_v2, %v1343_v3  ;;  %v5707_v59 = vadd.f32 %v1717_v40, %v1610_v43  ;;  %v6974_v43 = vunpack.c.l.b16 %v6973_v38  ;;  %v6975_v40 = vunpack.c.l.b16 %v5162_v21 }
 0x18b   :  { %3697 = vmatmul.msk.bf16.gmra.mxu1 %vm330_vm3, %v5700_v37  ;;  %v6713_v21 = vshll.u32 %v5725_v45, 16  ;;  %v3684_v38 = vrot.slane %v5405_v31, 10  ;;  %v6718_v37 = vunpack.c.l.b16 %v5725_v45 }
 0x18c   :  { %v5720_v22 = vpack.c.b16 %v6975_v40, %v6974_v43 }
 0x18d   :  { %v1989_v43 = vrot.slane %v6713_v21, 5 }
 0x18e   :  { %v1719_v63 = vpop.f32.mrf.mxu0  ;;  %3712 = vmatmul.msk.bf16.gmra.mxu2 %vm330_vm3, %v6971_v4  ;;  %6976 = vst [vmem:[#allocation49_spill] sm:$0xff] %v5720_v22  ;;  %v6979_v4 = vld [vmem:[#allocation17_spill] sm:$0xff] }
 0x18f   :  { %v1584_v47 = vpop.f32.mrf.mxu3 }
 0x190   :  { %v1321_v11 = vpop.f32.mrf.mxu1  ;;  %v1611_v52 = vadd.f32 %v1584_v47, %v1486_v48 }
 0x191   :  { %v1345_v62 = vadd.f32 %v1321_v11, %v5462_v20  ;;  %v1462_v26 = vpop.f32.mrf.mxu2  ;;  %v6712_v11 = vshrl.u32 %v5725_v45, 16 }
 0x192   :  { %v1487_v55 = vadd.f32 %v1462_v26, %v1344_v9  ;;  %v5712_v36 = vadd.f32 %v1719_v63, %v1611_v52  ;;  %v6977_v63 = vld [vmem:[#allocation55_spill] sm:$0xff] }
 0x194   :  { %3727 = vmatmul.msk.bf16.gmra.mxu3 %vm330_vm3, %v6972_v33 }
 0x196   :  { %v1722_v3 = vpop.f32.mrf.mxu0 }
 0x197   :  { %v1587_v20 = vpop.f32.mrf.mxu3 }
 0x198   :  { %v1324_v2 = vpop.f32.mrf.mxu1  ;;  %v1612_v9 = vadd.f32 %v1587_v20, %v1487_v55  ;;  %v1759_v55 = vrot.slane %v5435_v42, 6  ;;  %v6978_v20 = vld [vmem:[#allocation59_spill] sm:$0xff] }
 0x199   :  { %v1346_v48 = vadd.f32 %v1324_v2, %v5504_v54  ;;  %3744 = vmatmul.msk.bf16.gmra.mxu0 %vm330_vm3, %v6977_v63  ;;  %v1464_v47 = vpop.f32.mrf.mxu2  ;;  %v1986_v54 = vrot.slane %v6712_v11, 4 }
 0x19a   :  { %v1488_v52 = vadd.f32 %v1464_v47, %v1345_v62  ;;  %v5734_v26 = vadd.f32 %v1722_v3, %v1612_v9  ;;  %v5747_v62 = vld [vmem:[%s6508_s0 + $0xac] sm:$0x3]  ;;  %v5751_v42 = vsel %vm4526_vm12, %v3684_v38, %v1759_v55 }
 0x19b   :  { %3698 = vmatmul.msk.bf16.gmra.mxu1 %vm330_vm3, %v5720_v22  ;;  %v1990_v21 = vor.u32 %v1989_v43, %v1986_v54  ;;  %v6719_v63 = vshll.u32 %v5747_v62, 16 }
 0x19d   :  { %v1991_v39 = vrot.slane %v1990_v21, 4 }
 0x19e   :  { %v1724_v40 = vpop.f32.mrf.mxu0  ;;  %3713 = vmatmul.msk.bf16.gmra.mxu2 %vm330_vm3, %v6978_v20  ;;  %v6717_v20 = vunpack.c.l.b16 %v5751_v42 }
 0x19f   :  { %v1589_v3 = vpop.f32.mrf.mxu3 }
 0x1a0   :  { %v1326_v2 = vpop.f32.mrf.mxu1  ;;  %v1613_v9 = vadd.f32 %v1589_v3, %v1488_v52  ;;  %v1995_v52 = vrot.slane %v6719_v63, 5  ;;  %v3731_v3 = vrot.slane %v5725_v45, 9 }
 0x1a1   :  { %v1347_v47 = vadd.f32 %v1326_v2, %v5527_v23  ;;  %v1467_v11 = vpop.f32.mrf.mxu2  ;;  %v6980_v23 = vunpack.c.l.b16 %v5166_v14  ;;  %v6981_v2 = vld [vmem:[#allocation60_spill] sm:$0xff] }
 0x1a2   :  { %v1489_v33 = vadd.f32 %v1467_v11, %v1346_v48  ;;  %v5756_v22 = vadd.f32 %v1724_v40, %v1613_v9  ;;  %v3828_v48 = vld [vmem:[%s6507_s1 + $0xe0] sm:$0x3]  ;;  %v6982_v9 = vunpack.c.l.b16 %v5405_v31 }
 0x1a3   :  { %v5767_v55 = vpack.c.b16 %v6717_v20, %v6980_v23  ;;  %v2745_v43 = vunpack.c.l.b16 %v3828_v48  ;;  %v1996_v20 = vsel %vm4116_vm4, %v1991_v39, %v1995_v52  ;;  %v2096_v48 = vrot.slane %v5747_v62, 5 }
 0x1a4   :  { %3728 = vmatmul.msk.bf16.gmra.mxu3 %vm330_vm3, %v6979_v4  ;;  %v5780_v23 = vpack.c.b16 %v6718_v37, %v6982_v9  ;;  %v5796_v52 = vunpack.c.l.b16 %v1996_v20  ;;  %v3860_v20 = vld [vmem:[%s6507_s1 + $0xf8] sm:$0x3] }
 0x1a6   :  { %v1727_v38 = vpop.f32.mrf.mxu0 }
 0x1a7   :  { %v1592_v11 = vpop.f32.mrf.mxu3 }
 0x1a8   :  { %v1329_v54 = vpop.f32.mrf.mxu1  ;;  %v1614_v40 = vadd.f32 %v1592_v11, %v1489_v33  ;;  %v2747_v33 = vpack.c.b16 %v2745_v43, %v2745_v43  ;;  %v3813_v11 = vld [vmem:[%s6507_s1 + $0xd4] sm:$0x3] }
 0x1a9   :  { %v1348_v21 = vadd.f32 %v1329_v54, %v5544_v60  ;;  %3745 = vmatmul.msk.bf16.gmra.mxu0 %vm330_vm3, %v6981_v2  ;;  %v1469_v14 = vpop.f32.mrf.mxu2  ;;  %v3845_v60 = vld [vmem:[%s6507_s1 + $0xec] sm:$0x3]  ;;  %v2634_v9 = vunpack.c.l.b16 %v3813_v11 }
 0x1aa   :  { %v1490_v54 = vadd.f32 %v1469_v14, %v1347_v47  ;;  %v2844_v31 = vunpack.c.l.b16 %v3845_v60  ;;  %v5793_v37 = vadd.f32 %v1727_v38, %v1614_v40  ;;  %v2756_v39 = vsel %vm355_vm0, %v2747_v33, 0 }
 0x1ab   :  { %3699 = vmatmul.msk.bf16.gmra.mxu1 %vm330_vm3, %v5767_v55  ;;  %2764 = vmatpush.bf16.msrb.mxu2 %v2756_v39  ;;  %v2636_v63 = vpack.c.b16 %v2634_v9, %v2634_v9  ;;  %v5802_v47 = vsel %vm4469_vm7, %v3731_v3, %v2096_v48  ;;  %v2937_v60 = vunpack.c.l.b16 %v3860_v20 }
 0x1ac   :  { %v2846_v43 = vpack.c.b16 %v2844_v31, %v2844_v31  ;;  %v5811_v31 = vpack.c.b16 %v5796_v52, %v5474_v15  ;;  %v6720_v48 = vunpack.c.l.b16 %v5802_v47 }
 0x1ad   :  { %v2645_v38 = vsel %vm355_vm0, %v2636_v63, 0  ;;  %v2939_v63 = vpack.c.b16 %v2937_v60, %v2937_v60  ;;  %v6987_v60 = vld [vmem:[#allocation25_spill] sm:$0xff] }
 0x1ae   :  { %v1729_v2 = vpop.f32.mrf.mxu0  ;;  %3714 = vmatmul.msk.bf16.gmra.mxu2 %vm330_vm3, %v5780_v23  ;;  %v2855_v14 = vsel %vm355_vm0, %v2846_v43, 0  ;;  %2653 = vmatpush.bf16.msrb.mxu1 %v2645_v38  ;;  %6983 = vst [vmem:[#allocation6_spill] sm:$0xff] %v5811_v31 }
 0x1af   :  { %v1594_v40 = vpop.f32.mrf.mxu3  ;;  %2863 = vmatpush.bf16.msrb.mxu3 %v2855_v14  ;;  %v2948_v4 = vsel %vm355_vm0, %v2939_v63, 0 }
 0x1b0   :  { %v1331_v33 = vpop.f32.mrf.mxu1  ;;  %v1615_v11 = vadd.f32 %v1594_v40, %v1490_v54  ;;  %2956 = vmatpush.bf16.msrb.mxu0 %v2948_v4  ;;  %v6984_v54 = vunpack.c.l.b16 %v5488_v6 }
 0x1b1   :  { %v1349_v3 = vadd.f32 %v1331_v33, %v5549_v5  ;;  %v1472_v9 = vpop.f32.mrf.mxu2  ;;  %v6986_v33 = vld [vmem:[#allocation22_spill] sm:$0xff] }
 0x1b2   :  { %v1491_v39 = vadd.f32 %v1472_v9, %v1348_v21  ;;  %v5815_v43 = vadd.f32 %v1729_v2, %v1615_v11  ;;  %v5824_v15 = vpack.c.b16 %v6720_v48, %v6984_v54 }
 0x1b4   :  { %3729 = vmatmul.msk.bf16.gmra.mxu3 %vm330_vm3, %v5811_v31  ;;  %6985 = vst [vmem:[#allocation15_spill] sm:$0xff] %v5824_v15  ;;  %v6996_v31 = vld [vmem:[#allocation39_spill] sm:$0xff] }
 0x1b6   :  { %v1732_v5 = vpop.f32.mrf.mxu0 }
 0x1b7   :  { %v1597_v14 = vpop.f32.mrf.mxu3 }
 0x1b8   :  { %v1820_v38 = vpop.f32.mrf.mxu1  ;;  %v1616_v20 = vadd.f32 %v1597_v14, %v1491_v39 }
 0x1b9   :  { %v1860_v21 = vadd.f32 %v1820_v38, %v5564_v17  ;;  %3746 = vmatmul.msk.bf16.gmra.mxu0 %vm330_vm3, %v5824_v15  ;;  %v1474_v2 = vpop.f32.mrf.mxu2 }
 0x1ba   :  { %v1492_v40 = vadd.f32 %v1474_v2, %v1349_v3  ;;  %v5831_v4 = vadd.f32 %v1732_v5, %v1616_v20 }
 0x1bb   :  { %3754 = vmatmul.msk.bf16.vlgmr.msra.gmra.mxu1 %vm330_vm3, %v6986_v33  ;;  %v6988_v33 = vld [vmem:[#allocation63_spill] sm:$0xff] }
 0x1be   :  { %v1734_v6 = vpop.f32.mrf.mxu0  ;;  %3771 = vmatmul.msk.bf16.vlgmr.msra.gmra.mxu2 %vm330_vm3, %v6987_v60 }
 0x1bf   :  { %v1599_v11 = vpop.f32.mrf.mxu3 }
 0x1c0   :  { %v1822_v9 = vpop.f32.mrf.mxu1  ;;  %v1617_v63 = vadd.f32 %v1599_v11, %v1492_v40  ;;  %v6989_v11 = vld [vmem:[#allocation34_spill] sm:$0xff] }
 0x1c1   :  { %v1861_v39 = vadd.f32 %v1822_v9, %v5569_v49  ;;  %v1913_v17 = vpop.f32.mrf.mxu2 }
 0x1c2   :  { %v1953_v54 = vadd.f32 %v1913_v17, %v1860_v21  ;;  %v5836_v14 = vadd.f32 %v1734_v6, %v1617_v63  ;;  %v6990_v6 = vld [vmem:[#allocation35_spill] sm:$0xff] }
 0x1c4   :  { %3786 = vmatmul.msk.bf16.vlgmr.msra.gmra.mxu3 %vm330_vm3, %v5215_v57 }
 0x1c6   :  { %v2133_v3 = vpop.f32.mrf.mxu0 }
 0x1c7   :  { %v2032_v38 = vpop.f32.mrf.mxu3 }
 0x1c8   :  { %v1825_v5 = vpop.f32.mrf.mxu1  ;;  %v2072_v20 = vadd.f32 %v2032_v38, %v1953_v54 }
 0x1c9   :  { %v1862_v2 = vadd.f32 %v1825_v5, %v5591_v32  ;;  %3801 = vmatmul.msk.bf16.vlgmr.msra.gmra.mxu0 %vm330_vm3, %v6988_v33  ;;  %v1915_v60 = vpop.f32.mrf.mxu2  ;;  %v6992_v33 = vshll.u32 %v5582_v29, 16 }
 0x1ca   :  { %v1954_v40 = vadd.f32 %v1915_v60, %v1861_v39  ;;  %v5845_v49 = vadd.f32 %v2133_v3, %v2072_v20  ;;  %v6991_v39 = vshrl.u32 %v5582_v29, 16  ;;  %v2193_v20 = vshrl.u32 %v5604_v58, 16  ;;  %v6993_v60 = vld [vmem:[#allocation66_spill] sm:$0xff] }
 0x1cb   :  { %3755 = vmatmul.msk.bf16.gmra.mxu1 %vm330_vm3, %v6989_v11  ;;  %v2190_v3 = vrot.slane %v6992_v33, 6 }
 0x1cc   :  { %v2189_v5 = vrot.slane %v6991_v39, 5 }
 0x1ce   :  { %v2135_v21 = vpop.f32.mrf.mxu0  ;;  %3772 = vmatmul.msk.bf16.gmra.mxu2 %vm330_vm3, %v6990_v6 }
 0x1cf   :  { %v2034_v57 = vpop.f32.mrf.mxu3 }
 0x1d0   :  { %v1827_v9 = vpop.f32.mrf.mxu1  ;;  %v2073_v63 = vadd.f32 %v2034_v57, %v1954_v40  ;;  %v2191_v57 = vor.u32 %v2190_v3, %v2189_v5 }
 0x1d1   :  { %v1863_v17 = vadd.f32 %v1827_v9, %v5613_v24  ;;  %v1918_v32 = vpop.f32.mrf.mxu2  ;;  %v2195_v24 = vrot.slane %v2193_v20, 5 }
 0x1d2   :  { %v1955_v54 = vadd.f32 %v1918_v32, %v1862_v2  ;;  %v5850_v38 = vadd.f32 %v2135_v21, %v2073_v63  ;;  %v6994_v2 = vshll.u32 %v5604_v58, 16  ;;  %v6995_v32 = vld [vmem:[#allocation67_spill] sm:$0xff]  ;;  %v2192_v3 = vrot.slane %v2191_v57, 4 }
 0x1d4   :  { %3787 = vmatmul.msk.bf16.gmra.mxu3 %vm330_vm3, %v6993_v60  ;;  %v2196_v21 = vrot.slane %v6994_v2, 6  ;;  %v5869_v60 = vld [vmem:[%s6508_s0 + $0x50] sm:$0xf] }
 0x1d6   :  { %v2138_v48 = vpop.f32.mrf.mxu0  ;;  %v2197_v20 = vor.u32 %v2196_v21, %v2195_v24 }
 0x1d7   :  { %v2037_v15 = vpop.f32.mrf.mxu3 }
 0x1d8   :  { %v1830_v40 = vpop.f32.mrf.mxu1  ;;  %v2074_v9 = vadd.f32 %v2037_v15, %v1955_v54  ;;  %v6733_v15 = vshrl.u32 %v5869_v60, 16 }
 0x1d9   :  { %v1864_v63 = vadd.f32 %v1830_v40, %v5650_v1  ;;  %3802 = vmatmul.msk.bf16.gmra.mxu0 %vm330_vm3, %v6995_v32  ;;  %v1920_v39 = vpop.f32.mrf.mxu2  ;;  %v6727_v1 = vshll.u32 %v5869_v60, 16  ;;  %v6997_v40 = vld [vmem:[#allocation40_spill] sm:$0xff]  ;;  %v5879_v32 = vsel %vm4521_vm10, %v2192_v3, %v2197_v20 }
 0x1da   :  { %v1956_v33 = vadd.f32 %v1920_v39, %v1863_v17  ;;  %v5871_v5 = vadd.f32 %v2138_v48, %v2074_v9  ;;  %v3762_v39 = vrot.slane %v5582_v29, 10  ;;  %v2302_v48 = vrot.slane %v5604_v58, 6  ;;  %v5898_v58 = vld [vmem:[%s6508_s0 + $0x54] sm:$0x3] }
 0x1db   :  { %3756 = vmatmul.msk.bf16.gmra.mxu1 %vm330_vm3, %v6996_v31  ;;  %v2495_v9 = vrot.slane %v6733_v15, 4  ;;  %v6724_v6 = vunpack.c.l.b16 %v5879_v32 }
 0x1dc   :  { %v5893_v3 = vsel %vm4526_vm12, %v3762_v39, %v2302_v48 }
 0x1de   :  { %v2140_v54 = vpop.f32.mrf.mxu0  ;;  %3773 = vmatmul.msk.bf16.gmra.mxu2 %vm330_vm3, %v6997_v40  ;;  %v2498_v40 = vrot.slane %v6727_v1, 5 }
 0x1df   :  { %v2039_v17 = vpop.f32.mrf.mxu3 }
 0x1e0   :  { %v1832_v2 = vpop.f32.mrf.mxu1  ;;  %v2075_v57 = vadd.f32 %v2039_v17, %v1956_v33  ;;  %v6725_v17 = vshll.u32 %v5898_v58, 16 }
 0x1e1   :  { %v1865_v24 = vadd.f32 %v1832_v2, %v5669_v51  ;;  %v1923_v21 = vpop.f32.mrf.mxu2  ;;  %v2499_v51 = vor.u32 %v2498_v40, %v2495_v9  ;;  %v3955_v2 = vld [vmem:[%s6507_s1 + $0xd8] sm:$0xff]  ;;  %v3954_v9 = vld [vmem:[%s6507_s1 + $0xcc] sm:$0xff] }
 0x1e2   :  { %v1957_v31 = vadd.f32 %v1923_v21, %v1864_v63  ;;  %v5889_v11 = vadd.f32 %v2140_v54, %v2075_v57  ;;  %v6998_v63 = vunpack.c.l.b16 %v5337_v16  ;;  %v6723_v54 = vunpack.c.l.b16 %v5893_v3  ;;  %2765 = vmatpush.bf16.msrb.mxu2 %v3955_v2  ;;  %v3956_v21 = vld [vmem:[%s6507_s1 + $0xe4] sm:$0xff]  ;;  %2654 = vmatpush.bf16.msrb.mxu1 %v3954_v9 }
 0x1e3   :  { %v2500_v40 = vrot.slane %v2499_v51, 4  ;;  %2864 = vmatpush.bf16.msrb.mxu3 %v3956_v21  ;;  %v6726_v2 = vunpack.c.l.b16 %v5869_v60 }
 0x1e4   :  { %3788 = vmatmul.msk.bf16.gmra.mxu3 %vm330_vm3, %v5304_v46  ;;  %v5906_v20 = vpack.c.b16 %v6724_v6, %v6998_v63 }
 0x1e6   :  { %v2143_v33 = vpop.f32.mrf.mxu0 }
 0x1e7   :  { %v2042_v39 = vpop.f32.mrf.mxu3 }
 0x1e8   :  { %v1835_v48 = vpop.f32.mrf.mxu1  ;;  %v2076_v57 = vadd.f32 %v2042_v39, %v1957_v31 }
 0x1e9   :  { %v1866_v46 = vadd.f32 %v1835_v48, %v5687_v61  ;;  %3803 = vmatmul.msk.bf16.gmra.mxu0 %vm330_vm3, %v5328_v8  ;;  %v1925_v16 = vpop.f32.mrf.mxu2  ;;  %v6999_v61 = vunpack.c.l.b16 %v5608_v53  ;;  %v2504_v8 = vrot.slane %v6725_v17, 5 }
 0x1ea   :  { %v1958_v63 = vadd.f32 %v1925_v16, %v1865_v24  ;;  %v5932_v51 = vadd.f32 %v2143_v33, %v2076_v57  ;;  %v3957_v24 = vld [vmem:[%s6507_s1 + $0xf0] sm:$0xff]  ;;  %v7000_v33 = vunpack.c.l.b16 %v5582_v29 }
 0x1eb   :  { %3757 = vmatmul.msk.bf16.gmra.mxu1 %vm330_vm3, %v5906_v20  ;;  %v5928_v31 = vpack.c.b16 %v6723_v54, %v6999_v61  ;;  %v2505_v53 = vsel %vm4116_vm4, %v2500_v40, %v2504_v8  ;;  %2957 = vmatpush.bf16.msrb.mxu0 %v3957_v24  ;;  %v7001_v24 = vld [vmem:[#allocation50_spill] sm:$0xff] }
 0x1ec   :  { %v2407_v57 = vpack.c.b16 %v6726_v2, %v7000_v33  ;;  %v5947_v9 = vunpack.c.l.b16 %v2505_v53 }
 0x1ee   :  { %v2145_v39 = vpop.f32.mrf.mxu0  ;;  %3774 = vmatmul.msk.bf16.gmra.mxu2 %vm330_vm3, %v5928_v31  ;;  %v2526_v8 = vpack.c.b16 %v5947_v9, %v5652_v27 }
 0x1ef   :  { %v2044_v48 = vpop.f32.mrf.mxu3 }
 0x1f0   :  { %v1837_v16 = vpop.f32.mrf.mxu1  ;;  %v2077_v61 = vadd.f32 %v2044_v48, %v1958_v63 }
 0x1f1   :  { %v1867_v21 = vadd.f32 %v1837_v16, %v5692_v19  ;;  %v1928_v54 = vpop.f32.mrf.mxu2 }
 0x1f2   :  { %v1959_v6 = vadd.f32 %v1928_v54, %v1866_v46  ;;  %v5949_v40 = vadd.f32 %v2145_v39, %v2077_v61  ;;  %v7002_v39 = vld [vmem:[#allocation52_spill] sm:$0xff] }
 0x1f4   :  { %3789 = vmatmul.msk.bf16.gmra.mxu3 %vm330_vm3, %v2407_v57 }
 0x1f6   :  { %v2148_v63 = vpop.f32.mrf.mxu0 }
 0x1f7   :  { %v2047_v48 = vpop.f32.mrf.mxu3 }
 0x1f8   :  { %v1840_v29 = vpop.f32.mrf.mxu1  ;;  %v2078_v17 = vadd.f32 %v2047_v48, %v1959_v6 }
 0x1f9   :  { %v1868_v33 = vadd.f32 %v1840_v29, %v5707_v59  ;;  %3804 = vmatmul.msk.bf16.gmra.mxu0 %vm330_vm3, %v2526_v8  ;;  %v1930_v19 = vpop.f32.mrf.mxu2 }
 0x1fa   :  { %v1960_v53 = vadd.f32 %v1930_v19, %v1867_v21  ;;  %v5958_v54 = vadd.f32 %v2148_v63, %v2078_v17 }
 0x1fb   :  { %3758 = vmatmul.msk.bf16.gmra.mxu1 %vm330_vm3, %v7001_v24  ;;  %v7003_v24 = vld [vmem:[#allocation57_spill] sm:$0xff] }
 0x1fe   :  { %v2150_v46 = vpop.f32.mrf.mxu0  ;;  %3775 = vmatmul.msk.bf16.gmra.mxu2 %vm330_vm3, %v7002_v39 }
 0x1ff   :  { %v2049_v27 = vpop.f32.mrf.mxu3 }
 0x200   :  { %v1842_v16 = vpop.f32.mrf.mxu1  ;;  %v2079_v61 = vadd.f32 %v2049_v27, %v1960_v53 }
 0x201   :  { %v1869_v6 = vadd.f32 %v1842_v16, %v5712_v36  ;;  %v1933_v57 = vpop.f32.mrf.mxu2 }
 0x202   :  { %v1961_v59 = vadd.f32 %v1933_v57, %v1868_v33  ;;  %v5963_v48 = vadd.f32 %v2150_v46, %v2079_v61  ;;  %v7004_v46 = vld [vmem:[#allocation58_spill] sm:$0xff] }
 0x204   :  { %3790 = vmatmul.msk.bf16.gmra.mxu3 %vm330_vm3, %v5388_v25 }
 0x206   :  { %v2153_v21 = vpop.f32.mrf.mxu0 }
 0x207   :  { %v2052_v8 = vpop.f32.mrf.mxu3 }
 0x208   :  { %v1845_v17 = vpop.f32.mrf.mxu1  ;;  %v2080_v63 = vadd.f32 %v2052_v8, %v1961_v59  ;;  %v7006_v59 = vshll.u32 %v5725_v45, 16  ;;  %v2203_v8 = vshrl.u32 %v5747_v62, 16 }
 0x209   :  { %v1870_v29 = vadd.f32 %v1845_v17, %v5734_v26  ;;  %3805 = vmatmul.msk.bf16.gmra.mxu0 %vm330_vm3, %v5396_v18  ;;  %v1935_v19 = vpop.f32.mrf.mxu2  ;;  %v7005_v18 = vshrl.u32 %v5725_v45, 16 }
 0x20a   :  { %v1962_v53 = vadd.f32 %v1935_v19, %v1869_v6  ;;  %v5972_v36 = vadd.f32 %v2153_v21, %v2080_v63  ;;  %v2200_v21 = vrot.slane %v7006_v59, 6 }
 0x20b   :  { %3759 = vmatmul.msk.bf16.gmra.mxu1 %vm330_vm3, %v7003_v24  ;;  %v2199_v6 = vrot.slane %v7005_v18, 5  ;;  %v7008_v18 = vld [vmem:[#allocation61_spill] sm:$0xff] }
 0x20e   :  { %v2155_v33 = vpop.f32.mrf.mxu0  ;;  %3776 = vmatmul.msk.bf16.gmra.mxu2 %vm330_vm3, %v7004_v46 }
 0x20f   :  { %v2054_v25 = vpop.f32.mrf.mxu3 }
 0x210   :  { %v1847_v39 = vpop.f32.mrf.mxu1  ;;  %v2081_v27 = vadd.f32 %v2054_v25, %v1962_v53  ;;  %v2201_v53 = vor.u32 %v2200_v21, %v2199_v6 }
 0x211   :  { %v1871_v16 = vadd.f32 %v1847_v39, %v5756_v22  ;;  %v1938_v26 = vpop.f32.mrf.mxu2  ;;  %v2205_v22 = vrot.slane %v2203_v8, 5 }
 0x212   :  { %v1963_v61 = vadd.f32 %v1938_v26, %v1870_v29  ;;  %v5977_v57 = vadd.f32 %v2155_v33, %v2081_v27  ;;  %v7007_v29 = vshll.u32 %v5747_v62, 16  ;;  %v2202_v59 = vrot.slane %v2201_v53, 4 }
 0x214   :  { %3791 = vmatmul.msk.bf16.gmra.mxu3 %vm330_vm3, %v5430_v50  ;;  %v2206_v33 = vrot.slane %v7007_v29, 6  ;;  %v5996_v50 = vld [vmem:[%s6508_s0 + $0xb0] sm:$0xf] }
 0x216   :  { %v2158_v17 = vpop.f32.mrf.mxu0  ;;  %v2207_v21 = vor.u32 %v2206_v33, %v2205_v22 }
 0x217   :  { %v2057_v63 = vpop.f32.mrf.mxu3 }
 0x218   :  { %v1850_v19 = vpop.f32.mrf.mxu1  ;;  %v2082_v25 = vadd.f32 %v2057_v63, %v1963_v61  ;;  %v6730_v61 = vshrl.u32 %v5996_v50, 16  ;;  %v2306_v63 = vrot.slane %v5747_v62, 6 }
 0x219   :  { %v1872_v39 = vadd.f32 %v1850_v19, %v5793_v37  ;;  %3806 = vmatmul.msk.bf16.gmra.mxu0 %vm330_vm3, %v5442_v56  ;;  %v1940_v27 = vpop.f32.mrf.mxu2  ;;  %v6728_v37 = vshll.u32 %v5996_v50, 16  ;;  %v7009_v56 = vld [vmem:[#allocation62_spill] sm:$0xff] }
 0x21a   :  { %v1964_v26 = vadd.f32 %v1940_v27, %v1871_v16  ;;  %v5998_v6 = vadd.f32 %v2158_v17, %v2082_v25  ;;  %v3763_v16 = vrot.slane %v5725_v45, 10  ;;  %v6008_v17 = vsel %vm4521_vm10, %v2202_v59, %v2207_v21 }
 0x21b   :  { %3760 = vmatmul.msk.bf16.gmra.mxu1 %vm330_vm3, %v7008_v18  ;;  %v2509_v25 = vrot.slane %v6730_v61, 4  ;;  %v2512_v27 = vrot.slane %v6728_v37, 5  ;;  %v6729_v1 = vunpack.c.l.b16 %v6008_v17 }
 0x21c   :  { %v6018_v62 = vsel %vm4526_vm12, %v3763_v16, %v2306_v63 }
 0x21d   :  { %v6731_v59 = vunpack.c.l.b16 %v6018_v62  ;;  %v2513_v21 = vor.u32 %v2512_v27, %v2509_v25 }
 0x21e   :  { %v2160_v8 = vpop.f32.mrf.mxu0  ;;  %3777 = vmatmul.msk.bf16.gmra.mxu2 %vm330_vm3, %v7009_v56 }
 0x21f   :  { %v2059_v19 = vpop.f32.mrf.mxu3 }
 0x220   :  { %v1852_v29 = vpop.f32.mrf.mxu1  ;;  %v2083_v53 = vadd.f32 %v2059_v19, %v1964_v26  ;;  %v6023_v26 = vld [vmem:[%s6508_s0 + $0xb4] sm:$0x3] }
 0x221   :  { %v1873_v22 = vadd.f32 %v1852_v29, %v5815_v43  ;;  %v1943_v33 = vpop.f32.mrf.mxu2  ;;  %v7010_v29 = vunpack.c.l.b16 %v5512_v34  ;;  %v7011_v34 = vunpack.c.l.b16 %v5751_v42 }
 0x222   :  { %v1965_v2 = vadd.f32 %v1943_v33, %v1872_v39  ;;  %v6025_v43 = vadd.f32 %v2160_v8, %v2083_v53  ;;  %v6732_v39 = vshll.u32 %v6023_v26, 16  ;;  %v3892_v8 = vld [vmem:[%s6507_s1 + $0x110] sm:$0x3] }
 0x223   :  { %v6035_v16 = vpack.c.b16 %v6729_v1, %v7010_v29  ;;  %v3157_v33 = vunpack.c.l.b16 %v3892_v8  ;;  %v6047_v27 = vpack.c.b16 %v6731_v59, %v7011_v34  ;;  %v2514_v29 = vrot.slane %v2513_v21, 4 }
 0x224   :  { %3792 = vmatmul.msk.bf16.gmra.mxu3 %vm330_vm3, %v5480_v35  ;;  %v2518_v1 = vrot.slane %v6732_v39, 5 }
 0x225   :  { %7012 = vst [vmem:[#allocation51_spill] sm:$0xff] %v6047_v27  ;;  %v3159_v61 = vpack.c.b16 %v3157_v33, %v3157_v33 }
 0x226   :  { %v2163_v19 = vpop.f32.mrf.mxu0 }
 0x227   :  { %v2062_v63 = vpop.f32.mrf.mxu3  ;;  %v3168_v21 = vsel %vm355_vm0, %v3159_v61, 0  ;;  %v3924_v61 = vld [vmem:[%s6507_s1 + $0x128] sm:$0x3] }
 0x228   :  { %v1855_v53 = vpop.f32.mrf.mxu1  ;;  %v2084_v35 = vadd.f32 %v2062_v63, %v1965_v2  ;;  %v3907_v2 = vld [vmem:[%s6507_s1 + $0x11c] sm:$0x3]  ;;  %3176 = vmatpush.bf16.msra.mxu2 %v3168_v21 }
 0x229   :  { %v1874_v37 = vadd.f32 %v1855_v53, %v5831_v4  ;;  %3807 = vmatmul.msk.bf16.gmra.mxu0 %vm330_vm3, %v5494_v10  ;;  %v1945_v25 = vpop.f32.mrf.mxu2  ;;  %v3875_v10 = vld [vmem:[%s6507_s1 + $0x104] sm:$0x3]  ;;  %v3268_v42 = vunpack.c.l.b16 %v3907_v2  ;;  %v2406_v53 = vunpack.c.l.b16 %v5996_v50 }
 0x22a   :  { %v1966_v4 = vadd.f32 %v1945_v25, %v1873_v22  ;;  %v3056_v8 = vunpack.c.l.b16 %v3875_v10  ;;  %v6059_v63 = vadd.f32 %v2163_v19, %v2084_v35  ;;  %v2519_v22 = vsel %vm4116_vm4, %v2514_v29, %v2518_v1 }
 0x22b   :  { %3761 = vmatmul.msk.bf16.gmra.mxu1 %vm330_vm3, %v6035_v16  ;;  %v3270_v33 = vpack.c.b16 %v3268_v42, %v3268_v42  ;;  %v3367_v10 = vunpack.c.l.b16 %v3924_v61  ;;  %v6077_v29 = vunpack.c.l.b16 %v2519_v22 }
 0x22c   :  { %v3058_v34 = vpack.c.b16 %v3056_v8, %v3056_v8  ;;  %v7013_v8 = vunpack.c.l.b16 %v5725_v45 }
 0x22d   :  { %v3279_v25 = vsel %vm355_vm0, %v3270_v33, 0  ;;  %v2527_v45 = vpack.c.b16 %v6077_v29, %v5796_v52 }
 0x22e   :  { %v2165_v59 = vpop.f32.mrf.mxu0  ;;  %3778 = vmatmul.msk.bf16.gmra.mxu2 %vm330_vm3, %v6047_v27  ;;  %v3067_v2 = vsel %vm355_vm0, %v3058_v34, 0  ;;  %3287 = vmatpush.bf16.msra.mxu3 %v3279_v25  ;;  %v2408_v21 = vpack.c.b16 %v2406_v53, %v7013_v8  ;;  %v3369_v34 = vpack.c.b16 %v3367_v10, %v3367_v10 }
 0x22f   :  { %v2064_v19 = vpop.f32.mrf.mxu3  ;;  %3075 = vmatpush.bf16.msra.mxu1 %v3067_v2 }
 0x230   :  { %v1857_v35 = vpop.f32.mrf.mxu1  ;;  %v2085_v42 = vadd.f32 %v2064_v19, %v1966_v4  ;;  %v3378_v27 = vsel %vm355_vm0, %v3369_v34, 0 }
 0x231   :  { %v1875_v1 = vadd.f32 %v1857_v35, %v5836_v14  ;;  %v1948_v33 = vpop.f32.mrf.mxu2  ;;  %3386 = vmatpush.bf16.msra.mxu0 %v3378_v27  ;;  %v7015_v27 = vld [vmem:[#allocation65_spill] sm:$0xff] }
 0x232   :  { %v1967_v39 = vadd.f32 %v1948_v33, %v1874_v37  ;;  %v6079_v15 = vadd.f32 %v2165_v59, %v2085_v42  ;;  %v7014_v59 = vld [vmem:[#allocation64_spill] sm:$0xff] }
 0x234   :  { %3793 = vmatmul.msk.bf16.gmra.mxu3 %vm330_vm3, %v2408_v21 }
 0x236   :  { %v2168_v4 = vpop.f32.mrf.mxu0 }
 0x237   :  { %v2067_v25 = vpop.f32.mrf.mxu3 }
 0x238   :  { %v2244_v2 = vpop.f32.mrf.mxu1  ;;  %v2086_v61 = vadd.f32 %v2067_v25, %v1967_v39 }
 0x239   :  { %v2284_v14 = vadd.f32 %v2244_v2, %v5845_v49  ;;  %3808 = vmatmul.msk.bf16.gmra.mxu0 %vm330_vm3, %v2527_v45  ;;  %v1950_v22 = vpop.f32.mrf.mxu2 }
 0x23a   :  { %v1968_v37 = vadd.f32 %v1950_v22, %v1875_v1  ;;  %v6089_v19 = vadd.f32 %v2168_v4, %v2086_v61  ;;  %v7016_v61 = vld [vmem:[#allocation24_spill] sm:$0xff]  ;;  %v7017_v22 = vld [vmem:[#allocation2_spill] sm:$0xff] }
 0x23b   :  { %3818 = vmatmul.msk.bf16.vlgmr.msrb.gmra.mxu1 %vm330_vm3, %v7014_v59 }
 0x23e   :  { %v2170_v35 = vpop.f32.mrf.mxu0  ;;  %3833 = vmatmul.msk.bf16.vlgmr.msrb.gmra.mxu2 %vm330_vm3, %v7015_v27 }
 0x23f   :  { %v2069_v52 = vpop.f32.mrf.mxu3 }
 0x240   :  { %v2246_v10 = vpop.f32.mrf.mxu1  ;;  %v2087_v42 = vadd.f32 %v2069_v52, %v1968_v37 }
 0x241   :  { %v2285_v39 = vadd.f32 %v2246_v10, %v5850_v38  ;;  %v2343_v8 = vpop.f32.mrf.mxu2  ;;  %v7018_v10 = vshrl.u32 %v5869_v60, 16 }
 0x242   :  { %v2383_v49 = vadd.f32 %v2343_v8, %v2284_v14  ;;  %v6094_v21 = vadd.f32 %v2170_v35, %v2087_v42 }
 0x243   :  { %v2712_v42 = vrot.slane %v7018_v10, 5 }
 0x244   :  { %3850 = vmatmul.msk.bf16.vlgmr.msrb.gmra.mxu3 %vm330_vm3, %v5557_v0 }
 0x246   :  { %v2555_v1 = vpop.f32.mrf.mxu0 }
 0x247   :  { %v2436_v33 = vpop.f32.mrf.mxu3 }
 0x248   :  { %v2249_v34 = vpop.f32.mrf.mxu1  ;;  %v2476_v45 = vadd.f32 %v2436_v33, %v2383_v49  ;;  %v2716_v33 = vshrl.u32 %v5898_v58, 16 }
 0x249   :  { %v2286_v4 = vadd.f32 %v2249_v34, %v5871_v5  ;;  %3865 = vmatmul.msk.bf16.vlgmr.msrb.gmra.mxu0 %vm330_vm3, %v6942_v13  ;;  %v2345_v25 = vpop.f32.mrf.mxu2 }
 0x24a   :  { %v2384_v2 = vadd.f32 %v2345_v25, %v2285_v39  ;;  %v6103_v38 = vadd.f32 %v2555_v1, %v2476_v45  ;;  %v7019_v39 = vshll.u32 %v5869_v60, 16  ;;  %v7020_v45 = vld [vmem:[#allocation36_spill] sm:$0xff] }
 0x24b   :  { %3819 = vmatmul.msk.bf16.gmra.mxu1 %vm330_vm3, %v7016_v61 }
 0x24c   :  { %v2713_v8 = vrot.slane %v7019_v39, 6 }
 0x24e   :  { %v2557_v14 = vpop.f32.mrf.mxu0  ;;  %3834 = vmatmul.msk.bf16.gmra.mxu2 %vm330_vm3, %v7017_v22  ;;  %v2615_v22 = vrot.slane %v5898_v58, 5 }
 0x24f   :  { %v2438_v0 = vpop.f32.mrf.mxu3 }
 0x250   :  { %v2251_v37 = vpop.f32.mrf.mxu1  ;;  %v2477_v59 = vadd.f32 %v2438_v0, %v2384_v2  ;;  %v2714_v2 = vor.u32 %v2713_v8, %v2712_v42  ;;  %v2718_v0 = vrot.slane %v2716_v33, 5 }
 0x251   :  { %v2287_v35 = vadd.f32 %v2251_v37, %v5889_v11  ;;  %v2348_v5 = vpop.f32.mrf.mxu2  ;;  %v7022_v37 = vshll.u32 %v5898_v58, 16 }
 0x252   :  { %v2385_v27 = vadd.f32 %v2348_v5, %v2286_v4  ;;  %v6108_v52 = vadd.f32 %v2557_v14, %v2477_v59  ;;  %v3809_v14 = vrot.slane %v5869_v60, 9  ;;  %v7023_v5 = vld [vmem:[#allocation32_spill] sm:$0xff] }
 0x253   :  { %v2719_v59 = vrot.slane %v7022_v37, 6 }
 0x254   :  { %3851 = vmatmul.msk.bf16.gmra.mxu3 %vm330_vm3, %v5577_v30  ;;  %v7021_v30 = vld [vmem:[#allocation28_spill] sm:$0xff]  ;;  %v6132_v10 = vsel %vm4469_vm7, %v3809_v14, %v2615_v22  ;;  %v3959_v22 = vld [vmem:[%s6507_s1 + $0x108] sm:$0xff] }
 0x255   :  { %v2720_v42 = vor.u32 %v2719_v59, %v2718_v0  ;;  %v2625_v33 = vunpack.c.l.b16 %v6132_v10  ;;  %3177 = vmatpush.bf16.msra.mxu2 %v3959_v22 }
 0x256   :  { %v2560_v13 = vpop.f32.mrf.mxu0 }
 0x257   :  { %v2441_v49 = vpop.f32.mrf.mxu3 }
 0x258   :  { %v2254_v1 = vpop.f32.mrf.mxu1  ;;  %v2478_v34 = vadd.f32 %v2441_v49, %v2385_v27 }
 0x259   :  { %v2288_v11 = vadd.f32 %v2254_v1, %v5932_v51  ;;  %3866 = vmatmul.msk.bf16.gmra.mxu0 %vm330_vm3, %v7020_v45  ;;  %v2350_v4 = vpop.f32.mrf.mxu2 }
 0x25a   :  { %v2386_v25 = vadd.f32 %v2350_v4, %v2287_v35  ;;  %v6122_v61 = vadd.f32 %v2560_v13, %v2478_v34  ;;  %v2715_v13 = vrot.slane %v2714_v2, 4  ;;  %v3841_v4 = vrot.slane %v5869_v60, 10  ;;  %v7024_v2 = vld [vmem:[#allocation9_spill] sm:$0xff] }
 0x25b   :  { %3820 = vmatmul.msk.bf16.gmra.mxu1 %vm330_vm3, %v7021_v30  ;;  %v2825_v30 = vrot.slane %v5898_v58, 6 }
 0x25c   :  { %v6140_v45 = vsel %vm4521_vm10, %v2715_v13, %v2720_v42 }
 0x25d   :  { %v2736_v14 = vunpack.c.l.b16 %v6140_v45 }
 0x25e   :  { %v2562_v51 = vpop.f32.mrf.mxu0  ;;  %3835 = vmatmul.msk.bf16.gmra.mxu2 %vm330_vm3, %v7023_v5  ;;  %v6159_v5 = vsel %vm4526_vm12, %v3841_v4, %v2825_v30 }
 0x25f   :  { %v2443_v27 = vpop.f32.mrf.mxu3 }
 0x260   :  { %v2256_v35 = vpop.f32.mrf.mxu1  ;;  %v2479_v39 = vadd.f32 %v2443_v27, %v2386_v25  ;;  %v3960_v27 = vld [vmem:[%s6507_s1 + $0x114] sm:$0xff] }
 0x261   :  { %v2289_v8 = vadd.f32 %v2256_v35, %v5949_v40  ;;  %v2353_v49 = vpop.f32.mrf.mxu2  ;;  %v7025_v40 = vunpack.c.l.b16 %v7024_v2  ;;  %v3958_v35 = vld [vmem:[%s6507_s1 + $0xfc] sm:$0xff]  ;;  %3288 = vmatpush.bf16.msra.mxu3 %v3960_v27  ;;  %v7028_v2 = vunpack.c.l.b16 %v5893_v3 }
 0x262   :  { %v2387_v1 = vadd.f32 %v2353_v49, %v2288_v11  ;;  %v6136_v34 = vadd.f32 %v2562_v51, %v2479_v39  ;;  %v7026_v51 = vld [vmem:[#allocation45_spill] sm:$0xff]  ;;  %3076 = vmatpush.bf16.msra.mxu1 %v3958_v35  ;;  %v2835_v49 = vunpack.c.l.b16 %v6159_v5 }
 0x263   :  { %v2627_v11 = vpack.c.b16 %v2625_v33, %v7025_v40 }
 0x264   :  { %3852 = vmatmul.msk.bf16.gmra.mxu3 %vm330_vm3, %v5623_v12  ;;  %v2837_v40 = vpack.c.b16 %v2835_v49, %v7028_v2 }
 0x266   :  { %v2565_v25 = vpop.f32.mrf.mxu0 }
 0x267   :  { %v2446_v0 = vpop.f32.mrf.mxu3 }
 0x268   :  { %v2259_v37 = vpop.f32.mrf.mxu1  ;;  %v2480_v59 = vadd.f32 %v2446_v0, %v2387_v1 }
 0x269   :  { %v2290_v12 = vadd.f32 %v2259_v37, %v5958_v54  ;;  %3867 = vmatmul.msk.bf16.gmra.mxu0 %vm330_vm3, %v7026_v51  ;;  %v2355_v58 = vpop.f32.mrf.mxu2  ;;  %v7027_v54 = vunpack.c.l.b16 %v5879_v32  ;;  %v3961_v32 = vld [vmem:[%s6507_s1 + $0x120] sm:$0xff]  ;;  %v7029_v51 = vunpack.c.l.b16 %v5869_v60 }
 0x26a   :  { %v2388_v13 = vadd.f32 %v2355_v58, %v2289_v8  ;;  %v6172_v39 = vadd.f32 %v2565_v25, %v2480_v59  ;;  %v6179_v8 = vld [vmem:[%s6508_s0 + $0x58] sm:$0xf]  ;;  %3387 = vmatpush.bf16.msra.mxu0 %v3961_v32  ;;  %v7030_v32 = vld [vmem:[#allocation8_spill] sm:$0xff] }
 0x26b   :  { %3821 = vmatmul.msk.bf16.gmra.mxu1 %vm330_vm3, %v2627_v11  ;;  %v2738_v42 = vpack.c.b16 %v2736_v14, %v7027_v54  ;;  %v2928_v22 = vunpack.c.l.b16 %v6179_v8 }
 0x26d   :  { %v2930_v58 = vpack.c.b16 %v2928_v22, %v7029_v51 }
 0x26e   :  { %v2567_v1 = vpop.f32.mrf.mxu0  ;;  %3836 = vmatmul.msk.bf16.gmra.mxu2 %vm330_vm3, %v2738_v42 }
 0x26f   :  { %v2448_v4 = vpop.f32.mrf.mxu3 }
 0x270   :  { %v2261_v30 = vpop.f32.mrf.mxu1  ;;  %v2481_v25 = vadd.f32 %v2448_v4, %v2388_v13  ;;  %v7031_v4 = vld [vmem:[#allocation10_spill] sm:$0xff] }
 0x271   :  { %v2291_v11 = vadd.f32 %v2261_v30, %v5963_v48  ;;  %v2358_v0 = vpop.f32.mrf.mxu2 }
 0x272   :  { %v2389_v37 = vadd.f32 %v2358_v0, %v2290_v12  ;;  %v6190_v59 = vadd.f32 %v2567_v1, %v2481_v25  ;;  %v7032_v0 = vld [vmem:[#allocation43_spill] sm:$0xff] }
 0x274   :  { %3853 = vmatmul.msk.bf16.gmra.mxu3 %vm330_vm3, %v2837_v40 }
 0x276   :  { %v2570_v27 = vpop.f32.mrf.mxu0 }
 0x277   :  { %v2451_v35 = vpop.f32.mrf.mxu3 }
 0x278   :  { %v2264_v3 = vpop.f32.mrf.mxu1  ;;  %v2482_v13 = vadd.f32 %v2451_v35, %v2389_v37  ;;  %v7033_v35 = vld [vmem:[#allocation53_spill] sm:$0xff] }
 0x279   :  { %v2292_v54 = vadd.f32 %v2264_v3, %v5972_v36  ;;  %3868 = vmatmul.msk.bf16.gmra.mxu0 %vm330_vm3, %v2930_v58  ;;  %v2360_v48 = vpop.f32.mrf.mxu2 }
 0x27a   :  { %v2390_v42 = vadd.f32 %v2360_v48, %v2291_v11  ;;  %v6199_v12 = vadd.f32 %v2570_v27, %v2482_v13  ;;  %v7034_v48 = vld [vmem:[#allocation29_spill] sm:$0xff] }
 0x27b   :  { %3822 = vmatmul.msk.bf16.gmra.mxu1 %vm330_vm3, %v7030_v32 }
 0x27e   :  { %v2572_v1 = vpop.f32.mrf.mxu0  ;;  %3837 = vmatmul.msk.bf16.gmra.mxu2 %vm330_vm3, %v7031_v4 }
 0x27f   :  { %v2453_v60 = vpop.f32.mrf.mxu3 }
 0x280   :  { %v2266_v30 = vpop.f32.mrf.mxu1  ;;  %v2483_v25 = vadd.f32 %v2453_v60, %v2390_v42  ;;  %v7035_v42 = vld [vmem:[#allocation4_spill] sm:$0xff] }
 0x281   :  { %v2293_v2 = vadd.f32 %v2266_v30, %v5977_v57  ;;  %v2363_v40 = vpop.f32.mrf.mxu2 }
 0x282   :  { %v2391_v36 = vadd.f32 %v2363_v40, %v2292_v54  ;;  %v6204_v22 = vadd.f32 %v2572_v1, %v2483_v25  ;;  %v7036_v40 = vld [vmem:[#allocation49_spill] sm:$0xff] }
 0x284   :  { %3854 = vmatmul.msk.bf16.gmra.mxu3 %vm330_vm3, %v7032_v0 }
 0x286   :  { %v2575_v11 = vpop.f32.mrf.mxu0 }
 0x287   :  { %v2456_v37 = vpop.f32.mrf.mxu3 }
 0x288   :  { %v2269_v51 = vpop.f32.mrf.mxu1  ;;  %v2484_v58 = vadd.f32 %v2456_v37, %v2391_v36  ;;  %v7037_v36 = vshrl.u32 %v5996_v50, 16 }
 0x289   :  { %v2294_v27 = vadd.f32 %v2269_v51, %v5998_v6  ;;  %3869 = vmatmul.msk.bf16.gmra.mxu0 %vm330_vm3, %v7033_v35  ;;  %v2365_v3 = vpop.f32.mrf.mxu2  ;;  %v2726_v35 = vshrl.u32 %v6023_v26, 16 }
 0x28a   :  { %v2392_v13 = vadd.f32 %v2365_v3, %v2293_v2  ;;  %v6213_v57 = vadd.f32 %v2575_v11, %v2484_v58  ;;  %v2722_v0 = vrot.slane %v7037_v36, 5  ;;  %v7038_v11 = vshll.u32 %v5996_v50, 16  ;;  %v7042_v36 = vld [vmem:[#allocation41_spill] sm:$0xff] }
 0x28b   :  { %3823 = vmatmul.msk.bf16.gmra.mxu1 %vm330_vm3, %v7034_v48 }
 0x28c   :  { %v2723_v37 = vrot.slane %v7038_v11, 6 }
 0x28e   :  { %v2577_v54 = vpop.f32.mrf.mxu0  ;;  %3838 = vmatmul.msk.bf16.gmra.mxu2 %vm330_vm3, %v7035_v42  ;;  %v2724_v42 = vor.u32 %v2723_v37, %v2722_v0 }
 0x28f   :  { %v2458_v32 = vpop.f32.mrf.mxu3 }
 0x290   :  { %v2271_v1 = vpop.f32.mrf.mxu1  ;;  %v2485_v4 = vadd.f32 %v2458_v32, %v2392_v13 }
 0x291   :  { %v2295_v60 = vadd.f32 %v2271_v1, %v6025_v43  ;;  %v2368_v6 = vpop.f32.mrf.mxu2  ;;  %v3810_v1 = vrot.slane %v5996_v50, 9 }
 0x292   :  { %v2393_v30 = vadd.f32 %v2368_v6, %v2294_v27  ;;  %v6218_v25 = vadd.f32 %v2577_v54, %v2485_v4  ;;  %v7039_v27 = vld [vmem:[#allocation59_spill] sm:$0xff]  ;;  %v7040_v54 = vld [vmem:[#allocation12_spill] sm:$0xff]  ;;  %v2619_v4 = vrot.slane %v6023_v26, 5  ;;  %v2728_v6 = vrot.slane %v2726_v35, 5 }
 0x294   :  { %3855 = vmatmul.msk.bf16.gmra.mxu3 %vm330_vm3, %v7036_v40 }
 0x296   :  { %v2580_v2 = vpop.f32.mrf.mxu0 }
 0x297   :  { %v2461_v51 = vpop.f32.mrf.mxu3 }
 0x298   :  { %v2274_v58 = vpop.f32.mrf.mxu1  ;;  %v2486_v3 = vadd.f32 %v2461_v51, %v2393_v30  ;;  %v7041_v30 = vshll.u32 %v6023_v26, 16  ;;  %v6242_v51 = vsel %vm4469_vm7, %v3810_v1, %v2619_v4  ;;  %v3842_v1 = vrot.slane %v5996_v50, 10 }
 0x299   :  { %v2296_v43 = vadd.f32 %v2274_v58, %v6059_v63  ;;  %3870 = vmatmul.msk.bf16.gmra.mxu0 %vm330_vm3, %v7039_v27  ;;  %v2370_v13 = vpop.f32.mrf.mxu2  ;;  %v6737_v27 = vunpack.c.l.b16 %v6242_v51 }
 0x29a   :  { %v2394_v48 = vadd.f32 %v2370_v13, %v2295_v60  ;;  %v6232_v32 = vadd.f32 %v2580_v2, %v2486_v3  ;;  %v2729_v40 = vrot.slane %v7041_v30, 6  ;;  %v2725_v2 = vrot.slane %v2724_v42, 4 }
 0x29b   :  { %3824 = vmatmul.msk.bf16.gmra.mxu1 %vm330_vm3, %v7040_v54  ;;  %v2829_v42 = vrot.slane %v6023_v26, 6 }
 0x29c   :  { %v2730_v0 = vor.u32 %v2729_v40, %v2728_v6 }
 0x29d   :  { %v6266_v26 = vsel %vm4526_vm12, %v3842_v1, %v2829_v42 }
 0x29e   :  { %v2582_v63 = vpop.f32.mrf.mxu0  ;;  %3839 = vmatmul.msk.bf16.gmra.mxu2 %vm330_vm3, %v7042_v36  ;;  %v6250_v54 = vsel %vm4521_vm10, %v2725_v2, %v2730_v0 }
 0x29f   :  { %v2463_v11 = vpop.f32.mrf.mxu3  ;;  %v6736_v4 = vunpack.c.l.b16 %v6250_v54 }
 0x2a0   :  { %v2276_v60 = vpop.f32.mrf.mxu1  ;;  %v2487_v37 = vadd.f32 %v2463_v11, %v2394_v48 }
 0x2a1   :  { %v2297_v58 = vadd.f32 %v2276_v60, %v6079_v15  ;;  %v2373_v3 = vpop.f32.mrf.mxu2  ;;  %v7043_v15 = vunpack.c.l.b16 %v5802_v47  ;;  %v7044_v47 = vunpack.c.l.b16 %v6008_v17  ;;  %v7045_v17 = vunpack.c.l.b16 %v6018_v62 }
 0x2a2   :  { %v2395_v35 = vadd.f32 %v2373_v3, %v2296_v43  ;;  %v6246_v13 = vadd.f32 %v2582_v63, %v2487_v37 }
 0x2a3   :  { %v2628_v43 = vpack.c.b16 %v6737_v27, %v7043_v15  ;;  %v2739_v11 = vpack.c.b16 %v6736_v4, %v7044_v47  ;;  %v7046_v47 = vld [vmem:[#allocation3_spill] sm:$0xff] }
 0x2a4   :  { %3856 = vmatmul.msk.bf16.gmra.mxu3 %vm330_vm3, %v5767_v55 }
 0x2a6   :  { %v2585_v48 = vpop.f32.mrf.mxu0 }
 0x2a7   :  { %v2466_v6 = vpop.f32.mrf.mxu3 }
 0x2a8   :  { %v2279_v30 = vpop.f32.mrf.mxu1  ;;  %v2488_v40 = vadd.f32 %v2466_v6, %v2395_v35 }
 0x2a9   :  { %v2298_v63 = vadd.f32 %v2279_v30, %v6089_v19  ;;  %3871 = vmatmul.msk.bf16.gmra.mxu0 %vm330_vm3, %v5780_v23  ;;  %v2375_v55 = vpop.f32.mrf.mxu2  ;;  %v6735_v19 = vunpack.c.l.b16 %v6266_v26  ;;  %v6280_v23 = vld [vmem:[%s6508_s0 + $0xb8] sm:$0xf] }
 0x2aa   :  { %v2396_v36 = vadd.f32 %v2375_v55, %v2297_v58  ;;  %v6273_v60 = vadd.f32 %v2585_v48, %v2488_v40  ;;  %v2929_v1 = vunpack.c.l.b16 %v6280_v23 }
 0x2ab   :  { %3825 = vmatmul.msk.bf16.gmra.mxu1 %vm330_vm3, %v2628_v43  ;;  %v2838_v3 = vpack.c.b16 %v6735_v19, %v7045_v17 }
 0x2ac   :  { %v2931_v43 = vpack.c.b16 %v2929_v1, %v2406_v53 }
 0x2ae   :  { %v2587_v2 = vpop.f32.mrf.mxu0  ;;  %3840 = vmatmul.msk.bf16.gmra.mxu2 %vm330_vm3, %v2739_v11 }
 0x2af   :  { %v2468_v0 = vpop.f32.mrf.mxu3 }
 0x2b0   :  { %v2281_v37 = vpop.f32.mrf.mxu1  ;;  %v2489_v58 = vadd.f32 %v2468_v0, %v2396_v36 }
 0x2b1   :  { %v2299_v35 = vadd.f32 %v2281_v37, %v6094_v21  ;;  %v2378_v42 = vpop.f32.mrf.mxu2 }
 0x2b2   :  { %v2397_v48 = vadd.f32 %v2378_v42, %v2298_v63  ;;  %v6288_v15 = vadd.f32 %v2587_v2, %v2489_v58  ;;  %v7047_v2 = vld [vmem:[#allocation27_spill] sm:$0xff] }
 0x2b4   :  { %3857 = vmatmul.msk.bf16.gmra.mxu3 %vm330_vm3, %v2838_v3  ;;  %v7048_v3 = vld [vmem:[#allocation34_spill] sm:$0xff] }
 0x2b6   :  { %v2590_v6 = vpop.f32.mrf.mxu0 }
 0x2b7   :  { %v2471_v30 = vpop.f32.mrf.mxu3 }
 0x2b8   :  { %v2656_v40 = vpop.f32.mrf.mxu1  ;;  %v2490_v62 = vadd.f32 %v2471_v30, %v2397_v48 }
 0x2b9   :  { %v2696_v55 = vadd.f32 %v2656_v40, %v6103_v38  ;;  %3872 = vmatmul.msk.bf16.gmra.mxu0 %vm330_vm3, %v2931_v43  ;;  %v2380_v21 = vpop.f32.mrf.mxu2 }
 0x2ba   :  { %v2398_v36 = vadd.f32 %v2380_v21, %v2299_v35  ;;  %v6297_v63 = vadd.f32 %v2590_v6, %v2490_v62  ;;  %v7049_v6 = vld [vmem:[#allocation35_spill] sm:$0xff]  ;;  %v7051_v21 = vld [vmem:[#allocation37_spill] sm:$0xff] }
 0x2bb   :  { %3880 = vmatmul.msk.bf16.vlgmr.msra.gmra.mxu1 %vm330_vm3, %v7046_v47  ;;  %v7050_v62 = vld [vmem:[#allocation11_spill] sm:$0xff] }
 0x2be   :  { %v2592_v11 = vpop.f32.mrf.mxu0  ;;  %3897 = vmatmul.msk.bf16.vlgmr.msra.gmra.mxu2 %vm330_vm3, %v7047_v2 }
 0x2bf   :  { %v2473_v50 = vpop.f32.mrf.mxu3 }
 0x2c0   :  { %v2658_v53 = vpop.f32.mrf.mxu1  ;;  %v2491_v0 = vadd.f32 %v2473_v50, %v2398_v36 }
 0x2c1   :  { %v2697_v37 = vadd.f32 %v2658_v53, %v6108_v52  ;;  %v2767_v58 = vpop.f32.mrf.mxu2 }
 0x2c2   :  { %v2807_v38 = vadd.f32 %v2767_v58, %v2696_v55  ;;  %v6302_v17 = vadd.f32 %v2592_v11, %v2491_v0  ;;  %v3016_v11 = vshrl.u32 %v6179_v8, 16 }
 0x2c4   :  { %3912 = vmatmul.msk.bf16.vlgmr.msra.gmra.mxu3 %vm330_vm3, %v7048_v3  ;;  %v7052_v3 = vld [vmem:[#allocation39_spill] sm:$0xff] }
 0x2c6   :  { %v2959_v35 = vpop.f32.mrf.mxu0 }
 0x2c7   :  { %v2866_v1 = vpop.f32.mrf.mxu3 }
 0x2c8   :  { %v2661_v42 = vpop.f32.mrf.mxu1  ;;  %v2906_v48 = vadd.f32 %v2866_v1, %v2807_v38  ;;  %v38_v1 = vld [vmem:[%s6508_s0 + $0x5c] sm:$0x3] }
 0x2c9   :  { %v2698_v43 = vadd.f32 %v2661_v42, %v6122_v61  ;;  %3929 = vmatmul.msk.bf16.vlgmr.msra.gmra.mxu0 %vm330_vm3, %v7049_v6  ;;  %v2769_v30 = vpop.f32.mrf.mxu2  ;;  %v3019_v61 = vshll.u32 %v6179_v8, 16  ;;  %v3239_v19 = vshrl.u32 %v38_v1, 16 }
 0x2ca   :  { %v2808_v40 = vadd.f32 %v2769_v30, %v2697_v37  ;;  %v6311_v52 = vadd.f32 %v2959_v35, %v2906_v48  ;;  %v3018_v37 = vrot.slane %v3016_v11, 4 }
 0x2cb   :  { %3881 = vmatmul.msk.bf16.gmra.mxu1 %vm330_vm3, %v7050_v62  ;;  %v3021_v58 = vrot.slane %v3019_v61, 5  ;;  %v3025_v62 = vshll.u32 %v38_v1, 16 }
 0x2cd   :  { %v3022_v6 = vor.u32 %v3021_v58, %v3018_v37 }
 0x2ce   :  { %v2961_v55 = vpop.f32.mrf.mxu0  ;;  %3898 = vmatmul.msk.bf16.gmra.mxu2 %vm330_vm3, %v7051_v21  ;;  %v7054_v21 = vld [vmem:[#allocation13_spill] sm:$0xff] }
 0x2cf   :  { %v2868_v36 = vpop.f32.mrf.mxu3 }
 0x2d0   :  { %v2663_v47 = vpop.f32.mrf.mxu1  ;;  %v2907_v2 = vadd.f32 %v2868_v36, %v2808_v40  ;;  %v7053_v40 = vld [vmem:[#allocation40_spill] sm:$0xff] }
 0x2d1   :  { %v2699_v50 = vadd.f32 %v2663_v47, %v6136_v34  ;;  %v2772_v53 = vpop.f32.mrf.mxu2  ;;  %v3023_v47 = vrot.slane %v3022_v6, 4 }
 0x2d2   :  { %v2809_v0 = vadd.f32 %v2772_v53, %v2698_v43  ;;  %v6318_v38 = vadd.f32 %v2961_v55, %v2907_v2  ;;  %v3027_v2 = vrot.slane %v3025_v62, 5  ;;  %v3235_v53 = vrot.slane %v3016_v11, 5 }
 0x2d3   :  { %v3241_v11 = vrot.slane %v3239_v19, 5 }
 0x2d4   :  { %3913 = vmatmul.msk.bf16.gmra.mxu3 %vm330_vm3, %v7052_v3  ;;  %v3236_v3 = vrot.slane %v3019_v61, 6  ;;  %v3242_v61 = vrot.slane %v3025_v62, 6 }
 0x2d6   :  { %v2964_v35 = vpop.f32.mrf.mxu0 }
 0x2d7   :  { %v2871_v42 = vpop.f32.mrf.mxu3 }
 0x2d8   :  { %v2666_v48 = vpop.f32.mrf.mxu1  ;;  %v2908_v30 = vadd.f32 %v2871_v42, %v2809_v0  ;;  %v7055_v0 = vld [vmem:[#allocation5_spill] sm:$0xff]  ;;  %v3028_v42 = vsel %vm4116_vm4, %v3023_v47, %v3027_v2  ;;  %v3243_v2 = vor.u32 %v3242_v61, %v3241_v11 }
 0x2d9   :  { %v2700_v34 = vadd.f32 %v2666_v48, %v6172_v39  ;;  %3930 = vmatmul.msk.bf16.gmra.mxu0 %vm330_vm3, %v7053_v40  ;;  %v2774_v43 = vpop.f32.mrf.mxu2  ;;  %v3138_v48 = vrot.slane %v38_v1, 5 }
 0x2da   :  { %v2810_v55 = vadd.f32 %v2774_v43, %v2699_v50  ;;  %v6330_v36 = vadd.f32 %v2964_v35, %v2908_v30  ;;  %v3888_v50 = vrot.slane %v6179_v8, 9  ;;  %v3237_v30 = vor.u32 %v3236_v3, %v3235_v53 }
 0x2db   :  { %3882 = vmatmul.msk.bf16.gmra.mxu1 %vm330_vm3, %v7054_v21  ;;  %v3047_v21 = vunpack.c.l.b16 %v3028_v42 }
 0x2dc   :  { %v3238_v47 = vrot.slane %v3237_v30, 4 }
 0x2de   :  { %v2966_v37 = vpop.f32.mrf.mxu0  ;;  %3899 = vmatmul.msk.bf16.gmra.mxu2 %vm330_vm3, %v7055_v0  ;;  %v3139_v0 = vsel %vm4469_vm7, %v3888_v50, %v3138_v48  ;;  %v3244_v3 = vsel %vm4521_vm10, %v3238_v47, %v3243_v2 }
 0x2df   :  { %v2873_v39 = vpop.f32.mrf.mxu3  ;;  %v3259_v50 = vunpack.c.l.b16 %v3244_v3 }
 0x2e0   :  { %v2668_v58 = vpop.f32.mrf.mxu1  ;;  %v2909_v40 = vadd.f32 %v2873_v39, %v2810_v55  ;;  %v3049_v55 = vpack.c.b16 %v3047_v21, %v5947_v9 }
 0x2e1   :  { %v2701_v35 = vadd.f32 %v2668_v58, %v6190_v59  ;;  %v2777_v6 = vpop.f32.mrf.mxu2  ;;  %v3148_v59 = vunpack.c.l.b16 %v3139_v0  ;;  %v3348_v58 = vrot.slane %v38_v1, 6 }
 0x2e2   :  { %v2811_v43 = vadd.f32 %v2777_v6, %v2700_v34  ;;  %v6338_v4 = vadd.f32 %v2966_v37, %v2909_v40 }
 0x2e3   :  { %v3150_v9 = vpack.c.b16 %v3148_v59, %v2625_v33 }
 0x2e4   :  { %3914 = vmatmul.msk.bf16.gmra.mxu3 %vm330_vm3, %v5906_v20  ;;  %v3920_v20 = vrot.slane %v6179_v8, 10  ;;  %v3261_v8 = vpack.c.b16 %v3259_v50, %v2736_v14  ;;  %v7058_v50 = vld [vmem:[#allocation17_spill] sm:$0xff] }
 0x2e6   :  { %v2969_v27 = vpop.f32.mrf.mxu0 }
 0x2e7   :  { %v2876_v39 = vpop.f32.mrf.mxu3 }
 0x2e8   :  { %v2671_v53 = vpop.f32.mrf.mxu1  ;;  %v2910_v19 = vadd.f32 %v2876_v39, %v2811_v43 }
 0x2e9   :  { %v2702_v34 = vadd.f32 %v2671_v53, %v6199_v12  ;;  %3931 = vmatmul.msk.bf16.gmra.mxu0 %vm330_vm3, %v5928_v31  ;;  %v2779_v62 = vpop.f32.mrf.mxu2  ;;  %v3349_v31 = vsel %vm4526_vm12, %v3920_v20, %v3348_v58 }
 0x2ea   :  { %v2812_v37 = vadd.f32 %v2779_v62, %v2701_v35  ;;  %v6354_v42 = vadd.f32 %v2969_v27, %v2910_v19  ;;  %v3358_v10 = vunpack.c.l.b16 %v3349_v31  ;;  %v7059_v31 = vld [vmem:[#allocation60_spill] sm:$0xff] }
 0x2eb   :  { %3883 = vmatmul.msk.bf16.gmra.mxu1 %vm330_vm3, %v3049_v55  ;;  %v7057_v55 = vld [vmem:[#allocation55_spill] sm:$0xff] }
 0x2ec   :  { %v3360_v30 = vpack.c.b16 %v3358_v10, %v2835_v49 }
 0x2ee   :  { %v2971_v12 = vpop.f32.mrf.mxu0  ;;  %3900 = vmatmul.msk.bf16.gmra.mxu2 %vm330_vm3, %v3150_v9 }
 0x2ef   :  { %v2878_v48 = vpop.f32.mrf.mxu3 }
 0x2f0   :  { %v2673_v40 = vpop.f32.mrf.mxu1  ;;  %v2911_v6 = vadd.f32 %v2878_v48, %v2812_v37 }
 0x2f1   :  { %v2703_v35 = vadd.f32 %v2673_v40, %v6204_v22  ;;  %v2782_v33 = vpop.f32.mrf.mxu2  ;;  %v7056_v22 = vld [vmem:[#allocation7_spill] sm:$0xff]  ;;  %v3030_v40 = vshrl.u32 %v6280_v23, 16 }
 0x2f2   :  { %v2813_v1 = vadd.f32 %v2782_v33, %v2702_v34  ;;  %v6362_v27 = vadd.f32 %v2971_v12, %v2911_v6 }
 0x2f3   :  { %v3032_v10 = vrot.slane %v3030_v40, 4 }
 0x2f4   :  { %3915 = vmatmul.msk.bf16.gmra.mxu3 %vm330_vm3, %v3261_v8 }
 0x2f6   :  { %v2974_v11 = vpop.f32.mrf.mxu0 }
 0x2f7   :  { %v2881_v61 = vpop.f32.mrf.mxu3 }
 0x2f8   :  { %v2676_v43 = vpop.f32.mrf.mxu1  ;;  %v2912_v21 = vadd.f32 %v2881_v61, %v2813_v1 }
 0x2f9   :  { %v2704_v0 = vadd.f32 %v2676_v43, %v6213_v57  ;;  %3932 = vmatmul.msk.bf16.gmra.mxu0 %vm330_vm3, %v3360_v30  ;;  %v2784_v45 = vpop.f32.mrf.mxu2 }
 0x2fa   :  { %v2814_v14 = vadd.f32 %v2784_v45, %v2703_v35  ;;  %v6371_v47 = vadd.f32 %v2974_v11, %v2912_v21  ;;  %v62_v11 = vld [vmem:[%s6508_s0 + $0xbc] sm:$0x3] }
 0x2fb   :  { %3884 = vmatmul.msk.bf16.gmra.mxu1 %vm330_vm3, %v7056_v22 }
 0x2fe   :  { %v2976_v2 = vpop.f32.mrf.mxu0  ;;  %3901 = vmatmul.msk.bf16.gmra.mxu2 %vm330_vm3, %v7057_v55 }
 0x2ff   :  { %v2883_v5 = vpop.f32.mrf.mxu3 }
 0x300   :  { %v2678_v49 = vpop.f32.mrf.mxu1  ;;  %v2913_v59 = vadd.f32 %v2883_v5, %v2814_v14  ;;  %v3039_v14 = vshll.u32 %v62_v11, 16 }
 0x301   :  { %v2705_v39 = vadd.f32 %v2678_v49, %v6218_v25  ;;  %v2787_v53 = vpop.f32.mrf.mxu2  ;;  %v3245_v49 = vrot.slane %v3030_v40, 5 }
 0x302   :  { %v2815_v57 = vadd.f32 %v2787_v53, %v2704_v0  ;;  %v6376_v19 = vadd.f32 %v2976_v2, %v2913_v59  ;;  %v7060_v2 = vld [vmem:[#allocation6_spill] sm:$0xff]  ;;  %v3041_v5 = vrot.slane %v3039_v14, 5 }
 0x304   :  { %3916 = vmatmul.msk.bf16.gmra.mxu3 %vm330_vm3, %v7003_v24 }
 0x306   :  { %v2979_v34 = vpop.f32.mrf.mxu0 }
 0x307   :  { %v2886_v62 = vpop.f32.mrf.mxu3 }
 0x308   :  { %v2681_v3 = vpop.f32.mrf.mxu1  ;;  %v2914_v20 = vadd.f32 %v2886_v62, %v2815_v57  ;;  %v7061_v57 = vld [vmem:[#allocation15_spill] sm:$0xff]  ;;  %v3889_v62 = vrot.slane %v6280_v23, 9 }
 0x309   :  { %v2706_v37 = vadd.f32 %v2681_v3, %v6232_v32  ;;  %3933 = vmatmul.msk.bf16.gmra.mxu0 %vm330_vm3, %v7004_v46  ;;  %v2789_v9 = vpop.f32.mrf.mxu2  ;;  %v3033_v32 = vshll.u32 %v6280_v23, 16  ;;  %v3142_v3 = vrot.slane %v62_v11, 5 }
 0x30a   :  { %v2816_v58 = vadd.f32 %v2789_v9, %v2705_v39  ;;  %v6385_v25 = vadd.f32 %v2979_v34, %v2914_v20  ;;  %v3249_v39 = vshrl.u32 %v62_v11, 16 }
 0x30b   :  { %3885 = vmatmul.msk.bf16.gmra.mxu1 %vm330_vm3, %v7058_v50  ;;  %v3035_v33 = vrot.slane %v3033_v32, 5  ;;  %v3246_v59 = vrot.slane %v3033_v32, 6  ;;  %v3143_v40 = vsel %vm4469_vm7, %v3889_v62, %v3142_v3 }
 0x30c   :  { %v3251_v50 = vrot.slane %v3249_v39, 5  ;;  %v7065_v39 = vunpack.c.l.b16 %v6266_v26 }
 0x30d   :  { %v3036_v21 = vor.u32 %v3035_v33, %v3032_v10 }
 0x30e   :  { %v2981_v12 = vpop.f32.mrf.mxu0  ;;  %3902 = vmatmul.msk.bf16.gmra.mxu2 %vm330_vm3, %v7059_v31 }
 0x30f   :  { %v2888_v24 = vpop.f32.mrf.mxu3  ;;  %v3037_v55 = vrot.slane %v3036_v21, 4 }
 0x310   :  { %v2683_v48 = vpop.f32.mrf.mxu1  ;;  %v2915_v6 = vadd.f32 %v2888_v24, %v2816_v58  ;;  %v3247_v58 = vor.u32 %v3246_v59, %v3245_v49 }
 0x311   :  { %v2707_v46 = vadd.f32 %v2683_v48, %v6246_v13  ;;  %v2792_v8 = vpop.f32.mrf.mxu2 }
 0x312   :  { %v2817_v35 = vadd.f32 %v2792_v8, %v2706_v37  ;;  %v6392_v1 = vadd.f32 %v2981_v12, %v2915_v6  ;;  %v3252_v12 = vrot.slane %v3039_v14, 6  ;;  %v3248_v44 = vrot.slane %v3247_v58, 4 }
 0x314   :  { %3917 = vmatmul.msk.bf16.gmra.mxu3 %vm330_vm3, %v7008_v18  ;;  %v3253_v32 = vor.u32 %v3252_v12, %v3251_v50 }
 0x316   :  { %v2984_v30 = vpop.f32.mrf.mxu0  ;;  %v3254_v41 = vsel %vm4521_vm10, %v3248_v44, %v3253_v32 }
 0x317   :  { %v2891_v61 = vpop.f32.mrf.mxu3 }
 0x318   :  { %v2686_v43 = vpop.f32.mrf.mxu1  ;;  %v2916_v0 = vadd.f32 %v2891_v61, %v2817_v35 }
 0x319   :  { %v2708_v13 = vadd.f32 %v2686_v43, %v6273_v60  ;;  %3934 = vmatmul.msk.bf16.gmra.mxu0 %vm330_vm3, %v7009_v56  ;;  %v2794_v45 = vpop.f32.mrf.mxu2  ;;  %v3042_v56 = vsel %vm4116_vm4, %v3037_v55, %v3041_v5 }
 0x31a   :  { %v2818_v22 = vadd.f32 %v2794_v45, %v2707_v46  ;;  %v6404_v18 = vadd.f32 %v2984_v30, %v2916_v0  ;;  %v3048_v24 = vunpack.c.l.b16 %v3042_v56  ;;  %v7062_v30 = vld [vmem:[#allocation51_spill] sm:$0xff]  ;;  %v3352_v0 = vrot.slane %v62_v11, 6 }
 0x31b   :  { %3886 = vmatmul.msk.bf16.gmra.mxu1 %vm330_vm3, %v7060_v2  ;;  %v3260_v45 = vunpack.c.l.b16 %v3254_v41 }
 0x31c   :  { %v3050_v46 = vpack.c.b16 %v3048_v24, %v6077_v29  ;;  %v7063_v29 = vunpack.c.l.b16 %v6242_v51 }
 0x31e   :  { %v2986_v53 = vpop.f32.mrf.mxu0  ;;  %3903 = vmatmul.msk.bf16.gmra.mxu2 %vm330_vm3, %v7061_v57 }
 0x31f   :  { %v2893_v60 = vpop.f32.mrf.mxu3 }
 0x320   :  { %v2688_v34 = vpop.f32.mrf.mxu1  ;;  %v2917_v20 = vadd.f32 %v2893_v60, %v2818_v22 }
 0x321   :  { %v2709_v37 = vadd.f32 %v2688_v34, %v6288_v15  ;;  %v2797_v9 = vpop.f32.mrf.mxu2  ;;  %v3149_v15 = vunpack.c.l.b16 %v3143_v40 }
 0x322   :  { %v2819_v31 = vadd.f32 %v2797_v9, %v2708_v13  ;;  %v6412_v48 = vadd.f32 %v2986_v53, %v2917_v20 }
 0x323   :  { %v3151_v21 = vpack.c.b16 %v3149_v15, %v7063_v29  ;;  %v6451_v15 = vld [vmem:[%s6509_s2] ss:$0 sm:$0xff] }
 0x324   :  { %3918 = vmatmul.msk.bf16.gmra.mxu3 %vm330_vm3, %v6035_v16  ;;  %v3921_v16 = vrot.slane %v6280_v23, 10  ;;  %v7064_v23 = vunpack.c.l.b16 %v6250_v54 }
 0x326   :  { %v2989_v6 = vpop.f32.mrf.mxu0  ;;  %v3353_v14 = vsel %vm4526_vm12, %v3921_v16, %v3352_v0  ;;  %v3262_v55 = vpack.c.b16 %v3260_v45, %v7064_v23 }
 0x327   :  { %v2896_v8 = vpop.f32.mrf.mxu3  ;;  %v3359_v51 = vunpack.c.l.b16 %v3353_v14 }
 0x328   :  { %v2691_v35 = vpop.f32.mrf.mxu1  ;;  %v2918_v10 = vadd.f32 %v2896_v8, %v2819_v31 }
 0x329   :  { %v2710_v33 = vadd.f32 %v2691_v35, %v6297_v63  ;;  %3935 = vmatmul.msk.bf16.gmra.mxu0 %vm330_vm3, %v7062_v30  ;;  %v2799_v61 = vpop.f32.mrf.mxu2  ;;  %v3361_v53 = vpack.c.b16 %v3359_v51, %v7065_v39 }
 0x32a   :  { %v2820_v43 = vadd.f32 %v2799_v61, %v2709_v37  ;;  %v6428_v13 = vadd.f32 %v2989_v6, %v2918_v10 }
 0x32b   :  { %3887 = vmatmul.msk.bf16.gmra.mxu1 %vm330_vm3, %v3050_v46 }
 0x32e   :  { %v2991_v63 = vpop.f32.mrf.mxu0  ;;  %3904 = vmatmul.msk.bf16.gmra.mxu2 %vm330_vm3, %v3151_v21 }
 0x32f   :  { %v2898_v28 = vpop.f32.mrf.mxu3 }
 0x330   :  { %v2693_v22 = vpop.f32.mrf.mxu1  ;;  %v2919_v2 = vadd.f32 %v2898_v28, %v2820_v43 }
 0x331   :  { %v2711_v5 = vadd.f32 %v2693_v22, %v6302_v17  ;;  %v2802_v49 = vpop.f32.mrf.mxu2 }
 0x332   :  { %v2821_v11 = vadd.f32 %v2802_v49, %v2710_v33  ;;  %v6436_v59 = vadd.f32 %v2991_v63, %v2919_v2 }
 0x334   :  { %3919 = vmatmul.msk.bf16.gmra.mxu3 %vm330_vm3, %v3262_v55 }
 0x336   :  { %v2994_v7 = vpop.f32.mrf.mxu0 }
 0x337   :  { %v2901_v57 = vpop.f32.mrf.mxu3 }
 0x338   :  { %v3078_v60 = vpop.f32.mrf.mxu1  ;;  %v2920_v34 = vadd.f32 %v2901_v57, %v2821_v11 }
 0x339   :  { %3936 = vmatmul.msk.bf16.gmra.mxu0 %vm330_vm3, %v3361_v53  ;;  %v2804_v54 = vpop.f32.mrf.mxu2  ;;  %v3118_v26 = vadd.f32 %v3078_v60, %v6311_v52 }
 0x33a   :  { %v2822_v56 = vadd.f32 %v2804_v54, %v2711_v5  ;;  %v6442_v62 = vadd.f32 %v2994_v7, %v2920_v34 }
 0x33e   :  { %v2996_v17 = vpop.f32.mrf.mxu0 }
 0x33f   :  { %v2903_v3 = vpop.f32.mrf.mxu3 }
 0x340   :  { %v3080_v20 = vpop.f32.mrf.mxu1  ;;  %v2921_v37 = vadd.f32 %v2903_v3, %v2822_v56 }
 0x341   :  { %v3179_v9 = vpop.f32.mrf.mxu2  ;;  %v3119_v32 = vadd.f32 %v3080_v20, %v6318_v38 }
 0x342   :  { %v6444_v58 = vadd.f32 %v2996_v17, %v2921_v37  ;;  %v3219_v12 = vadd.f32 %v3179_v9, %v3118_v26 }
 0x346   :  { %v3389_v50 = vpop.f32.mrf.mxu0 }
 0x347   :  { %v3290_v31 = vpop.f32.mrf.mxu3 }
 0x348   :  { %v3083_v24 = vpop.f32.mrf.mxu1  ;;  %v3330_v44 = vadd.f32 %v3290_v31, %v3219_v12 }
 0x349   :  { %v3181_v40 = vpop.f32.mrf.mxu2  ;;  %v3120_v16 = vadd.f32 %v3083_v24, %v6330_v36 }
 0x34a   :  { %v3220_v6 = vadd.f32 %v3181_v40, %v3119_v32  ;;  %v3429_v46 = vadd.f32 %v3389_v50, %v3330_v44 }
 0x34c   :  { %v3449_v30 = vadd.f32 %v6451_v15, %v3429_v46 }
 0x34e   :  { %v3391_v8 = vpop.f32.mrf.mxu0  ;;  %v3465_v38 = vmax.f32 %v3449_v30, 0.0 }
 0x34f   :  { %v3292_v35 = vpop.f32.mrf.mxu3 }
 0x350   :  { %v3085_v10 = vpop.f32.mrf.mxu1  ;;  %v3331_v33 = vadd.f32 %v3292_v35, %v3220_v6 }
 0x351   :  { %v3184_v52 = vpop.f32.mrf.mxu2  ;;  %v3121_v22 = vadd.f32 %v3085_v10, %v6338_v4 }
 0x352   :  { %v3430_v61 = vadd.f32 %v3391_v8, %v3331_v33  ;;  %v3221_v21 = vadd.f32 %v3184_v52, %v3120_v16 }
 0x354   :  { %v3450_v41 = vadd.f32 %v6451_v15, %v3430_v61 }
 0x356   :  { %v3466_v43 = vmax.f32 %v3450_v41, 0.0  ;;  %v3394_v29 = vpop.f32.mrf.mxu0 }
 0x357   :  { %v3295_v0 = vpop.f32.mrf.mxu3 }
 0x358   :  { %v3088_v45 = vpop.f32.mrf.mxu1  ;;  %v3965_v63 = vpack.c.bf16 %v3466_v43, %v3465_v38  ;;  %v3332_v28 = vadd.f32 %v3295_v0, %v3221_v21 }
 0x359   :  { %v3186_v14 = vpop.f32.mrf.mxu2  ;;  %v3122_v7 = vadd.f32 %v3088_v45, %v6354_v42 }
 0x35a   :  { %3966 = vst [vmem:[%s6510_s3] sm:$0xff] %v3965_v63   ;;  %v3222_v2 = vadd.f32 %v3186_v14, %v3121_v22  ;;  %v3431_v23 = vadd.f32 %v3394_v29, %v3332_v28 }
 0x35c   :  { %v3451_v11 = vadd.f32 %v6451_v15, %v3431_v23 }
 0x35e   :  { %v3396_v55 = vpop.f32.mrf.mxu0  ;;  %v3467_v57 = vmax.f32 %v3451_v11, 0.0 }
 0x35f   :  { %v3297_v5 = vpop.f32.mrf.mxu3 }
 0x360   :  { %v3090_v36 = vpop.f32.mrf.mxu1  ;;  %v3333_v51 = vadd.f32 %v3297_v5, %v3222_v2 }
 0x361   :  { %v3189_v49 = vpop.f32.mrf.mxu2  ;;  %v3123_v37 = vadd.f32 %v3090_v36, %v6362_v27 }
 0x362   :  { %v3432_v39 = vadd.f32 %v3396_v55, %v3333_v51  ;;  %v3223_v54 = vadd.f32 %v3189_v49, %v3122_v7 }
 0x364   :  { %v3452_v53 = vadd.f32 %v6451_v15, %v3432_v39 }
 0x366   :  { %v3468_v60 = vmax.f32 %v3452_v53, 0.0  ;;  %v3399_v34 = vpop.f32.mrf.mxu0 }
 0x367   :  { %v3300_v56 = vpop.f32.mrf.mxu3 }
 0x368   :  { %v3093_v4 = vpop.f32.mrf.mxu1  ;;  %v3970_v17 = vpack.c.bf16 %v3468_v60, %v3467_v57  ;;  %v3334_v20 = vadd.f32 %v3300_v56, %v3223_v54 }
 0x369   :  { %v3191_v3 = vpop.f32.mrf.mxu2  ;;  %v3124_v6 = vadd.f32 %v3093_v4, %v6371_v47 }
 0x36a   :  { %4002 = vst [vmem:[%s6510_s3 + $0x8] sm:$0xff] %v3970_v17   ;;  %v3224_v9 = vadd.f32 %v3191_v3, %v3123_v37  ;;  %v3433_v26 = vadd.f32 %v3399_v34, %v3334_v20 }
 0x36c   :  { %v3453_v40 = vadd.f32 %v6451_v15, %v3433_v26 }
 0x36e   :  { %v3401_v50 = vpop.f32.mrf.mxu0  ;;  %v3469_v46 = vmax.f32 %v3453_v40, 0.0 }
 0x36f   :  { %v3302_v12 = vpop.f32.mrf.mxu3 }
 0x370   :  { %v3095_v42 = vpop.f32.mrf.mxu1  ;;  %v3335_v31 = vadd.f32 %v3302_v12, %v3224_v9 }
 0x371   :  { %v3194_v24 = vpop.f32.mrf.mxu2  ;;  %v3125_v41 = vadd.f32 %v3095_v42, %v6376_v19 }
 0x372   :  { %v3434_v44 = vadd.f32 %v3401_v50, %v3335_v31  ;;  %v3225_v10 = vadd.f32 %v3194_v24, %v3124_v6 }
 0x374   :  { %v3454_v32 = vadd.f32 %v6451_v15, %v3434_v44 }
 0x376   :  { %v3470_v8 = vmax.f32 %v3454_v32, 0.0  ;;  %v3404_v35 = vpop.f32.mrf.mxu0 }
 0x377   :  { %v3305_v33 = vpop.f32.mrf.mxu3 }
 0x378   :  { %v3098_v27 = vpop.f32.mrf.mxu1  ;;  %v3975_v52 = vpack.c.bf16 %v3470_v8, %v3469_v46  ;;  %v3336_v61 = vadd.f32 %v3305_v33, %v3225_v10 }
 0x379   :  { %v3196_v30 = vpop.f32.mrf.mxu2  ;;  %v3126_v28 = vadd.f32 %v3098_v27, %v6385_v25 }
 0x37a   :  { %4003 = vst [vmem:[%s6510_s3 + $0x10] sm:$0xff] %v3975_v52   ;;  %v3226_v16 = vadd.f32 %v3196_v30, %v3125_v41  ;;  %v3435_v38 = vadd.f32 %v3404_v35, %v3336_v61 }
 0x37c   :  { %v3455_v45 = vadd.f32 %v6451_v15, %v3435_v38 }
 0x37e   :  { %v3406_v43 = vpop.f32.mrf.mxu0  ;;  %v3471_v22 = vmax.f32 %v3455_v45, 0.0 }
 0x37f   :  { %v3307_v29 = vpop.f32.mrf.mxu3 }
 0x380   :  { %v3100_v47 = vpop.f32.mrf.mxu1  ;;  %v3337_v21 = vadd.f32 %v3307_v29, %v3226_v16 }
 0x381   :  { %v3199_v0 = vpop.f32.mrf.mxu2  ;;  %v3127_v11 = vadd.f32 %v3100_v47, %v6392_v1 }
 0x382   :  { %v3436_v63 = vadd.f32 %v3406_v43, %v3337_v21  ;;  %v3227_v55 = vadd.f32 %v3199_v0, %v3126_v28 }
 0x384   :  { %v3456_v14 = vadd.f32 %v6451_v15, %v3436_v63 }
 0x386   :  { %v3472_v2 = vmax.f32 %v3456_v14, 0.0  ;;  %v3409_v23 = vpop.f32.mrf.mxu0 }
 0x387   :  { %v3310_v5 = vpop.f32.mrf.mxu3 }
 0x388   :  { %v3103_v19 = vpop.f32.mrf.mxu1  ;;  %v3980_v36 = vpack.c.bf16 %v3472_v2, %v3471_v22  ;;  %v3338_v49 = vadd.f32 %v3310_v5, %v3227_v55 }
 0x389   :  { %v3201_v51 = vpop.f32.mrf.mxu2  ;;  %v3128_v17 = vadd.f32 %v3103_v19, %v6404_v18 }
 0x38a   :  { %4004 = vst [vmem:[%s6510_s3 + $0x18] sm:$0xff] %v3980_v36   ;;  %v3228_v39 = vadd.f32 %v3201_v51, %v3127_v11  ;;  %v3437_v53 = vadd.f32 %v3409_v23, %v3338_v49 }
 0x38c   :  { %v3457_v54 = vadd.f32 %v6451_v15, %v3437_v53 }
 0x38e   :  { %v3411_v7 = vpop.f32.mrf.mxu0  ;;  %v3473_v3 = vmax.f32 %v3457_v54, 0.0 }
 0x38f   :  { %v3312_v57 = vpop.f32.mrf.mxu3 }
 0x390   :  { %v3105_v25 = vpop.f32.mrf.mxu1  ;;  %v3339_v60 = vadd.f32 %v3312_v57, %v3228_v39 }
 0x391   :  { %v3204_v34 = vpop.f32.mrf.mxu2  ;;  %v3129_v31 = vadd.f32 %v3105_v25, %v6412_v48 }
 0x392   :  { %v3438_v56 = vadd.f32 %v3411_v7, %v3339_v60  ;;  %v3229_v9 = vadd.f32 %v3204_v34, %v3128_v17 }
 0x394   :  { %v3458_v4 = vadd.f32 %v6451_v15, %v3438_v56 }
 0x396   :  { %v3474_v20 = vmax.f32 %v3458_v4, 0.0  ;;  %v3414_v37 = vpop.f32.mrf.mxu0 }
 0x397   :  { %v3315_v26 = vpop.f32.mrf.mxu3 }
 0x398   :  { %v3985_v1 = vpack.c.bf16 %v3474_v20, %v3473_v3  ;;  %v3108_v50 = vpop.f32.mrf.mxu1  ;;  %v3340_v42 = vadd.f32 %v3315_v26, %v3229_v9 }
 0x399   :  { %v3206_v12 = vpop.f32.mrf.mxu2  ;;  %v3130_v33 = vadd.f32 %v3108_v50, %v6428_v13 }
 0x39a   :  { %4005 = vst [vmem:[%s6510_s3 + $0x20] sm:$0xff] %v3985_v1   ;;  %v3230_v24 = vadd.f32 %v3206_v12, %v3129_v31  ;;  %v3439_v40 = vadd.f32 %v3414_v37, %v3340_v42 }
 0x39c   :  { %v3459_v46 = vadd.f32 %v6451_v15, %v3439_v40 }
 0x39e   :  { %v3416_v44 = vpop.f32.mrf.mxu0  ;;  %v3475_v27 = vmax.f32 %v3459_v46, 0.0 }
 0x39f   :  { %v3317_v32 = vpop.f32.mrf.mxu3 }
 0x3a0   :  { %v3341_v18 = vadd.f32 %v3317_v32, %v3230_v24  ;;  %v3110_v35 = vpop.f32.mrf.mxu1 }
 0x3a1   :  { %v3209_v6 = vpop.f32.mrf.mxu2  ;;  %v3131_v43 = vadd.f32 %v3110_v35, %v6436_v59 }
 0x3a2   :  { %v3440_v8 = vadd.f32 %v3416_v44, %v3341_v18  ;;  %v3231_v61 = vadd.f32 %v3209_v6, %v3130_v33 }
 0x3a4   :  { %v3460_v10 = vadd.f32 %v6451_v15, %v3440_v8 }
 0x3a6   :  { %v3476_v52 = vmax.f32 %v3460_v10, 0.0  ;;  %v3419_v30 = vpop.f32.mrf.mxu0 }
 0x3a7   :  { %v3320_v41 = vpop.f32.mrf.mxu3 }
 0x3a8   :  { %v3990_v48 = vpack.c.bf16 %v3476_v52, %v3475_v27  ;;  %v3342_v38 = vadd.f32 %v3320_v41, %v3231_v61  ;;  %v3113_v47 = vpop.f32.mrf.mxu1 }
 0x3a9   :  { %v3211_v16 = vpop.f32.mrf.mxu2  ;;  %v3132_v2 = vadd.f32 %v3113_v47, %v6442_v62 }
 0x3aa   :  { %4006 = vst [vmem:[%s6510_s3 + $0x28] sm:$0xff] %v3990_v48   ;;  %v3232_v29 = vadd.f32 %v3211_v16, %v3131_v43  ;;  %v3441_v21 = vadd.f32 %v3419_v30, %v3342_v38 }
 0x3ac   :  { %v3461_v14 = vadd.f32 %v6451_v15, %v3441_v21 }
 0x3ae   :  { %v3421_v0 = vpop.f32.mrf.mxu0  ;;  %v3477_v23 = vmax.f32 %v3461_v14, 0.0 }
 0x3af   :  { %v3322_v45 = vpop.f32.mrf.mxu3 }
 0x3b0   :  { %v3343_v13 = vadd.f32 %v3322_v45, %v3232_v29  ;;  %v3115_v19 = vpop.f32.mrf.mxu1 }
 0x3b1   :  { %v3214_v63 = vpop.f32.mrf.mxu2  ;;  %v3133_v39 = vadd.f32 %v3115_v19, %v6444_v58 }
 0x3b2   :  { %v3442_v28 = vadd.f32 %v3421_v0, %v3343_v13  ;;  %v3233_v5 = vadd.f32 %v3214_v63, %v3132_v2 }
 0x3b4   :  { %v3462_v22 = vadd.f32 %v6451_v15, %v3442_v28 }
 0x3b6   :  { %v3478_v55 = vmax.f32 %v3462_v22, 0.0  ;;  %v3424_v36 = vpop.f32.mrf.mxu0 }
 0x3b7   :  { %v3325_v59 = vpop.f32.mrf.mxu3 }
 0x3b8   :  { %v3995_v51 = vpack.c.bf16 %v3478_v55, %v3477_v23  ;;  %v3344_v11 = vadd.f32 %v3325_v59, %v3233_v5 }
 0x3b9   :  { %v3216_v49 = vpop.f32.mrf.mxu2 }
 0x3ba   :  { %4007 = vst [vmem:[%s6510_s3 + $0x30] sm:$0xff] %v3995_v51   ;;  %v3234_v53 = vadd.f32 %v3216_v49, %v3133_v39  ;;  %v3443_v7 = vadd.f32 %v3424_v36, %v3344_v11 }
 0x3bc   :  { %v3463_v60 = vadd.f32 %v6451_v15, %v3443_v7 }
 0x3be   :  { %v3426_v62 = vpop.f32.mrf.mxu0  ;;  %v3479_v56 = vmax.f32 %v3463_v60, 0.0 }
 0x3bf   :  { %v3327_v57 = vpop.f32.mrf.mxu3 }
 0x3c0   :  { %v3345_v25 = vadd.f32 %v3327_v57, %v3234_v53 }
 0x3c2   :  { %v3444_v34 = vadd.f32 %v3426_v62, %v3345_v25 }
 0x3c4   :  { %v3464_v54 = vadd.f32 %v6451_v15, %v3444_v34 }
 0x3c6   :  { %v3480_v4 = vmax.f32 %v3464_v54, 0.0 }
 0x3c8   :  { %v4000_v17 = vpack.c.bf16 %v3480_v4, %v3479_v56 }
 0x3ca   :  { %4008 = vst [vmem:[%s6510_s3 + $0x38] sm:$0xff] %v4000_v17  }

// kernel: my_cnn_model_forward.5
= control target key start
LH: loop header
LB: loop body
LE: loop exit
PB: predicated region body
PF: predicated region fallthrough
CT: control target
= control target key end

     0   :  { %vm1259_vm0 = vcmask 261120   ;;  %s4528_s1 = inlined_call_operand.vmem [shape: bf16[800,512], index: 1, kind: input, shape index: {}]   ;;  %s4529_s0 = inlined_call_operand.vmem [shape: bf16[8,800], index: 0, kind: input, shape index: {}]   ;;  %s4530_s2 = inlined_call_operand.vmem [shape: f32[1,512], index: 2, kind: input, shape index: {}]   ;;  %s4531_s3 = inlined_call_operand.vmem [shape: bf16[512,128], index: 3, kind: input, shape index: {}]   ;;  %s4532_s4 = inlined_call_operand.vmem [shape: f32[1,128], index: 4, kind: input, shape index: {}]   ;;  %s4533_s5 = inlined_call_operand.vmem [shape: f32[8,128], index: 5, kind: output, shape index: {}]  }
   0x1   :  { %v2066_v0 = vld [vmem:[%s4528_s1 + $0xe0] sm:$0xf]  ;;  %v2914_v1 = vld [vmem:[%s4528_s1 + $0xec] sm:$0xf0] }
   0x2   :  { %v2194_v2 = vld [vmem:[%s4528_s1 + $0x1e0] sm:$0xf]  ;;  %v2067_v3 = vor.u32 %v2914_v1, %v2066_v0  ;;  %v2946_v4 = vld [vmem:[%s4528_s1 + $0x1ec] sm:$0xf0] }
   0x3   :  { %v2322_v5 = vld [vmem:[%s4528_s1 + $0x2e0] sm:$0xf]  ;;  %v2978_v6 = vld [vmem:[%s4528_s1 + $0x2ec] sm:$0xf0]  ;;  %v2195_v7 = vor.u32 %v2946_v4, %v2194_v2 }
   0x4   :  { %v2323_v8 = vor.u32 %v2978_v6, %v2322_v5  ;;  %v2450_v9 = vld [vmem:[%s4528_s1 + $0x3e0] sm:$0xf]  ;;  %v3010_v10 = vld [vmem:[%s4528_s1 + $0x3ec] sm:$0xf0]  ;;  %1263 = vmatpush.bf16.msra.mxu0 %v2067_v3 }
   0x5   :  { %v2050_v11 = vld [vmem:[%s4528_s1 + $0xc0] sm:$0xf]  ;;  %v2451_v12 = vor.u32 %v3010_v10, %v2450_v9  ;;  %v2910_v13 = vld [vmem:[%s4528_s1 + $0xcc] sm:$0xf0]  ;;  %1276 = vmatpush.bf16.msra.mxu1 %v2195_v7 }
   0x6   :  { %v2178_v14 = vld [vmem:[%s4528_s1 + $0x1c0] sm:$0xf]  ;;  %v2942_v15 = vld [vmem:[%s4528_s1 + $0x1cc] sm:$0xf0]  ;;  %1289 = vmatpush.bf16.msra.mxu2 %v2323_v8  ;;  %v2051_v16 = vor.u32 %v2910_v13, %v2050_v11 }
   0x7   :  { %v2179_v17 = vor.u32 %v2942_v15, %v2178_v14  ;;  %v2306_v18 = vld [vmem:[%s4528_s1 + $0x2c0] sm:$0xf]  ;;  %v2974_v19 = vld [vmem:[%s4528_s1 + $0x2cc] sm:$0xf0]  ;;  %1302 = vmatpush.bf16.msra.mxu3 %v2451_v12 }
   0x8   :  { %v2434_v20 = vld [vmem:[%s4528_s1 + $0x3c0] sm:$0xf]  ;;  %v2307_v21 = vor.u32 %v2974_v19, %v2306_v18  ;;  %v3006_v22 = vld [vmem:[%s4528_s1 + $0x3cc] sm:$0xf0]  ;;  %1264 = vmatpush.bf16.msra.mxu0 %v2051_v16 }
   0x9   :  { %v2034_v23 = vld [vmem:[%s4528_s1 + $0xa0] sm:$0xf]  ;;  %v2906_v24 = vld [vmem:[%s4528_s1 + $0xac] sm:$0xf0]  ;;  %v2435_v25 = vor.u32 %v3006_v22, %v2434_v20  ;;  %1277 = vmatpush.bf16.msra.mxu1 %v2179_v17 }
   0xa   :  { %v2162_v26 = vld [vmem:[%s4528_s1 + $0x1a0] sm:$0xf]  ;;  %v2938_v27 = vld [vmem:[%s4528_s1 + $0x1ac] sm:$0xf0]  ;;  %v2035_v29 = vor.u32 %v2906_v24, %v2034_v23  ;;  %1290 = vmatpush.bf16.msra.mxu2 %v2307_v21  ;;  %v22_v24 = vld [vmem:[%s4529_s0 + $0x8] sm:$0xff] }
   0xb   :  { %v2290_v28 = vld [vmem:[%s4528_s1 + $0x2a0] sm:$0xf]  ;;  %v2970_v30 = vld [vmem:[%s4528_s1 + $0x2ac] sm:$0xf0]  ;;  %v2163_v33 = vor.u32 %v2938_v27, %v2162_v26  ;;  %1303 = vmatpush.bf16.msra.mxu3 %v2435_v25 }
   0xc   :  { %v2418_v31 = vld [vmem:[%s4528_s1 + $0x3a0] sm:$0xf]  ;;  %v3002_v32 = vld [vmem:[%s4528_s1 + $0x3ac] sm:$0xf0]  ;;  %v2291_v34 = vor.u32 %v2970_v30, %v2290_v28  ;;  %1265 = vmatpush.bf16.msra.mxu0 %v2035_v29 }
   0xd   :  { %v2018_v35 = vld [vmem:[%s4528_s1 + $0x80] sm:$0xf]  ;;  %v2902_v36 = vld [vmem:[%s4528_s1 + $0x8c] sm:$0xf0]  ;;  %v2419_v38 = vor.u32 %v3002_v32, %v2418_v31  ;;  %1278 = vmatpush.bf16.msra.mxu1 %v2163_v33 }
   0xe   :  { %v2146_v37 = vld [vmem:[%s4528_s1 + $0x180] sm:$0xf]  ;;  %v2934_v39 = vld [vmem:[%s4528_s1 + $0x18c] sm:$0xf0]  ;;  %v2019_v44 = vor.u32 %v2902_v36, %v2018_v35  ;;  %1291 = vmatpush.bf16.msra.mxu2 %v2291_v34  ;;  %v241_v36 = vunpack.c.l.b16 %v22_v24 }
   0xf   :  { %v2274_v40 = vld [vmem:[%s4528_s1 + $0x280] sm:$0xf]  ;;  %v2966_v41 = vld [vmem:[%s4528_s1 + $0x28c] sm:$0xf0]  ;;  %v2147_v45 = vor.u32 %v2934_v39, %v2146_v37  ;;  %1304 = vmatpush.bf16.msra.mxu3 %v2419_v38  ;;  %v2912_v39 = vld [vmem:[%s4528_s1 + $0xe4] sm:$0xf] }
  0x10   :  { %v2402_v42 = vld [vmem:[%s4528_s1 + $0x380] sm:$0xf]  ;;  %v2998_v43 = vld [vmem:[%s4528_s1 + $0x38c] sm:$0xf0]  ;;  %v2275_v46 = vor.u32 %v2966_v41, %v2274_v40  ;;  %1266 = vmatpush.bf16.msra.mxu0 %v2019_v44  ;;  %v2068_v40 = vld [vmem:[%s4528_s1 + $0xf0] sm:$0xf0]  ;;  %v242_v41 = vunpack.c.h.b16 %v22_v24 }
  0x11   :  { %v2002_v47 = vld [vmem:[%s4528_s1 + $0x60] sm:$0xf]  ;;  %v2898_v48 = vld [vmem:[%s4528_s1 + $0x6c] sm:$0xf0]  ;;  %v2403_v50 = vor.u32 %v2998_v43, %v2402_v42  ;;  %1279 = vmatpush.bf16.msra.mxu1 %v2147_v45  ;;  %v2164_v24 = vld [vmem:[%s4528_s1 + $0x1b0] sm:$0xf0] }
  0x12   :  { %v2130_v49 = vld [vmem:[%s4528_s1 + $0x160] sm:$0xf]  ;;  %v2930_v51 = vld [vmem:[%s4528_s1 + $0x16c] sm:$0xf0]  ;;  %v2003_v56 = vor.u32 %v2898_v48, %v2002_v47  ;;  %1292 = vmatpush.bf16.msra.mxu2 %v2275_v46 }
  0x13   :  { %v2258_v52 = vld [vmem:[%s4528_s1 + $0x260] sm:$0xf]  ;;  %v2962_v53 = vld [vmem:[%s4528_s1 + $0x26c] sm:$0xf0]  ;;  %v2131_v57 = vor.u32 %v2930_v51, %v2130_v49  ;;  %1305 = vmatpush.bf16.msra.mxu3 %v2403_v50 }
  0x14   :  { %v2386_v54 = vld [vmem:[%s4528_s1 + $0x360] sm:$0xf]  ;;  %v2994_v55 = vld [vmem:[%s4528_s1 + $0x36c] sm:$0xf0]  ;;  %v2259_v58 = vor.u32 %v2962_v53, %v2258_v52  ;;  %1267 = vmatpush.bf16.msra.mxu0 %v2003_v56  ;;  %v2071_v53 = vor.u32 %v2912_v39, %v2068_v40 }
  0x15   :  { %v1986_v59 = vld [vmem:[%s4528_s1 + $0x40] sm:$0xf]  ;;  %v2894_v60 = vld [vmem:[%s4528_s1 + $0x4c] sm:$0xf0]  ;;  %v2387_v62 = vor.u32 %v2994_v55, %v2386_v54  ;;  %1280 = vmatpush.bf16.msra.mxu1 %v2131_v57  ;;  %v3381_v54 = vpack.c.b16 %v241_v36, %v241_v36  ;;  %v2908_v57 = vld [vmem:[%s4528_s1 + $0xc4] sm:$0xf] }
  0x16   :  { %v2114_v61 = vld [vmem:[%s4528_s1 + $0x140] sm:$0xf]  ;;  %v2926_v63 = vld [vmem:[%s4528_s1 + $0x14c] sm:$0xf0]  ;;  %v1987_v4 = vor.u32 %v2894_v60, %v1986_v59  ;;  %1293 = vmatpush.bf16.msra.mxu2 %v2259_v58  ;;  %v2052_v58 = vld [vmem:[%s4528_s1 + $0xd0] sm:$0xf0] }
  0x17   :  { %v2242_v0 = vld [vmem:[%s4528_s1 + $0x240] sm:$0xf]  ;;  %v2958_v1 = vld [vmem:[%s4528_s1 + $0x24c] sm:$0xf0]  ;;  %v2115_v5 = vor.u32 %v2926_v63, %v2114_v61  ;;  %1306 = vmatpush.bf16.msra.mxu3 %v2387_v62  ;;  %v2944_v59 = vld [vmem:[%s4528_s1 + $0x1e4] sm:$0xf]  ;;  %v3403_v62 = vpack.c.b16 %v242_v41, %v242_v41 }
  0x18   :  { %v2370_v2 = vld [vmem:[%s4528_s1 + $0x340] sm:$0xf]  ;;  %v2990_v3 = vld [vmem:[%s4528_s1 + $0x34c] sm:$0xf0]  ;;  %v2243_v6 = vor.u32 %v2958_v1, %v2242_v0  ;;  %1268 = vmatpush.bf16.msra.mxu0 %v1987_v4  ;;  %v2196_v60 = vld [vmem:[%s4528_s1 + $0x1f0] sm:$0xf0] }
  0x19   :  { %v1970_v7 = vld [vmem:[%s4528_s1 + $0x20] sm:$0xf]  ;;  %v2890_v8 = vld [vmem:[%s4528_s1 + $0x2c] sm:$0xf0]  ;;  %v2371_v10 = vor.u32 %v2990_v3, %v2370_v2  ;;  %1281 = vmatpush.bf16.msra.mxu1 %v2115_v5  ;;  %v2055_v5 = vor.u32 %v2908_v57, %v2052_v58  ;;  %v2932_v36 = vld [vmem:[%s4528_s1 + $0x184] sm:$0xf] }
  0x1a   :  { %v2098_v9 = vld [vmem:[%s4528_s1 + $0x120] sm:$0xf]  ;;  %v2922_v11 = vld [vmem:[%s4528_s1 + $0x12c] sm:$0xf0]  ;;  %v1971_v16 = vor.u32 %v2890_v8, %v1970_v7  ;;  %1294 = vmatpush.bf16.msra.mxu2 %v2243_v6  ;;  %v2199_v6 = vor.u32 %v2944_v59, %v2196_v60 }
  0x1b   :  { %v2226_v12 = vld [vmem:[%s4528_s1 + $0x220] sm:$0xf]  ;;  %v2954_v13 = vld [vmem:[%s4528_s1 + $0x22c] sm:$0xf0]  ;;  %v2099_v20 = vor.u32 %v2922_v11, %v2098_v9  ;;  %1307 = vmatpush.bf16.msra.mxu3 %v2371_v10  ;;  %v2904_v9 = vld [vmem:[%s4528_s1 + $0xa4] sm:$0xf] }
  0x1c   :  { %v2354_v14 = vld [vmem:[%s4528_s1 + $0x320] sm:$0xf]  ;;  %v2986_v15 = vld [vmem:[%s4528_s1 + $0x32c] sm:$0xf0]  ;;  %v2227_v21 = vor.u32 %v2954_v13, %v2226_v12  ;;  %1269 = vmatpush.bf16.msra.mxu0 %v1971_v16  ;;  %v2036_v10 = vld [vmem:[%s4528_s1 + $0xb0] sm:$0xf0] }
  0x1d   :  { %v1954_v17 = vld [vmem:[%s4528_s1] sm:$0xf]  ;;  %v2886_v18 = vld [vmem:[%s4528_s1 + $0xc] sm:$0xf0]  ;;  %v2355_v25 = vor.u32 %v2986_v15, %v2354_v14  ;;  %1282 = vmatpush.bf16.msra.mxu1 %v2099_v20  ;;  %v2940_v11 = vld [vmem:[%s4528_s1 + $0x1c4] sm:$0xf] }
  0x1e   :  { %v2082_v19 = vld [vmem:[%s4528_s1 + $0x100] sm:$0xf]  ;;  %v2918_v22 = vld [vmem:[%s4528_s1 + $0x10c] sm:$0xf0]  ;;  %v1955_v32 = vor.u32 %v2886_v18, %v1954_v17  ;;  %1295 = vmatpush.bf16.msra.mxu2 %v2227_v21  ;;  %v2180_v12 = vld [vmem:[%s4528_s1 + $0x1d0] sm:$0xf0]  ;;  %v2039_v17 = vor.u32 %v2904_v9, %v2036_v10 }
  0x1f   :  { %v2210_v23 = vld [vmem:[%s4528_s1 + $0x200] sm:$0xf]  ;;  %v2950_v26 = vld [vmem:[%s4528_s1 + $0x20c] sm:$0xf0]  ;;  %v2083_v37 = vor.u32 %v2918_v22, %v2082_v19  ;;  %1308 = vmatpush.bf16.msra.mxu3 %v2355_v25  ;;  %v2183_v18 = vor.u32 %v2940_v11, %v2180_v12  ;;  %v2900_v21 = vld [vmem:[%s4528_s1 + $0x84] sm:$0xf] }
  0x20   :  { %v2338_v27 = vld [vmem:[%s4528_s1 + $0x300] sm:$0xf]  ;;  %v2982_v28 = vld [vmem:[%s4528_s1 + $0x30c] sm:$0xf0]  ;;  %v2211_v38 = vor.u32 %v2950_v26, %v2210_v23  ;;  %1270 = vmatpush.bf16.msra.mxu0 %v1955_v32  ;;  %v2020_v22 = vld [vmem:[%s4528_s1 + $0x90] sm:$0xf0] }
  0x21   :  { %v2578_v29 = vld [vmem:[%s4528_s1 + $0x4e0] sm:$0xf]  ;;  %v3042_v30 = vld [vmem:[%s4528_s1 + $0x4ec] sm:$0xf0]  ;;  %v2339_v42 = vor.u32 %v2982_v28, %v2338_v27  ;;  %1283 = vmatpush.bf16.msra.mxu1 %v2083_v37  ;;  %v2936_v23 = vld [vmem:[%s4528_s1 + $0x1a4] sm:$0xf] }
  0x22   :  { %v2706_v31 = vld [vmem:[%s4528_s1 + $0x5e0] sm:$0xf]  ;;  %v3074_v33 = vld [vmem:[%s4528_s1 + $0x5ec] sm:$0xf0]  ;;  %v2579_v43 = vor.u32 %v3042_v30, %v2578_v29  ;;  %1296 = vmatpush.bf16.msra.mxu2 %v2211_v38  ;;  %v24_v29 = vld [vmem:[%s4529_s0 + $0x18] sm:$0xf]  ;;  %v2023_v30 = vor.u32 %v2900_v21, %v2020_v22 }
  0x23   :  { %v2738_v34 = vld [vmem:[%s4528_s1 + $0x620] sm:$0xf]  ;;  %v3082_v35 = vld [vmem:[%s4528_s1 + $0x62c] sm:$0xf0]  ;;  %v2707_v46 = vor.u32 %v3074_v33, %v2706_v31  ;;  %1309 = vmatpush.bf16.msra.mxu3 %v2339_v42  ;;  %v2167_v31 = vor.u32 %v2936_v23, %v2164_v24  ;;  %v2148_v37 = vld [vmem:[%s4528_s1 + $0x190] sm:$0xf0]  ;;  %v245_v38 = vunpack.c.l.b16 %v24_v29 }
  0x24   :  { %v2562_v44 = vld [vmem:[%s4528_s1 + $0x4c0] sm:$0xf]  ;;  %v2739_v47 = vor.u32 %v3082_v35, %v2738_v34  ;;  %v3038_v48 = vld [vmem:[%s4528_s1 + $0x4cc] sm:$0xf0]  ;;  %1315 = vmatpush.bf16.msrb.mxu0 %v2579_v43  ;;  %v2896_v34 = vld [vmem:[%s4528_s1 + $0x64] sm:$0xf] }
  0x25   :  { %v21_v45 = vld [vmem:[%s4529_s0] sm:$0xff]  ;;  %v3070_v50 = vld [vmem:[%s4528_s1 + $0x5cc] sm:$0xf0]  ;;  %v2563_v63 = vor.u32 %v3038_v48, %v2562_v44  ;;  %1328 = vmatpush.bf16.msrb.mxu1 %v2707_v46  ;;  %1297 = vmatmul.bf16.vlgmr.msra.gmra.mxu2 %v3381_v54  ;;  %v2004_v35 = vld [vmem:[%s4528_s1 + $0x70] sm:$0xf0]  ;;  %v2151_v44 = vor.u32 %v2932_v36, %v2148_v37 }
  0x26   :  { %v2690_v49 = vld [vmem:[%s4528_s1 + $0x5c0] sm:$0xf]  ;;  %v239_v51 = vunpack.c.l.b16 %v21_v45  ;;  %v240_v52 = vunpack.c.h.b16 %v21_v45  ;;  %v3078_v56 = vld [vmem:[%s4528_s1 + $0x60c] sm:$0xf0]  ;;  %1347 = vmatpush.bf16.msrb.mxu2 %v2739_v47  ;;  %1310 = vmatmul.bf16.vlgmr.msra.gmra.mxu3 %v3403_v62  ;;  %v2007_v43 = vor.u32 %v2896_v34, %v2004_v35  ;;  %v2892_v47 = vld [vmem:[%s4528_s1 + $0x44] sm:$0xf] }
  0x27   :  { %v2722_v55 = vld [vmem:[%s4528_s1 + $0x600] sm:$0xf]  ;;  %v2691_v1 = vor.u32 %v3070_v50, %v2690_v49  ;;  %v3034_v4 = vld [vmem:[%s4528_s1 + $0x4ac] sm:$0xf0]  ;;  %1354 = vmatpush.bf16.msrb.mxu3 %v2071_v53  ;;  %v1988_v48 = vld [vmem:[%s4528_s1 + $0x50] sm:$0xf0] }
  0x28   :  { %v3401_v61 = vpack.c.b16 %v239_v51, %v239_v51  ;;  %v3405_v0 = vpack.c.b16 %v240_v52, %v240_v52  ;;  %v2723_v2 = vor.u32 %v3078_v56, %v2722_v55  ;;  %v2546_v3 = vld [vmem:[%s4528_s1 + $0x4a0] sm:$0xf]  ;;  %v3066_v8 = vld [vmem:[%s4528_s1 + $0x5ac] sm:$0xf0]  ;;  %1316 = vmatpush.bf16.msrb.mxu0 %v2563_v63  ;;  %v2928_v49 = vld [vmem:[%s4528_s1 + $0x164] sm:$0xf]  ;;  %v3510_v51 = vpack.c.b16 %v245_v38, %v245_v38 }
  0x29   :  { %v2674_v7 = vld [vmem:[%s4528_s1 + $0x5a0] sm:$0xf]  ;;  %v2547_v13 = vor.u32 %v3034_v4, %v2546_v3  ;;  %1329 = vmatpush.bf16.msrb.mxu1 %v2691_v1  ;;  %v3030_v16 = vld [vmem:[%s4528_s1 + $0x48c] sm:$0xf0]  ;;  %v2132_v50 = vld [vmem:[%s4528_s1 + $0x170] sm:$0xf0]  ;;  %v1991_v57 = vor.u32 %v2892_v47, %v1988_v48 }
  0x2a   :  { %1271 = vmatmul.bf16.vlgmr.msra.gmra.mxu0 %v3401_v61  ;;  %1284 = vmatmul.bf16.vlgmr.msra.gmra.mxu1 %v3405_v0  ;;  %v2675_v14 = vor.u32 %v3066_v8, %v2674_v7  ;;  %v2530_v15 = vld [vmem:[%s4528_s1 + $0x480] sm:$0xf]  ;;  %v3062_v20 = vld [vmem:[%s4528_s1 + $0x58c] sm:$0xf0]  ;;  %v2135_v58 = vor.u32 %v2928_v49, %v2132_v50  ;;  %v2888_v63 = vld [vmem:[%s4528_s1 + $0x24] sm:$0xf] }
  0x2b   :  { %1348 = vmatpush.bf16.msrb.mxu2 %v2723_v2  ;;  %1355 = vmatpush.bf16.msrb.mxu3 %v2055_v5  ;;  %v2658_v19 = vld [vmem:[%s4528_s1 + $0x580] sm:$0xf]  ;;  %v2531_v25 = vor.u32 %v3030_v16, %v2530_v15  ;;  %v3026_v28 = vld [vmem:[%s4528_s1 + $0x46c] sm:$0xf0]  ;;  %v1972_v1 = vld [vmem:[%s4528_s1 + $0x30] sm:$0xf0] }
  0x2c   :  { %1317 = vmatpush.bf16.msrb.mxu0 %v2547_v13  ;;  %v2659_v26 = vor.u32 %v3062_v20, %v2658_v19  ;;  %v2514_v27 = vld [vmem:[%s4528_s1 + $0x460] sm:$0xf]  ;;  %v3058_v33 = vld [vmem:[%s4528_s1 + $0x56c] sm:$0xf0]  ;;  %v2924_v2 = vld [vmem:[%s4528_s1 + $0x144] sm:$0xf]  ;;  %v1975_v12 = vor.u32 %v2888_v63, %v1972_v1 }
  0x2d   :  { %1330 = vmatpush.bf16.msrb.mxu1 %v2675_v14  ;;  %v2642_v32 = vld [vmem:[%s4528_s1 + $0x560] sm:$0xf]  ;;  %v2515_v39 = vor.u32 %v3026_v28, %v2514_v27  ;;  %v3022_v42 = vld [vmem:[%s4528_s1 + $0x44c] sm:$0xf0]  ;;  %v2116_v3 = vld [vmem:[%s4528_s1 + $0x150] sm:$0xf0] }
  0x2e   :  { %v2643_v40 = vor.u32 %v3058_v33, %v2642_v32  ;;  %v2498_v41 = vld [vmem:[%s4528_s1 + $0x440] sm:$0xf]  ;;  %v3054_v46 = vld [vmem:[%s4528_s1 + $0x54c] sm:$0xf0]  ;;  %v2884_v10 = vld [vmem:[%s4528_s1 + $0x4] sm:$0xf]  ;;  %v2119_v13 = vor.u32 %v2924_v2, %v2116_v3 }
  0x2f   :  { %1367 = vmatpush.bf16.msra.mxu2 %v2199_v6  ;;  %1356 = vmatpush.bf16.msrb.mxu3 %v2039_v17  ;;  %v2626_v45 = vld [vmem:[%s4528_s1 + $0x540] sm:$0xf]  ;;  %v2499_v52 = vor.u32 %v3022_v42, %v2498_v41  ;;  %v3018_v56 = vld [vmem:[%s4528_s1 + $0x42c] sm:$0xf0]  ;;  %v1956_v14 = vld [vmem:[%s4528_s1 + $0x10] sm:$0xf0] }
  0x30   :  { %1318 = vmatpush.bf16.msrb.mxu0 %v2531_v25  ;;  %v2627_v53 = vor.u32 %v3054_v46, %v2626_v45  ;;  %v2482_v55 = vld [vmem:[%s4528_s1 + $0x420] sm:$0xf]  ;;  %v3050_v60 = vld [vmem:[%s4528_s1 + $0x52c] sm:$0xf0]  ;;  %v2976_v15 = vld [vmem:[%s4528_s1 + $0x2e4] sm:$0xf]  ;;  %v1959_v28 = vor.u32 %v2884_v10, %v1956_v14 }
  0x31   :  { %1331 = vmatpush.bf16.msrb.mxu1 %v2659_v26  ;;  %v2610_v59 = vld [vmem:[%s4528_s1 + $0x520] sm:$0xf]  ;;  %v2483_v4 = vor.u32 %v3018_v56, %v2482_v55  ;;  %v3014_v6 = vld [vmem:[%s4528_s1 + $0x40c] sm:$0xf0]  ;;  %v2324_v16 = vld [vmem:[%s4528_s1 + $0x2f0] sm:$0xf0] }
  0x32   :  { %v2466_v5 = vld [vmem:[%s4528_s1 + $0x400] sm:$0xf]  ;;  %v2611_v8 = vor.u32 %v3050_v60, %v2610_v59  ;;  %v3046_v9 = vld [vmem:[%s4528_s1 + $0x50c] sm:$0xf0]  ;;  %v2920_v17 = vld [vmem:[%s4528_s1 + $0x124] sm:$0xf]  ;;  %v2327_v27 = vor.u32 %v2976_v15, %v2324_v16 }
  0x33   :  { %1368 = vmatpush.bf16.msra.mxu2 %v2183_v18  ;;  %1357 = vmatpush.bf16.msrb.mxu3 %v2023_v30  ;;  %v2594_v7 = vld [vmem:[%s4528_s1 + $0x500] sm:$0xf]  ;;  %v23_v11 = vld [vmem:[%s4529_s0 + $0x10] sm:$0xff]  ;;  %v3008_v19 = vld [vmem:[%s4528_s1 + $0x3e4] sm:$0xf]  ;;  %v2467_v20 = vor.u32 %v3014_v6, %v2466_v5 }
  0x34   :  { %1319 = vmatpush.bf16.msrb.mxu0 %v2515_v39  ;;  %v2100_v18 = vld [vmem:[%s4528_s1 + $0x130] sm:$0xf0]  ;;  %v3040_v22 = vld [vmem:[%s4528_s1 + $0x4e4] sm:$0xf]  ;;  %v243_v24 = vunpack.c.l.b16 %v23_v11  ;;  %v244_v25 = vunpack.c.h.b16 %v23_v11  ;;  %v2595_v26 = vor.u32 %v3046_v9, %v2594_v7 }
  0x35   :  { %1332 = vmatpush.bf16.msrb.mxu1 %v2643_v40  ;;  %2752 = vmatmul.msk.bf16.vlgmr.msrb.gmra.mxu2 %vm1259_vm0, %v3510_v51  ;;  %v2452_v21 = vld [vmem:[%s4528_s1 + $0x3f0] sm:$0xf0]  ;;  %v2103_v29 = vor.u32 %v2920_v17, %v2100_v18  ;;  %v2972_v30 = vld [vmem:[%s4528_s1 + $0x2c4] sm:$0xf] }
  0x36   :  { %v2580_v23 = vld [vmem:[%s4528_s1 + $0x4f0] sm:$0xf0]  ;;  %v2455_v32 = vor.u32 %v3008_v19, %v2452_v21  ;;  %v2916_v34 = vld [vmem:[%s4528_s1 + $0x104] sm:$0xf]  ;;  %v3598_v37 = vpack.c.b16 %v243_v24, %v243_v24  ;;  %v3600_v38 = vpack.c.b16 %v244_v25, %v244_v25 }
  0x37   :  { %1369 = vmatpush.bf16.msra.mxu2 %v2167_v31  ;;  %1358 = vmatpush.bf16.msrb.mxu3 %v2007_v43  ;;  %v2308_v31 = vld [vmem:[%s4528_s1 + $0x2d0] sm:$0xf0]  ;;  %v2583_v33 = vor.u32 %v3040_v22, %v2580_v23  ;;  %v3004_v36 = vld [vmem:[%s4528_s1 + $0x3c4] sm:$0xf] }
  0x38   :  { %1320 = vmatpush.bf16.msrb.mxu0 %v2499_v52  ;;  %v2084_v35 = vld [vmem:[%s4528_s1 + $0x110] sm:$0xf0]  ;;  %v3036_v40 = vld [vmem:[%s4528_s1 + $0x4c4] sm:$0xf]  ;;  %v2311_v42 = vor.u32 %v2972_v30, %v2308_v31 }
  0x39   :  { %1333 = vmatpush.bf16.msrb.mxu1 %v2627_v53  ;;  %v2436_v39 = vld [vmem:[%s4528_s1 + $0x3d0] sm:$0xf0]  ;;  %v3072_v43 = vld [vmem:[%s4528_s1 + $0x5e4] sm:$0xf]  ;;  %v2087_v45 = vor.u32 %v2916_v34, %v2084_v35 }
  0x3a   :  { %v2564_v41 = vld [vmem:[%s4528_s1 + $0x4d0] sm:$0xf0]  ;;  %v2968_v46 = vld [vmem:[%s4528_s1 + $0x2a4] sm:$0xf]  ;;  %v2439_v48 = vor.u32 %v3004_v36, %v2436_v39 }
  0x3b   :  { %1370 = vmatpush.bf16.msra.mxu2 %v2151_v44  ;;  %1359 = vmatpush.bf16.msrb.mxu3 %v1991_v57  ;;  %v2708_v44 = vld [vmem:[%s4528_s1 + $0x5f0] sm:$0xf0]  ;;  %v2567_v49 = vor.u32 %v3036_v40, %v2564_v41  ;;  %v3000_v50 = vld [vmem:[%s4528_s1 + $0x3a4] sm:$0xf] }
  0x3c   :  { %1321 = vmatpush.bf16.msrb.mxu0 %v2483_v4  ;;  %v2292_v47 = vld [vmem:[%s4528_s1 + $0x2b0] sm:$0xf0]  ;;  %v2711_v52 = vor.u32 %v3072_v43, %v2708_v44  ;;  %v3032_v55 = vld [vmem:[%s4528_s1 + $0x4a4] sm:$0xf] }
  0x3d   :  { %1334 = vmatpush.bf16.msrb.mxu1 %v2611_v8  ;;  %v2420_v53 = vld [vmem:[%s4528_s1 + $0x3b0] sm:$0xf0]  ;;  %v2295_v57 = vor.u32 %v2968_v46, %v2292_v47  ;;  %v2964_v60 = vld [vmem:[%s4528_s1 + $0x284] sm:$0xf] }
  0x3e   :  { %v2548_v56 = vld [vmem:[%s4528_s1 + $0x4b0] sm:$0xf0]  ;;  %v2423_v1 = vor.u32 %v3000_v50, %v2420_v53  ;;  %v2996_v3 = vld [vmem:[%s4528_s1 + $0x384] sm:$0xf] }
  0x3f   :  { %1371 = vmatpush.bf16.msra.mxu2 %v2135_v58  ;;  %1360 = vmatpush.bf16.msrb.mxu3 %v1975_v12  ;;  %v3068_v58 = vld [vmem:[%s4528_s1 + $0x5c4] sm:$0xf]  ;;  %v2692_v59 = vld [vmem:[%s4528_s1 + $0x5d0] sm:$0xf0]  ;;  %v2551_v2 = vor.u32 %v3032_v55, %v2548_v56 }
  0x40   :  { %1322 = vmatpush.bf16.msrb.mxu0 %v2467_v20  ;;  %v2276_v63 = vld [vmem:[%s4528_s1 + $0x290] sm:$0xf0]  ;;  %v2695_v4 = vor.u32 %v3068_v58, %v2692_v59  ;;  %v3028_v6 = vld [vmem:[%s4528_s1 + $0x484] sm:$0xf]  ;;  %v2979_v58 = vld [vmem:[%s4528_s1 + $0x2f4] sm:$0xf0] }
  0x41   :  { %1335 = vmatpush.bf16.msrb.mxu1 %v2595_v26  ;;  %v2404_v5 = vld [vmem:[%s4528_s1 + $0x390] sm:$0xf0]  ;;  %v2279_v8 = vor.u32 %v2964_v60, %v2276_v63  ;;  %v3064_v9 = vld [vmem:[%s4528_s1 + $0x5a4] sm:$0xf] }
  0x42   :  { %v2532_v7 = vld [vmem:[%s4528_s1 + $0x490] sm:$0xf0]  ;;  %v2960_v11 = vld [vmem:[%s4528_s1 + $0x264] sm:$0xf] }
  0x43   :  { %1372 = vmatpush.bf16.msra.mxu2 %v2119_v13  ;;  %1361 = vmatpush.bf16.msrb.mxu3 %v1959_v28  ;;  %v2676_v10 = vld [vmem:[%s4528_s1 + $0x5b0] sm:$0xf0]  ;;  %v2407_v13 = vor.u32 %v2996_v3, %v2404_v5  ;;  %v2535_v14 = vor.u32 %v3028_v6, %v2532_v7  ;;  %v2992_v15 = vld [vmem:[%s4528_s1 + $0x364] sm:$0xf]  ;;  %v2074_v6 = vld [vmem:[%s4528_s1 + $0xe8] sm:$0xf] }
  0x44   :  { %1380 = vmatpush.bf16.msra.mxu0 %v2327_v27  ;;  %1336 = vmatmul.bf16.vlgmr.msrb.gmra.mxu1 %v3600_v38  ;;  %v2260_v12 = vld [vmem:[%s4528_s1 + $0x270] sm:$0xf0]  ;;  %v2679_v16 = vor.u32 %v3064_v9, %v2676_v10  ;;  %v3024_v18 = vld [vmem:[%s4528_s1 + $0x464] sm:$0xf]  ;;  %v2915_v7 = vld [vmem:[%s4528_s1 + $0xf4] sm:$0xf0] }
  0x45   :  { %1393 = vmatpush.bf16.msra.mxu1 %v2455_v32  ;;  %1323 = vmatmul.bf16.vlgmr.msrb.gmra.mxu0 %v3598_v37  ;;  %v2388_v17 = vld [vmem:[%s4528_s1 + $0x370] sm:$0xf0]  ;;  %v2263_v20 = vor.u32 %v2960_v11, %v2260_v12  ;;  %v3060_v21 = vld [vmem:[%s4528_s1 + $0x584] sm:$0xf] }
  0x46   :  { %1362 = vmatmul.bf16.vlgmr.msrb.gmra.mxu3 %v3401_v61  ;;  %v2516_v19 = vld [vmem:[%s4528_s1 + $0x470] sm:$0xf0]  ;;  %v2956_v23 = vld [vmem:[%s4528_s1 + $0x244] sm:$0xf]  ;;  %v2391_v25 = vor.u32 %v2992_v15, %v2388_v17  ;;  %v2314_v15 = vld [vmem:[%s4528_s1 + $0x2c8] sm:$0xf]  ;;  %v2075_v17 = vor.u32 %v2915_v7, %v2074_v6 }
  0x47   :  { %1373 = vmatpush.bf16.msra.mxu2 %v2103_v29  ;;  %1406 = vmatpush.bf16.msra.mxu3 %v2583_v33  ;;  %v2660_v22 = vld [vmem:[%s4528_s1 + $0x590] sm:$0xf0]  ;;  %v2519_v26 = vor.u32 %v3024_v18, %v2516_v19  ;;  %v2988_v27 = vld [vmem:[%s4528_s1 + $0x344] sm:$0xf]  ;;  %v2999_v6 = vld [vmem:[%s4528_s1 + $0x394] sm:$0xf0] }
  0x48   :  { %1381 = vmatpush.bf16.msra.mxu0 %v2311_v42  ;;  %v2244_v24 = vld [vmem:[%s4528_s1 + $0x250] sm:$0xf0]  ;;  %v2663_v28 = vor.u32 %v3060_v21, %v2660_v22  ;;  %v3020_v30 = vld [vmem:[%s4528_s1 + $0x444] sm:$0xf]  ;;  %v2911_v21 = vld [vmem:[%s4528_s1 + $0xd4] sm:$0xf0] }
  0x49   :  { %1394 = vmatpush.bf16.msra.mxu1 %v2439_v48  ;;  %v2372_v29 = vld [vmem:[%s4528_s1 + $0x350] sm:$0xf0]  ;;  %v2247_v32 = vor.u32 %v2956_v23, %v2244_v24  ;;  %v3056_v33 = vld [vmem:[%s4528_s1 + $0x564] sm:$0xf]  ;;  %v2202_v22 = vld [vmem:[%s4528_s1 + $0x1e8] sm:$0xf] }
  0x4a   :  { %v2500_v31 = vld [vmem:[%s4528_s1 + $0x450] sm:$0xf0]  ;;  %v2952_v35 = vld [vmem:[%s4528_s1 + $0x224] sm:$0xf]  ;;  %v2375_v39 = vor.u32 %v2988_v27, %v2372_v29  ;;  %v2947_v23 = vld [vmem:[%s4528_s1 + $0x1f4] sm:$0xf0] }
  0x4b   :  { %1374 = vmatpush.bf16.msra.mxu2 %v2087_v45  ;;  %1407 = vmatpush.bf16.msra.mxu3 %v2567_v49  ;;  %v2644_v34 = vld [vmem:[%s4528_s1 + $0x570] sm:$0xf0]  ;;  %v2503_v40 = vor.u32 %v3020_v30, %v2500_v31  ;;  %v2984_v41 = vld [vmem:[%s4528_s1 + $0x324] sm:$0xf]  ;;  %v2458_v24 = vld [vmem:[%s4528_s1 + $0x3e8] sm:$0xf] }
  0x4c   :  { %1382 = vmatpush.bf16.msra.mxu0 %v2295_v57  ;;  %v2228_v36 = vld [vmem:[%s4528_s1 + $0x230] sm:$0xf0]  ;;  %v2647_v42 = vor.u32 %v3056_v33, %v2644_v34  ;;  %v3016_v44 = vld [vmem:[%s4528_s1 + $0x424] sm:$0xf]  ;;  %v2330_v57 = vld [vmem:[%s4528_s1 + $0x2e8] sm:$0xf] }
  0x4d   :  { %1395 = vmatpush.bf16.msra.mxu1 %v2423_v1  ;;  %v2356_v43 = vld [vmem:[%s4528_s1 + $0x330] sm:$0xf0]  ;;  %v2231_v46 = vor.u32 %v2952_v35, %v2228_v36  ;;  %v3052_v47 = vld [vmem:[%s4528_s1 + $0x544] sm:$0xf]  ;;  %v2298_v29 = vld [vmem:[%s4528_s1 + $0x2a8] sm:$0xf] }
  0x4e   :  { %1375 = vmatmul.bf16.vlgmr.msra.gmra.mxu2 %v3405_v0  ;;  %v2484_v45 = vld [vmem:[%s4528_s1 + $0x430] sm:$0xf0]  ;;  %v2948_v49 = vld [vmem:[%s4528_s1 + $0x204] sm:$0xf]  ;;  %v2359_v53 = vor.u32 %v2984_v41, %v2356_v43  ;;  %v2971_v30 = vld [vmem:[%s4528_s1 + $0x2b4] sm:$0xf0] }
  0x4f   :  { %1419 = vmatpush.bf16.msrb.mxu2 %v2711_v52  ;;  %1408 = vmatpush.bf16.msra.mxu3 %v2551_v2  ;;  %v2628_v48 = vld [vmem:[%s4528_s1 + $0x550] sm:$0xf0]  ;;  %v2980_v52 = vld [vmem:[%s4528_s1 + $0x304] sm:$0xf]  ;;  %v2487_v55 = vor.u32 %v3016_v44, %v2484_v45  ;;  %v2042_v33 = vld [vmem:[%s4528_s1 + $0xa8] sm:$0xf] }
  0x50   :  { %1383 = vmatpush.bf16.msra.mxu0 %v2279_v8  ;;  %v2212_v50 = vld [vmem:[%s4528_s1 + $0x210] sm:$0xf0]  ;;  %v2631_v59 = vor.u32 %v3052_v47, %v2628_v48  ;;  %v3012_v60 = vld [vmem:[%s4528_s1 + $0x404] sm:$0xf]  ;;  %v2331_v8 = vor.u32 %v2979_v58, %v2330_v57  ;;  %v2907_v35 = vld [vmem:[%s4528_s1 + $0xb4] sm:$0xf0] }
  0x51   :  { %1396 = vmatpush.bf16.msra.mxu1 %v2407_v13  ;;  %v2340_v56 = vld [vmem:[%s4528_s1 + $0x310] sm:$0xf0]  ;;  %v3048_v1 = vld [vmem:[%s4528_s1 + $0x524] sm:$0xf]  ;;  %v2215_v2 = vor.u32 %v2948_v49, %v2212_v50  ;;  %v2186_v36 = vld [vmem:[%s4528_s1 + $0x1c8] sm:$0xf]  ;;  %v2043_v45 = vor.u32 %v2907_v35, %v2042_v33 }
  0x52   :  { %v2468_v63 = vld [vmem:[%s4528_s1 + $0x410] sm:$0xf0]  ;;  %v2343_v9 = vor.u32 %v2980_v52, %v2340_v56  ;;  %v3044_v11 = vld [vmem:[%s4528_s1 + $0x504] sm:$0xf]  ;;  %v3007_v41 = vld [vmem:[%s4528_s1 + $0x3d4] sm:$0xf0] }
  0x53   :  { %1420 = vmatpush.bf16.msrb.mxu2 %v2695_v4  ;;  %1409 = vmatpush.bf16.msra.mxu3 %v2535_v14  ;;  %v2612_v3 = vld [vmem:[%s4528_s1 + $0x530] sm:$0xf0]  ;;  %v3080_v4 = vld [vmem:[%s4528_s1 + $0x624] sm:$0xf]  ;;  %v2471_v10 = vor.u32 %v3012_v60, %v2468_v63  ;;  %v2282_v43 = vld [vmem:[%s4528_s1 + $0x288] sm:$0xf] }
  0x54   :  { %1384 = vmatpush.bf16.msra.mxu0 %v2263_v20  ;;  %v2740_v5 = vld [vmem:[%s4528_s1 + $0x630] sm:$0xf0]  ;;  %v2615_v12 = vor.u32 %v3048_v1, %v2612_v3  ;;  %v3076_v18 = vld [vmem:[%s4528_s1 + $0x604] sm:$0xf]  ;;  %v2058_v20 = vld [vmem:[%s4528_s1 + $0xc8] sm:$0xf] }
  0x55   :  { %1397 = vmatpush.bf16.msra.mxu1 %v2391_v25  ;;  %v2743_v13 = vor.u32 %v3080_v4, %v2740_v5  ;;  %v2596_v14 = vld [vmem:[%s4528_s1 + $0x510] sm:$0xf0]  ;;  %v3011_v25 = vld [vmem:[%s4528_s1 + $0x3f4] sm:$0xf0]  ;;  %v2059_v31 = vor.u32 %v2911_v21, %v2058_v20  ;;  %v2026_v47 = vld [vmem:[%s4528_s1 + $0x88] sm:$0xf] }
  0x56   :  { %v2724_v19 = vld [vmem:[%s4528_s1 + $0x610] sm:$0xf0]  ;;  %v2599_v27 = vor.u32 %v3044_v11, %v2596_v14  ;;  %v2459_v34 = vor.u32 %v3011_v25, %v2458_v24  ;;  %v2967_v44 = vld [vmem:[%s4528_s1 + $0x294] sm:$0xf0]  ;;  %v2170_v50 = vld [vmem:[%s4528_s1 + $0x1a8] sm:$0xf] }
  0x57   :  { %1421 = vmatpush.bf16.msrb.mxu2 %v2679_v16  ;;  %1410 = vmatpush.bf16.msra.mxu3 %v2519_v26  ;;  %v2975_v16 = vld [vmem:[%s4528_s1 + $0x2d4] sm:$0xf0]  ;;  %v2283_v56 = vor.u32 %v2967_v44, %v2282_v43  ;;  %v2266_v57 = vld [vmem:[%s4528_s1 + $0x268] sm:$0xf] }
  0x58   :  { %1385 = vmatpush.bf16.msra.mxu0 %v2247_v32  ;;  %v2315_v26 = vor.u32 %v2975_v16, %v2314_v15  ;;  %v2203_v32 = vor.u32 %v2947_v23, %v2202_v22  ;;  %v2903_v49 = vld [vmem:[%s4528_s1 + $0x94] sm:$0xf0]  ;;  %v2010_v63 = vld [vmem:[%s4528_s1 + $0x68] sm:$0xf] }
  0x59   :  { %1398 = vmatpush.bf16.msra.mxu1 %v2375_v39  ;;  %v2943_v39 = vld [vmem:[%s4528_s1 + $0x1d4] sm:$0xf0]  ;;  %v2154_v3 = vld [vmem:[%s4528_s1 + $0x188] sm:$0xf] }
  0x5a   :  { %v2939_v52 = vld [vmem:[%s4528_s1 + $0x1b4] sm:$0xf0]  ;;  %v2410_v5 = vld [vmem:[%s4528_s1 + $0x388] sm:$0xf] }
  0x5b   :  { %1422 = vmatpush.bf16.msrb.mxu2 %v2663_v28  ;;  %1411 = vmatpush.bf16.msra.mxu3 %v2503_v40  ;;  %v2727_v28 = vor.u32 %v3076_v18, %v2724_v19  ;;  %v2442_v40 = vld [vmem:[%s4528_s1 + $0x3c8] sm:$0xf]  ;;  %v2963_v58 = vld [vmem:[%s4528_s1 + $0x274] sm:$0xf0]  ;;  %v2171_v60 = vor.u32 %v2939_v52, %v2170_v50 }
  0x5c   :  { %1386 = vmatpush.bf16.msra.mxu0 %v2231_v46  ;;  %v2187_v46 = vor.u32 %v2943_v39, %v2186_v36  ;;  %v2443_v48 = vor.u32 %v3007_v41, %v2442_v40  ;;  %v2935_v4 = vld [vmem:[%s4528_s1 + $0x194] sm:$0xf0]  ;;  %v2267_v7 = vor.u32 %v2963_v58, %v2266_v57  ;;  %v2138_v15 = vld [vmem:[%s4528_s1 + $0x168] sm:$0xf] }
  0x5d   :  { %1399 = vmatpush.bf16.msra.mxu1 %v2359_v53  ;;  %v2426_v53 = vld [vmem:[%s4528_s1 + $0x3a8] sm:$0xf]  ;;  %v2155_v11 = vor.u32 %v2935_v4, %v2154_v3  ;;  %v2895_v14 = vld [vmem:[%s4528_s1 + $0x54] sm:$0xf0]  ;;  %v2204_v3 = vld [vmem:[%s4528_s1 + $0x1f8] sm:$0xf0] }
  0x5e   :  { %v2931_v16 = vld [vmem:[%s4528_s1 + $0x174] sm:$0xf0]  ;;  %v2234_v20 = vld [vmem:[%s4528_s1 + $0x228] sm:$0xf] }
  0x5f   :  { %1423 = vmatpush.bf16.msrb.mxu2 %v2647_v42  ;;  %1412 = vmatpush.bf16.msra.mxu3 %v2487_v55  ;;  %v2299_v42 = vor.u32 %v2971_v30, %v2298_v29  ;;  %v3003_v55 = vld [vmem:[%s4528_s1 + $0x3b4] sm:$0xf0]  ;;  %v2139_v23 = vor.u32 %v2931_v16, %v2138_v15  ;;  %v1978_v24 = vld [vmem:[%s4528_s1 + $0x28] sm:$0xf]  ;;  %v2941_v15 = vld [vmem:[%s4528_s1 + $0x1cc] sm:$0xf] }
  0x60   :  { %1387 = vmatpush.bf16.msra.mxu0 %v2215_v2  ;;  %v2427_v1 = vor.u32 %v3003_v55, %v2426_v53  ;;  %v2899_v2 = vld [vmem:[%s4528_s1 + $0x74] sm:$0xf0]  ;;  %v2378_v29 = vld [vmem:[%s4528_s1 + $0x348] sm:$0xf]  ;;  %v2188_v16 = vld [vmem:[%s4528_s1 + $0x1d8] sm:$0xf0] }
  0x61   :  { %1400 = vmatpush.bf16.msra.mxu1 %v2343_v9  ;;  %v2959_v9 = vld [vmem:[%s4528_s1 + $0x254] sm:$0xf0]  ;;  %v2218_v33 = vld [vmem:[%s4528_s1 + $0x208] sm:$0xf] }
  0x62   :  { %v2995_v18 = vld [vmem:[%s4528_s1 + $0x374] sm:$0xf0]  ;;  %v2746_v40 = vld [vmem:[%s4528_s1 + $0x628] sm:$0xf] }
  0x63   :  { %1424 = vmatpush.bf16.msrb.mxu2 %v2631_v59  ;;  %1413 = vmatpush.bf16.msra.mxu3 %v2471_v10  ;;  %v2027_v59 = vor.u32 %v2903_v49, %v2026_v47  ;;  %v2011_v10 = vor.u32 %v2899_v2, %v2010_v63  ;;  %v2955_v21 = vld [vmem:[%s4528_s1 + $0x234] sm:$0xf0]  ;;  %v2106_v43 = vld [vmem:[%s4528_s1 + $0x128] sm:$0xf]  ;;  %v2945_v2 = vld [vmem:[%s4528_s1 + $0x1ec] sm:$0xf] }
  0x64   :  { %1471 = vmatpush.bf16.msrb.mxu0 %v2331_v8  ;;  %1401 = vmatmul.bf16.vlgmr.msra.gmra.mxu1 %v3403_v62  ;;  %v2250_v8 = vld [vmem:[%s4528_s1 + $0x248] sm:$0xf]  ;;  %v2991_v30 = vld [vmem:[%s4528_s1 + $0x354] sm:$0xf0] }
  0x65   :  { %1445 = vmatpush.bf16.msrb.mxu1 %v2075_v17  ;;  %1388 = vmatmul.bf16.vlgmr.msra.gmra.mxu0 %v3381_v54  ;;  %v2394_v17 = vld [vmem:[%s4528_s1 + $0x368] sm:$0xf]  ;;  %v2251_v19 = vor.u32 %v2959_v9, %v2250_v8  ;;  %v2887_v39 = vld [vmem:[%s4528_s1 + $0x14] sm:$0xf0]  ;;  %v2913_v8 = vld [vmem:[%s4528_s1 + $0xec] sm:$0xf] }
  0x66   :  { %1414 = vmatmul.bf16.vlgmr.msra.gmra.mxu3 %v3598_v37  ;;  %v2395_v25 = vor.u32 %v2995_v18, %v2394_v17  ;;  %v3083_v41 = vld [vmem:[%s4528_s1 + $0x634] sm:$0xf0]  ;;  %v2586_v47 = vld [vmem:[%s4528_s1 + $0x4e8] sm:$0xf]  ;;  %v2076_v9 = vld [vmem:[%s4528_s1 + $0xf8] sm:$0xf0] }
  0x67   :  { %1425 = vmatpush.bf16.msrb.mxu2 %v2615_v12  ;;  %1438 = vmatpush.bf16.msrb.mxu3 %v2743_v13  ;;  %v1994_v12 = vld [vmem:[%s4528_s1 + $0x48] sm:$0xf]  ;;  %v2411_v13 = vor.u32 %v2999_v6, %v2410_v5  ;;  %v2923_v44 = vld [vmem:[%s4528_s1 + $0x134] sm:$0xf0]  ;;  %v2747_v50 = vor.u32 %v3083_v41, %v2746_v40  ;;  %v2079_v18 = vor.u32 %v2913_v8, %v2076_v9  ;;  %v2933_v41 = vld [vmem:[%s4528_s1 + $0x18c] sm:$0xf] }
  0x68   :  { %1472 = vmatpush.bf16.msrb.mxu0 %v2315_v26  ;;  %v1995_v22 = vor.u32 %v2895_v14, %v1994_v12  ;;  %v2891_v26 = vld [vmem:[%s4528_s1 + $0x34] sm:$0xf0]  ;;  %v2090_v52 = vld [vmem:[%s4528_s1 + $0x108] sm:$0xf]  ;;  %v2207_v12 = vor.u32 %v2945_v2, %v2204_v3  ;;  %v2897_v2 = vld [vmem:[%s4528_s1 + $0x6c] sm:$0xf] }
  0x69   :  { %1446 = vmatpush.bf16.msrb.mxu1 %v2059_v31  ;;  %v2235_v31 = vor.u32 %v2955_v21, %v2234_v20  ;;  %v1979_v35 = vor.u32 %v2891_v26, %v1978_v24  ;;  %v2919_v53 = vld [vmem:[%s4528_s1 + $0x114] sm:$0xf0]  ;;  %v2346_v57 = vld [vmem:[%s4528_s1 + $0x308] sm:$0xf]  ;;  %v2060_v24 = vld [vmem:[%s4528_s1 + $0xd8] sm:$0xf0] }
  0x6a   :  { %v2730_v58 = vld [vmem:[%s4528_s1 + $0x608] sm:$0xf]  ;;  %v3039_v5 = vld [vmem:[%s4528_s1 + $0x4d4] sm:$0xf0]  ;;  %v2012_v3 = vld [vmem:[%s4528_s1 + $0x78] sm:$0xf0] }
  0x6b   :  { %1426 = vmatpush.bf16.msrb.mxu2 %v2599_v27  ;;  %1439 = vmatpush.bf16.msrb.mxu3 %v2727_v28  ;;  %v2122_v27 = vld [vmem:[%s4528_s1 + $0x148] sm:$0xf]  ;;  %v2927_v28 = vld [vmem:[%s4528_s1 + $0x154] sm:$0xf0]  ;;  %v2015_v9 = vor.u32 %v2897_v2, %v2012_v3  ;;  %v2300_v2 = vld [vmem:[%s4528_s1 + $0x2b8] sm:$0xf0] }
  0x6c   :  { %1473 = vmatpush.bf16.msrb.mxu0 %v2299_v42  ;;  %v2123_v36 = vor.u32 %v2927_v28, %v2122_v27  ;;  %v2379_v42 = vor.u32 %v2991_v30, %v2378_v29  ;;  %v2570_v4 = vld [vmem:[%s4528_s1 + $0x4c8] sm:$0xf]  ;;  %v3035_v20 = vld [vmem:[%s4528_s1 + $0x4b4] sm:$0xf0]  ;;  %v2937_v27 = vld [vmem:[%s4528_s1 + $0x1ac] sm:$0xf] }
  0x6d   :  { %1447 = vmatpush.bf16.msrb.mxu1 %v2043_v45  ;;  %v2362_v45 = vld [vmem:[%s4528_s1 + $0x328] sm:$0xf]  ;;  %v2571_v14 = vor.u32 %v3039_v5, %v2570_v4  ;;  %v2172_v28 = vld [vmem:[%s4528_s1 + $0x1b8] sm:$0xf0]  ;;  %v3005_v3 = vld [vmem:[%s4528_s1 + $0x3cc] sm:$0xf] }
  0x6e   :  { %1427 = vmatmul.bf16.vlgmr.msrb.gmra.mxu2 %v3600_v38  ;;  %v2714_v6 = vld [vmem:[%s4528_s1 + $0x5e8] sm:$0xf] }
  0x6f   :  { %1458 = vmatpush.bf16.msra.mxu3 %v2203_v32  ;;  %1484 = vmatpush.bf16.msra.mxu2 %v2459_v34  ;;  %v1962_v32 = vld [vmem:[%s4528_s1 + $0x8] sm:$0xf]  ;;  %v2951_v34 = vld [vmem:[%s4528_s1 + $0x214] sm:$0xf0] }
  0x70   :  { %1474 = vmatpush.bf16.msrb.mxu0 %v2283_v56  ;;  %v2219_v49 = vor.u32 %v2951_v34, %v2218_v33  ;;  %v1963_v55 = vor.u32 %v2887_v39, %v1962_v32  ;;  %v2107_v56 = vor.u32 %v2923_v44, %v2106_v43  ;;  %v2698_v21 = vld [vmem:[%s4528_s1 + $0x5c8] sm:$0xf]  ;;  %v3031_v32 = vld [vmem:[%s4528_s1 + $0x494] sm:$0xf0]  ;;  %v2175_v39 = vor.u32 %v2937_v27, %v2172_v28  ;;  %v1980_v27 = vld [vmem:[%s4528_s1 + $0x38] sm:$0xf0] }
  0x71   :  { %1448 = vmatpush.bf16.msrb.mxu1 %v2027_v59  ;;  %v3079_v59 = vld [vmem:[%s4528_s1 + $0x614] sm:$0xf0]  ;;  %v2682_v33 = vld [vmem:[%s4528_s1 + $0x5a8] sm:$0xf]  ;;  %v2977_v28 = vld [vmem:[%s4528_s1 + $0x2ec] sm:$0xf] }
  0x72   :  { %v3067_v34 = vld [vmem:[%s4528_s1 + $0x5b4] sm:$0xf0] }
  0x73   :  { %1459 = vmatpush.bf16.msra.mxu3 %v2187_v46  ;;  %1485 = vmatpush.bf16.msra.mxu2 %v2443_v48  ;;  %v2987_v46 = vld [vmem:[%s4528_s1 + $0x334] sm:$0xf0]  ;;  %v2683_v43 = vor.u32 %v3067_v34, %v2682_v33  ;;  %v2917_v33 = vld [vmem:[%s4528_s1 + $0x10c] sm:$0xf]  ;;  %v2092_v34 = vld [vmem:[%s4528_s1 + $0x118] sm:$0xf0] }
  0x74   :  { %1475 = vmatpush.bf16.msrb.mxu0 %v2267_v7  ;;  %v3043_v48 = vld [vmem:[%s4528_s1 + $0x4f4] sm:$0xf0] }
  0x75   :  { %1449 = vmatpush.bf16.msrb.mxu1 %v2011_v10  ;;  %v2587_v63 = vor.u32 %v3043_v48, %v2586_v47  ;;  %v3075_v7 = vld [vmem:[%s4528_s1 + $0x5f4] sm:$0xf0]  ;;  %v2731_v10 = vor.u32 %v3079_v59, %v2730_v58  ;;  %v2666_v47 = vld [vmem:[%s4528_s1 + $0x588] sm:$0xf] }
  0x76   :  { %2753 = vmatmul.msk.bf16.vlgmr.msrb.gmra.mxu3 %vm1259_vm0, %v3510_v51  ;;  %v2715_v17 = vor.u32 %v3075_v7, %v2714_v6  ;;  %v3063_v48 = vld [vmem:[%s4528_s1 + $0x594] sm:$0xf0]  ;;  %v2506_v59 = vld [vmem:[%s4528_s1 + $0x448] sm:$0xf]  ;;  %v2925_v6 = vld [vmem:[%s4528_s1 + $0x14c] sm:$0xf] }
  0x77   :  { %1460 = vmatpush.bf16.msra.mxu3 %v2171_v60  ;;  %1486 = vmatpush.bf16.msra.mxu2 %v2427_v1  ;;  %v2363_v60 = vor.u32 %v2987_v46, %v2362_v45  ;;  %v2983_v1 = vld [vmem:[%s4528_s1 + $0x314] sm:$0xf0]  ;;  %v2522_v45 = vld [vmem:[%s4528_s1 + $0x468] sm:$0xf]  ;;  %v2124_v7 = vld [vmem:[%s4528_s1 + $0x158] sm:$0xf0] }
  0x78   :  { %1476 = vmatpush.bf16.msrb.mxu0 %v2251_v19  ;;  %v2554_v19 = vld [vmem:[%s4528_s1 + $0x4a8] sm:$0xf]  ;;  %v3027_v46 = vld [vmem:[%s4528_s1 + $0x474] sm:$0xf0] }
  0x79   :  { %1450 = vmatpush.bf16.msrb.mxu1 %v1995_v22  ;;  %v3071_v22 = vld [vmem:[%s4528_s1 + $0x5d4] sm:$0xf0]  ;;  %v2555_v26 = vor.u32 %v3035_v20, %v2554_v19  ;;  %v2108_v19 = vld [vmem:[%s4528_s1 + $0x138] sm:$0xf0] }
  0x7a   :  { %v2699_v29 = vor.u32 %v3071_v22, %v2698_v21  ;;  %v2474_v22 = vld [vmem:[%s4528_s1 + $0x408] sm:$0xf] }
  0x7b   :  { %1461 = vmatpush.bf16.msra.mxu3 %v2155_v11  ;;  %1487 = vmatpush.bf16.msra.mxu2 %v2411_v13  ;;  %v2091_v11 = vor.u32 %v2919_v53, %v2090_v52  ;;  %v2347_v13 = vor.u32 %v2983_v1, %v2346_v57  ;;  %v2523_v53 = vor.u32 %v3027_v46, %v2522_v45  ;;  %v3059_v1 = vld [vmem:[%s4528_s1 + $0x574] sm:$0xf0]  ;;  %v2973_v45 = vld [vmem:[%s4528_s1 + $0x2cc] sm:$0xf]  ;;  %v2316_v46 = vld [vmem:[%s4528_s1 + $0x2d8] sm:$0xf0] }
  0x7c   :  { %1477 = vmatpush.bf16.msrb.mxu0 %v2235_v31  ;;  %v2538_v31 = vld [vmem:[%s4528_s1 + $0x488] sm:$0xf]  ;;  %v2667_v57 = vor.u32 %v3063_v48, %v2666_v47  ;;  %v3009_v47 = vld [vmem:[%s4528_s1 + $0x3ec] sm:$0xf]  ;;  %v2460_v48 = vld [vmem:[%s4528_s1 + $0x3f8] sm:$0xf0] }
  0x7d   :  { %1451 = vmatpush.bf16.msrb.mxu1 %v1979_v35  ;;  %v2905_v35 = vld [vmem:[%s4528_s1 + $0xac] sm:$0xf]  ;;  %v2539_v40 = vor.u32 %v3031_v32, %v2538_v31  ;;  %v2602_v32 = vld [vmem:[%s4528_s1 + $0x508] sm:$0xf] }
  0x7f   :  { %1462 = vmatpush.bf16.msra.mxu3 %v2139_v23  ;;  %1488 = vmatpush.bf16.msra.mxu2 %v2395_v25  ;;  %v2909_v23 = vld [vmem:[%s4528_s1 + $0xcc] sm:$0xf]  ;;  %v2191_v25 = vor.u32 %v2941_v15, %v2188_v16  ;;  %v1996_v15 = vld [vmem:[%s4528_s1 + $0x58] sm:$0xf0]  ;;  %v2127_v16 = vor.u32 %v2925_v6, %v2124_v7 }
  0x80   :  { %1478 = vmatpush.bf16.msrb.mxu0 %v2219_v49  ;;  %v2063_v30 = vor.u32 %v2909_v23, %v2060_v24  ;;  %v2901_v49 = vld [vmem:[%s4528_s1 + $0x8c] sm:$0xf]  ;;  %v3015_v23 = vld [vmem:[%s4528_s1 + $0x414] sm:$0xf0]  ;;  %v2618_v24 = vld [vmem:[%s4528_s1 + $0x528] sm:$0xf] }
  0x81   :  { %1452 = vmatpush.bf16.msrb.mxu1 %v1963_v55  ;;  %v2929_v55 = vld [vmem:[%s4528_s1 + $0x16c] sm:$0xf]  ;;  %v2475_v31 = vor.u32 %v3015_v23, %v2474_v22  ;;  %v2572_v6 = vld [vmem:[%s4528_s1 + $0x4d8] sm:$0xf0] }
  0x82   :  { %v2961_v23 = vld [vmem:[%s4528_s1 + $0x26c] sm:$0xf] }
  0x83   :  { %1463 = vmatpush.bf16.msra.mxu3 %v2123_v36  ;;  %1489 = vmatpush.bf16.msra.mxu2 %v2379_v42  ;;  %v2044_v36 = vld [vmem:[%s4528_s1 + $0xb8] sm:$0xf0] }
  0x84   :  { %1529 = vmatpush.bf16.msra.mxu0 %v2747_v50  ;;  %1453 = vmatmul.bf16.vlgmr.msrb.gmra.mxu1 %v3401_v61  ;;  %v2156_v42 = vld [vmem:[%s4528_s1 + $0x198] sm:$0xf0]  ;;  %v2047_v44 = vor.u32 %v2905_v35, %v2044_v36 }
  0x85   :  { %1497 = vmatpush.bf16.msra.mxu1 %v2587_v63  ;;  %1479 = vmatmul.bf16.vlgmr.msrb.gmra.mxu0 %v3381_v54  ;;  %v2028_v50 = vld [vmem:[%s4528_s1 + $0x98] sm:$0xf0]  ;;  %v2159_v52 = vor.u32 %v2933_v41, %v2156_v42  ;;  %v2650_v63 = vld [vmem:[%s4528_s1 + $0x568] sm:$0xf] }
  0x86   :  { %v2031_v58 = vor.u32 %v2901_v49, %v2028_v50  ;;  %v2651_v8 = vor.u32 %v3059_v1, %v2650_v63  ;;  %v2716_v41 = vld [vmem:[%s4528_s1 + $0x5f8] sm:$0xf0]  ;;  %v2095_v49 = vor.u32 %v2917_v33, %v2092_v34  ;;  %v3041_v50 = vld [vmem:[%s4528_s1 + $0x4ec] sm:$0xf] }
  0x87   :  { %1464 = vmatpush.bf16.msra.mxu3 %v2107_v56  ;;  %1490 = vmatpush.bf16.msra.mxu2 %v2363_v60  ;;  %v2140_v56 = vld [vmem:[%s4528_s1 + $0x178] sm:$0xf0]  ;;  %v3023_v60 = vld [vmem:[%s4528_s1 + $0x454] sm:$0xf0]  ;;  %v2969_v63 = vld [vmem:[%s4528_s1 + $0x2ac] sm:$0xf] }
  0x88   :  { %1530 = vmatpush.bf16.msra.mxu0 %v2731_v10  ;;  %v2143_v4 = vor.u32 %v2929_v55, %v2140_v56  ;;  %v2507_v5 = vor.u32 %v3023_v60, %v2506_v59  ;;  %v2490_v10 = vld [vmem:[%s4528_s1 + $0x428] sm:$0xf]  ;;  %v2319_v59 = vor.u32 %v2973_v45, %v2316_v46  ;;  %v2463_v60 = vor.u32 %v3009_v47, %v2460_v48  ;;  %v2652_v33 = vld [vmem:[%s4528_s1 + $0x578] sm:$0xf0]  ;;  %v3053_v48 = vld [vmem:[%s4528_s1 + $0x54c] sm:$0xf] }
  0x89   :  { %1498 = vmatpush.bf16.msra.mxu1 %v2571_v14  ;;  %v2893_v14 = vld [vmem:[%s4528_s1 + $0x4c] sm:$0xf]  ;;  %v2524_v45 = vld [vmem:[%s4528_s1 + $0x478] sm:$0xf0] }
  0x8a   :  { %v1999_v21 = vor.u32 %v2893_v14, %v1996_v15  ;;  %v2284_v14 = vld [vmem:[%s4528_s1 + $0x298] sm:$0xf0]  ;;  %v3001_v15 = vld [vmem:[%s4528_s1 + $0x3ac] sm:$0xf] }
  0x8b   :  { %1465 = vmatpush.bf16.msra.mxu3 %v2091_v11  ;;  %1491 = vmatpush.bf16.msra.mxu2 %v2347_v13  ;;  %v3019_v11 = vld [vmem:[%s4528_s1 + $0x434] sm:$0xf0] }
  0x8c   :  { %1549 = vmatpush.bf16.msrb.mxu0 %v2207_v12  ;;  %v2634_v12 = vld [vmem:[%s4528_s1 + $0x548] sm:$0xf]  ;;  %v3055_v13 = vld [vmem:[%s4528_s1 + $0x554] sm:$0xf0] }
  0x8d   :  { %1499 = vmatpush.bf16.msra.mxu1 %v2555_v26  ;;  %v2635_v20 = vor.u32 %v3055_v13, %v2634_v12  ;;  %v2889_v26 = vld [vmem:[%s4528_s1 + $0x2c] sm:$0xf] }
  0x8e   :  { %1466 = vmatmul.bf16.vlgmr.msra.gmra.mxu3 %v3405_v0  ;;  %1492 = vmatmul.bf16.vlgmr.msra.gmra.mxu2 %v3403_v62  ;;  %v1983_v36 = vor.u32 %v2889_v26, %v1980_v27  ;;  %v2965_v12 = vld [vmem:[%s4528_s1 + $0x28c] sm:$0xf]  ;;  %v2412_v27 = vld [vmem:[%s4528_s1 + $0x398] sm:$0xf0] }
  0x8f   :  { %1510 = vmatpush.bf16.msrb.mxu3 %v2715_v17  ;;  %1536 = vmatpush.bf16.msrb.mxu2 %v2079_v18  ;;  %v2491_v17 = vor.u32 %v3019_v11, %v2490_v10  ;;  %v2921_v18 = vld [vmem:[%s4528_s1 + $0x12c] sm:$0xf]  ;;  %v2303_v10 = vor.u32 %v2969_v63, %v2300_v2 }
  0x90   :  { %1550 = vmatpush.bf16.msrb.mxu0 %v2191_v25  ;;  %v3051_v25 = vld [vmem:[%s4528_s1 + $0x534] sm:$0xf0]  ;;  %v2997_v26 = vld [vmem:[%s4528_s1 + $0x38c] sm:$0xf] }
  0x91   :  { %1500 = vmatpush.bf16.msra.mxu1 %v2539_v40  ;;  %v2619_v35 = vor.u32 %v3051_v25, %v2618_v24  ;;  %v3073_v40 = vld [vmem:[%s4528_s1 + $0x5ec] sm:$0xf]  ;;  %v2268_v25 = vld [vmem:[%s4528_s1 + $0x278] sm:$0xf0] }
  0x92   :  { %v2271_v34 = vor.u32 %v2961_v23, %v2268_v25  ;;  %v3021_v63 = vld [vmem:[%s4528_s1 + $0x44c] sm:$0xf] }
  0x93   :  { %1511 = vmatpush.bf16.msrb.mxu3 %v2699_v29  ;;  %1537 = vmatpush.bf16.msrb.mxu2 %v2063_v30  ;;  %v2332_v29 = vld [vmem:[%s4528_s1 + $0x2f8] sm:$0xf0]  ;;  %v2111_v30 = vor.u32 %v2921_v18, %v2108_v19  ;;  %v2981_v25 = vld [vmem:[%s4528_s1 + $0x30c] sm:$0xf] }
  0x94   :  { %1551 = vmatpush.bf16.msrb.mxu0 %v2175_v39  ;;  %v3047_v39 = vld [vmem:[%s4528_s1 + $0x514] sm:$0xf0]  ;;  %v2335_v42 = vor.u32 %v2977_v28, %v2332_v29  ;;  %v2556_v18 = vld [vmem:[%s4528_s1 + $0x4b8] sm:$0xf0]  ;;  %v3029_v29 = vld [vmem:[%s4528_s1 + $0x48c] sm:$0xf] }
  0x95   :  { %1501 = vmatpush.bf16.msra.mxu1 %v2523_v53  ;;  %2754 = vmatmul.msk.bf16.vlgmr.msra.gmra.mxu0 %vm1259_vm0, %v3510_v51  ;;  %v2719_v53 = vor.u32 %v3073_v40, %v2716_v41  ;;  %v2603_v55 = vor.u32 %v3047_v39, %v2602_v32  ;;  %v3057_v32 = vld [vmem:[%s4528_s1 + $0x56c] sm:$0xf]  ;;  %v2252_v41 = vld [vmem:[%s4528_s1 + $0x258] sm:$0xf0] }
  0x96   :  { %v2655_v46 = vor.u32 %v3057_v32, %v2652_v33  ;;  %v2732_v32 = vld [vmem:[%s4528_s1 + $0x618] sm:$0xf0] }
  0x97   :  { %1512 = vmatpush.bf16.msrb.mxu3 %v2683_v43  ;;  %1538 = vmatpush.bf16.msrb.mxu2 %v2047_v44  ;;  %v2885_v43 = vld [vmem:[%s4528_s1 + $0xc] sm:$0xf]  ;;  %v1964_v44 = vld [vmem:[%s4528_s1 + $0x18] sm:$0xf0] }
  0x98   :  { %1552 = vmatpush.bf16.msrb.mxu0 %v2159_v52  ;;  %v2588_v52 = vld [vmem:[%s4528_s1 + $0x4f8] sm:$0xf0]  ;;  %v1967_v56 = vor.u32 %v2885_v43, %v1964_v44  ;;  %v3025_v44 = vld [vmem:[%s4528_s1 + $0x46c] sm:$0xf] }
  0x99   :  { %1502 = vmatpush.bf16.msra.mxu1 %v2507_v5  ;;  %v2591_v1 = vor.u32 %v3041_v50, %v2588_v52  ;;  %v3037_v5 = vld [vmem:[%s4528_s1 + $0x4cc] sm:$0xf]  ;;  %v2396_v43 = vld [vmem:[%s4528_s1 + $0x378] sm:$0xf0] }
  0x9a   :  { %v2575_v13 = vor.u32 %v3037_v5, %v2572_v6 }
  0x9b   :  { %1513 = vmatpush.bf16.msrb.mxu3 %v2667_v57  ;;  %1539 = vmatpush.bf16.msrb.mxu2 %v2031_v58  ;;  %v3069_v57 = vld [vmem:[%s4528_s1 + $0x5cc] sm:$0xf]  ;;  %v2700_v58 = vld [vmem:[%s4528_s1 + $0x5d8] sm:$0xf0] }
  0x9c   :  { %1553 = vmatpush.bf16.msrb.mxu0 %v2143_v4  ;;  %v2444_v4 = vld [vmem:[%s4528_s1 + $0x3d8] sm:$0xf0]  ;;  %v2703_v7 = vor.u32 %v3069_v57, %v2700_v58  ;;  %v2989_v58 = vld [vmem:[%s4528_s1 + $0x34c] sm:$0xf] }
  0x9d   :  { %1503 = vmatpush.bf16.msra.mxu1 %v2491_v17  ;;  %v2447_v11 = vor.u32 %v3005_v3, %v2444_v4  ;;  %v3033_v17 = vld [vmem:[%s4528_s1 + $0x4ac] sm:$0xf]  ;;  %v2236_v57 = vld [vmem:[%s4528_s1 + $0x238] sm:$0xf0] }
  0x9e   :  { %v3049_v3 = vld [vmem:[%s4528_s1 + $0x52c] sm:$0xf]  ;;  %v2620_v4 = vld [vmem:[%s4528_s1 + $0x538] sm:$0xf0] }
  0x9f   :  { %1514 = vmatpush.bf16.msrb.mxu3 %v2651_v8  ;;  %1540 = vmatpush.bf16.msrb.mxu2 %v2015_v9  ;;  %v3065_v8 = vld [vmem:[%s4528_s1 + $0x5ac] sm:$0xf]  ;;  %v2684_v9 = vld [vmem:[%s4528_s1 + $0x5b8] sm:$0xf0] }
  0xa0   :  { %1554 = vmatpush.bf16.msrb.mxu0 %v2127_v16  ;;  %v2428_v16 = vld [vmem:[%s4528_s1 + $0x3b8] sm:$0xf0]  ;;  %v2687_v19 = vor.u32 %v3065_v8, %v2684_v9 }
  0xa1   :  { %1504 = vmatpush.bf16.msra.mxu1 %v2475_v31  ;;  %v2431_v22 = vor.u32 %v3001_v15, %v2428_v16  ;;  %v2220_v8 = vld [vmem:[%s4528_s1 + $0x218] sm:$0xf0]  ;;  %v2623_v15 = vor.u32 %v3049_v3, %v2620_v4  ;;  %v3081_v16 = vld [vmem:[%s4528_s1 + $0x62c] sm:$0xf]  ;;  %v3084_v3 = vld [vmem:[%s4531_s3] sm:$0xff] }
  0xa2   :  { %v3093_v4 = vld [vmem:[%s4531_s3 + $0x48] sm:$0xff] }
  0xa3   :  { %1515 = vmatpush.bf16.msrb.mxu3 %v2635_v20  ;;  %1541 = vmatpush.bf16.msrb.mxu2 %v1999_v21  ;;  %v3061_v20 = vld [vmem:[%s4528_s1 + $0x58c] sm:$0xf]  ;;  %v2287_v21 = vor.u32 %v2965_v12, %v2284_v14  ;;  %v2364_v12 = vld [vmem:[%s4528_s1 + $0x338] sm:$0xf0] }
  0xa4   :  { %1555 = vmatpush.bf16.msrb.mxu0 %v2111_v30  ;;  %1505 = vmatmul.bf16.vlgmr.msra.gmra.mxu1 %v3598_v37  ;;  %v2540_v30 = vld [vmem:[%s4528_s1 + $0x498] sm:$0xf0] }
  0xa5   :  { %1562 = vmatpush.bf16.msrb.mxu1 %v2335_v42  ;;  %v2543_v40 = vor.u32 %v3029_v29, %v2540_v30  ;;  %v2993_v42 = vld [vmem:[%s4528_s1 + $0x36c] sm:$0xf]  ;;  %v2492_v14 = vld [vmem:[%s4528_s1 + $0x438] sm:$0xf0] }
  0xa6   :  { %v2399_v52 = vor.u32 %v2993_v42, %v2396_v43  ;;  %v2476_v29 = vld [vmem:[%s4528_s1 + $0x418] sm:$0xf0] }
  0xa7   :  { %1516 = vmatpush.bf16.msrb.mxu3 %v2619_v35  ;;  %1542 = vmatpush.bf16.msrb.mxu2 %v1983_v36  ;;  %v4282_v24 = vpop.f32.mrf.mxu0  ;;  %v4293_v28 = vpop.f32.mrf.mxu1  ;;  %v2415_v35 = vor.u32 %v2997_v26, %v2412_v27  ;;  %v2957_v36 = vld [vmem:[%s4528_s1 + $0x24c] sm:$0xf]  ;;  %v2348_v26 = vld [vmem:[%s4528_s1 + $0x318] sm:$0xf0] }
  0xa8   :  { %1556 = vmatpush.bf16.msrb.mxu0 %v2095_v49  ;;  %v4310_v39 = vpop.f32.mrf.mxu2  ;;  %v2636_v49 = vld [vmem:[%s4528_s1 + $0x558] sm:$0xf0]  ;;  %v2255_v50 = vor.u32 %v2957_v36, %v2252_v41  ;;  %v3013_v27 = vld [vmem:[%s4528_s1 + $0x40c] sm:$0xf] }
  0xa9   :  { %1563 = vmatpush.bf16.msrb.mxu1 %v2319_v59  ;;  %v4327_v47 = vpop.f32.mrf.mxu3  ;;  %v2380_v59 = vld [vmem:[%s4528_s1 + $0x358] sm:$0xf0]  ;;  %v2639_v2 = vor.u32 %v3053_v48, %v2636_v49  ;;  %v3098_v48 = vld [vmem:[%s4531_s3 + $0x70] sm:$0xff] }
  0xaa   :  { %v2383_v6 = vor.u32 %v2989_v58, %v2380_v59  ;;  %v3091_v36 = vld [vmem:[%s4531_s3 + $0x38] sm:$0xff] }
  0xab   :  { %1517 = vmatpush.bf16.msrb.mxu3 %v2603_v55  ;;  %1543 = vmatpush.bf16.msrb.mxu2 %v1967_v56  ;;  %v2527_v56 = vor.u32 %v3025_v44, %v2524_v45  ;;  %v3099_v43 = vld [vmem:[%s4531_s3 + $0x78] sm:$0xff]  ;;  %v3090_v44 = vld [vmem:[%s4531_s3 + $0x30] sm:$0xff] }
  0xac   :  { %1601 = vmatpush.bf16.msra.mxu0 %v2719_v53  ;;  %v2953_v53 = vld [vmem:[%s4528_s1 + $0x22c] sm:$0xf]  ;;  %v3095_v58 = vld [vmem:[%s4531_s3 + $0x58] sm:$0xff] }
  0xad   :  { %1557 = vmatmul.bf16.vlgmr.msrb.gmra.mxu0 %v3405_v0  ;;  %v2668_v0 = vld [vmem:[%s4528_s1 + $0x598] sm:$0xf0]  ;;  %1564 = vmatpush.bf16.msrb.mxu1 %v2303_v10  ;;  %v2239_v5 = vor.u32 %v2953_v53, %v2236_v57 }
  0xae   :  { %1518 = vmatmul.bf16.vlgmr.msrb.gmra.mxu3 %v3600_v38  ;;  %1544 = vmatmul.bf16.vlgmr.msrb.gmra.mxu2 %v3401_v61  ;;  %v2559_v61 = vor.u32 %v3033_v17, %v2556_v18  ;;  %v2671_v31 = vor.u32 %v3061_v20, %v2668_v0  ;;  %v2748_v17 = vld [vmem:[%s4528_s1 + $0x638] sm:$0xf0] }
  0xaf   :  { %1575 = vmatpush.bf16.msra.mxu3 %v2463_v60  ;;  %1588 = vmatpush.bf16.msra.mxu2 %v2591_v1  ;;  %v1274_v55 = vpop.f32.mrf.mxu0  ;;  %v1287_v60 = vpop.f32.mrf.mxu1  ;;  %v2508_v1 = vld [vmem:[%s4528_s1 + $0x458] sm:$0xf0] }
  0xb0   :  { %1602 = vmatpush.bf16.msra.mxu0 %v2703_v7  ;;  %v2949_v7 = vld [vmem:[%s4528_s1 + $0x20c] sm:$0xf]  ;;  %v1300_v9 = vpop.f32.mrf.mxu2  ;;  %v2511_v10 = vor.u32 %v3021_v63, %v2508_v1  ;;  %v2604_v20 = vld [vmem:[%s4528_s1 + $0x518] sm:$0xf0]  ;;  %v3094_v63 = vld [vmem:[%s4531_s3 + $0x50] sm:$0xff] }
  0xb1   :  { %1565 = vmatpush.bf16.msrb.mxu1 %v2287_v21  ;;  %v1313_v18 = vpop.f32.mrf.mxu3  ;;  %v2223_v0 = vor.u32 %v2949_v7, %v2220_v8 }
  0xb2   :  { %v3107_v18 = vld [vmem:[%s4531_s3 + $0xb8] sm:$0xff] }
  0xb3   :  { %1576 = vmatpush.bf16.msra.mxu3 %v2447_v11  ;;  %1589 = vmatpush.bf16.msra.mxu2 %v2575_v13  ;;  %v2985_v11 = vld [vmem:[%s4528_s1 + $0x32c] sm:$0xf] }
  0xb4   :  { %1603 = vmatpush.bf16.msra.mxu0 %v2687_v19  ;;  %v3017_v13 = vld [vmem:[%s4528_s1 + $0x42c] sm:$0xf]  ;;  %v2367_v21 = vor.u32 %v2985_v11, %v2364_v12 }
  0xb5   :  { %1566 = vmatpush.bf16.msrb.mxu1 %v2271_v34  ;;  %v3045_v19 = vld [vmem:[%s4528_s1 + $0x50c] sm:$0xf]  ;;  %v2495_v23 = vor.u32 %v3017_v13, %v2492_v14  ;;  %v2351_v34 = vor.u32 %v2981_v25, %v2348_v26 }
  0xb6   :  { %v2607_v30 = vor.u32 %v3045_v19, %v2604_v20  ;;  %v3106_v20 = vld [vmem:[%s4531_s3 + $0xb0] sm:$0xff] }
  0xb7   :  { %1577 = vmatpush.bf16.msra.mxu3 %v2431_v22  ;;  %1590 = vmatpush.bf16.msra.mxu2 %v2559_v61  ;;  %v4392_v22 = vld [vmem:[%s4530_s2] sm:$0xf]  ;;  %v2751_v61 = vor.u32 %v3081_v16, %v2748_v17 }
  0xb8   :  { %1604 = vmatpush.bf16.msra.mxu0 %v2671_v31  ;;  %v3077_v31 = vld [vmem:[%s4528_s1 + $0x60c] sm:$0xf]  ;;  %v227_v33 = vperm.slane %v4392_v22, 0  ;;  %v1350_v41 = vpop.f32.mrf.mxu2 }
  0xb9   :  { %1567 = vmatpush.bf16.msrb.mxu1 %v2255_v50 }
  0xba   :  { %v1273_v42 = vadd.f32 %v4282_v24, %v227_v33  ;;  %v3103_v33 = vld [vmem:[%s4531_s3 + $0x98] sm:$0xff] }
  0xbb   :  { %1578 = vmatpush.bf16.msra.mxu3 %v2415_v35  ;;  %1591 = vmatpush.bf16.msra.mxu2 %v2543_v40  ;;  %v2479_v35 = vor.u32 %v3013_v27, %v2476_v29  ;;  %v2735_v40 = vor.u32 %v3077_v31, %v2732_v32  ;;  %v3104_v31 = vld [vmem:[%s4531_s3 + $0xa0] sm:$0xff] }
  0xbc   :  { %1605 = vmatpush.bf16.msra.mxu0 %v2655_v46  ;;  %v3089_v46 = vld [vmem:[%s4531_s3 + $0x28] sm:$0xff] }
  0xbd   :  { %1568 = vmatpush.bf16.msrb.mxu1 %v2239_v5 }
  0xbf   :  { %1579 = vmatpush.bf16.msra.mxu3 %v2399_v52  ;;  %1592 = vmatpush.bf16.msra.mxu2 %v2527_v56  ;;  %v3096_v52 = vld [vmem:[%s4531_s3 + $0x60] sm:$0xff] }
  0xc0   :  { %1606 = vmatpush.bf16.msra.mxu0 %v2639_v2 }
  0xc1   :  { %1569 = vmatpush.bf16.msrb.mxu1 %v2223_v0  ;;  %v1337_v45 = vpop.f32.mrf.mxu1 }
  0xc2   :  { %v1324_v24 = vpop.f32.mrf.mxu0 }
  0xc3   :  { %1580 = vmatpush.bf16.msra.mxu3 %v2383_v6  ;;  %1593 = vmatpush.bf16.msra.mxu2 %v2511_v10  ;;  %v3092_v6 = vld [vmem:[%s4531_s3 + $0x40] sm:$0xff]  ;;  %v228_v10 = vperm.slane %v4392_v22, 1 }
  0xc4   :  { %1607 = vmatpush.bf16.msra.mxu0 %v2623_v15  ;;  %1570 = vmatmul.bf16.vlgmr.msrb.gmra.mxu1 %v3381_v54  ;;  %v1286_v54 = vadd.f32 %v4293_v28, %v1273_v42  ;;  %v3097_v28 = vld [vmem:[%s4531_s3 + $0x68] sm:$0xff] }
  0xc5   :  { %1620 = vmatpush.bf16.msra.mxu1 %v2751_v61  ;;  %v3105_v61 = vld [vmem:[%s4531_s3 + $0xa8] sm:$0xff] }
  0xc6   :  { %v3101_v42 = vld [vmem:[%s4531_s3 + $0x88] sm:$0xff] }
  0xc7   :  { %1581 = vmatpush.bf16.msra.mxu3 %v2367_v21  ;;  %1594 = vmatpush.bf16.msra.mxu2 %v2495_v23 }
  0xc8   :  { %1608 = vmatpush.bf16.msra.mxu0 %v2607_v30 }
  0xc9   :  { %1621 = vmatpush.bf16.msra.mxu1 %v2735_v40  ;;  %v1363_v50 = vpop.f32.mrf.mxu3  ;;  %v1339_v55 = vpop.f32.mrf.mxu1 }
  0xca   :  { %v1326_v53 = vpop.f32.mrf.mxu0  ;;  %v1364_v12 = vadd.f32 %v1363_v50, %v228_v10  ;;  %v3112_v50 = vld [vmem:[%s4531_s3 + $0xe0] sm:$0xff] }
  0xcb   :  { %1582 = vmatpush.bf16.msra.mxu3 %v2351_v34  ;;  %1595 = vmatpush.bf16.msra.mxu2 %v2479_v35 }
  0xcc   :  { %1609 = vmatmul.bf16.vlgmr.msra.gmra.mxu0 %v3600_v38  ;;  %v1352_v38 = vpop.f32.mrf.mxu2 }
  0xcd   :  { %1908 = vmatpush.bf16.msrb.mxu1 %v3099_v43  ;;  %v3114_v38 = vld [vmem:[%s4531_s3 + $0xf0] sm:$0xff] }
  0xce   :  { %1583 = vmatmul.bf16.vlgmr.msra.gmra.mxu3 %v3403_v62  ;;  %1596 = vmatmul.bf16.vlgmr.msra.gmra.mxu2 %v3598_v37  ;;  %v1299_v62 = vadd.f32 %v4310_v39, %v1286_v54  ;;  %v3088_v37 = vld [vmem:[%s4531_s3 + $0x20] sm:$0xff]  ;;  %v3087_v39 = vld [vmem:[%s4531_s3 + $0x18] sm:$0xff] }
  0xcf   :  { %1895 = vmatpush.bf16.msrb.mxu3 %v3091_v36  ;;  %1921 = vmatpush.bf16.msrb.mxu2 %v3107_v18  ;;  %v3102_v36 = vld [vmem:[%s4531_s3 + $0x90] sm:$0xff]  ;;  %v3100_v54 = vld [vmem:[%s4531_s3 + $0x80] sm:$0xff] }
  0xd0   :  { %v1312_v49 = vadd.f32 %v4327_v47, %v1299_v62  ;;  %v3086_v47 = vld [vmem:[%s4531_s3 + $0x10] sm:$0xff]  ;;  %v229_v62 = vperm.slane %v4392_v22, 2 }
  0xd1   :  { %1909 = vmatpush.bf16.msrb.mxu1 %v3098_v48  ;;  %v1365_v60 = vpop.f32.mrf.mxu3 }
  0xd2   :  { %v1325_v56 = vadd.f32 %v1324_v24, %v1312_v49  ;;  %v3113_v49 = vld [vmem:[%s4531_s3 + $0xe8] sm:$0xff] }
  0xd3   :  { %1896 = vmatpush.bf16.msrb.mxu3 %v3090_v44  ;;  %1922 = vmatpush.bf16.msrb.mxu2 %v3106_v20 }
  0xd4   :  { %2755 = vmatmul.msk.bf16.vlgmr.msra.gmra.mxu1 %vm1259_vm0, %v3510_v51  ;;  %v1376_v57 = vpop.f32.mrf.mxu2  ;;  %v1338_v59 = vadd.f32 %v1337_v45, %v1325_v56  ;;  %v3085_v51 = vld [vmem:[%s4531_s3 + $0x8] sm:$0xff]  ;;  %v3115_v45 = vld [vmem:[%s4531_s3 + $0xf8] sm:$0xff] }
  0xd5   :  { %1910 = vmatpush.bf16.msrb.mxu1 %v3097_v28  ;;  %v1377_v15 = vadd.f32 %v1376_v57, %v1364_v12  ;;  %1934 = vmatpush.bf16.msrb.mxu0 %v3115_v45  ;;  %v3111_v56 = vld [vmem:[%s4531_s3 + $0xd8] sm:$0xff] }
  0xd6   :  { %v1351_v1 = vadd.f32 %v1350_v41, %v1338_v59 }
  0xd7   :  { %1897 = vmatpush.bf16.msrb.mxu3 %v3089_v46  ;;  %1923 = vmatpush.bf16.msrb.mxu2 %v3105_v61 }
  0xd8   :  { %v1627_v5 = vmax.f32 %v1351_v1, 0.0 }
  0xd9   :  { %1911 = vmatpush.bf16.msrb.mxu1 %v3096_v52  ;;  %1935 = vmatpush.bf16.msrb.mxu0 %v3114_v38 }
  0xda   :  { %v1631_v7 = vpack.c.bf16 %v1627_v5, %v1627_v5  ;;  %v3108_v5 = vld [vmem:[%s4531_s3 + $0xc0] sm:$0xff] }
  0xdb   :  { %1898 = vmatpush.bf16.msrb.mxu3 %v3088_v37  ;;  %1924 = vmatpush.bf16.msrb.mxu2 %v3104_v31  ;;  %v3116_v31 = vld [vmem:[%s4532_s4] ss:$0 sm:$0xff] }
  0xdc   :  { %v1378_v2 = vpop.f32.mrf.mxu2 }
  0xdd   :  { %1912 = vmatpush.bf16.msrb.mxu1 %v3095_v58  ;;  %1936 = vmatpush.bf16.msrb.mxu0 %v3113_v49  ;;  %v3110_v58 = vld [vmem:[%s4531_s3 + $0xd0] sm:$0xff]  ;;  %v3109_v2 = vld [vmem:[%s4531_s3 + $0xc8] sm:$0xff] }
  0xdf   :  { %1899 = vmatpush.bf16.msrb.mxu3 %v3087_v39  ;;  %1925 = vmatpush.bf16.msrb.mxu2 %v3103_v33 }
  0xe1   :  { %1913 = vmatpush.bf16.msrb.mxu1 %v3094_v63  ;;  %v1402_v9 = vpop.f32.mrf.mxu1  ;;  %1937 = vmatpush.bf16.msrb.mxu0 %v3112_v50 }
  0xe2   :  { %v1389_v8 = vpop.f32.mrf.mxu0 }
  0xe3   :  { %1900 = vmatpush.bf16.msrb.mxu3 %v3086_v47  ;;  %v1390_v17 = vadd.f32 %v1389_v8, %v1377_v15  ;;  %1926 = vmatpush.bf16.msrb.mxu2 %v3102_v36 }
  0xe5   :  { %1914 = vmatpush.bf16.msrb.mxu1 %v3093_v4  ;;  %v1403_v0 = vadd.f32 %v1402_v9, %v1390_v17  ;;  %1938 = vmatpush.bf16.msrb.mxu0 %v3111_v56  ;;  %v230_v9 = vperm.slane %v4392_v22, 3 }
  0xe7   :  { %1901 = vmatpush.bf16.msrb.mxu3 %v3085_v51  ;;  %1927 = vmatpush.bf16.msrb.mxu2 %v3101_v42 }
  0xe9   :  { %1915 = vmatpush.bf16.msrb.mxu1 %v3092_v6  ;;  %v1415_v11 = vpop.f32.mrf.mxu3  ;;  %v1404_v14 = vpop.f32.mrf.mxu1  ;;  %1939 = vmatpush.bf16.msrb.mxu0 %v3110_v58 }
  0xea   :  { %v1391_v13 = vpop.f32.mrf.mxu0  ;;  %v1416_v21 = vadd.f32 %v1415_v11, %v1403_v0 }
  0xeb   :  { %1902 = vmatpush.bf16.msrb.mxu3 %v3084_v3  ;;  %1928 = vmatpush.bf16.msrb.mxu2 %v3100_v54 }
  0xed   :  { %1940 = vmatpush.bf16.msrb.mxu0 %v3109_v2 }
  0xee   :  { %1903 = vmatmul.bf16.vlgmr.msrb.gmra.mxu3 %v1631_v7 }
  0xf1   :  { %v1428_v16 = vpop.f32.mrf.mxu2  ;;  %v1417_v19 = vpop.f32.mrf.mxu3  ;;  %1941 = vmatpush.bf16.msrb.mxu0 %v3108_v5 }
  0xf2   :  { %v1429_v25 = vadd.f32 %v1428_v16, %v1416_v21 }
  0xf9   :  { %v1430_v23 = vpop.f32.mrf.mxu2  ;;  %v1441_v26 = vpop.f32.mrf.mxu3 }
  0xfa   :  { %v1442_v27 = vadd.f32 %v1441_v26, %v1429_v25 }
  0xfc   :  { %v1628_v29 = vmax.f32 %v1442_v27, 0.0 }
  0xfe   :  { %v1632_v30 = vpack.c.bf16 %v1628_v29, %v1628_v29 }
 0x100   :  { %1916 = vmatmul.bf16.vlgmr.msrb.gmra.mxu1 %v1632_v30 }
 0x101   :  { %v1443_v34 = vpop.f32.mrf.mxu3  ;;  %v1454_v35 = vpop.f32.mrf.mxu1 }
 0x102   :  { %v1480_v32 = vpop.f32.mrf.mxu0  ;;  %v1455_v28 = vadd.f32 %v1454_v35, %v229_v62 }
 0x109   :  { %v1456_v41 = vpop.f32.mrf.mxu1 }
 0x10a   :  { %v1482_v40 = vpop.f32.mrf.mxu0 }
 0x111   :  { %v1467_v43 = vpop.f32.mrf.mxu3  ;;  %v1493_v44 = vpop.f32.mrf.mxu2 }
 0x112   :  { %v1532_v24 = vpop.f32.mrf.mxu0  ;;  %v1468_v52 = vadd.f32 %v1467_v43, %v1455_v28 }
 0x114   :  { %v1481_v53 = vadd.f32 %v1480_v32, %v1468_v52 }
 0x116   :  { %v1494_v57 = vadd.f32 %v1493_v44, %v1481_v53 }
 0x119   :  { %v1469_v46 = vpop.f32.mrf.mxu3  ;;  %v1495_v48 = vpop.f32.mrf.mxu2 }
 0x11a   :  { %v1534_v37 = vpop.f32.mrf.mxu0 }
 0x121   :  { %v1506_v39 = vpop.f32.mrf.mxu1 }
 0x122   :  { %v1507_v59 = vadd.f32 %v1506_v39, %v1494_v57 }
 0x129   :  { %v1508_v47 = vpop.f32.mrf.mxu1 }
 0x12a   :  { %v1558_v55 = vpop.f32.mrf.mxu0 }
 0x131   :  { %v1519_v60 = vpop.f32.mrf.mxu3  ;;  %v1545_v51 = vpop.f32.mrf.mxu2 }
 0x132   :  { %v1520_v63 = vadd.f32 %v1519_v60, %v1507_v59  ;;  %v1560_v1 = vpop.f32.mrf.mxu0  ;;  %v1546_v11 = vadd.f32 %v1545_v51, %v230_v9 }
 0x134   :  { %v1533_v3 = vadd.f32 %v1532_v24, %v1520_v63  ;;  %v1559_v13 = vadd.f32 %v1558_v55, %v1546_v11 }
 0x136   :  { %v1629_v4 = vmax.f32 %v1533_v3, 0.0 }
 0x138   :  { %v1633_v6 = vpack.c.bf16 %v1629_v4, %v1629_v4 }
 0x139   :  { %v1521_v7 = vpop.f32.mrf.mxu3  ;;  %v1547_v8 = vpop.f32.mrf.mxu2 }
 0x13a   :  { %1929 = vmatmul.bf16.vlgmr.msrb.gmra.mxu2 %v1633_v6 }
 0x141   :  { %v1571_v10 = vpop.f32.mrf.mxu1 }
 0x142   :  { %v1572_v15 = vadd.f32 %v1571_v10, %v1559_v13 }
 0x149   :  { %v1610_v12 = vpop.f32.mrf.mxu0  ;;  %v1573_v14 = vpop.f32.mrf.mxu1 }
 0x151   :  { %v1584_v16 = vpop.f32.mrf.mxu3  ;;  %v1597_v18 = vpop.f32.mrf.mxu2 }
 0x152   :  { %v1585_v17 = vadd.f32 %v1584_v16, %v1572_v15  ;;  %v1612_v19 = vpop.f32.mrf.mxu0  ;;  %v1623_v21 = vpop.f32.mrf.mxu1 }
 0x154   :  { %v1598_v20 = vadd.f32 %v1597_v18, %v1585_v17 }
 0x156   :  { %v1611_v0 = vadd.f32 %v1610_v12, %v1598_v20 }
 0x158   :  { %v1624_v23 = vadd.f32 %v1623_v21, %v1611_v0 }
 0x159   :  { %v1586_v61 = vpop.f32.mrf.mxu3  ;;  %v1599_v26 = vpop.f32.mrf.mxu2 }
 0x15a   :  { %v1630_v25 = vmax.f32 %v1624_v23, 0.0  ;;  %v1625_v22 = vpop.f32.mrf.mxu1 }
 0x15c   :  { %v1634_v27 = vpack.c.bf16 %v1630_v25, %v1630_v25 }
 0x15e   :  { %1942 = vmatmul.bf16.vlgmr.msrb.gmra.mxu0 %v1634_v27 }
 0x171   :  { %v1904_v29 = vpop.f32.mrf.mxu3 }
 0x172   :  { %v1905_v32 = vadd.f32 %v3116_v31, %v1904_v29 }
 0x179   :  { %v1906_v30 = vpop.f32.mrf.mxu3 }
 0x17d   :  { %v1917_v33 = vpop.f32.mrf.mxu1 }
 0x17e   :  { %v1918_v34 = vadd.f32 %v1917_v33, %v1905_v32 }
 0x185   :  { %v1919_v35 = vpop.f32.mrf.mxu1 }
 0x1bd   :  { %v1930_v36 = vpop.f32.mrf.mxu2 }
 0x1be   :  { %v1931_v41 = vadd.f32 %v1930_v36, %v1918_v34 }
 0x1c5   :  { %v1932_v40 = vpop.f32.mrf.mxu2 }
 0x1db   :  { %v1943_v42 = vpop.f32.mrf.mxu0 }
 0x1dc   :  { %v1944_v43 = vadd.f32 %v1943_v42, %v1931_v41 }
 0x1de   :  { %1947 = vst [vmem:[%s4533_s5] sm:$0xff] %v1944_v43 }
 0x1e3   :  { %v1945_v44 = vpop.f32.mrf.mxu0 }

</bundles_post_ra>
